<compile_context>
chip_gen: v7x
topology: tpu7x:2x2x1
jax: 0.10.0
libtpu: 0.0.40
codegen_flags: <defaults>
</compile_context>

<pallas_src>
import functools

import jax
import jax.numpy as jnp
import numpy as np
from jax import lax
from jax.experimental import pallas as pl
from jax.experimental.pallas import tpu as pltpu

NEG_SLOPE = 0.2              # LeakyReLU slope
EPS = 1e-5                   # InstanceNorm2d default eps
MXU_DTYPE = jnp.bfloat16     # matmul operand dtype (f32 accumulation)
ACT_DTYPE = jnp.bfloat16     # intermediate activation storage dtype


# ---------------------------------------------------------------------------
# Fused Conv [+ bias] [+ InstanceNorm(affine)] [+ LeakyReLU] Pallas kernel
# ---------------------------------------------------------------------------
def _conv_in_lrelu_kernel(x_ref, w_ref, b_ref, g_ref, bt_ref, o_ref, acc_ref, *,
                          k, stride, Ho, Wo, Cin, Cout, do_inorm, do_leaky):
    """One sample of a fused conv layer.

    x_ref   : (1, Hp, Wp//stride, stride*Cin)  stride-folded padded input
    w_ref   : (k*k, Cin, Cout) bf16 weights, tap-major (kh, kw)
    b_ref   : (1, Cout) f32 bias (zeros when the layer has no bias)
    g_ref   : (1, Cout) f32 affine gamma (ones for non-IN layers)
    bt_ref  : (1, Cout) f32 affine beta  (zeros for non-IN layers)
    o_ref   : (1, Ho, Wo, Cout) layer output
    acc_ref : (1, Ho, Wo, Cout) f32 VMEM scratch holding the raw conv result
    """
    sw = stride

    def row_body(r, carry):
        # Shift-and-accumulate over the k*k taps.  Every slice is contiguous
        # because the W-stride was folded into the channel (lane) axis, and
        # the H offset is a plain dynamic index on an untiled dim.
        acc = jnp.zeros((Wo, Cout), jnp.float32)
        for i in range(k):
            row = r * stride + i                       # padded-input row of tap i
            for j in range(k):
                win = x_ref[0, row,
                            pl.ds(j // sw, Wo),
                            pl.ds((j % sw) * Cin, Cin)]          # (Wo, Cin)
                acc = acc + jnp.dot(win.astype(MXU_DTYPE),       # bf16 MXU
                                    w_ref[i * k + j],
                                    preferred_element_type=jnp.float32)
        acc_ref[0, r] = acc
        return carry

    lax.fori_loop(0, Ho, row_body, 0)

    # Epilogue (all f32): bias + InstanceNorm stats/normalize + affine + leaky,
    # fused so the conv result never leaves VMEM before normalization.
    y = acc_ref[...] + b_ref[...]                                # (1, Ho, Wo, Cout)
    if do_inorm:
        inv_hw = 1.0 / float(Ho * Wo)
        mean = jnp.sum(jnp.sum(y, axis=2, keepdims=True),
                       axis=1, keepdims=True) * inv_hw
        d = y - mean
        var = jnp.sum(jnp.sum(d * d, axis=2, keepdims=True),
                      axis=1, keepdims=True) * inv_hw
        y = d * lax.rsqrt(var + EPS)
    y = y * g_ref[...] + bt_ref[...]        # identity (gamma=1, beta=0) if no IN
    if do_leaky:
        y = jnp.where(y >= 0, y, NEG_SLOPE * y)
    o_ref[...] = y.astype(o_ref.dtype)


def reflect_pad(x, p):
    if p == 0:
        return x
    return jnp.pad(x, ((0, 0), (p, p), (p, p), (0, 0)), mode="reflect")


def conv_in_lrelu(x, w, bias, gamma, beta, *, stride, padding, do_inorm,
                  do_leaky, out_dtype):
    """Fused conv layer.  x: [N,H,W,Cin] (f32 or bf16); w: [k,k,Cin,Cout]."""
    N, H, W, Cin = x.shape
    k = w.shape[0]
    Cout = w.shape[3]

    x = reflect_pad(x, padding)
    H, W = H + 2 * padding, W + 2 * padding
    Ho = (H - k) // stride + 1
    Wo = (W - k) // stride + 1

    # Make W divisible by the stride so the stride can be folded into the
    # channel axis with a free reshape; the padded column is never read.
    if W % stride:
        extra = stride - W % stride
        x = jnp.pad(x, ((0, 0), (0, 0), (0, extra), (0, 0)))
        W += extra
    xf = x.reshape(N, H, W // stride, stride * Cin)      # free reshape (no copy)

    wf = w.reshape(k * k, Cin, Cout).astype(MXU_DTYPE)   # bf16 MXU operands

    def vec(v, default):
        v = default if v is None else v
        return jnp.asarray(v, jnp.float32).reshape(1, Cout)

    b = vec(bias, jnp.zeros((Cout,), jnp.float32))
    g = vec(gamma, jnp.ones((Cout,), jnp.float32))
    bt = vec(beta, jnp.zeros((Cout,), jnp.float32))

    kernel = functools.partial(
        _conv_in_lrelu_kernel, k=k, stride=stride, Ho=Ho, Wo=Wo,
        Cin=Cin, Cout=Cout, do_inorm=do_inorm, do_leaky=do_leaky)

    return pl.pallas_call(
        kernel,
        out_shape=jax.ShapeDtypeStruct((N, Ho, Wo, Cout), out_dtype),
        grid=(N,),
        in_specs=[
            pl.BlockSpec((1, H, W // stride, stride * Cin), lambda n: (n, 0, 0, 0)),
            pl.BlockSpec((k * k, Cin, Cout), lambda n: (0, 0, 0)),
            pl.BlockSpec((1, Cout), lambda n: (0, 0)),
            pl.BlockSpec((1, Cout), lambda n: (0, 0)),
            pl.BlockSpec((1, Cout), lambda n: (0, 0)),
        ],
        out_specs=pl.BlockSpec((1, Ho, Wo, Cout), lambda n: (n, 0, 0, 0)),
        scratch_shapes=[pltpu.VMEM((1, Ho, Wo, Cout), jnp.float32)],
        compiler_params=pltpu.CompilerParams(dimension_semantics=("parallel",)),
    )(xf, wf, b, g, bt)


# ---------------------------------------------------------------------------
# Discriminator: params + forward
# ---------------------------------------------------------------------------
def init_params(key, in_channels, features):
    keys = iter(jax.random.split(key, 4 + 3 * len(features)))

    def rnd(shape, scale=0.05):
        return jax.random.normal(next(keys), shape, jnp.float32) * scale

    params = {
        "init_w": rnd((4, 4, in_channels * 2, features[0])),
        "init_b": rnd((features[0],)),
        "blocks": [],
    }
    cin = features[0]
    for feat in features[1:]:
        params["blocks"].append({
            "w": rnd((4, 4, cin, feat)),
            "gamma": 1.0 + rnd((feat,)),
            "beta": rnd((feat,)),
        })
        cin = feat
    params["final_w"] = rnd((4, 4, cin, 1))
    params["final_b"] = rnd((1,))
    return params


def discriminator_forward(params, x, y):
    h = jnp.concatenate([x, y], axis=-1)
    # initial: Conv(k4 s2 p1 reflect, bias) + LeakyReLU
    h = conv_in_lrelu(h, params["init_w"], params["init_b"], None, None,
                      stride=2, padding=1, do_inorm=False, do_leaky=True,
                      out_dtype=ACT_DTYPE)
    # CNNBlocks: Conv(k4, stride, p0, no bias) + InstanceNorm(affine) + LeakyReLU
    nblk = len(params["blocks"])
    for bi, blk in enumerate(params["blocks"]):
        stride = 1 if bi == nblk - 1 else 2
        h = conv_in_lrelu(h, blk["w"], None, blk["gamma"], blk["beta"],
                          stride=stride, padding=0, do_inorm=True, do_leaky=True,
                          out_dtype=ACT_DTYPE)
    # final: Conv(k4 s1 p1 reflect, bias), no activation, f32 output
    return conv_in_lrelu(h, params["final_w"], params["final_b"], None, None,
                         stride=1, padding=1, do_inorm=False, do_leaky=False,
                         out_dtype=jnp.float32)


# ---------------------------------------------------------------------------
# Pure-JAX f32 reference (for correctness check)
# ---------------------------------------------------------------------------
def _leaky(x):
    return jnp.where(x >= 0, x, NEG_SLOPE * x)


def _conv_ref(x, w, bias, *, stride, padding):
    xp = reflect_pad(x, padding)
    out = lax.conv_general_dilated(
        xp, w, window_strides=(stride, stride), padding="VALID",
        dimension_numbers=("NHWC", "HWIO", "NHWC"),
        precision=lax.Precision.HIGHEST)
    return out if bias is None else out + bias


def discriminator_ref(params, x, y):
    h = jnp.concatenate([x, y], axis=-1)
    h = _leaky(_conv_ref(h, params["init_w"], params["init_b"], stride=2, padding=1))
    nblk = len(params["blocks"])
    for bi, blk in enumerate(params["blocks"]):
        stride = 1 if bi == nblk - 1 else 2
        h = _conv_ref(h, blk["w"], None, stride=stride, padding=0)
        mean = jnp.mean(h, axis=(1, 2), keepdims=True)
        var = jnp.mean(jnp.square(h - mean), axis=(1, 2), keepdims=True)
        h = _leaky((h - mean) * lax.rsqrt(var + EPS) * blk["gamma"] + blk["beta"])
    return _conv_ref(h, params["final_w"], params["final_b"], stride=1, padding=1)


# ---------------------------------------------------------------------------
if __name__ == "__main__":
    key = jax.random.PRNGKey(0)
    kp, kx, ky = jax.random.split(key, 3)

    in_channels = 3
    features = (8, 16, 32, 64)     # scaled-down analogue of [64, 128, 256, 512]
    N, H, W = 2, 64, 64            # small spatial size; NHWC inputs

    params = init_params(kp, in_channels, features)
    x = jax.random.normal(kx, (N, H, W, in_channels), jnp.float32)
    y = jax.random.normal(ky, (N, H, W, in_channels), jnp.float32)

    fwd = jax.jit(discriminator_forward)
    out = jax.block_until_ready(fwd(params, x, y))

    ref = discriminator_ref(params, x, y)
    # Tolerance accounts for bf16 MXU operands + bf16 intermediate activations
    # (per perf review) versus the pure-f32 HIGHEST-precision reference.
    np.testing.assert_allclose(np.asarray(out), np.asarray(ref),
                               rtol=3e-2, atol=3e-2)
    assert out.shape == (N, 2, 2, 1), out.shape

    print("KERNEL_OK")
</pallas_src>

<mosaic_0001>
module attributes {stable_mosaic.version = 11 : i64} {
  func.func @_conv_in_lrelu_kernel(%arg0: i32, %arg1: memref<1x66x33x12xf32, #tpu.memory_space<vmem>>, %arg2: memref<16x6x8xbf16, #tpu.memory_space<vmem>>, %arg3: memref<1x8xf32, #tpu.memory_space<vmem>>, %arg4: memref<1x8xf32, #tpu.memory_space<vmem>>, %arg5: memref<1x8xf32, #tpu.memory_space<vmem>>, %arg6: memref<1x32x32x8xbf16, #tpu.memory_space<vmem>>, %arg7: memref<1x32x32x8xf32, #tpu.memory_space<vmem>>) attributes {dimension_semantics = [#tpu.dimension_semantics<parallel>], iteration_bounds = array<i64: 2>, scalar_prefetch = 0 : i64, scratch_operands = 1 : i64, tpu.core_type = #tpu.core_type<tc>, window_params = [{transform_indices = @transform_0, window_bounds = array<i64: 1, 66, 33, 12>}, {pipeline_mode = #tpu.pipeline_mode<synchronous>, transform_indices = @transform_1, window_bounds = array<i64: 16, 6, 8>}, {pipeline_mode = #tpu.pipeline_mode<synchronous>, transform_indices = @transform_2, window_bounds = array<i64: 1, 8>}, {pipeline_mode = #tpu.pipeline_mode<synchronous>, transform_indices = @transform_3, window_bounds = array<i64: 1, 8>}, {pipeline_mode = #tpu.pipeline_mode<synchronous>, transform_indices = @transform_4, window_bounds = array<i64: 1, 8>}, {transform_indices = @transform_5, window_bounds = array<i64: 1, 32, 32, 8>}]} {
    %c0_i32 = arith.constant 0 : i32
    %c32_i32 = arith.constant 32 : i32
    %0 = arith.addi %c0_i32, %c32_i32 : i32
    %c1_i32 = arith.constant 1 : i32
    scf.for %arg8 = %c0_i32 to %0 step %c1_i32  : i32 {
      %cst_15 = arith.constant 0.000000e+00 : f32
      %21 = vector.broadcast %cst_15 : f32 to vector<32x8xf32>
      %c2_i32 = arith.constant 2 : i32
      %22 = arith.muli %arg8, %c2_i32 : i32
      %c0_i32_16 = arith.constant 0 : i32
      %23 = arith.addi %22, %c0_i32_16 : i32
      %c0_17 = arith.constant 0 : index
      %24 = arith.index_cast %23 : i32 to index
      %c0_18 = arith.constant 0 : index
      %c0_19 = arith.constant 0 : index
      %25 = vector.load %arg1[%c0_17, %24, %c0_18, %c0_19] : memref<1x66x33x12xf32, #tpu.memory_space<vmem>>, vector<1x1x32x6xf32>
      %26 = vector.shape_cast %25 : vector<1x1x32x6xf32> to vector<32x6xf32>
      %27 = arith.truncf %26 : vector<32x6xf32> to vector<32x6xbf16>
      %c0_20 = arith.constant 0 : index
      %c0_21 = arith.constant 0 : index
      %c0_22 = arith.constant 0 : index
      %28 = vector.load %arg2[%c0_20, %c0_21, %c0_22] : memref<16x6x8xbf16, #tpu.memory_space<vmem>>, vector<1x6x8xbf16>
      %29 = vector.shape_cast %28 : vector<1x6x8xbf16> to vector<6x8xbf16>
      %cst_23 = arith.constant dense<0.000000e+00> : vector<32x8xf32>
      %30 = tpu.matmul %27, %29, %cst_23 {dimension_numbers = #tpu.dot_dimension_numbers<[1], [0], [0], [1], [0, 0, 1, 1], [], []>} : vector<32x6xbf16>, vector<6x8xbf16>, vector<32x8xf32> -> vector<32x8xf32>
      %31 = arith.addf %21, %30 : vector<32x8xf32>
      %c0_24 = arith.constant 0 : index
      %32 = arith.index_cast %23 : i32 to index
      %c0_25 = arith.constant 0 : index
      %c6 = arith.constant 6 : index
      %33 = vector.load %arg1[%c0_24, %32, %c0_25, %c6] : memref<1x66x33x12xf32, #tpu.memory_space<vmem>>, vector<1x1x32x6xf32>
      %34 = vector.shape_cast %33 : vector<1x1x32x6xf32> to vector<32x6xf32>
      %35 = arith.truncf %34 : vector<32x6xf32> to vector<32x6xbf16>
      %c1 = arith.constant 1 : index
      %c0_26 = arith.constant 0 : index
      %c0_27 = arith.constant 0 : index
      %36 = vector.load %arg2[%c1, %c0_26, %c0_27] : memref<16x6x8xbf16, #tpu.memory_space<vmem>>, vector<1x6x8xbf16>
      %37 = vector.shape_cast %36 : vector<1x6x8xbf16> to vector<6x8xbf16>
      %cst_28 = arith.constant dense<0.000000e+00> : vector<32x8xf32>
      %38 = tpu.matmul %35, %37, %cst_28 {dimension_numbers = #tpu.dot_dimension_numbers<[1], [0], [0], [1], [0, 0, 1, 1], [], []>} : vector<32x6xbf16>, vector<6x8xbf16>, vector<32x8xf32> -> vector<32x8xf32>
      %39 = arith.addf %31, %38 : vector<32x8xf32>
      %c0_29 = arith.constant 0 : index
      %40 = arith.index_cast %23 : i32 to index
      %c1_30 = arith.constant 1 : index
      %c0_31 = arith.constant 0 : index
      %41 = vector.load %arg1[%c0_29, %40, %c1_30, %c0_31] : memref<1x66x33x12xf32, #tpu.memory_space<vmem>>, vector<1x1x32x6xf32>
      %42 = vector.shape_cast %41 : vector<1x1x32x6xf32> to vector<32x6xf32>
      %43 = arith.truncf %42 : vector<32x6xf32> to vector<32x6xbf16>
      %c2 = arith.constant 2 : index
      %c0_32 = arith.constant 0 : index
      %c0_33 = arith.constant 0 : index
      %44 = vector.load %arg2[%c2, %c0_32, %c0_33] : memref<16x6x8xbf16, #tpu.memory_space<vmem>>, vector<1x6x8xbf16>
      %45 = vector.shape_cast %44 : vector<1x6x8xbf16> to vector<6x8xbf16>
      %cst_34 = arith.constant dense<0.000000e+00> : vector<32x8xf32>
      %46 = tpu.matmul %43, %45, %cst_34 {dimension_numbers = #tpu.dot_dimension_numbers<[1], [0], [0], [1], [0, 0, 1, 1], [], []>} : vector<32x6xbf16>, vector<6x8xbf16>, vector<32x8xf32> -> vector<32x8xf32>
      %47 = arith.addf %39, %46 : vector<32x8xf32>
      %c0_35 = arith.constant 0 : index
      %48 = arith.index_cast %23 : i32 to index
      %c1_36 = arith.constant 1 : index
      %c6_37 = arith.constant 6 : index
      %49 = vector.load %arg1[%c0_35, %48, %c1_36, %c6_37] : memref<1x66x33x12xf32, #tpu.memory_space<vmem>>, vector<1x1x32x6xf32>
      %50 = vector.shape_cast %49 : vector<1x1x32x6xf32> to vector<32x6xf32>
      %51 = arith.truncf %50 : vector<32x6xf32> to vector<32x6xbf16>
      %c3 = arith.constant 3 : index
      %c0_38 = arith.constant 0 : index
      %c0_39 = arith.constant 0 : index
      %52 = vector.load %arg2[%c3, %c0_38, %c0_39] : memref<16x6x8xbf16, #tpu.memory_space<vmem>>, vector<1x6x8xbf16>
      %53 = vector.shape_cast %52 : vector<1x6x8xbf16> to vector<6x8xbf16>
      %cst_40 = arith.constant dense<0.000000e+00> : vector<32x8xf32>
      %54 = tpu.matmul %51, %53, %cst_40 {dimension_numbers = #tpu.dot_dimension_numbers<[1], [0], [0], [1], [0, 0, 1, 1], [], []>} : vector<32x6xbf16>, vector<6x8xbf16>, vector<32x8xf32> -> vector<32x8xf32>
      %55 = arith.addf %47, %54 : vector<32x8xf32>
      %c2_i32_41 = arith.constant 2 : i32
      %56 = arith.muli %arg8, %c2_i32_41 : i32
      %c1_i32_42 = arith.constant 1 : i32
      %57 = arith.addi %56, %c1_i32_42 : i32
      %c0_43 = arith.constant 0 : index
      %58 = arith.index_cast %57 : i32 to index
      %c0_44 = arith.constant 0 : index
      %c0_45 = arith.constant 0 : index
      %59 = vector.load %arg1[%c0_43, %58, %c0_44, %c0_45] : memref<1x66x33x12xf32, #tpu.memory_space<vmem>>, vector<1x1x32x6xf32>
      %60 = vector.shape_cast %59 : vector<1x1x32x6xf32> to vector<32x6xf32>
      %61 = arith.truncf %60 : vector<32x6xf32> to vector<32x6xbf16>
      %c4 = arith.constant 4 : index
      %c0_46 = arith.constant 0 : index
      %c0_47 = arith.constant 0 : index
      %62 = vector.load %arg2[%c4, %c0_46, %c0_47] : memref<16x6x8xbf16, #tpu.memory_space<vmem>>, vector<1x6x8xbf16>
      %63 = vector.shape_cast %62 : vector<1x6x8xbf16> to vector<6x8xbf16>
      %cst_48 = arith.constant dense<0.000000e+00> : vector<32x8xf32>
      %64 = tpu.matmul %61, %63, %cst_48 {dimension_numbers = #tpu.dot_dimension_numbers<[1], [0], [0], [1], [0, 0, 1, 1], [], []>} : vector<32x6xbf16>, vector<6x8xbf16>, vector<32x8xf32> -> vector<32x8xf32>
      %65 = arith.addf %55, %64 : vector<32x8xf32>
      %c0_49 = arith.constant 0 : index
      %66 = arith.index_cast %57 : i32 to index
      %c0_50 = arith.constant 0 : index
      %c6_51 = arith.constant 6 : index
      %67 = vector.load %arg1[%c0_49, %66, %c0_50, %c6_51] : memref<1x66x33x12xf32, #tpu.memory_space<vmem>>, vector<1x1x32x6xf32>
      %68 = vector.shape_cast %67 : vector<1x1x32x6xf32> to vector<32x6xf32>
      %69 = arith.truncf %68 : vector<32x6xf32> to vector<32x6xbf16>
      %c5 = arith.constant 5 : index
      %c0_52 = arith.constant 0 : index
      %c0_53 = arith.constant 0 : index
      %70 = vector.load %arg2[%c5, %c0_52, %c0_53] : memref<16x6x8xbf16, #tpu.memory_space<vmem>>, vector<1x6x8xbf16>
      %71 = vector.shape_cast %70 : vector<1x6x8xbf16> to vector<6x8xbf16>
      %cst_54 = arith.constant dense<0.000000e+00> : vector<32x8xf32>
      %72 = tpu.matmul %69, %71, %cst_54 {dimension_numbers = #tpu.dot_dimension_numbers<[1], [0], [0], [1], [0, 0, 1, 1], [], []>} : vector<32x6xbf16>, vector<6x8xbf16>, vector<32x8xf32> -> vector<32x8xf32>
      %73 = arith.addf %65, %72 : vector<32x8xf32>
      %c0_55 = arith.constant 0 : index
      %74 = arith.index_cast %57 : i32 to index
      %c1_56 = arith.constant 1 : index
      %c0_57 = arith.constant 0 : index
      %75 = vector.load %arg1[%c0_55, %74, %c1_56, %c0_57] : memref<1x66x33x12xf32, #tpu.memory_space<vmem>>, vector<1x1x32x6xf32>
      %76 = vector.shape_cast %75 : vector<1x1x32x6xf32> to vector<32x6xf32>
      %77 = arith.truncf %76 : vector<32x6xf32> to vector<32x6xbf16>
      %c6_58 = arith.constant 6 : index
      %c0_59 = arith.constant 0 : index
      %c0_60 = arith.constant 0 : index
      %78 = vector.load %arg2[%c6_58, %c0_59, %c0_60] : memref<16x6x8xbf16, #tpu.memory_space<vmem>>, vector<1x6x8xbf16>
      %79 = vector.shape_cast %78 : vector<1x6x8xbf16> to vector<6x8xbf16>
      %cst_61 = arith.constant dense<0.000000e+00> : vector<32x8xf32>
      %80 = tpu.matmul %77, %79, %cst_61 {dimension_numbers = #tpu.dot_dimension_numbers<[1], [0], [0], [1], [0, 0, 1, 1], [], []>} : vector<32x6xbf16>, vector<6x8xbf16>, vector<32x8xf32> -> vector<32x8xf32>
      %81 = arith.addf %73, %80 : vector<32x8xf32>
      %c0_62 = arith.constant 0 : index
      %82 = arith.index_cast %57 : i32 to index
      %c1_63 = arith.constant 1 : index
      %c6_64 = arith.constant 6 : index
      %83 = vector.load %arg1[%c0_62, %82, %c1_63, %c6_64] : memref<1x66x33x12xf32, #tpu.memory_space<vmem>>, vector<1x1x32x6xf32>
      %84 = vector.shape_cast %83 : vector<1x1x32x6xf32> to vector<32x6xf32>
      %85 = arith.truncf %84 : vector<32x6xf32> to vector<32x6xbf16>
      %c7 = arith.constant 7 : index
      %c0_65 = arith.constant 0 : index
      %c0_66 = arith.constant 0 : index
      %86 = vector.load %arg2[%c7, %c0_65, %c0_66] : memref<16x6x8xbf16, #tpu.memory_space<vmem>>, vector<1x6x8xbf16>
      %87 = vector.shape_cast %86 : vector<1x6x8xbf16> to vector<6x8xbf16>
      %cst_67 = arith.constant dense<0.000000e+00> : vector<32x8xf32>
      %88 = tpu.matmul %85, %87, %cst_67 {dimension_numbers = #tpu.dot_dimension_numbers<[1], [0], [0], [1], [0, 0, 1, 1], [], []>} : vector<32x6xbf16>, vector<6x8xbf16>, vector<32x8xf32> -> vector<32x8xf32>
      %89 = arith.addf %81, %88 : vector<32x8xf32>
      %c2_i32_68 = arith.constant 2 : i32
      %90 = arith.muli %arg8, %c2_i32_68 : i32
      %c2_i32_69 = arith.constant 2 : i32
      %91 = arith.addi %90, %c2_i32_69 : i32
      %c0_70 = arith.constant 0 : index
      %92 = arith.index_cast %91 : i32 to index
      %c0_71 = arith.constant 0 : index
      %c0_72 = arith.constant 0 : index
      %93 = vector.load %arg1[%c0_70, %92, %c0_71, %c0_72] : memref<1x66x33x12xf32, #tpu.memory_space<vmem>>, vector<1x1x32x6xf32>
      %94 = vector.shape_cast %93 : vector<1x1x32x6xf32> to vector<32x6xf32>
      %95 = arith.truncf %94 : vector<32x6xf32> to vector<32x6xbf16>
      %c8 = arith.constant 8 : index
      %c0_73 = arith.constant 0 : index
      %c0_74 = arith.constant 0 : index
      %96 = vector.load %arg2[%c8, %c0_73, %c0_74] : memref<16x6x8xbf16, #tpu.memory_space<vmem>>, vector<1x6x8xbf16>
      %97 = vector.shape_cast %96 : vector<1x6x8xbf16> to vector<6x8xbf16>
      %cst_75 = arith.constant dense<0.000000e+00> : vector<32x8xf32>
      %98 = tpu.matmul %95, %97, %cst_75 {dimension_numbers = #tpu.dot_dimension_numbers<[1], [0], [0], [1], [0, 0, 1, 1], [], []>} : vector<32x6xbf16>, vector<6x8xbf16>, vector<32x8xf32> -> vector<32x8xf32>
      %99 = arith.addf %89, %98 : vector<32x8xf32>
      %c0_76 = arith.constant 0 : index
      %100 = arith.index_cast %91 : i32 to index
      %c0_77 = arith.constant 0 : index
      %c6_78 = arith.constant 6 : index
      %101 = vector.load %arg1[%c0_76, %100, %c0_77, %c6_78] : memref<1x66x33x12xf32, #tpu.memory_space<vmem>>, vector<1x1x32x6xf32>
      %102 = vector.shape_cast %101 : vector<1x1x32x6xf32> to vector<32x6xf32>
      %103 = arith.truncf %102 : vector<32x6xf32> to vector<32x6xbf16>
      %c9 = arith.constant 9 : index
      %c0_79 = arith.constant 0 : index
      %c0_80 = arith.constant 0 : index
      %104 = vector.load %arg2[%c9, %c0_79, %c0_80] : memref<16x6x8xbf16, #tpu.memory_space<vmem>>, vector<1x6x8xbf16>
      %105 = vector.shape_cast %104 : vector<1x6x8xbf16> to vector<6x8xbf16>
      %cst_81 = arith.constant dense<0.000000e+00> : vector<32x8xf32>
      %106 = tpu.matmul %103, %105, %cst_81 {dimension_numbers = #tpu.dot_dimension_numbers<[1], [0], [0], [1], [0, 0, 1, 1], [], []>} : vector<32x6xbf16>, vector<6x8xbf16>, vector<32x8xf32> -> vector<32x8xf32>
      %107 = arith.addf %99, %106 : vector<32x8xf32>
      %c0_82 = arith.constant 0 : index
      %108 = arith.index_cast %91 : i32 to index
      %c1_83 = arith.constant 1 : index
      %c0_84 = arith.constant 0 : index
      %109 = vector.load %arg1[%c0_82, %108, %c1_83, %c0_84] : memref<1x66x33x12xf32, #tpu.memory_space<vmem>>, vector<1x1x32x6xf32>
      %110 = vector.shape_cast %109 : vector<1x1x32x6xf32> to vector<32x6xf32>
      %111 = arith.truncf %110 : vector<32x6xf32> to vector<32x6xbf16>
      %c10 = arith.constant 10 : index
      %c0_85 = arith.constant 0 : index
      %c0_86 = arith.constant 0 : index
      %112 = vector.load %arg2[%c10, %c0_85, %c0_86] : memref<16x6x8xbf16, #tpu.memory_space<vmem>>, vector<1x6x8xbf16>
      %113 = vector.shape_cast %112 : vector<1x6x8xbf16> to vector<6x8xbf16>
      %cst_87 = arith.constant dense<0.000000e+00> : vector<32x8xf32>
      %114 = tpu.matmul %111, %113, %cst_87 {dimension_numbers = #tpu.dot_dimension_numbers<[1], [0], [0], [1], [0, 0, 1, 1], [], []>} : vector<32x6xbf16>, vector<6x8xbf16>, vector<32x8xf32> -> vector<32x8xf32>
      %115 = arith.addf %107, %114 : vector<32x8xf32>
      %c0_88 = arith.constant 0 : index
      %116 = arith.index_cast %91 : i32 to index
      %c1_89 = arith.constant 1 : index
      %c6_90 = arith.constant 6 : index
      %117 = vector.load %arg1[%c0_88, %116, %c1_89, %c6_90] : memref<1x66x33x12xf32, #tpu.memory_space<vmem>>, vector<1x1x32x6xf32>
      %118 = vector.shape_cast %117 : vector<1x1x32x6xf32> to vector<32x6xf32>
      %119 = arith.truncf %118 : vector<32x6xf32> to vector<32x6xbf16>
      %c11 = arith.constant 11 : index
      %c0_91 = arith.constant 0 : index
      %c0_92 = arith.constant 0 : index
      %120 = vector.load %arg2[%c11, %c0_91, %c0_92] : memref<16x6x8xbf16, #tpu.memory_space<vmem>>, vector<1x6x8xbf16>
      %121 = vector.shape_cast %120 : vector<1x6x8xbf16> to vector<6x8xbf16>
      %cst_93 = arith.constant dense<0.000000e+00> : vector<32x8xf32>
      %122 = tpu.matmul %119, %121, %cst_93 {dimension_numbers = #tpu.dot_dimension_numbers<[1], [0], [0], [1], [0, 0, 1, 1], [], []>} : vector<32x6xbf16>, vector<6x8xbf16>, vector<32x8xf32> -> vector<32x8xf32>
      %123 = arith.addf %115, %122 : vector<32x8xf32>
      %c2_i32_94 = arith.constant 2 : i32
      %124 = arith.muli %arg8, %c2_i32_94 : i32
      %c3_i32 = arith.constant 3 : i32
      %125 = arith.addi %124, %c3_i32 : i32
      %c0_95 = arith.constant 0 : index
      %126 = arith.index_cast %125 : i32 to index
      %c0_96 = arith.constant 0 : index
      %c0_97 = arith.constant 0 : index
      %127 = vector.load %arg1[%c0_95, %126, %c0_96, %c0_97] : memref<1x66x33x12xf32, #tpu.memory_space<vmem>>, vector<1x1x32x6xf32>
      %128 = vector.shape_cast %127 : vector<1x1x32x6xf32> to vector<32x6xf32>
      %129 = arith.truncf %128 : vector<32x6xf32> to vector<32x6xbf16>
      %c12 = arith.constant 12 : index
      %c0_98 = arith.constant 0 : index
      %c0_99 = arith.constant 0 : index
      %130 = vector.load %arg2[%c12, %c0_98, %c0_99] : memref<16x6x8xbf16, #tpu.memory_space<vmem>>, vector<1x6x8xbf16>
      %131 = vector.shape_cast %130 : vector<1x6x8xbf16> to vector<6x8xbf16>
      %cst_100 = arith.constant dense<0.000000e+00> : vector<32x8xf32>
      %132 = tpu.matmul %129, %131, %cst_100 {dimension_numbers = #tpu.dot_dimension_numbers<[1], [0], [0], [1], [0, 0, 1, 1], [], []>} : vector<32x6xbf16>, vector<6x8xbf16>, vector<32x8xf32> -> vector<32x8xf32>
      %133 = arith.addf %123, %132 : vector<32x8xf32>
      %c0_101 = arith.constant 0 : index
      %134 = arith.index_cast %125 : i32 to index
      %c0_102 = arith.constant 0 : index
      %c6_103 = arith.constant 6 : index
      %135 = vector.load %arg1[%c0_101, %134, %c0_102, %c6_103] : memref<1x66x33x12xf32, #tpu.memory_space<vmem>>, vector<1x1x32x6xf32>
      %136 = vector.shape_cast %135 : vector<1x1x32x6xf32> to vector<32x6xf32>
      %137 = arith.truncf %136 : vector<32x6xf32> to vector<32x6xbf16>
      %c13 = arith.constant 13 : index
      %c0_104 = arith.constant 0 : index
      %c0_105 = arith.constant 0 : index
      %138 = vector.load %arg2[%c13, %c0_104, %c0_105] : memref<16x6x8xbf16, #tpu.memory_space<vmem>>, vector<1x6x8xbf16>
      %139 = vector.shape_cast %138 : vector<1x6x8xbf16> to vector<6x8xbf16>
      %cst_106 = arith.constant dense<0.000000e+00> : vector<32x8xf32>
      %140 = tpu.matmul %137, %139, %cst_106 {dimension_numbers = #tpu.dot_dimension_numbers<[1], [0], [0], [1], [0, 0, 1, 1], [], []>} : vector<32x6xbf16>, vector<6x8xbf16>, vector<32x8xf32> -> vector<32x8xf32>
      %141 = arith.addf %133, %140 : vector<32x8xf32>
      %c0_107 = arith.constant 0 : index
      %142 = arith.index_cast %125 : i32 to index
      %c1_108 = arith.constant 1 : index
      %c0_109 = arith.constant 0 : index
      %143 = vector.load %arg1[%c0_107, %142, %c1_108, %c0_109] : memref<1x66x33x12xf32, #tpu.memory_space<vmem>>, vector<1x1x32x6xf32>
      %144 = vector.shape_cast %143 : vector<1x1x32x6xf32> to vector<32x6xf32>
      %145 = arith.truncf %144 : vector<32x6xf32> to vector<32x6xbf16>
      %c14 = arith.constant 14 : index
      %c0_110 = arith.constant 0 : index
      %c0_111 = arith.constant 0 : index
      %146 = vector.load %arg2[%c14, %c0_110, %c0_111] : memref<16x6x8xbf16, #tpu.memory_space<vmem>>, vector<1x6x8xbf16>
      %147 = vector.shape_cast %146 : vector<1x6x8xbf16> to vector<6x8xbf16>
      %cst_112 = arith.constant dense<0.000000e+00> : vector<32x8xf32>
      %148 = tpu.matmul %145, %147, %cst_112 {dimension_numbers = #tpu.dot_dimension_numbers<[1], [0], [0], [1], [0, 0, 1, 1], [], []>} : vector<32x6xbf16>, vector<6x8xbf16>, vector<32x8xf32> -> vector<32x8xf32>
      %149 = arith.addf %141, %148 : vector<32x8xf32>
      %c0_113 = arith.constant 0 : index
      %150 = arith.index_cast %125 : i32 to index
      %c1_114 = arith.constant 1 : index
      %c6_115 = arith.constant 6 : index
      %151 = vector.load %arg1[%c0_113, %150, %c1_114, %c6_115] : memref<1x66x33x12xf32, #tpu.memory_space<vmem>>, vector<1x1x32x6xf32>
      %152 = vector.shape_cast %151 : vector<1x1x32x6xf32> to vector<32x6xf32>
      %153 = arith.truncf %152 : vector<32x6xf32> to vector<32x6xbf16>
      %c15 = arith.constant 15 : index
      %c0_116 = arith.constant 0 : index
      %c0_117 = arith.constant 0 : index
      %154 = vector.load %arg2[%c15, %c0_116, %c0_117] : memref<16x6x8xbf16, #tpu.memory_space<vmem>>, vector<1x6x8xbf16>
      %155 = vector.shape_cast %154 : vector<1x6x8xbf16> to vector<6x8xbf16>
      %cst_118 = arith.constant dense<0.000000e+00> : vector<32x8xf32>
      %156 = tpu.matmul %153, %155, %cst_118 {dimension_numbers = #tpu.dot_dimension_numbers<[1], [0], [0], [1], [0, 0, 1, 1], [], []>} : vector<32x6xbf16>, vector<6x8xbf16>, vector<32x8xf32> -> vector<32x8xf32>
      %157 = arith.addf %149, %156 : vector<32x8xf32>
      %c0_119 = arith.constant 0 : index
      %158 = arith.index_cast %arg8 : i32 to index
      %c0_120 = arith.constant 0 : index
      %c0_121 = arith.constant 0 : index
      %159 = vector.load %arg7[%c0_119, %158, %c0_120, %c0_121] : memref<1x32x32x8xf32, #tpu.memory_space<vmem>>, vector<1x1x32x8xf32>
      %160 = vector.shape_cast %159 : vector<1x1x32x8xf32> to vector<32x8xf32>
      %161 = vector.shape_cast %157 : vector<32x8xf32> to vector<1x1x32x8xf32>
      tpu.vector_store %arg7[%c0_119, %158, %c0_120, %c0_121], %161 {strides = array<i32>} : memref<1x32x32x8xf32, #tpu.memory_space<vmem>>, vector<1x1x32x8xf32>,
    }
    %c32_i32_0 = arith.constant 32 : i32
    %c0 = arith.constant 0 : index
    %c0_1 = arith.constant 0 : index
    %c0_2 = arith.constant 0 : index
    %c0_3 = arith.constant 0 : index
    %1 = vector.load %arg7[%c0, %c0_1, %c0_2, %c0_3] : memref<1x32x32x8xf32, #tpu.memory_space<vmem>>, vector<1x32x32x8xf32>
    %c0_4 = arith.constant 0 : index
    %c0_5 = arith.constant 0 : index
    %2 = vector.load %arg3[%c0_4, %c0_5] : memref<1x8xf32, #tpu.memory_space<vmem>>, vector<1x8xf32>
    %3 = vector.shape_cast %2 : vector<1x8xf32> to vector<1x1x1x8xf32>
    %4 = vector.broadcast %3 : vector<1x1x1x8xf32> to vector<1x32x32x8xf32>
    %5 = arith.addf %1, %4 : vector<1x32x32x8xf32>
    %c0_6 = arith.constant 0 : index
    %c0_7 = arith.constant 0 : index
    %6 = vector.load %arg4[%c0_6, %c0_7] : memref<1x8xf32, #tpu.memory_space<vmem>>, vector<1x8xf32>
    %7 = vector.shape_cast %6 : vector<1x8xf32> to vector<1x1x1x8xf32>
    %8 = vector.broadcast %7 : vector<1x1x1x8xf32> to vector<1x32x32x8xf32>
    %9 = arith.mulf %5, %8 : vector<1x32x32x8xf32>
    %c0_8 = arith.constant 0 : index
    %c0_9 = arith.constant 0 : index
    %10 = vector.load %arg5[%c0_8, %c0_9] : memref<1x8xf32, #tpu.memory_space<vmem>>, vector<1x8xf32>
    %11 = vector.shape_cast %10 : vector<1x8xf32> to vector<1x1x1x8xf32>
    %12 = vector.broadcast %11 : vector<1x1x1x8xf32> to vector<1x32x32x8xf32>
    %13 = arith.addf %9, %12 : vector<1x32x32x8xf32>
    %cst = arith.constant 0.000000e+00 : f32
    %14 = vector.broadcast %cst : f32 to vector<1x32x32x8xf32>
    %15 = arith.cmpf oge, %13, %14 : vector<1x32x32x8xf32>
    %cst_10 = arith.constant 2.000000e-01 : f32
    %16 = vector.broadcast %cst_10 : f32 to vector<1x32x32x8xf32>
    %17 = arith.mulf %16, %13 : vector<1x32x32x8xf32>
    %18 = arith.select %15, %13, %17 : vector<1x32x32x8xi1>, vector<1x32x32x8xf32>
    %19 = arith.truncf %18 : vector<1x32x32x8xf32> to vector<1x32x32x8xbf16>
    %c0_11 = arith.constant 0 : index
    %c0_12 = arith.constant 0 : index
    %c0_13 = arith.constant 0 : index
    %c0_14 = arith.constant 0 : index
    %20 = vector.load %arg6[%c0_11, %c0_12, %c0_13, %c0_14] : memref<1x32x32x8xbf16, #tpu.memory_space<vmem>>, vector<1x32x32x8xbf16>
    tpu.vector_store %arg6[%c0_11, %c0_12, %c0_13, %c0_14], %19 {strides = array<i32>} : memref<1x32x32x8xbf16, #tpu.memory_space<vmem>>, vector<1x32x32x8xbf16>,
    return
  }
  func.func @transform_0(%arg0: i32) -> (i32, i32, i32, i32) {
    %c0_i32 = arith.constant 0 : i32
    %c0_i32_0 = arith.constant 0 : i32
    %c0_i32_1 = arith.constant 0 : i32
    %c0_i32_2 = arith.constant 0 : i32
    return %arg0, %c0_i32, %c0_i32_0, %c0_i32_1 : i32, i32, i32, i32
  }
  func.func @transform_1(%arg0: i32) -> (i32, i32, i32) {
    %c0_i32 = arith.constant 0 : i32
    %c0_i32_0 = arith.constant 0 : i32
    %c0_i32_1 = arith.constant 0 : i32
    %c0_i32_2 = arith.constant 0 : i32
    return %c0_i32, %c0_i32_0, %c0_i32_1 : i32, i32, i32
  }
  func.func @transform_2(%arg0: i32) -> (i32, i32) {
    %c0_i32 = arith.constant 0 : i32
    %c0_i32_0 = arith.constant 0 : i32
    %c0_i32_1 = arith.constant 0 : i32
    return %c0_i32, %c0_i32_0 : i32, i32
  }
  func.func @transform_3(%arg0: i32) -> (i32, i32) {
    %c0_i32 = arith.constant 0 : i32
    %c0_i32_0 = arith.constant 0 : i32
    %c0_i32_1 = arith.constant 0 : i32
    return %c0_i32, %c0_i32_0 : i32, i32
  }
  func.func @transform_4(%arg0: i32) -> (i32, i32) {
    %c0_i32 = arith.constant 0 : i32
    %c0_i32_0 = arith.constant 0 : i32
    %c0_i32_1 = arith.constant 0 : i32
    return %c0_i32, %c0_i32_0 : i32, i32
  }
  func.func @transform_5(%arg0: i32) -> (i32, i32, i32, i32) {
    %c0_i32 = arith.constant 0 : i32
    %c0_i32_0 = arith.constant 0 : i32
    %c0_i32_1 = arith.constant 0 : i32
    %c0_i32_2 = arith.constant 0 : i32
    return %arg0, %c0_i32, %c0_i32_0, %c0_i32_1 : i32, i32, i32, i32
  }
}

module attributes {stable_mosaic.version = 11 : i64} {
  func.func @_conv_in_lrelu_kernel(%arg0: i32, %arg1: memref<1x32x16x16xbf16, #tpu.memory_space<vmem>>, %arg2: memref<16x8x16xbf16, #tpu.memory_space<vmem>>, %arg3: memref<1x16xf32, #tpu.memory_space<vmem>>, %arg4: memref<1x16xf32, #tpu.memory_space<vmem>>, %arg5: memref<1x16xf32, #tpu.memory_space<vmem>>, %arg6: memref<1x15x15x16xbf16, #tpu.memory_space<vmem>>, %arg7: memref<1x15x15x16xf32, #tpu.memory_space<vmem>>) attributes {dimension_semantics = [#tpu.dimension_semantics<parallel>], iteration_bounds = array<i64: 2>, scalar_prefetch = 0 : i64, scratch_operands = 1 : i64, tpu.core_type = #tpu.core_type<tc>, window_params = [{transform_indices = @transform_0, window_bounds = array<i64: 1, 32, 16, 16>}, {pipeline_mode = #tpu.pipeline_mode<synchronous>, transform_indices = @transform_1, window_bounds = array<i64: 16, 8, 16>}, {pipeline_mode = #tpu.pipeline_mode<synchronous>, transform_indices = @transform_2, window_bounds = array<i64: 1, 16>}, {pipeline_mode = #tpu.pipeline_mode<synchronous>, transform_indices = @transform_3, window_bounds = array<i64: 1, 16>}, {pipeline_mode = #tpu.pipeline_mode<synchronous>, transform_indices = @transform_4, window_bounds = array<i64: 1, 16>}, {transform_indices = @transform_5, window_bounds = array<i64: 1, 15, 15, 16>}]} {
    %c0_i32 = arith.constant 0 : i32
    %c15_i32 = arith.constant 15 : i32
    %0 = arith.addi %c0_i32, %c15_i32 : i32
    %c1_i32 = arith.constant 1 : i32
    scf.for %arg8 = %c0_i32 to %0 step %c1_i32  : i32 {
      %cst_22 = arith.constant 0.000000e+00 : f32
      %41 = vector.broadcast %cst_22 : f32 to vector<15x16xf32>
      %c2_i32 = arith.constant 2 : i32
      %42 = arith.muli %arg8, %c2_i32 : i32
      %c0_i32_23 = arith.constant 0 : i32
      %43 = arith.addi %42, %c0_i32_23 : i32
      %c0_24 = arith.constant 0 : index
      %44 = arith.index_cast %43 : i32 to index
      %c0_25 = arith.constant 0 : index
      %c0_26 = arith.constant 0 : index
      %45 = vector.load %arg1[%c0_24, %44, %c0_25, %c0_26] : memref<1x32x16x16xbf16, #tpu.memory_space<vmem>>, vector<1x1x15x8xbf16>
      %46 = vector.shape_cast %45 : vector<1x1x15x8xbf16> to vector<15x8xbf16>
      %c0_27 = arith.constant 0 : index
      %c0_28 = arith.constant 0 : index
      %c0_29 = arith.constant 0 : index
      %47 = vector.load %arg2[%c0_27, %c0_28, %c0_29] : memref<16x8x16xbf16, #tpu.memory_space<vmem>>, vector<1x8x16xbf16>
      %48 = vector.shape_cast %47 : vector<1x8x16xbf16> to vector<8x16xbf16>
      %cst_30 = arith.constant dense<0.000000e+00> : vector<15x16xf32>
      %49 = tpu.matmul %46, %48, %cst_30 {dimension_numbers = #tpu.dot_dimension_numbers<[1], [0], [0], [1], [0, 0, 1, 1], [], []>} : vector<15x8xbf16>, vector<8x16xbf16>, vector<15x16xf32> -> vector<15x16xf32>
      %50 = arith.addf %41, %49 : vector<15x16xf32>
      %c0_31 = arith.constant 0 : index
      %51 = arith.index_cast %43 : i32 to index
      %c0_32 = arith.constant 0 : index
      %c8 = arith.constant 8 : index
      %52 = vector.load %arg1[%c0_31, %51, %c0_32, %c8] : memref<1x32x16x16xbf16, #tpu.memory_space<vmem>>, vector<1x1x15x8xbf16>
      %53 = vector.shape_cast %52 : vector<1x1x15x8xbf16> to vector<15x8xbf16>
      %c1 = arith.constant 1 : index
      %c0_33 = arith.constant 0 : index
      %c0_34 = arith.constant 0 : index
      %54 = vector.load %arg2[%c1, %c0_33, %c0_34] : memref<16x8x16xbf16, #tpu.memory_space<vmem>>, vector<1x8x16xbf16>
      %55 = vector.shape_cast %54 : vector<1x8x16xbf16> to vector<8x16xbf16>
      %cst_35 = arith.constant dense<0.000000e+00> : vector<15x16xf32>
      %56 = tpu.matmul %53, %55, %cst_35 {dimension_numbers = #tpu.dot_dimension_numbers<[1], [0], [0], [1], [0, 0, 1, 1], [], []>} : vector<15x8xbf16>, vector<8x16xbf16>, vector<15x16xf32> -> vector<15x16xf32>
      %57 = arith.addf %50, %56 : vector<15x16xf32>
      %c0_36 = arith.constant 0 : index
      %58 = arith.index_cast %43 : i32 to index
      %c1_37 = arith.constant 1 : index
      %c0_38 = arith.constant 0 : index
      %59 = vector.load %arg1[%c0_36, %58, %c1_37, %c0_38] : memref<1x32x16x16xbf16, #tpu.memory_space<vmem>>, vector<1x1x15x8xbf16>
      %60 = vector.shape_cast %59 : vector<1x1x15x8xbf16> to vector<15x8xbf16>
      %c2 = arith.constant 2 : index
      %c0_39 = arith.constant 0 : index
      %c0_40 = arith.constant 0 : index
      %61 = vector.load %arg2[%c2, %c0_39, %c0_40] : memref<16x8x16xbf16, #tpu.memory_space<vmem>>, vector<1x8x16xbf16>
      %62 = vector.shape_cast %61 : vector<1x8x16xbf16> to vector<8x16xbf16>
      %cst_41 = arith.constant dense<0.000000e+00> : vector<15x16xf32>
      %63 = tpu.matmul %60, %62, %cst_41 {dimension_numbers = #tpu.dot_dimension_numbers<[1], [0], [0], [1], [0, 0, 1, 1], [], []>} : vector<15x8xbf16>, vector<8x16xbf16>, vector<15x16xf32> -> vector<15x16xf32>
      %64 = arith.addf %57, %63 : vector<15x16xf32>
      %c0_42 = arith.constant 0 : index
      %65 = arith.index_cast %43 : i32 to index
      %c1_43 = arith.constant 1 : index
      %c8_44 = arith.constant 8 : index
      %66 = vector.load %arg1[%c0_42, %65, %c1_43, %c8_44] : memref<1x32x16x16xbf16, #tpu.memory_space<vmem>>, vector<1x1x15x8xbf16>
      %67 = vector.shape_cast %66 : vector<1x1x15x8xbf16> to vector<15x8xbf16>
      %c3 = arith.constant 3 : index
      %c0_45 = arith.constant 0 : index
      %c0_46 = arith.constant 0 : index
      %68 = vector.load %arg2[%c3, %c0_45, %c0_46] : memref<16x8x16xbf16, #tpu.memory_space<vmem>>, vector<1x8x16xbf16>
      %69 = vector.shape_cast %68 : vector<1x8x16xbf16> to vector<8x16xbf16>
      %cst_47 = arith.constant dense<0.000000e+00> : vector<15x16xf32>
      %70 = tpu.matmul %67, %69, %cst_47 {dimension_numbers = #tpu.dot_dimension_numbers<[1], [0], [0], [1], [0, 0, 1, 1], [], []>} : vector<15x8xbf16>, vector<8x16xbf16>, vector<15x16xf32> -> vector<15x16xf32>
      %71 = arith.addf %64, %70 : vector<15x16xf32>
      %c2_i32_48 = arith.constant 2 : i32
      %72 = arith.muli %arg8, %c2_i32_48 : i32
      %c1_i32_49 = arith.constant 1 : i32
      %73 = arith.addi %72, %c1_i32_49 : i32
      %c0_50 = arith.constant 0 : index
      %74 = arith.index_cast %73 : i32 to index
      %c0_51 = arith.constant 0 : index
      %c0_52 = arith.constant 0 : index
      %75 = vector.load %arg1[%c0_50, %74, %c0_51, %c0_52] : memref<1x32x16x16xbf16, #tpu.memory_space<vmem>>, vector<1x1x15x8xbf16>
      %76 = vector.shape_cast %75 : vector<1x1x15x8xbf16> to vector<15x8xbf16>
      %c4 = arith.constant 4 : index
      %c0_53 = arith.constant 0 : index
      %c0_54 = arith.constant 0 : index
      %77 = vector.load %arg2[%c4, %c0_53, %c0_54] : memref<16x8x16xbf16, #tpu.memory_space<vmem>>, vector<1x8x16xbf16>
      %78 = vector.shape_cast %77 : vector<1x8x16xbf16> to vector<8x16xbf16>
      %cst_55 = arith.constant dense<0.000000e+00> : vector<15x16xf32>
      %79 = tpu.matmul %76, %78, %cst_55 {dimension_numbers = #tpu.dot_dimension_numbers<[1], [0], [0], [1], [0, 0, 1, 1], [], []>} : vector<15x8xbf16>, vector<8x16xbf16>, vector<15x16xf32> -> vector<15x16xf32>
      %80 = arith.addf %71, %79 : vector<15x16xf32>
      %c0_56 = arith.constant 0 : index
      %81 = arith.index_cast %73 : i32 to index
      %c0_57 = arith.constant 0 : index
      %c8_58 = arith.constant 8 : index
      %82 = vector.load %arg1[%c0_56, %81, %c0_57, %c8_58] : memref<1x32x16x16xbf16, #tpu.memory_space<vmem>>, vector<1x1x15x8xbf16>
      %83 = vector.shape_cast %82 : vector<1x1x15x8xbf16> to vector<15x8xbf16>
      %c5 = arith.constant 5 : index
      %c0_59 = arith.constant 0 : index
      %c0_60 = arith.constant 0 : index
      %84 = vector.load %arg2[%c5, %c0_59, %c0_60] : memref<16x8x16xbf16, #tpu.memory_space<vmem>>, vector<1x8x16xbf16>
      %85 = vector.shape_cast %84 : vector<1x8x16xbf16> to vector<8x16xbf16>
      %cst_61 = arith.constant dense<0.000000e+00> : vector<15x16xf32>
      %86 = tpu.matmul %83, %85, %cst_61 {dimension_numbers = #tpu.dot_dimension_numbers<[1], [0], [0], [1], [0, 0, 1, 1], [], []>} : vector<15x8xbf16>, vector<8x16xbf16>, vector<15x16xf32> -> vector<15x16xf32>
      %87 = arith.addf %80, %86 : vector<15x16xf32>
      %c0_62 = arith.constant 0 : index
      %88 = arith.index_cast %73 : i32 to index
      %c1_63 = arith.constant 1 : index
      %c0_64 = arith.constant 0 : index
      %89 = vector.load %arg1[%c0_62, %88, %c1_63, %c0_64] : memref<1x32x16x16xbf16, #tpu.memory_space<vmem>>, vector<1x1x15x8xbf16>
      %90 = vector.shape_cast %89 : vector<1x1x15x8xbf16> to vector<15x8xbf16>
      %c6 = arith.constant 6 : index
      %c0_65 = arith.constant 0 : index
      %c0_66 = arith.constant 0 : index
      %91 = vector.load %arg2[%c6, %c0_65, %c0_66] : memref<16x8x16xbf16, #tpu.memory_space<vmem>>, vector<1x8x16xbf16>
      %92 = vector.shape_cast %91 : vector<1x8x16xbf16> to vector<8x16xbf16>
      %cst_67 = arith.constant dense<0.000000e+00> : vector<15x16xf32>
      %93 = tpu.matmul %90, %92, %cst_67 {dimension_numbers = #tpu.dot_dimension_numbers<[1], [0], [0], [1], [0, 0, 1, 1], [], []>} : vector<15x8xbf16>, vector<8x16xbf16>, vector<15x16xf32> -> vector<15x16xf32>
      %94 = arith.addf %87, %93 : vector<15x16xf32>
      %c0_68 = arith.constant 0 : index
      %95 = arith.index_cast %73 : i32 to index
      %c1_69 = arith.constant 1 : index
      %c8_70 = arith.constant 8 : index
      %96 = vector.load %arg1[%c0_68, %95, %c1_69, %c8_70] : memref<1x32x16x16xbf16, #tpu.memory_space<vmem>>, vector<1x1x15x8xbf16>
      %97 = vector.shape_cast %96 : vector<1x1x15x8xbf16> to vector<15x8xbf16>
      %c7 = arith.constant 7 : index
      %c0_71 = arith.constant 0 : index
      %c0_72 = arith.constant 0 : index
      %98 = vector.load %arg2[%c7, %c0_71, %c0_72] : memref<16x8x16xbf16, #tpu.memory_space<vmem>>, vector<1x8x16xbf16>
      %99 = vector.shape_cast %98 : vector<1x8x16xbf16> to vector<8x16xbf16>
      %cst_73 = arith.constant dense<0.000000e+00> : vector<15x16xf32>
      %100 = tpu.matmul %97, %99, %cst_73 {dimension_numbers = #tpu.dot_dimension_numbers<[1], [0], [0], [1], [0, 0, 1, 1], [], []>} : vector<15x8xbf16>, vector<8x16xbf16>, vector<15x16xf32> -> vector<15x16xf32>
      %101 = arith.addf %94, %100 : vector<15x16xf32>
      %c2_i32_74 = arith.constant 2 : i32
      %102 = arith.muli %arg8, %c2_i32_74 : i32
      %c2_i32_75 = arith.constant 2 : i32
      %103 = arith.addi %102, %c2_i32_75 : i32
      %c0_76 = arith.constant 0 : index
      %104 = arith.index_cast %103 : i32 to index
      %c0_77 = arith.constant 0 : index
      %c0_78 = arith.constant 0 : index
      %105 = vector.load %arg1[%c0_76, %104, %c0_77, %c0_78] : memref<1x32x16x16xbf16, #tpu.memory_space<vmem>>, vector<1x1x15x8xbf16>
      %106 = vector.shape_cast %105 : vector<1x1x15x8xbf16> to vector<15x8xbf16>
      %c8_79 = arith.constant 8 : index
      %c0_80 = arith.constant 0 : index
      %c0_81 = arith.constant 0 : index
      %107 = vector.load %arg2[%c8_79, %c0_80, %c0_81] : memref<16x8x16xbf16, #tpu.memory_space<vmem>>, vector<1x8x16xbf16>
      %108 = vector.shape_cast %107 : vector<1x8x16xbf16> to vector<8x16xbf16>
      %cst_82 = arith.constant dense<0.000000e+00> : vector<15x16xf32>
      %109 = tpu.matmul %106, %108, %cst_82 {dimension_numbers = #tpu.dot_dimension_numbers<[1], [0], [0], [1], [0, 0, 1, 1], [], []>} : vector<15x8xbf16>, vector<8x16xbf16>, vector<15x16xf32> -> vector<15x16xf32>
      %110 = arith.addf %101, %109 : vector<15x16xf32>
      %c0_83 = arith.constant 0 : index
      %111 = arith.index_cast %103 : i32 to index
      %c0_84 = arith.constant 0 : index
      %c8_85 = arith.constant 8 : index
      %112 = vector.load %arg1[%c0_83, %111, %c0_84, %c8_85] : memref<1x32x16x16xbf16, #tpu.memory_space<vmem>>, vector<1x1x15x8xbf16>
      %113 = vector.shape_cast %112 : vector<1x1x15x8xbf16> to vector<15x8xbf16>
      %c9 = arith.constant 9 : index
      %c0_86 = arith.constant 0 : index
      %c0_87 = arith.constant 0 : index
      %114 = vector.load %arg2[%c9, %c0_86, %c0_87] : memref<16x8x16xbf16, #tpu.memory_space<vmem>>, vector<1x8x16xbf16>
      %115 = vector.shape_cast %114 : vector<1x8x16xbf16> to vector<8x16xbf16>
      %cst_88 = arith.constant dense<0.000000e+00> : vector<15x16xf32>
      %116 = tpu.matmul %113, %115, %cst_88 {dimension_numbers = #tpu.dot_dimension_numbers<[1], [0], [0], [1], [0, 0, 1, 1], [], []>} : vector<15x8xbf16>, vector<8x16xbf16>, vector<15x16xf32> -> vector<15x16xf32>
      %117 = arith.addf %110, %116 : vector<15x16xf32>
      %c0_89 = arith.constant 0 : index
      %118 = arith.index_cast %103 : i32 to index
      %c1_90 = arith.constant 1 : index
      %c0_91 = arith.constant 0 : index
      %119 = vector.load %arg1[%c0_89, %118, %c1_90, %c0_91] : memref<1x32x16x16xbf16, #tpu.memory_space<vmem>>, vector<1x1x15x8xbf16>
      %120 = vector.shape_cast %119 : vector<1x1x15x8xbf16> to vector<15x8xbf16>
      %c10 = arith.constant 10 : index
      %c0_92 = arith.constant 0 : index
      %c0_93 = arith.constant 0 : index
      %121 = vector.load %arg2[%c10, %c0_92, %c0_93] : memref<16x8x16xbf16, #tpu.memory_space<vmem>>, vector<1x8x16xbf16>
      %122 = vector.shape_cast %121 : vector<1x8x16xbf16> to vector<8x16xbf16>
      %cst_94 = arith.constant dense<0.000000e+00> : vector<15x16xf32>
      %123 = tpu.matmul %120, %122, %cst_94 {dimension_numbers = #tpu.dot_dimension_numbers<[1], [0], [0], [1], [0, 0, 1, 1], [], []>} : vector<15x8xbf16>, vector<8x16xbf16>, vector<15x16xf32> -> vector<15x16xf32>
      %124 = arith.addf %117, %123 : vector<15x16xf32>
      %c0_95 = arith.constant 0 : index
      %125 = arith.index_cast %103 : i32 to index
      %c1_96 = arith.constant 1 : index
      %c8_97 = arith.constant 8 : index
      %126 = vector.load %arg1[%c0_95, %125, %c1_96, %c8_97] : memref<1x32x16x16xbf16, #tpu.memory_space<vmem>>, vector<1x1x15x8xbf16>
      %127 = vector.shape_cast %126 : vector<1x1x15x8xbf16> to vector<15x8xbf16>
      %c11 = arith.constant 11 : index
      %c0_98 = arith.constant 0 : index
      %c0_99 = arith.constant 0 : index
      %128 = vector.load %arg2[%c11, %c0_98, %c0_99] : memref<16x8x16xbf16, #tpu.memory_space<vmem>>, vector<1x8x16xbf16>
      %129 = vector.shape_cast %128 : vector<1x8x16xbf16> to vector<8x16xbf16>
      %cst_100 = arith.constant dense<0.000000e+00> : vector<15x16xf32>
      %130 = tpu.matmul %127, %129, %cst_100 {dimension_numbers = #tpu.dot_dimension_numbers<[1], [0], [0], [1], [0, 0, 1, 1], [], []>} : vector<15x8xbf16>, vector<8x16xbf16>, vector<15x16xf32> -> vector<15x16xf32>
      %131 = arith.addf %124, %130 : vector<15x16xf32>
      %c2_i32_101 = arith.constant 2 : i32
      %132 = arith.muli %arg8, %c2_i32_101 : i32
      %c3_i32 = arith.constant 3 : i32
      %133 = arith.addi %132, %c3_i32 : i32
      %c0_102 = arith.constant 0 : index
      %134 = arith.index_cast %133 : i32 to index
      %c0_103 = arith.constant 0 : index
      %c0_104 = arith.constant 0 : index
      %135 = vector.load %arg1[%c0_102, %134, %c0_103, %c0_104] : memref<1x32x16x16xbf16, #tpu.memory_space<vmem>>, vector<1x1x15x8xbf16>
      %136 = vector.shape_cast %135 : vector<1x1x15x8xbf16> to vector<15x8xbf16>
      %c12 = arith.constant 12 : index
      %c0_105 = arith.constant 0 : index
      %c0_106 = arith.constant 0 : index
      %137 = vector.load %arg2[%c12, %c0_105, %c0_106] : memref<16x8x16xbf16, #tpu.memory_space<vmem>>, vector<1x8x16xbf16>
      %138 = vector.shape_cast %137 : vector<1x8x16xbf16> to vector<8x16xbf16>
      %cst_107 = arith.constant dense<0.000000e+00> : vector<15x16xf32>
      %139 = tpu.matmul %136, %138, %cst_107 {dimension_numbers = #tpu.dot_dimension_numbers<[1], [0], [0], [1], [0, 0, 1, 1], [], []>} : vector<15x8xbf16>, vector<8x16xbf16>, vector<15x16xf32> -> vector<15x16xf32>
      %140 = arith.addf %131, %139 : vector<15x16xf32>
      %c0_108 = arith.constant 0 : index
      %141 = arith.index_cast %133 : i32 to index
      %c0_109 = arith.constant 0 : index
      %c8_110 = arith.constant 8 : index
      %142 = vector.load %arg1[%c0_108, %141, %c0_109, %c8_110] : memref<1x32x16x16xbf16, #tpu.memory_space<vmem>>, vector<1x1x15x8xbf16>
      %143 = vector.shape_cast %142 : vector<1x1x15x8xbf16> to vector<15x8xbf16>
      %c13 = arith.constant 13 : index
      %c0_111 = arith.constant 0 : index
      %c0_112 = arith.constant 0 : index
      %144 = vector.load %arg2[%c13, %c0_111, %c0_112] : memref<16x8x16xbf16, #tpu.memory_space<vmem>>, vector<1x8x16xbf16>
      %145 = vector.shape_cast %144 : vector<1x8x16xbf16> to vector<8x16xbf16>
      %cst_113 = arith.constant dense<0.000000e+00> : vector<15x16xf32>
      %146 = tpu.matmul %143, %145, %cst_113 {dimension_numbers = #tpu.dot_dimension_numbers<[1], [0], [0], [1], [0, 0, 1, 1], [], []>} : vector<15x8xbf16>, vector<8x16xbf16>, vector<15x16xf32> -> vector<15x16xf32>
      %147 = arith.addf %140, %146 : vector<15x16xf32>
      %c0_114 = arith.constant 0 : index
      %148 = arith.index_cast %133 : i32 to index
      %c1_115 = arith.constant 1 : index
      %c0_116 = arith.constant 0 : index
      %149 = vector.load %arg1[%c0_114, %148, %c1_115, %c0_116] : memref<1x32x16x16xbf16, #tpu.memory_space<vmem>>, vector<1x1x15x8xbf16>
      %150 = vector.shape_cast %149 : vector<1x1x15x8xbf16> to vector<15x8xbf16>
      %c14 = arith.constant 14 : index
      %c0_117 = arith.constant 0 : index
      %c0_118 = arith.constant 0 : index
      %151 = vector.load %arg2[%c14, %c0_117, %c0_118] : memref<16x8x16xbf16, #tpu.memory_space<vmem>>, vector<1x8x16xbf16>
      %152 = vector.shape_cast %151 : vector<1x8x16xbf16> to vector<8x16xbf16>
      %cst_119 = arith.constant dense<0.000000e+00> : vector<15x16xf32>
      %153 = tpu.matmul %150, %152, %cst_119 {dimension_numbers = #tpu.dot_dimension_numbers<[1], [0], [0], [1], [0, 0, 1, 1], [], []>} : vector<15x8xbf16>, vector<8x16xbf16>, vector<15x16xf32> -> vector<15x16xf32>
      %154 = arith.addf %147, %153 : vector<15x16xf32>
      %c0_120 = arith.constant 0 : index
      %155 = arith.index_cast %133 : i32 to index
      %c1_121 = arith.constant 1 : index
      %c8_122 = arith.constant 8 : index
      %156 = vector.load %arg1[%c0_120, %155, %c1_121, %c8_122] : memref<1x32x16x16xbf16, #tpu.memory_space<vmem>>, vector<1x1x15x8xbf16>
      %157 = vector.shape_cast %156 : vector<1x1x15x8xbf16> to vector<15x8xbf16>
      %c15 = arith.constant 15 : index
      %c0_123 = arith.constant 0 : index
      %c0_124 = arith.constant 0 : index
      %158 = vector.load %arg2[%c15, %c0_123, %c0_124] : memref<16x8x16xbf16, #tpu.memory_space<vmem>>, vector<1x8x16xbf16>
      %159 = vector.shape_cast %158 : vector<1x8x16xbf16> to vector<8x16xbf16>
      %cst_125 = arith.constant dense<0.000000e+00> : vector<15x16xf32>
      %160 = tpu.matmul %157, %159, %cst_125 {dimension_numbers = #tpu.dot_dimension_numbers<[1], [0], [0], [1], [0, 0, 1, 1], [], []>} : vector<15x8xbf16>, vector<8x16xbf16>, vector<15x16xf32> -> vector<15x16xf32>
      %161 = arith.addf %154, %160 : vector<15x16xf32>
      %c0_126 = arith.constant 0 : index
      %162 = arith.index_cast %arg8 : i32 to index
      %c0_127 = arith.constant 0 : index
      %c0_128 = arith.constant 0 : index
      %163 = vector.load %arg7[%c0_126, %162, %c0_127, %c0_128] : memref<1x15x15x16xf32, #tpu.memory_space<vmem>>, vector<1x1x15x16xf32>
      %164 = vector.shape_cast %163 : vector<1x1x15x16xf32> to vector<15x16xf32>
      %165 = vector.shape_cast %161 : vector<15x16xf32> to vector<1x1x15x16xf32>
      tpu.vector_store %arg7[%c0_126, %162, %c0_127, %c0_128], %165 {strides = array<i32>} : memref<1x15x15x16xf32, #tpu.memory_space<vmem>>, vector<1x1x15x16xf32>,
    }
    %c15_i32_0 = arith.constant 15 : i32
    %c0 = arith.constant 0 : index
    %c0_1 = arith.constant 0 : index
    %c0_2 = arith.constant 0 : index
    %c0_3 = arith.constant 0 : index
    %1 = vector.load %arg7[%c0, %c0_1, %c0_2, %c0_3] : memref<1x15x15x16xf32, #tpu.memory_space<vmem>>, vector<1x15x15x16xf32>
    %c0_4 = arith.constant 0 : index
    %c0_5 = arith.constant 0 : index
    %2 = vector.load %arg3[%c0_4, %c0_5] : memref<1x16xf32, #tpu.memory_space<vmem>>, vector<1x16xf32>
    %3 = vector.shape_cast %2 : vector<1x16xf32> to vector<1x1x1x16xf32>
    %4 = vector.broadcast %3 : vector<1x1x1x16xf32> to vector<1x15x15x16xf32>
    %5 = arith.addf %1, %4 : vector<1x15x15x16xf32>
    %cst = arith.constant dense<0.000000e+00> : vector<1x15x16xf32>
    %6 = vector.multi_reduction <add>, %5, %cst [2] : vector<1x15x15x16xf32> to vector<1x15x16xf32>
    %7 = vector.shape_cast %6 : vector<1x15x16xf32> to vector<1x15x1x16xf32>
    %cst_6 = arith.constant dense<0.000000e+00> : vector<1x1x16xf32>
    %8 = vector.multi_reduction <add>, %7, %cst_6 [1] : vector<1x15x1x16xf32> to vector<1x1x16xf32>
    %9 = vector.shape_cast %8 : vector<1x1x16xf32> to vector<1x1x1x16xf32>
    %cst_7 = arith.constant 0.00444444455 : f32
    %10 = vector.broadcast %cst_7 : f32 to vector<1x1x1x16xf32>
    %11 = arith.mulf %9, %10 : vector<1x1x1x16xf32>
    %12 = vector.broadcast %11 : vector<1x1x1x16xf32> to vector<1x15x15x16xf32>
    %13 = arith.subf %5, %12 : vector<1x15x15x16xf32>
    %14 = arith.mulf %13, %13 : vector<1x15x15x16xf32>
    %cst_8 = arith.constant dense<0.000000e+00> : vector<1x15x16xf32>
    %15 = vector.multi_reduction <add>, %14, %cst_8 [2] : vector<1x15x15x16xf32> to vector<1x15x16xf32>
    %16 = vector.shape_cast %15 : vector<1x15x16xf32> to vector<1x15x1x16xf32>
    %cst_9 = arith.constant dense<0.000000e+00> : vector<1x1x16xf32>
    %17 = vector.multi_reduction <add>, %16, %cst_9 [1] : vector<1x15x1x16xf32> to vector<1x1x16xf32>
    %18 = vector.shape_cast %17 : vector<1x1x16xf32> to vector<1x1x1x16xf32>
    %cst_10 = arith.constant 0.00444444455 : f32
    %19 = vector.broadcast %cst_10 : f32 to vector<1x1x1x16xf32>
    %20 = arith.mulf %18, %19 : vector<1x1x1x16xf32>
    %cst_11 = arith.constant 9.99999974E-6 : f32
    %21 = vector.broadcast %cst_11 : f32 to vector<1x1x1x16xf32>
    %22 = arith.addf %20, %21 : vector<1x1x1x16xf32>
    %23 = math.rsqrt %22 : vector<1x1x1x16xf32>
    %24 = vector.broadcast %23 : vector<1x1x1x16xf32> to vector<1x15x15x16xf32>
    %25 = arith.mulf %13, %24 : vector<1x15x15x16xf32>
    %c0_12 = arith.constant 0 : index
    %c0_13 = arith.constant 0 : index
    %26 = vector.load %arg4[%c0_12, %c0_13] : memref<1x16xf32, #tpu.memory_space<vmem>>, vector<1x16xf32>
    %27 = vector.shape_cast %26 : vector<1x16xf32> to vector<1x1x1x16xf32>
    %28 = vector.broadcast %27 : vector<1x1x1x16xf32> to vector<1x15x15x16xf32>
    %29 = arith.mulf %25, %28 : vector<1x15x15x16xf32>
    %c0_14 = arith.constant 0 : index
    %c0_15 = arith.constant 0 : index
    %30 = vector.load %arg5[%c0_14, %c0_15] : memref<1x16xf32, #tpu.memory_space<vmem>>, vector<1x16xf32>
    %31 = vector.shape_cast %30 : vector<1x16xf32> to vector<1x1x1x16xf32>
    %32 = vector.broadcast %31 : vector<1x1x1x16xf32> to vector<1x15x15x16xf32>
    %33 = arith.addf %29, %32 : vector<1x15x15x16xf32>
    %cst_16 = arith.constant 0.000000e+00 : f32
    %34 = vector.broadcast %cst_16 : f32 to vector<1x15x15x16xf32>
    %35 = arith.cmpf oge, %33, %34 : vector<1x15x15x16xf32>
    %cst_17 = arith.constant 2.000000e-01 : f32
    %36 = vector.broadcast %cst_17 : f32 to vector<1x15x15x16xf32>
    %37 = arith.mulf %36, %33 : vector<1x15x15x16xf32>
    %38 = arith.select %35, %33, %37 : vector<1x15x15x16xi1>, vector<1x15x15x16xf32>
    %39 = arith.truncf %38 : vector<1x15x15x16xf32> to vector<1x15x15x16xbf16>
    %c0_18 = arith.constant 0 : index
    %c0_19 = arith.constant 0 : index
    %c0_20 = arith.constant 0 : index
    %c0_21 = arith.constant 0 : index
    %40 = vector.load %arg6[%c0_18, %c0_19, %c0_20, %c0_21] : memref<1x15x15x16xbf16, #tpu.memory_space<vmem>>, vector<1x15x15x16xbf16>
    tpu.vector_store %arg6[%c0_18, %c0_19, %c0_20, %c0_21], %39 {strides = array<i32>} : memref<1x15x15x16xbf16, #tpu.memory_space<vmem>>, vector<1x15x15x16xbf16>,
    return
  }
  func.func @transform_0(%arg0: i32) -> (i32, i32, i32, i32) {
    %c0_i32 = arith.constant 0 : i32
    %c0_i32_0 = arith.constant 0 : i32
    %c0_i32_1 = arith.constant 0 : i32
    %c0_i32_2 = arith.constant 0 : i32
    return %arg0, %c0_i32, %c0_i32_0, %c0_i32_1 : i32, i32, i32, i32
  }
  func.func @transform_1(%arg0: i32) -> (i32, i32, i32) {
    %c0_i32 = arith.constant 0 : i32
    %c0_i32_0 = arith.constant 0 : i32
    %c0_i32_1 = arith.constant 0 : i32
    %c0_i32_2 = arith.constant 0 : i32
    return %c0_i32, %c0_i32_0, %c0_i32_1 : i32, i32, i32
  }
  func.func @transform_2(%arg0: i32) -> (i32, i32) {
    %c0_i32 = arith.constant 0 : i32
    %c0_i32_0 = arith.constant 0 : i32
    %c0_i32_1 = arith.constant 0 : i32
    return %c0_i32, %c0_i32_0 : i32, i32
  }
  func.func @transform_3(%arg0: i32) -> (i32, i32) {
    %c0_i32 = arith.constant 0 : i32
    %c0_i32_0 = arith.constant 0 : i32
    %c0_i32_1 = arith.constant 0 : i32
    return %c0_i32, %c0_i32_0 : i32, i32
  }
  func.func @transform_4(%arg0: i32) -> (i32, i32) {
    %c0_i32 = arith.constant 0 : i32
    %c0_i32_0 = arith.constant 0 : i32
    %c0_i32_1 = arith.constant 0 : i32
    return %c0_i32, %c0_i32_0 : i32, i32
  }
  func.func @transform_5(%arg0: i32) -> (i32, i32, i32, i32) {
    %c0_i32 = arith.constant 0 : i32
    %c0_i32_0 = arith.constant 0 : i32
    %c0_i32_1 = arith.constant 0 : i32
    %c0_i32_2 = arith.constant 0 : i32
    return %arg0, %c0_i32, %c0_i32_0, %c0_i32_1 : i32, i32, i32, i32
  }
}

module attributes {stable_mosaic.version = 11 : i64} {
  func.func @_conv_in_lrelu_kernel(%arg0: i32, %arg1: memref<1x15x8x32xbf16, #tpu.memory_space<vmem>>, %arg2: memref<16x16x32xbf16, #tpu.memory_space<vmem>>, %arg3: memref<1x32xf32, #tpu.memory_space<vmem>>, %arg4: memref<1x32xf32, #tpu.memory_space<vmem>>, %arg5: memref<1x32xf32, #tpu.memory_space<vmem>>, %arg6: memref<1x6x6x32xbf16, #tpu.memory_space<vmem>>, %arg7: memref<1x6x6x32xf32, #tpu.memory_space<vmem>>) attributes {dimension_semantics = [#tpu.dimension_semantics<parallel>], iteration_bounds = array<i64: 2>, scalar_prefetch = 0 : i64, scratch_operands = 1 : i64, tpu.core_type = #tpu.core_type<tc>, window_params = [{transform_indices = @transform_0, window_bounds = array<i64: 1, 15, 8, 32>}, {pipeline_mode = #tpu.pipeline_mode<synchronous>, transform_indices = @transform_1, window_bounds = array<i64: 16, 16, 32>}, {pipeline_mode = #tpu.pipeline_mode<synchronous>, transform_indices = @transform_2, window_bounds = array<i64: 1, 32>}, {pipeline_mode = #tpu.pipeline_mode<synchronous>, transform_indices = @transform_3, window_bounds = array<i64: 1, 32>}, {pipeline_mode = #tpu.pipeline_mode<synchronous>, transform_indices = @transform_4, window_bounds = array<i64: 1, 32>}, {transform_indices = @transform_5, window_bounds = array<i64: 1, 6, 6, 32>}]} {
    %c0_i32 = arith.constant 0 : i32
    %c6_i32 = arith.constant 6 : i32
    %0 = arith.addi %c0_i32, %c6_i32 : i32
    %c1_i32 = arith.constant 1 : i32
    scf.for %arg8 = %c0_i32 to %0 step %c1_i32  : i32 {
      %cst_22 = arith.constant 0.000000e+00 : f32
      %41 = vector.broadcast %cst_22 : f32 to vector<6x32xf32>
      %c2_i32 = arith.constant 2 : i32
      %42 = arith.muli %arg8, %c2_i32 : i32
      %c0_i32_23 = arith.constant 0 : i32
      %43 = arith.addi %42, %c0_i32_23 : i32
      %c0_24 = arith.constant 0 : index
      %44 = arith.index_cast %43 : i32 to index
      %c0_25 = arith.constant 0 : index
      %c0_26 = arith.constant 0 : index
      %45 = vector.load %arg1[%c0_24, %44, %c0_25, %c0_26] : memref<1x15x8x32xbf16, #tpu.memory_space<vmem>>, vector<1x1x6x16xbf16>
      %46 = vector.shape_cast %45 : vector<1x1x6x16xbf16> to vector<6x16xbf16>
      %c0_27 = arith.constant 0 : index
      %c0_28 = arith.constant 0 : index
      %c0_29 = arith.constant 0 : index
      %47 = vector.load %arg2[%c0_27, %c0_28, %c0_29] : memref<16x16x32xbf16, #tpu.memory_space<vmem>>, vector<1x16x32xbf16>
      %48 = vector.shape_cast %47 : vector<1x16x32xbf16> to vector<16x32xbf16>
      %cst_30 = arith.constant dense<0.000000e+00> : vector<6x32xf32>
      %49 = tpu.matmul %46, %48, %cst_30 {dimension_numbers = #tpu.dot_dimension_numbers<[1], [0], [0], [1], [0, 0, 1, 1], [], []>} : vector<6x16xbf16>, vector<16x32xbf16>, vector<6x32xf32> -> vector<6x32xf32>
      %50 = arith.addf %41, %49 : vector<6x32xf32>
      %c0_31 = arith.constant 0 : index
      %51 = arith.index_cast %43 : i32 to index
      %c0_32 = arith.constant 0 : index
      %c16 = arith.constant 16 : index
      %52 = vector.load %arg1[%c0_31, %51, %c0_32, %c16] : memref<1x15x8x32xbf16, #tpu.memory_space<vmem>>, vector<1x1x6x16xbf16>
      %53 = vector.shape_cast %52 : vector<1x1x6x16xbf16> to vector<6x16xbf16>
      %c1 = arith.constant 1 : index
      %c0_33 = arith.constant 0 : index
      %c0_34 = arith.constant 0 : index
      %54 = vector.load %arg2[%c1, %c0_33, %c0_34] : memref<16x16x32xbf16, #tpu.memory_space<vmem>>, vector<1x16x32xbf16>
      %55 = vector.shape_cast %54 : vector<1x16x32xbf16> to vector<16x32xbf16>
      %cst_35 = arith.constant dense<0.000000e+00> : vector<6x32xf32>
      %56 = tpu.matmul %53, %55, %cst_35 {dimension_numbers = #tpu.dot_dimension_numbers<[1], [0], [0], [1], [0, 0, 1, 1], [], []>} : vector<6x16xbf16>, vector<16x32xbf16>, vector<6x32xf32> -> vector<6x32xf32>
      %57 = arith.addf %50, %56 : vector<6x32xf32>
      %c0_36 = arith.constant 0 : index
      %58 = arith.index_cast %43 : i32 to index
      %c1_37 = arith.constant 1 : index
      %c0_38 = arith.constant 0 : index
      %59 = vector.load %arg1[%c0_36, %58, %c1_37, %c0_38] : memref<1x15x8x32xbf16, #tpu.memory_space<vmem>>, vector<1x1x6x16xbf16>
      %60 = vector.shape_cast %59 : vector<1x1x6x16xbf16> to vector<6x16xbf16>
      %c2 = arith.constant 2 : index
      %c0_39 = arith.constant 0 : index
      %c0_40 = arith.constant 0 : index
      %61 = vector.load %arg2[%c2, %c0_39, %c0_40] : memref<16x16x32xbf16, #tpu.memory_space<vmem>>, vector<1x16x32xbf16>
      %62 = vector.shape_cast %61 : vector<1x16x32xbf16> to vector<16x32xbf16>
      %cst_41 = arith.constant dense<0.000000e+00> : vector<6x32xf32>
      %63 = tpu.matmul %60, %62, %cst_41 {dimension_numbers = #tpu.dot_dimension_numbers<[1], [0], [0], [1], [0, 0, 1, 1], [], []>} : vector<6x16xbf16>, vector<16x32xbf16>, vector<6x32xf32> -> vector<6x32xf32>
      %64 = arith.addf %57, %63 : vector<6x32xf32>
      %c0_42 = arith.constant 0 : index
      %65 = arith.index_cast %43 : i32 to index
      %c1_43 = arith.constant 1 : index
      %c16_44 = arith.constant 16 : index
      %66 = vector.load %arg1[%c0_42, %65, %c1_43, %c16_44] : memref<1x15x8x32xbf16, #tpu.memory_space<vmem>>, vector<1x1x6x16xbf16>
      %67 = vector.shape_cast %66 : vector<1x1x6x16xbf16> to vector<6x16xbf16>
      %c3 = arith.constant 3 : index
      %c0_45 = arith.constant 0 : index
      %c0_46 = arith.constant 0 : index
      %68 = vector.load %arg2[%c3, %c0_45, %c0_46] : memref<16x16x32xbf16, #tpu.memory_space<vmem>>, vector<1x16x32xbf16>
      %69 = vector.shape_cast %68 : vector<1x16x32xbf16> to vector<16x32xbf16>
      %cst_47 = arith.constant dense<0.000000e+00> : vector<6x32xf32>
      %70 = tpu.matmul %67, %69, %cst_47 {dimension_numbers = #tpu.dot_dimension_numbers<[1], [0], [0], [1], [0, 0, 1, 1], [], []>} : vector<6x16xbf16>, vector<16x32xbf16>, vector<6x32xf32> -> vector<6x32xf32>
      %71 = arith.addf %64, %70 : vector<6x32xf32>
      %c2_i32_48 = arith.constant 2 : i32
      %72 = arith.muli %arg8, %c2_i32_48 : i32
      %c1_i32_49 = arith.constant 1 : i32
      %73 = arith.addi %72, %c1_i32_49 : i32
      %c0_50 = arith.constant 0 : index
      %74 = arith.index_cast %73 : i32 to index
      %c0_51 = arith.constant 0 : index
      %c0_52 = arith.constant 0 : index
      %75 = vector.load %arg1[%c0_50, %74, %c0_51, %c0_52] : memref<1x15x8x32xbf16, #tpu.memory_space<vmem>>, vector<1x1x6x16xbf16>
      %76 = vector.shape_cast %75 : vector<1x1x6x16xbf16> to vector<6x16xbf16>
      %c4 = arith.constant 4 : index
      %c0_53 = arith.constant 0 : index
      %c0_54 = arith.constant 0 : index
      %77 = vector.load %arg2[%c4, %c0_53, %c0_54] : memref<16x16x32xbf16, #tpu.memory_space<vmem>>, vector<1x16x32xbf16>
      %78 = vector.shape_cast %77 : vector<1x16x32xbf16> to vector<16x32xbf16>
      %cst_55 = arith.constant dense<0.000000e+00> : vector<6x32xf32>
      %79 = tpu.matmul %76, %78, %cst_55 {dimension_numbers = #tpu.dot_dimension_numbers<[1], [0], [0], [1], [0, 0, 1, 1], [], []>} : vector<6x16xbf16>, vector<16x32xbf16>, vector<6x32xf32> -> vector<6x32xf32>
      %80 = arith.addf %71, %79 : vector<6x32xf32>
      %c0_56 = arith.constant 0 : index
      %81 = arith.index_cast %73 : i32 to index
      %c0_57 = arith.constant 0 : index
      %c16_58 = arith.constant 16 : index
      %82 = vector.load %arg1[%c0_56, %81, %c0_57, %c16_58] : memref<1x15x8x32xbf16, #tpu.memory_space<vmem>>, vector<1x1x6x16xbf16>
      %83 = vector.shape_cast %82 : vector<1x1x6x16xbf16> to vector<6x16xbf16>
      %c5 = arith.constant 5 : index
      %c0_59 = arith.constant 0 : index
      %c0_60 = arith.constant 0 : index
      %84 = vector.load %arg2[%c5, %c0_59, %c0_60] : memref<16x16x32xbf16, #tpu.memory_space<vmem>>, vector<1x16x32xbf16>
      %85 = vector.shape_cast %84 : vector<1x16x32xbf16> to vector<16x32xbf16>
      %cst_61 = arith.constant dense<0.000000e+00> : vector<6x32xf32>
      %86 = tpu.matmul %83, %85, %cst_61 {dimension_numbers = #tpu.dot_dimension_numbers<[1], [0], [0], [1], [0, 0, 1, 1], [], []>} : vector<6x16xbf16>, vector<16x32xbf16>, vector<6x32xf32> -> vector<6x32xf32>
      %87 = arith.addf %80, %86 : vector<6x32xf32>
      %c0_62 = arith.constant 0 : index
      %88 = arith.index_cast %73 : i32 to index
      %c1_63 = arith.constant 1 : index
      %c0_64 = arith.constant 0 : index
      %89 = vector.load %arg1[%c0_62, %88, %c1_63, %c0_64] : memref<1x15x8x32xbf16, #tpu.memory_space<vmem>>, vector<1x1x6x16xbf16>
      %90 = vector.shape_cast %89 : vector<1x1x6x16xbf16> to vector<6x16xbf16>
      %c6 = arith.constant 6 : index
      %c0_65 = arith.constant 0 : index
      %c0_66 = arith.constant 0 : index
      %91 = vector.load %arg2[%c6, %c0_65, %c0_66] : memref<16x16x32xbf16, #tpu.memory_space<vmem>>, vector<1x16x32xbf16>
      %92 = vector.shape_cast %91 : vector<1x16x32xbf16> to vector<16x32xbf16>
      %cst_67 = arith.constant dense<0.000000e+00> : vector<6x32xf32>
      %93 = tpu.matmul %90, %92, %cst_67 {dimension_numbers = #tpu.dot_dimension_numbers<[1], [0], [0], [1], [0, 0, 1, 1], [], []>} : vector<6x16xbf16>, vector<16x32xbf16>, vector<6x32xf32> -> vector<6x32xf32>
      %94 = arith.addf %87, %93 : vector<6x32xf32>
      %c0_68 = arith.constant 0 : index
      %95 = arith.index_cast %73 : i32 to index
      %c1_69 = arith.constant 1 : index
      %c16_70 = arith.constant 16 : index
      %96 = vector.load %arg1[%c0_68, %95, %c1_69, %c16_70] : memref<1x15x8x32xbf16, #tpu.memory_space<vmem>>, vector<1x1x6x16xbf16>
      %97 = vector.shape_cast %96 : vector<1x1x6x16xbf16> to vector<6x16xbf16>
      %c7 = arith.constant 7 : index
      %c0_71 = arith.constant 0 : index
      %c0_72 = arith.constant 0 : index
      %98 = vector.load %arg2[%c7, %c0_71, %c0_72] : memref<16x16x32xbf16, #tpu.memory_space<vmem>>, vector<1x16x32xbf16>
      %99 = vector.shape_cast %98 : vector<1x16x32xbf16> to vector<16x32xbf16>
      %cst_73 = arith.constant dense<0.000000e+00> : vector<6x32xf32>
      %100 = tpu.matmul %97, %99, %cst_73 {dimension_numbers = #tpu.dot_dimension_numbers<[1], [0], [0], [1], [0, 0, 1, 1], [], []>} : vector<6x16xbf16>, vector<16x32xbf16>, vector<6x32xf32> -> vector<6x32xf32>
      %101 = arith.addf %94, %100 : vector<6x32xf32>
      %c2_i32_74 = arith.constant 2 : i32
      %102 = arith.muli %arg8, %c2_i32_74 : i32
      %c2_i32_75 = arith.constant 2 : i32
      %103 = arith.addi %102, %c2_i32_75 : i32
      %c0_76 = arith.constant 0 : index
      %104 = arith.index_cast %103 : i32 to index
      %c0_77 = arith.constant 0 : index
      %c0_78 = arith.constant 0 : index
      %105 = vector.load %arg1[%c0_76, %104, %c0_77, %c0_78] : memref<1x15x8x32xbf16, #tpu.memory_space<vmem>>, vector<1x1x6x16xbf16>
      %106 = vector.shape_cast %105 : vector<1x1x6x16xbf16> to vector<6x16xbf16>
      %c8 = arith.constant 8 : index
      %c0_79 = arith.constant 0 : index
      %c0_80 = arith.constant 0 : index
      %107 = vector.load %arg2[%c8, %c0_79, %c0_80] : memref<16x16x32xbf16, #tpu.memory_space<vmem>>, vector<1x16x32xbf16>
      %108 = vector.shape_cast %107 : vector<1x16x32xbf16> to vector<16x32xbf16>
      %cst_81 = arith.constant dense<0.000000e+00> : vector<6x32xf32>
      %109 = tpu.matmul %106, %108, %cst_81 {dimension_numbers = #tpu.dot_dimension_numbers<[1], [0], [0], [1], [0, 0, 1, 1], [], []>} : vector<6x16xbf16>, vector<16x32xbf16>, vector<6x32xf32> -> vector<6x32xf32>
      %110 = arith.addf %101, %109 : vector<6x32xf32>
      %c0_82 = arith.constant 0 : index
      %111 = arith.index_cast %103 : i32 to index
      %c0_83 = arith.constant 0 : index
      %c16_84 = arith.constant 16 : index
      %112 = vector.load %arg1[%c0_82, %111, %c0_83, %c16_84] : memref<1x15x8x32xbf16, #tpu.memory_space<vmem>>, vector<1x1x6x16xbf16>
      %113 = vector.shape_cast %112 : vector<1x1x6x16xbf16> to vector<6x16xbf16>
      %c9 = arith.constant 9 : index
      %c0_85 = arith.constant 0 : index
      %c0_86 = arith.constant 0 : index
      %114 = vector.load %arg2[%c9, %c0_85, %c0_86] : memref<16x16x32xbf16, #tpu.memory_space<vmem>>, vector<1x16x32xbf16>
      %115 = vector.shape_cast %114 : vector<1x16x32xbf16> to vector<16x32xbf16>
      %cst_87 = arith.constant dense<0.000000e+00> : vector<6x32xf32>
      %116 = tpu.matmul %113, %115, %cst_87 {dimension_numbers = #tpu.dot_dimension_numbers<[1], [0], [0], [1], [0, 0, 1, 1], [], []>} : vector<6x16xbf16>, vector<16x32xbf16>, vector<6x32xf32> -> vector<6x32xf32>
      %117 = arith.addf %110, %116 : vector<6x32xf32>
      %c0_88 = arith.constant 0 : index
      %118 = arith.index_cast %103 : i32 to index
      %c1_89 = arith.constant 1 : index
      %c0_90 = arith.constant 0 : index
      %119 = vector.load %arg1[%c0_88, %118, %c1_89, %c0_90] : memref<1x15x8x32xbf16, #tpu.memory_space<vmem>>, vector<1x1x6x16xbf16>
      %120 = vector.shape_cast %119 : vector<1x1x6x16xbf16> to vector<6x16xbf16>
      %c10 = arith.constant 10 : index
      %c0_91 = arith.constant 0 : index
      %c0_92 = arith.constant 0 : index
      %121 = vector.load %arg2[%c10, %c0_91, %c0_92] : memref<16x16x32xbf16, #tpu.memory_space<vmem>>, vector<1x16x32xbf16>
      %122 = vector.shape_cast %121 : vector<1x16x32xbf16> to vector<16x32xbf16>
      %cst_93 = arith.constant dense<0.000000e+00> : vector<6x32xf32>
      %123 = tpu.matmul %120, %122, %cst_93 {dimension_numbers = #tpu.dot_dimension_numbers<[1], [0], [0], [1], [0, 0, 1, 1], [], []>} : vector<6x16xbf16>, vector<16x32xbf16>, vector<6x32xf32> -> vector<6x32xf32>
      %124 = arith.addf %117, %123 : vector<6x32xf32>
      %c0_94 = arith.constant 0 : index
      %125 = arith.index_cast %103 : i32 to index
      %c1_95 = arith.constant 1 : index
      %c16_96 = arith.constant 16 : index
      %126 = vector.load %arg1[%c0_94, %125, %c1_95, %c16_96] : memref<1x15x8x32xbf16, #tpu.memory_space<vmem>>, vector<1x1x6x16xbf16>
      %127 = vector.shape_cast %126 : vector<1x1x6x16xbf16> to vector<6x16xbf16>
      %c11 = arith.constant 11 : index
      %c0_97 = arith.constant 0 : index
      %c0_98 = arith.constant 0 : index
      %128 = vector.load %arg2[%c11, %c0_97, %c0_98] : memref<16x16x32xbf16, #tpu.memory_space<vmem>>, vector<1x16x32xbf16>
      %129 = vector.shape_cast %128 : vector<1x16x32xbf16> to vector<16x32xbf16>
      %cst_99 = arith.constant dense<0.000000e+00> : vector<6x32xf32>
      %130 = tpu.matmul %127, %129, %cst_99 {dimension_numbers = #tpu.dot_dimension_numbers<[1], [0], [0], [1], [0, 0, 1, 1], [], []>} : vector<6x16xbf16>, vector<16x32xbf16>, vector<6x32xf32> -> vector<6x32xf32>
      %131 = arith.addf %124, %130 : vector<6x32xf32>
      %c2_i32_100 = arith.constant 2 : i32
      %132 = arith.muli %arg8, %c2_i32_100 : i32
      %c3_i32 = arith.constant 3 : i32
      %133 = arith.addi %132, %c3_i32 : i32
      %c0_101 = arith.constant 0 : index
      %134 = arith.index_cast %133 : i32 to index
      %c0_102 = arith.constant 0 : index
      %c0_103 = arith.constant 0 : index
      %135 = vector.load %arg1[%c0_101, %134, %c0_102, %c0_103] : memref<1x15x8x32xbf16, #tpu.memory_space<vmem>>, vector<1x1x6x16xbf16>
      %136 = vector.shape_cast %135 : vector<1x1x6x16xbf16> to vector<6x16xbf16>
      %c12 = arith.constant 12 : index
      %c0_104 = arith.constant 0 : index
      %c0_105 = arith.constant 0 : index
      %137 = vector.load %arg2[%c12, %c0_104, %c0_105] : memref<16x16x32xbf16, #tpu.memory_space<vmem>>, vector<1x16x32xbf16>
      %138 = vector.shape_cast %137 : vector<1x16x32xbf16> to vector<16x32xbf16>
      %cst_106 = arith.constant dense<0.000000e+00> : vector<6x32xf32>
      %139 = tpu.matmul %136, %138, %cst_106 {dimension_numbers = #tpu.dot_dimension_numbers<[1], [0], [0], [1], [0, 0, 1, 1], [], []>} : vector<6x16xbf16>, vector<16x32xbf16>, vector<6x32xf32> -> vector<6x32xf32>
      %140 = arith.addf %131, %139 : vector<6x32xf32>
      %c0_107 = arith.constant 0 : index
      %141 = arith.index_cast %133 : i32 to index
      %c0_108 = arith.constant 0 : index
      %c16_109 = arith.constant 16 : index
      %142 = vector.load %arg1[%c0_107, %141, %c0_108, %c16_109] : memref<1x15x8x32xbf16, #tpu.memory_space<vmem>>, vector<1x1x6x16xbf16>
      %143 = vector.shape_cast %142 : vector<1x1x6x16xbf16> to vector<6x16xbf16>
      %c13 = arith.constant 13 : index
      %c0_110 = arith.constant 0 : index
      %c0_111 = arith.constant 0 : index
      %144 = vector.load %arg2[%c13, %c0_110, %c0_111] : memref<16x16x32xbf16, #tpu.memory_space<vmem>>, vector<1x16x32xbf16>
      %145 = vector.shape_cast %144 : vector<1x16x32xbf16> to vector<16x32xbf16>
      %cst_112 = arith.constant dense<0.000000e+00> : vector<6x32xf32>
      %146 = tpu.matmul %143, %145, %cst_112 {dimension_numbers = #tpu.dot_dimension_numbers<[1], [0], [0], [1], [0, 0, 1, 1], [], []>} : vector<6x16xbf16>, vector<16x32xbf16>, vector<6x32xf32> -> vector<6x32xf32>
      %147 = arith.addf %140, %146 : vector<6x32xf32>
      %c0_113 = arith.constant 0 : index
      %148 = arith.index_cast %133 : i32 to index
      %c1_114 = arith.constant 1 : index
      %c0_115 = arith.constant 0 : index
      %149 = vector.load %arg1[%c0_113, %148, %c1_114, %c0_115] : memref<1x15x8x32xbf16, #tpu.memory_space<vmem>>, vector<1x1x6x16xbf16>
      %150 = vector.shape_cast %149 : vector<1x1x6x16xbf16> to vector<6x16xbf16>
      %c14 = arith.constant 14 : index
      %c0_116 = arith.constant 0 : index
      %c0_117 = arith.constant 0 : index
      %151 = vector.load %arg2[%c14, %c0_116, %c0_117] : memref<16x16x32xbf16, #tpu.memory_space<vmem>>, vector<1x16x32xbf16>
      %152 = vector.shape_cast %151 : vector<1x16x32xbf16> to vector<16x32xbf16>
      %cst_118 = arith.constant dense<0.000000e+00> : vector<6x32xf32>
      %153 = tpu.matmul %150, %152, %cst_118 {dimension_numbers = #tpu.dot_dimension_numbers<[1], [0], [0], [1], [0, 0, 1, 1], [], []>} : vector<6x16xbf16>, vector<16x32xbf16>, vector<6x32xf32> -> vector<6x32xf32>
      %154 = arith.addf %147, %153 : vector<6x32xf32>
      %c0_119 = arith.constant 0 : index
      %155 = arith.index_cast %133 : i32 to index
      %c1_120 = arith.constant 1 : index
      %c16_121 = arith.constant 16 : index
      %156 = vector.load %arg1[%c0_119, %155, %c1_120, %c16_121] : memref<1x15x8x32xbf16, #tpu.memory_space<vmem>>, vector<1x1x6x16xbf16>
      %157 = vector.shape_cast %156 : vector<1x1x6x16xbf16> to vector<6x16xbf16>
      %c15 = arith.constant 15 : index
      %c0_122 = arith.constant 0 : index
      %c0_123 = arith.constant 0 : index
      %158 = vector.load %arg2[%c15, %c0_122, %c0_123] : memref<16x16x32xbf16, #tpu.memory_space<vmem>>, vector<1x16x32xbf16>
      %159 = vector.shape_cast %158 : vector<1x16x32xbf16> to vector<16x32xbf16>
      %cst_124 = arith.constant dense<0.000000e+00> : vector<6x32xf32>
      %160 = tpu.matmul %157, %159, %cst_124 {dimension_numbers = #tpu.dot_dimension_numbers<[1], [0], [0], [1], [0, 0, 1, 1], [], []>} : vector<6x16xbf16>, vector<16x32xbf16>, vector<6x32xf32> -> vector<6x32xf32>
      %161 = arith.addf %154, %160 : vector<6x32xf32>
      %c0_125 = arith.constant 0 : index
      %162 = arith.index_cast %arg8 : i32 to index
      %c0_126 = arith.constant 0 : index
      %c0_127 = arith.constant 0 : index
      %163 = vector.load %arg7[%c0_125, %162, %c0_126, %c0_127] : memref<1x6x6x32xf32, #tpu.memory_space<vmem>>, vector<1x1x6x32xf32>
      %164 = vector.shape_cast %163 : vector<1x1x6x32xf32> to vector<6x32xf32>
      %165 = vector.shape_cast %161 : vector<6x32xf32> to vector<1x1x6x32xf32>
      tpu.vector_store %arg7[%c0_125, %162, %c0_126, %c0_127], %165 {strides = array<i32>} : memref<1x6x6x32xf32, #tpu.memory_space<vmem>>, vector<1x1x6x32xf32>,
    }
    %c6_i32_0 = arith.constant 6 : i32
    %c0 = arith.constant 0 : index
    %c0_1 = arith.constant 0 : index
    %c0_2 = arith.constant 0 : index
    %c0_3 = arith.constant 0 : index
    %1 = vector.load %arg7[%c0, %c0_1, %c0_2, %c0_3] : memref<1x6x6x32xf32, #tpu.memory_space<vmem>>, vector<1x6x6x32xf32>
    %c0_4 = arith.constant 0 : index
    %c0_5 = arith.constant 0 : index
    %2 = vector.load %arg3[%c0_4, %c0_5] : memref<1x32xf32, #tpu.memory_space<vmem>>, vector<1x32xf32>
    %3 = vector.shape_cast %2 : vector<1x32xf32> to vector<1x1x1x32xf32>
    %4 = vector.broadcast %3 : vector<1x1x1x32xf32> to vector<1x6x6x32xf32>
    %5 = arith.addf %1, %4 : vector<1x6x6x32xf32>
    %cst = arith.constant dense<0.000000e+00> : vector<1x6x32xf32>
    %6 = vector.multi_reduction <add>, %5, %cst [2] : vector<1x6x6x32xf32> to vector<1x6x32xf32>
    %7 = vector.shape_cast %6 : vector<1x6x32xf32> to vector<1x6x1x32xf32>
    %cst_6 = arith.constant dense<0.000000e+00> : vector<1x1x32xf32>
    %8 = vector.multi_reduction <add>, %7, %cst_6 [1] : vector<1x6x1x32xf32> to vector<1x1x32xf32>
    %9 = vector.shape_cast %8 : vector<1x1x32xf32> to vector<1x1x1x32xf32>
    %cst_7 = arith.constant 0.027777778 : f32
    %10 = vector.broadcast %cst_7 : f32 to vector<1x1x1x32xf32>
    %11 = arith.mulf %9, %10 : vector<1x1x1x32xf32>
    %12 = vector.broadcast %11 : vector<1x1x1x32xf32> to vector<1x6x6x32xf32>
    %13 = arith.subf %5, %12 : vector<1x6x6x32xf32>
    %14 = arith.mulf %13, %13 : vector<1x6x6x32xf32>
    %cst_8 = arith.constant dense<0.000000e+00> : vector<1x6x32xf32>
    %15 = vector.multi_reduction <add>, %14, %cst_8 [2] : vector<1x6x6x32xf32> to vector<1x6x32xf32>
    %16 = vector.shape_cast %15 : vector<1x6x32xf32> to vector<1x6x1x32xf32>
    %cst_9 = arith.constant dense<0.000000e+00> : vector<1x1x32xf32>
    %17 = vector.multi_reduction <add>, %16, %cst_9 [1] : vector<1x6x1x32xf32> to vector<1x1x32xf32>
    %18 = vector.shape_cast %17 : vector<1x1x32xf32> to vector<1x1x1x32xf32>
    %cst_10 = arith.constant 0.027777778 : f32
    %19 = vector.broadcast %cst_10 : f32 to vector<1x1x1x32xf32>
    %20 = arith.mulf %18, %19 : vector<1x1x1x32xf32>
    %cst_11 = arith.constant 9.99999974E-6 : f32
    %21 = vector.broadcast %cst_11 : f32 to vector<1x1x1x32xf32>
    %22 = arith.addf %20, %21 : vector<1x1x1x32xf32>
    %23 = math.rsqrt %22 : vector<1x1x1x32xf32>
    %24 = vector.broadcast %23 : vector<1x1x1x32xf32> to vector<1x6x6x32xf32>
    %25 = arith.mulf %13, %24 : vector<1x6x6x32xf32>
    %c0_12 = arith.constant 0 : index
    %c0_13 = arith.constant 0 : index
    %26 = vector.load %arg4[%c0_12, %c0_13] : memref<1x32xf32, #tpu.memory_space<vmem>>, vector<1x32xf32>
    %27 = vector.shape_cast %26 : vector<1x32xf32> to vector<1x1x1x32xf32>
    %28 = vector.broadcast %27 : vector<1x1x1x32xf32> to vector<1x6x6x32xf32>
    %29 = arith.mulf %25, %28 : vector<1x6x6x32xf32>
    %c0_14 = arith.constant 0 : index
    %c0_15 = arith.constant 0 : index
    %30 = vector.load %arg5[%c0_14, %c0_15] : memref<1x32xf32, #tpu.memory_space<vmem>>, vector<1x32xf32>
    %31 = vector.shape_cast %30 : vector<1x32xf32> to vector<1x1x1x32xf32>
    %32 = vector.broadcast %31 : vector<1x1x1x32xf32> to vector<1x6x6x32xf32>
    %33 = arith.addf %29, %32 : vector<1x6x6x32xf32>
    %cst_16 = arith.constant 0.000000e+00 : f32
    %34 = vector.broadcast %cst_16 : f32 to vector<1x6x6x32xf32>
    %35 = arith.cmpf oge, %33, %34 : vector<1x6x6x32xf32>
    %cst_17 = arith.constant 2.000000e-01 : f32
    %36 = vector.broadcast %cst_17 : f32 to vector<1x6x6x32xf32>
    %37 = arith.mulf %36, %33 : vector<1x6x6x32xf32>
    %38 = arith.select %35, %33, %37 : vector<1x6x6x32xi1>, vector<1x6x6x32xf32>
    %39 = arith.truncf %38 : vector<1x6x6x32xf32> to vector<1x6x6x32xbf16>
    %c0_18 = arith.constant 0 : index
    %c0_19 = arith.constant 0 : index
    %c0_20 = arith.constant 0 : index
    %c0_21 = arith.constant 0 : index
    %40 = vector.load %arg6[%c0_18, %c0_19, %c0_20, %c0_21] : memref<1x6x6x32xbf16, #tpu.memory_space<vmem>>, vector<1x6x6x32xbf16>
    tpu.vector_store %arg6[%c0_18, %c0_19, %c0_20, %c0_21], %39 {strides = array<i32>} : memref<1x6x6x32xbf16, #tpu.memory_space<vmem>>, vector<1x6x6x32xbf16>,
    return
  }
  func.func @transform_0(%arg0: i32) -> (i32, i32, i32, i32) {
    %c0_i32 = arith.constant 0 : i32
    %c0_i32_0 = arith.constant 0 : i32
    %c0_i32_1 = arith.constant 0 : i32
    %c0_i32_2 = arith.constant 0 : i32
    return %arg0, %c0_i32, %c0_i32_0, %c0_i32_1 : i32, i32, i32, i32
  }
  func.func @transform_1(%arg0: i32) -> (i32, i32, i32) {
    %c0_i32 = arith.constant 0 : i32
    %c0_i32_0 = arith.constant 0 : i32
    %c0_i32_1 = arith.constant 0 : i32
    %c0_i32_2 = arith.constant 0 : i32
    return %c0_i32, %c0_i32_0, %c0_i32_1 : i32, i32, i32
  }
  func.func @transform_2(%arg0: i32) -> (i32, i32) {
    %c0_i32 = arith.constant 0 : i32
    %c0_i32_0 = arith.constant 0 : i32
    %c0_i32_1 = arith.constant 0 : i32
    return %c0_i32, %c0_i32_0 : i32, i32
  }
  func.func @transform_3(%arg0: i32) -> (i32, i32) {
    %c0_i32 = arith.constant 0 : i32
    %c0_i32_0 = arith.constant 0 : i32
    %c0_i32_1 = arith.constant 0 : i32
    return %c0_i32, %c0_i32_0 : i32, i32
  }
  func.func @transform_4(%arg0: i32) -> (i32, i32) {
    %c0_i32 = arith.constant 0 : i32
    %c0_i32_0 = arith.constant 0 : i32
    %c0_i32_1 = arith.constant 0 : i32
    return %c0_i32, %c0_i32_0 : i32, i32
  }
  func.func @transform_5(%arg0: i32) -> (i32, i32, i32, i32) {
    %c0_i32 = arith.constant 0 : i32
    %c0_i32_0 = arith.constant 0 : i32
    %c0_i32_1 = arith.constant 0 : i32
    %c0_i32_2 = arith.constant 0 : i32
    return %arg0, %c0_i32, %c0_i32_0, %c0_i32_1 : i32, i32, i32, i32
  }
}

module attributes {stable_mosaic.version = 11 : i64} {
  func.func @_conv_in_lrelu_kernel(%arg0: i32, %arg1: memref<1x6x6x32xbf16, #tpu.memory_space<vmem>>, %arg2: memref<16x32x64xbf16, #tpu.memory_space<vmem>>, %arg3: memref<1x64xf32, #tpu.memory_space<vmem>>, %arg4: memref<1x64xf32, #tpu.memory_space<vmem>>, %arg5: memref<1x64xf32, #tpu.memory_space<vmem>>, %arg6: memref<1x3x3x64xbf16, #tpu.memory_space<vmem>>, %arg7: memref<1x3x3x64xf32, #tpu.memory_space<vmem>>) attributes {dimension_semantics = [#tpu.dimension_semantics<parallel>], iteration_bounds = array<i64: 2>, scalar_prefetch = 0 : i64, scratch_operands = 1 : i64, tpu.core_type = #tpu.core_type<tc>, window_params = [{transform_indices = @transform_0, window_bounds = array<i64: 1, 6, 6, 32>}, {pipeline_mode = #tpu.pipeline_mode<synchronous>, transform_indices = @transform_1, window_bounds = array<i64: 16, 32, 64>}, {pipeline_mode = #tpu.pipeline_mode<synchronous>, transform_indices = @transform_2, window_bounds = array<i64: 1, 64>}, {pipeline_mode = #tpu.pipeline_mode<synchronous>, transform_indices = @transform_3, window_bounds = array<i64: 1, 64>}, {pipeline_mode = #tpu.pipeline_mode<synchronous>, transform_indices = @transform_4, window_bounds = array<i64: 1, 64>}, {transform_indices = @transform_5, window_bounds = array<i64: 1, 3, 3, 64>}]} {
    %c0_i32 = arith.constant 0 : i32
    %c3_i32 = arith.constant 3 : i32
    %0 = arith.addi %c0_i32, %c3_i32 : i32
    %c1_i32 = arith.constant 1 : i32
    scf.for %arg8 = %c0_i32 to %0 step %c1_i32  : i32 {
      %cst_22 = arith.constant 0.000000e+00 : f32
      %41 = vector.broadcast %cst_22 : f32 to vector<3x64xf32>
      %c1_i32_23 = arith.constant 1 : i32
      %42 = arith.muli %arg8, %c1_i32_23 : i32
      %c0_i32_24 = arith.constant 0 : i32
      %43 = arith.addi %42, %c0_i32_24 : i32
      %c0_25 = arith.constant 0 : index
      %44 = arith.index_cast %43 : i32 to index
      %c0_26 = arith.constant 0 : index
      %c0_27 = arith.constant 0 : index
      %45 = vector.load %arg1[%c0_25, %44, %c0_26, %c0_27] : memref<1x6x6x32xbf16, #tpu.memory_space<vmem>>, vector<1x1x3x32xbf16>
      %46 = vector.shape_cast %45 : vector<1x1x3x32xbf16> to vector<3x32xbf16>
      %c0_28 = arith.constant 0 : index
      %c0_29 = arith.constant 0 : index
      %c0_30 = arith.constant 0 : index
      %47 = vector.load %arg2[%c0_28, %c0_29, %c0_30] : memref<16x32x64xbf16, #tpu.memory_space<vmem>>, vector<1x32x64xbf16>
      %48 = vector.shape_cast %47 : vector<1x32x64xbf16> to vector<32x64xbf16>
      %cst_31 = arith.constant dense<0.000000e+00> : vector<3x64xf32>
      %49 = tpu.matmul %46, %48, %cst_31 {dimension_numbers = #tpu.dot_dimension_numbers<[1], [0], [0], [1], [0, 0, 1, 1], [], []>} : vector<3x32xbf16>, vector<32x64xbf16>, vector<3x64xf32> -> vector<3x64xf32>
      %50 = arith.addf %41, %49 : vector<3x64xf32>
      %c0_32 = arith.constant 0 : index
      %51 = arith.index_cast %43 : i32 to index
      %c1 = arith.constant 1 : index
      %c0_33 = arith.constant 0 : index
      %52 = vector.load %arg1[%c0_32, %51, %c1, %c0_33] : memref<1x6x6x32xbf16, #tpu.memory_space<vmem>>, vector<1x1x3x32xbf16>
      %53 = vector.shape_cast %52 : vector<1x1x3x32xbf16> to vector<3x32xbf16>
      %c1_34 = arith.constant 1 : index
      %c0_35 = arith.constant 0 : index
      %c0_36 = arith.constant 0 : index
      %54 = vector.load %arg2[%c1_34, %c0_35, %c0_36] : memref<16x32x64xbf16, #tpu.memory_space<vmem>>, vector<1x32x64xbf16>
      %55 = vector.shape_cast %54 : vector<1x32x64xbf16> to vector<32x64xbf16>
      %cst_37 = arith.constant dense<0.000000e+00> : vector<3x64xf32>
      %56 = tpu.matmul %53, %55, %cst_37 {dimension_numbers = #tpu.dot_dimension_numbers<[1], [0], [0], [1], [0, 0, 1, 1], [], []>} : vector<3x32xbf16>, vector<32x64xbf16>, vector<3x64xf32> -> vector<3x64xf32>
      %57 = arith.addf %50, %56 : vector<3x64xf32>
      %c0_38 = arith.constant 0 : index
      %58 = arith.index_cast %43 : i32 to index
      %c2 = arith.constant 2 : index
      %c0_39 = arith.constant 0 : index
      %59 = vector.load %arg1[%c0_38, %58, %c2, %c0_39] : memref<1x6x6x32xbf16, #tpu.memory_space<vmem>>, vector<1x1x3x32xbf16>
      %60 = vector.shape_cast %59 : vector<1x1x3x32xbf16> to vector<3x32xbf16>
      %c2_40 = arith.constant 2 : index
      %c0_41 = arith.constant 0 : index
      %c0_42 = arith.constant 0 : index
      %61 = vector.load %arg2[%c2_40, %c0_41, %c0_42] : memref<16x32x64xbf16, #tpu.memory_space<vmem>>, vector<1x32x64xbf16>
      %62 = vector.shape_cast %61 : vector<1x32x64xbf16> to vector<32x64xbf16>
      %cst_43 = arith.constant dense<0.000000e+00> : vector<3x64xf32>
      %63 = tpu.matmul %60, %62, %cst_43 {dimension_numbers = #tpu.dot_dimension_numbers<[1], [0], [0], [1], [0, 0, 1, 1], [], []>} : vector<3x32xbf16>, vector<32x64xbf16>, vector<3x64xf32> -> vector<3x64xf32>
      %64 = arith.addf %57, %63 : vector<3x64xf32>
      %c0_44 = arith.constant 0 : index
      %65 = arith.index_cast %43 : i32 to index
      %c3 = arith.constant 3 : index
      %c0_45 = arith.constant 0 : index
      %66 = vector.load %arg1[%c0_44, %65, %c3, %c0_45] : memref<1x6x6x32xbf16, #tpu.memory_space<vmem>>, vector<1x1x3x32xbf16>
      %67 = vector.shape_cast %66 : vector<1x1x3x32xbf16> to vector<3x32xbf16>
      %c3_46 = arith.constant 3 : index
      %c0_47 = arith.constant 0 : index
      %c0_48 = arith.constant 0 : index
      %68 = vector.load %arg2[%c3_46, %c0_47, %c0_48] : memref<16x32x64xbf16, #tpu.memory_space<vmem>>, vector<1x32x64xbf16>
      %69 = vector.shape_cast %68 : vector<1x32x64xbf16> to vector<32x64xbf16>
      %cst_49 = arith.constant dense<0.000000e+00> : vector<3x64xf32>
      %70 = tpu.matmul %67, %69, %cst_49 {dimension_numbers = #tpu.dot_dimension_numbers<[1], [0], [0], [1], [0, 0, 1, 1], [], []>} : vector<3x32xbf16>, vector<32x64xbf16>, vector<3x64xf32> -> vector<3x64xf32>
      %71 = arith.addf %64, %70 : vector<3x64xf32>
      %c1_i32_50 = arith.constant 1 : i32
      %72 = arith.muli %arg8, %c1_i32_50 : i32
      %c1_i32_51 = arith.constant 1 : i32
      %73 = arith.addi %72, %c1_i32_51 : i32
      %c0_52 = arith.constant 0 : index
      %74 = arith.index_cast %73 : i32 to index
      %c0_53 = arith.constant 0 : index
      %c0_54 = arith.constant 0 : index
      %75 = vector.load %arg1[%c0_52, %74, %c0_53, %c0_54] : memref<1x6x6x32xbf16, #tpu.memory_space<vmem>>, vector<1x1x3x32xbf16>
      %76 = vector.shape_cast %75 : vector<1x1x3x32xbf16> to vector<3x32xbf16>
      %c4 = arith.constant 4 : index
      %c0_55 = arith.constant 0 : index
      %c0_56 = arith.constant 0 : index
      %77 = vector.load %arg2[%c4, %c0_55, %c0_56] : memref<16x32x64xbf16, #tpu.memory_space<vmem>>, vector<1x32x64xbf16>
      %78 = vector.shape_cast %77 : vector<1x32x64xbf16> to vector<32x64xbf16>
      %cst_57 = arith.constant dense<0.000000e+00> : vector<3x64xf32>
      %79 = tpu.matmul %76, %78, %cst_57 {dimension_numbers = #tpu.dot_dimension_numbers<[1], [0], [0], [1], [0, 0, 1, 1], [], []>} : vector<3x32xbf16>, vector<32x64xbf16>, vector<3x64xf32> -> vector<3x64xf32>
      %80 = arith.addf %71, %79 : vector<3x64xf32>
      %c0_58 = arith.constant 0 : index
      %81 = arith.index_cast %73 : i32 to index
      %c1_59 = arith.constant 1 : index
      %c0_60 = arith.constant 0 : index
      %82 = vector.load %arg1[%c0_58, %81, %c1_59, %c0_60] : memref<1x6x6x32xbf16, #tpu.memory_space<vmem>>, vector<1x1x3x32xbf16>
      %83 = vector.shape_cast %82 : vector<1x1x3x32xbf16> to vector<3x32xbf16>
      %c5 = arith.constant 5 : index
      %c0_61 = arith.constant 0 : index
      %c0_62 = arith.constant 0 : index
      %84 = vector.load %arg2[%c5, %c0_61, %c0_62] : memref<16x32x64xbf16, #tpu.memory_space<vmem>>, vector<1x32x64xbf16>
      %85 = vector.shape_cast %84 : vector<1x32x64xbf16> to vector<32x64xbf16>
      %cst_63 = arith.constant dense<0.000000e+00> : vector<3x64xf32>
      %86 = tpu.matmul %83, %85, %cst_63 {dimension_numbers = #tpu.dot_dimension_numbers<[1], [0], [0], [1], [0, 0, 1, 1], [], []>} : vector<3x32xbf16>, vector<32x64xbf16>, vector<3x64xf32> -> vector<3x64xf32>
      %87 = arith.addf %80, %86 : vector<3x64xf32>
      %c0_64 = arith.constant 0 : index
      %88 = arith.index_cast %73 : i32 to index
      %c2_65 = arith.constant 2 : index
      %c0_66 = arith.constant 0 : index
      %89 = vector.load %arg1[%c0_64, %88, %c2_65, %c0_66] : memref<1x6x6x32xbf16, #tpu.memory_space<vmem>>, vector<1x1x3x32xbf16>
      %90 = vector.shape_cast %89 : vector<1x1x3x32xbf16> to vector<3x32xbf16>
      %c6 = arith.constant 6 : index
      %c0_67 = arith.constant 0 : index
      %c0_68 = arith.constant 0 : index
      %91 = vector.load %arg2[%c6, %c0_67, %c0_68] : memref<16x32x64xbf16, #tpu.memory_space<vmem>>, vector<1x32x64xbf16>
      %92 = vector.shape_cast %91 : vector<1x32x64xbf16> to vector<32x64xbf16>
      %cst_69 = arith.constant dense<0.000000e+00> : vector<3x64xf32>
      %93 = tpu.matmul %90, %92, %cst_69 {dimension_numbers = #tpu.dot_dimension_numbers<[1], [0], [0], [1], [0, 0, 1, 1], [], []>} : vector<3x32xbf16>, vector<32x64xbf16>, vector<3x64xf32> -> vector<3x64xf32>
      %94 = arith.addf %87, %93 : vector<3x64xf32>
      %c0_70 = arith.constant 0 : index
      %95 = arith.index_cast %73 : i32 to index
      %c3_71 = arith.constant 3 : index
      %c0_72 = arith.constant 0 : index
      %96 = vector.load %arg1[%c0_70, %95, %c3_71, %c0_72] : memref<1x6x6x32xbf16, #tpu.memory_space<vmem>>, vector<1x1x3x32xbf16>
      %97 = vector.shape_cast %96 : vector<1x1x3x32xbf16> to vector<3x32xbf16>
      %c7 = arith.constant 7 : index
      %c0_73 = arith.constant 0 : index
      %c0_74 = arith.constant 0 : index
      %98 = vector.load %arg2[%c7, %c0_73, %c0_74] : memref<16x32x64xbf16, #tpu.memory_space<vmem>>, vector<1x32x64xbf16>
      %99 = vector.shape_cast %98 : vector<1x32x64xbf16> to vector<32x64xbf16>
      %cst_75 = arith.constant dense<0.000000e+00> : vector<3x64xf32>
      %100 = tpu.matmul %97, %99, %cst_75 {dimension_numbers = #tpu.dot_dimension_numbers<[1], [0], [0], [1], [0, 0, 1, 1], [], []>} : vector<3x32xbf16>, vector<32x64xbf16>, vector<3x64xf32> -> vector<3x64xf32>
      %101 = arith.addf %94, %100 : vector<3x64xf32>
      %c1_i32_76 = arith.constant 1 : i32
      %102 = arith.muli %arg8, %c1_i32_76 : i32
      %c2_i32 = arith.constant 2 : i32
      %103 = arith.addi %102, %c2_i32 : i32
      %c0_77 = arith.constant 0 : index
      %104 = arith.index_cast %103 : i32 to index
      %c0_78 = arith.constant 0 : index
      %c0_79 = arith.constant 0 : index
      %105 = vector.load %arg1[%c0_77, %104, %c0_78, %c0_79] : memref<1x6x6x32xbf16, #tpu.memory_space<vmem>>, vector<1x1x3x32xbf16>
      %106 = vector.shape_cast %105 : vector<1x1x3x32xbf16> to vector<3x32xbf16>
      %c8 = arith.constant 8 : index
      %c0_80 = arith.constant 0 : index
      %c0_81 = arith.constant 0 : index
      %107 = vector.load %arg2[%c8, %c0_80, %c0_81] : memref<16x32x64xbf16, #tpu.memory_space<vmem>>, vector<1x32x64xbf16>
      %108 = vector.shape_cast %107 : vector<1x32x64xbf16> to vector<32x64xbf16>
      %cst_82 = arith.constant dense<0.000000e+00> : vector<3x64xf32>
      %109 = tpu.matmul %106, %108, %cst_82 {dimension_numbers = #tpu.dot_dimension_numbers<[1], [0], [0], [1], [0, 0, 1, 1], [], []>} : vector<3x32xbf16>, vector<32x64xbf16>, vector<3x64xf32> -> vector<3x64xf32>
      %110 = arith.addf %101, %109 : vector<3x64xf32>
      %c0_83 = arith.constant 0 : index
      %111 = arith.index_cast %103 : i32 to index
      %c1_84 = arith.constant 1 : index
      %c0_85 = arith.constant 0 : index
      %112 = vector.load %arg1[%c0_83, %111, %c1_84, %c0_85] : memref<1x6x6x32xbf16, #tpu.memory_space<vmem>>, vector<1x1x3x32xbf16>
      %113 = vector.shape_cast %112 : vector<1x1x3x32xbf16> to vector<3x32xbf16>
      %c9 = arith.constant 9 : index
      %c0_86 = arith.constant 0 : index
      %c0_87 = arith.constant 0 : index
      %114 = vector.load %arg2[%c9, %c0_86, %c0_87] : memref<16x32x64xbf16, #tpu.memory_space<vmem>>, vector<1x32x64xbf16>
      %115 = vector.shape_cast %114 : vector<1x32x64xbf16> to vector<32x64xbf16>
      %cst_88 = arith.constant dense<0.000000e+00> : vector<3x64xf32>
      %116 = tpu.matmul %113, %115, %cst_88 {dimension_numbers = #tpu.dot_dimension_numbers<[1], [0], [0], [1], [0, 0, 1, 1], [], []>} : vector<3x32xbf16>, vector<32x64xbf16>, vector<3x64xf32> -> vector<3x64xf32>
      %117 = arith.addf %110, %116 : vector<3x64xf32>
      %c0_89 = arith.constant 0 : index
      %118 = arith.index_cast %103 : i32 to index
      %c2_90 = arith.constant 2 : index
      %c0_91 = arith.constant 0 : index
      %119 = vector.load %arg1[%c0_89, %118, %c2_90, %c0_91] : memref<1x6x6x32xbf16, #tpu.memory_space<vmem>>, vector<1x1x3x32xbf16>
      %120 = vector.shape_cast %119 : vector<1x1x3x32xbf16> to vector<3x32xbf16>
      %c10 = arith.constant 10 : index
      %c0_92 = arith.constant 0 : index
      %c0_93 = arith.constant 0 : index
      %121 = vector.load %arg2[%c10, %c0_92, %c0_93] : memref<16x32x64xbf16, #tpu.memory_space<vmem>>, vector<1x32x64xbf16>
      %122 = vector.shape_cast %121 : vector<1x32x64xbf16> to vector<32x64xbf16>
      %cst_94 = arith.constant dense<0.000000e+00> : vector<3x64xf32>
      %123 = tpu.matmul %120, %122, %cst_94 {dimension_numbers = #tpu.dot_dimension_numbers<[1], [0], [0], [1], [0, 0, 1, 1], [], []>} : vector<3x32xbf16>, vector<32x64xbf16>, vector<3x64xf32> -> vector<3x64xf32>
      %124 = arith.addf %117, %123 : vector<3x64xf32>
      %c0_95 = arith.constant 0 : index
      %125 = arith.index_cast %103 : i32 to index
      %c3_96 = arith.constant 3 : index
      %c0_97 = arith.constant 0 : index
      %126 = vector.load %arg1[%c0_95, %125, %c3_96, %c0_97] : memref<1x6x6x32xbf16, #tpu.memory_space<vmem>>, vector<1x1x3x32xbf16>
      %127 = vector.shape_cast %126 : vector<1x1x3x32xbf16> to vector<3x32xbf16>
      %c11 = arith.constant 11 : index
      %c0_98 = arith.constant 0 : index
      %c0_99 = arith.constant 0 : index
      %128 = vector.load %arg2[%c11, %c0_98, %c0_99] : memref<16x32x64xbf16, #tpu.memory_space<vmem>>, vector<1x32x64xbf16>
      %129 = vector.shape_cast %128 : vector<1x32x64xbf16> to vector<32x64xbf16>
      %cst_100 = arith.constant dense<0.000000e+00> : vector<3x64xf32>
      %130 = tpu.matmul %127, %129, %cst_100 {dimension_numbers = #tpu.dot_dimension_numbers<[1], [0], [0], [1], [0, 0, 1, 1], [], []>} : vector<3x32xbf16>, vector<32x64xbf16>, vector<3x64xf32> -> vector<3x64xf32>
      %131 = arith.addf %124, %130 : vector<3x64xf32>
      %c1_i32_101 = arith.constant 1 : i32
      %132 = arith.muli %arg8, %c1_i32_101 : i32
      %c3_i32_102 = arith.constant 3 : i32
      %133 = arith.addi %132, %c3_i32_102 : i32
      %c0_103 = arith.constant 0 : index
      %134 = arith.index_cast %133 : i32 to index
      %c0_104 = arith.constant 0 : index
      %c0_105 = arith.constant 0 : index
      %135 = vector.load %arg1[%c0_103, %134, %c0_104, %c0_105] : memref<1x6x6x32xbf16, #tpu.memory_space<vmem>>, vector<1x1x3x32xbf16>
      %136 = vector.shape_cast %135 : vector<1x1x3x32xbf16> to vector<3x32xbf16>
      %c12 = arith.constant 12 : index
      %c0_106 = arith.constant 0 : index
      %c0_107 = arith.constant 0 : index
      %137 = vector.load %arg2[%c12, %c0_106, %c0_107] : memref<16x32x64xbf16, #tpu.memory_space<vmem>>, vector<1x32x64xbf16>
      %138 = vector.shape_cast %137 : vector<1x32x64xbf16> to vector<32x64xbf16>
      %cst_108 = arith.constant dense<0.000000e+00> : vector<3x64xf32>
      %139 = tpu.matmul %136, %138, %cst_108 {dimension_numbers = #tpu.dot_dimension_numbers<[1], [0], [0], [1], [0, 0, 1, 1], [], []>} : vector<3x32xbf16>, vector<32x64xbf16>, vector<3x64xf32> -> vector<3x64xf32>
      %140 = arith.addf %131, %139 : vector<3x64xf32>
      %c0_109 = arith.constant 0 : index
      %141 = arith.index_cast %133 : i32 to index
      %c1_110 = arith.constant 1 : index
      %c0_111 = arith.constant 0 : index
      %142 = vector.load %arg1[%c0_109, %141, %c1_110, %c0_111] : memref<1x6x6x32xbf16, #tpu.memory_space<vmem>>, vector<1x1x3x32xbf16>
      %143 = vector.shape_cast %142 : vector<1x1x3x32xbf16> to vector<3x32xbf16>
      %c13 = arith.constant 13 : index
      %c0_112 = arith.constant 0 : index
      %c0_113 = arith.constant 0 : index
      %144 = vector.load %arg2[%c13, %c0_112, %c0_113] : memref<16x32x64xbf16, #tpu.memory_space<vmem>>, vector<1x32x64xbf16>
      %145 = vector.shape_cast %144 : vector<1x32x64xbf16> to vector<32x64xbf16>
      %cst_114 = arith.constant dense<0.000000e+00> : vector<3x64xf32>
      %146 = tpu.matmul %143, %145, %cst_114 {dimension_numbers = #tpu.dot_dimension_numbers<[1], [0], [0], [1], [0, 0, 1, 1], [], []>} : vector<3x32xbf16>, vector<32x64xbf16>, vector<3x64xf32> -> vector<3x64xf32>
      %147 = arith.addf %140, %146 : vector<3x64xf32>
      %c0_115 = arith.constant 0 : index
      %148 = arith.index_cast %133 : i32 to index
      %c2_116 = arith.constant 2 : index
      %c0_117 = arith.constant 0 : index
      %149 = vector.load %arg1[%c0_115, %148, %c2_116, %c0_117] : memref<1x6x6x32xbf16, #tpu.memory_space<vmem>>, vector<1x1x3x32xbf16>
      %150 = vector.shape_cast %149 : vector<1x1x3x32xbf16> to vector<3x32xbf16>
      %c14 = arith.constant 14 : index
      %c0_118 = arith.constant 0 : index
      %c0_119 = arith.constant 0 : index
      %151 = vector.load %arg2[%c14, %c0_118, %c0_119] : memref<16x32x64xbf16, #tpu.memory_space<vmem>>, vector<1x32x64xbf16>
      %152 = vector.shape_cast %151 : vector<1x32x64xbf16> to vector<32x64xbf16>
      %cst_120 = arith.constant dense<0.000000e+00> : vector<3x64xf32>
      %153 = tpu.matmul %150, %152, %cst_120 {dimension_numbers = #tpu.dot_dimension_numbers<[1], [0], [0], [1], [0, 0, 1, 1], [], []>} : vector<3x32xbf16>, vector<32x64xbf16>, vector<3x64xf32> -> vector<3x64xf32>
      %154 = arith.addf %147, %153 : vector<3x64xf32>
      %c0_121 = arith.constant 0 : index
      %155 = arith.index_cast %133 : i32 to index
      %c3_122 = arith.constant 3 : index
      %c0_123 = arith.constant 0 : index
      %156 = vector.load %arg1[%c0_121, %155, %c3_122, %c0_123] : memref<1x6x6x32xbf16, #tpu.memory_space<vmem>>, vector<1x1x3x32xbf16>
      %157 = vector.shape_cast %156 : vector<1x1x3x32xbf16> to vector<3x32xbf16>
      %c15 = arith.constant 15 : index
      %c0_124 = arith.constant 0 : index
      %c0_125 = arith.constant 0 : index
      %158 = vector.load %arg2[%c15, %c0_124, %c0_125] : memref<16x32x64xbf16, #tpu.memory_space<vmem>>, vector<1x32x64xbf16>
      %159 = vector.shape_cast %158 : vector<1x32x64xbf16> to vector<32x64xbf16>
      %cst_126 = arith.constant dense<0.000000e+00> : vector<3x64xf32>
      %160 = tpu.matmul %157, %159, %cst_126 {dimension_numbers = #tpu.dot_dimension_numbers<[1], [0], [0], [1], [0, 0, 1, 1], [], []>} : vector<3x32xbf16>, vector<32x64xbf16>, vector<3x64xf32> -> vector<3x64xf32>
      %161 = arith.addf %154, %160 : vector<3x64xf32>
      %c0_127 = arith.constant 0 : index
      %162 = arith.index_cast %arg8 : i32 to index
      %c0_128 = arith.constant 0 : index
      %c0_129 = arith.constant 0 : index
      %163 = vector.load %arg7[%c0_127, %162, %c0_128, %c0_129] : memref<1x3x3x64xf32, #tpu.memory_space<vmem>>, vector<1x1x3x64xf32>
      %164 = vector.shape_cast %163 : vector<1x1x3x64xf32> to vector<3x64xf32>
      %165 = vector.shape_cast %161 : vector<3x64xf32> to vector<1x1x3x64xf32>
      tpu.vector_store %arg7[%c0_127, %162, %c0_128, %c0_129], %165 {strides = array<i32>} : memref<1x3x3x64xf32, #tpu.memory_space<vmem>>, vector<1x1x3x64xf32>,
    }
    %c3_i32_0 = arith.constant 3 : i32
    %c0 = arith.constant 0 : index
    %c0_1 = arith.constant 0 : index
    %c0_2 = arith.constant 0 : index
    %c0_3 = arith.constant 0 : index
    %1 = vector.load %arg7[%c0, %c0_1, %c0_2, %c0_3] : memref<1x3x3x64xf32, #tpu.memory_space<vmem>>, vector<1x3x3x64xf32>
    %c0_4 = arith.constant 0 : index
    %c0_5 = arith.constant 0 : index
    %2 = vector.load %arg3[%c0_4, %c0_5] : memref<1x64xf32, #tpu.memory_space<vmem>>, vector<1x64xf32>
    %3 = vector.shape_cast %2 : vector<1x64xf32> to vector<1x1x1x64xf32>
    %4 = vector.broadcast %3 : vector<1x1x1x64xf32> to vector<1x3x3x64xf32>
    %5 = arith.addf %1, %4 : vector<1x3x3x64xf32>
    %cst = arith.constant dense<0.000000e+00> : vector<1x3x64xf32>
    %6 = vector.multi_reduction <add>, %5, %cst [2] : vector<1x3x3x64xf32> to vector<1x3x64xf32>
    %7 = vector.shape_cast %6 : vector<1x3x64xf32> to vector<1x3x1x64xf32>
    %cst_6 = arith.constant dense<0.000000e+00> : vector<1x1x64xf32>
    %8 = vector.multi_reduction <add>, %7, %cst_6 [1] : vector<1x3x1x64xf32> to vector<1x1x64xf32>
    %9 = vector.shape_cast %8 : vector<1x1x64xf32> to vector<1x1x1x64xf32>
    %cst_7 = arith.constant 0.111111112 : f32
    %10 = vector.broadcast %cst_7 : f32 to vector<1x1x1x64xf32>
    %11 = arith.mulf %9, %10 : vector<1x1x1x64xf32>
    %12 = vector.broadcast %11 : vector<1x1x1x64xf32> to vector<1x3x3x64xf32>
    %13 = arith.subf %5, %12 : vector<1x3x3x64xf32>
    %14 = arith.mulf %13, %13 : vector<1x3x3x64xf32>
    %cst_8 = arith.constant dense<0.000000e+00> : vector<1x3x64xf32>
    %15 = vector.multi_reduction <add>, %14, %cst_8 [2] : vector<1x3x3x64xf32> to vector<1x3x64xf32>
    %16 = vector.shape_cast %15 : vector<1x3x64xf32> to vector<1x3x1x64xf32>
    %cst_9 = arith.constant dense<0.000000e+00> : vector<1x1x64xf32>
    %17 = vector.multi_reduction <add>, %16, %cst_9 [1] : vector<1x3x1x64xf32> to vector<1x1x64xf32>
    %18 = vector.shape_cast %17 : vector<1x1x64xf32> to vector<1x1x1x64xf32>
    %cst_10 = arith.constant 0.111111112 : f32
    %19 = vector.broadcast %cst_10 : f32 to vector<1x1x1x64xf32>
    %20 = arith.mulf %18, %19 : vector<1x1x1x64xf32>
    %cst_11 = arith.constant 9.99999974E-6 : f32
    %21 = vector.broadcast %cst_11 : f32 to vector<1x1x1x64xf32>
    %22 = arith.addf %20, %21 : vector<1x1x1x64xf32>
    %23 = math.rsqrt %22 : vector<1x1x1x64xf32>
    %24 = vector.broadcast %23 : vector<1x1x1x64xf32> to vector<1x3x3x64xf32>
    %25 = arith.mulf %13, %24 : vector<1x3x3x64xf32>
    %c0_12 = arith.constant 0 : index
    %c0_13 = arith.constant 0 : index
    %26 = vector.load %arg4[%c0_12, %c0_13] : memref<1x64xf32, #tpu.memory_space<vmem>>, vector<1x64xf32>
    %27 = vector.shape_cast %26 : vector<1x64xf32> to vector<1x1x1x64xf32>
    %28 = vector.broadcast %27 : vector<1x1x1x64xf32> to vector<1x3x3x64xf32>
    %29 = arith.mulf %25, %28 : vector<1x3x3x64xf32>
    %c0_14 = arith.constant 0 : index
    %c0_15 = arith.constant 0 : index
    %30 = vector.load %arg5[%c0_14, %c0_15] : memref<1x64xf32, #tpu.memory_space<vmem>>, vector<1x64xf32>
    %31 = vector.shape_cast %30 : vector<1x64xf32> to vector<1x1x1x64xf32>
    %32 = vector.broadcast %31 : vector<1x1x1x64xf32> to vector<1x3x3x64xf32>
    %33 = arith.addf %29, %32 : vector<1x3x3x64xf32>
    %cst_16 = arith.constant 0.000000e+00 : f32
    %34 = vector.broadcast %cst_16 : f32 to vector<1x3x3x64xf32>
    %35 = arith.cmpf oge, %33, %34 : vector<1x3x3x64xf32>
    %cst_17 = arith.constant 2.000000e-01 : f32
    %36 = vector.broadcast %cst_17 : f32 to vector<1x3x3x64xf32>
    %37 = arith.mulf %36, %33 : vector<1x3x3x64xf32>
    %38 = arith.select %35, %33, %37 : vector<1x3x3x64xi1>, vector<1x3x3x64xf32>
    %39 = arith.truncf %38 : vector<1x3x3x64xf32> to vector<1x3x3x64xbf16>
    %c0_18 = arith.constant 0 : index
    %c0_19 = arith.constant 0 : index
    %c0_20 = arith.constant 0 : index
    %c0_21 = arith.constant 0 : index
    %40 = vector.load %arg6[%c0_18, %c0_19, %c0_20, %c0_21] : memref<1x3x3x64xbf16, #tpu.memory_space<vmem>>, vector<1x3x3x64xbf16>
    tpu.vector_store %arg6[%c0_18, %c0_19, %c0_20, %c0_21], %39 {strides = array<i32>} : memref<1x3x3x64xbf16, #tpu.memory_space<vmem>>, vector<1x3x3x64xbf16>,
    return
  }
  func.func @transform_0(%arg0: i32) -> (i32, i32, i32, i32) {
    %c0_i32 = arith.constant 0 : i32
    %c0_i32_0 = arith.constant 0 : i32
    %c0_i32_1 = arith.constant 0 : i32
    %c0_i32_2 = arith.constant 0 : i32
    return %arg0, %c0_i32, %c0_i32_0, %c0_i32_1 : i32, i32, i32, i32
  }
  func.func @transform_1(%arg0: i32) -> (i32, i32, i32) {
    %c0_i32 = arith.constant 0 : i32
    %c0_i32_0 = arith.constant 0 : i32
    %c0_i32_1 = arith.constant 0 : i32
    %c0_i32_2 = arith.constant 0 : i32
    return %c0_i32, %c0_i32_0, %c0_i32_1 : i32, i32, i32
  }
  func.func @transform_2(%arg0: i32) -> (i32, i32) {
    %c0_i32 = arith.constant 0 : i32
    %c0_i32_0 = arith.constant 0 : i32
    %c0_i32_1 = arith.constant 0 : i32
    return %c0_i32, %c0_i32_0 : i32, i32
  }
  func.func @transform_3(%arg0: i32) -> (i32, i32) {
    %c0_i32 = arith.constant 0 : i32
    %c0_i32_0 = arith.constant 0 : i32
    %c0_i32_1 = arith.constant 0 : i32
    return %c0_i32, %c0_i32_0 : i32, i32
  }
  func.func @transform_4(%arg0: i32) -> (i32, i32) {
    %c0_i32 = arith.constant 0 : i32
    %c0_i32_0 = arith.constant 0 : i32
    %c0_i32_1 = arith.constant 0 : i32
    return %c0_i32, %c0_i32_0 : i32, i32
  }
  func.func @transform_5(%arg0: i32) -> (i32, i32, i32, i32) {
    %c0_i32 = arith.constant 0 : i32
    %c0_i32_0 = arith.constant 0 : i32
    %c0_i32_1 = arith.constant 0 : i32
    %c0_i32_2 = arith.constant 0 : i32
    return %arg0, %c0_i32, %c0_i32_0, %c0_i32_1 : i32, i32, i32, i32
  }
}

module attributes {stable_mosaic.version = 11 : i64} {
  func.func @_conv_in_lrelu_kernel(%arg0: i32, %arg1: memref<1x5x5x64xbf16, #tpu.memory_space<vmem>>, %arg2: memref<16x64x1xbf16, #tpu.memory_space<vmem>>, %arg3: memref<1x1xf32, #tpu.memory_space<vmem>>, %arg4: memref<1x1xf32, #tpu.memory_space<vmem>>, %arg5: memref<1x1xf32, #tpu.memory_space<vmem>>, %arg6: memref<1x2x2x1xf32, #tpu.memory_space<vmem>>, %arg7: memref<1x2x2x1xf32, #tpu.memory_space<vmem>>) attributes {dimension_semantics = [#tpu.dimension_semantics<parallel>], iteration_bounds = array<i64: 2>, scalar_prefetch = 0 : i64, scratch_operands = 1 : i64, tpu.core_type = #tpu.core_type<tc>, window_params = [{transform_indices = @transform_0, window_bounds = array<i64: 1, 5, 5, 64>}, {pipeline_mode = #tpu.pipeline_mode<synchronous>, transform_indices = @transform_1, window_bounds = array<i64: 16, 64, 1>}, {pipeline_mode = #tpu.pipeline_mode<synchronous>, transform_indices = @transform_2, window_bounds = array<i64: 1, 1>}, {pipeline_mode = #tpu.pipeline_mode<synchronous>, transform_indices = @transform_3, window_bounds = array<i64: 1, 1>}, {pipeline_mode = #tpu.pipeline_mode<synchronous>, transform_indices = @transform_4, window_bounds = array<i64: 1, 1>}, {transform_indices = @transform_5, window_bounds = array<i64: 1, 2, 2, 1>}]} {
    %c0_i32 = arith.constant 0 : i32
    %c2_i32 = arith.constant 2 : i32
    %0 = arith.addi %c0_i32, %c2_i32 : i32
    %c1_i32 = arith.constant 1 : i32
    scf.for %arg8 = %c0_i32 to %0 step %c1_i32  : i32 {
      %cst = arith.constant 0.000000e+00 : f32
      %15 = vector.broadcast %cst : f32 to vector<2x1xf32>
      %c1_i32_14 = arith.constant 1 : i32
      %16 = arith.muli %arg8, %c1_i32_14 : i32
      %c0_i32_15 = arith.constant 0 : i32
      %17 = arith.addi %16, %c0_i32_15 : i32
      %c0_16 = arith.constant 0 : index
      %18 = arith.index_cast %17 : i32 to index
      %c0_17 = arith.constant 0 : index
      %c0_18 = arith.constant 0 : index
      %19 = vector.load %arg1[%c0_16, %18, %c0_17, %c0_18] : memref<1x5x5x64xbf16, #tpu.memory_space<vmem>>, vector<1x1x2x64xbf16>
      %20 = vector.shape_cast %19 : vector<1x1x2x64xbf16> to vector<2x64xbf16>
      %c0_19 = arith.constant 0 : index
      %c0_20 = arith.constant 0 : index
      %c0_21 = arith.constant 0 : index
      %21 = vector.load %arg2[%c0_19, %c0_20, %c0_21] : memref<16x64x1xbf16, #tpu.memory_space<vmem>>, vector<1x64x1xbf16>
      %22 = vector.shape_cast %21 : vector<1x64x1xbf16> to vector<64x1xbf16>
      %cst_22 = arith.constant dense<0.000000e+00> : vector<2x1xf32>
      %23 = tpu.matmul %20, %22, %cst_22 {dimension_numbers = #tpu.dot_dimension_numbers<[1], [0], [0], [1], [0, 0, 1, 1], [], []>} : vector<2x64xbf16>, vector<64x1xbf16>, vector<2x1xf32> -> vector<2x1xf32>
      %24 = arith.addf %15, %23 : vector<2x1xf32>
      %c0_23 = arith.constant 0 : index
      %25 = arith.index_cast %17 : i32 to index
      %c1 = arith.constant 1 : index
      %c0_24 = arith.constant 0 : index
      %26 = vector.load %arg1[%c0_23, %25, %c1, %c0_24] : memref<1x5x5x64xbf16, #tpu.memory_space<vmem>>, vector<1x1x2x64xbf16>
      %27 = vector.shape_cast %26 : vector<1x1x2x64xbf16> to vector<2x64xbf16>
      %c1_25 = arith.constant 1 : index
      %c0_26 = arith.constant 0 : index
      %c0_27 = arith.constant 0 : index
      %28 = vector.load %arg2[%c1_25, %c0_26, %c0_27] : memref<16x64x1xbf16, #tpu.memory_space<vmem>>, vector<1x64x1xbf16>
      %29 = vector.shape_cast %28 : vector<1x64x1xbf16> to vector<64x1xbf16>
      %cst_28 = arith.constant dense<0.000000e+00> : vector<2x1xf32>
      %30 = tpu.matmul %27, %29, %cst_28 {dimension_numbers = #tpu.dot_dimension_numbers<[1], [0], [0], [1], [0, 0, 1, 1], [], []>} : vector<2x64xbf16>, vector<64x1xbf16>, vector<2x1xf32> -> vector<2x1xf32>
      %31 = arith.addf %24, %30 : vector<2x1xf32>
      %c0_29 = arith.constant 0 : index
      %32 = arith.index_cast %17 : i32 to index
      %c2 = arith.constant 2 : index
      %c0_30 = arith.constant 0 : index
      %33 = vector.load %arg1[%c0_29, %32, %c2, %c0_30] : memref<1x5x5x64xbf16, #tpu.memory_space<vmem>>, vector<1x1x2x64xbf16>
      %34 = vector.shape_cast %33 : vector<1x1x2x64xbf16> to vector<2x64xbf16>
      %c2_31 = arith.constant 2 : index
      %c0_32 = arith.constant 0 : index
      %c0_33 = arith.constant 0 : index
      %35 = vector.load %arg2[%c2_31, %c0_32, %c0_33] : memref<16x64x1xbf16, #tpu.memory_space<vmem>>, vector<1x64x1xbf16>
      %36 = vector.shape_cast %35 : vector<1x64x1xbf16> to vector<64x1xbf16>
      %cst_34 = arith.constant dense<0.000000e+00> : vector<2x1xf32>
      %37 = tpu.matmul %34, %36, %cst_34 {dimension_numbers = #tpu.dot_dimension_numbers<[1], [0], [0], [1], [0, 0, 1, 1], [], []>} : vector<2x64xbf16>, vector<64x1xbf16>, vector<2x1xf32> -> vector<2x1xf32>
      %38 = arith.addf %31, %37 : vector<2x1xf32>
      %c0_35 = arith.constant 0 : index
      %39 = arith.index_cast %17 : i32 to index
      %c3 = arith.constant 3 : index
      %c0_36 = arith.constant 0 : index
      %40 = vector.load %arg1[%c0_35, %39, %c3, %c0_36] : memref<1x5x5x64xbf16, #tpu.memory_space<vmem>>, vector<1x1x2x64xbf16>
      %41 = vector.shape_cast %40 : vector<1x1x2x64xbf16> to vector<2x64xbf16>
      %c3_37 = arith.constant 3 : index
      %c0_38 = arith.constant 0 : index
      %c0_39 = arith.constant 0 : index
      %42 = vector.load %arg2[%c3_37, %c0_38, %c0_39] : memref<16x64x1xbf16, #tpu.memory_space<vmem>>, vector<1x64x1xbf16>
      %43 = vector.shape_cast %42 : vector<1x64x1xbf16> to vector<64x1xbf16>
      %cst_40 = arith.constant dense<0.000000e+00> : vector<2x1xf32>
      %44 = tpu.matmul %41, %43, %cst_40 {dimension_numbers = #tpu.dot_dimension_numbers<[1], [0], [0], [1], [0, 0, 1, 1], [], []>} : vector<2x64xbf16>, vector<64x1xbf16>, vector<2x1xf32> -> vector<2x1xf32>
      %45 = arith.addf %38, %44 : vector<2x1xf32>
      %c1_i32_41 = arith.constant 1 : i32
      %46 = arith.muli %arg8, %c1_i32_41 : i32
      %c1_i32_42 = arith.constant 1 : i32
      %47 = arith.addi %46, %c1_i32_42 : i32
      %c0_43 = arith.constant 0 : index
      %48 = arith.index_cast %47 : i32 to index
      %c0_44 = arith.constant 0 : index
      %c0_45 = arith.constant 0 : index
      %49 = vector.load %arg1[%c0_43, %48, %c0_44, %c0_45] : memref<1x5x5x64xbf16, #tpu.memory_space<vmem>>, vector<1x1x2x64xbf16>
      %50 = vector.shape_cast %49 : vector<1x1x2x64xbf16> to vector<2x64xbf16>
      %c4 = arith.constant 4 : index
      %c0_46 = arith.constant 0 : index
      %c0_47 = arith.constant 0 : index
      %51 = vector.load %arg2[%c4, %c0_46, %c0_47] : memref<16x64x1xbf16, #tpu.memory_space<vmem>>, vector<1x64x1xbf16>
      %52 = vector.shape_cast %51 : vector<1x64x1xbf16> to vector<64x1xbf16>
      %cst_48 = arith.constant dense<0.000000e+00> : vector<2x1xf32>
      %53 = tpu.matmul %50, %52, %cst_48 {dimension_numbers = #tpu.dot_dimension_numbers<[1], [0], [0], [1], [0, 0, 1, 1], [], []>} : vector<2x64xbf16>, vector<64x1xbf16>, vector<2x1xf32> -> vector<2x1xf32>
      %54 = arith.addf %45, %53 : vector<2x1xf32>
      %c0_49 = arith.constant 0 : index
      %55 = arith.index_cast %47 : i32 to index
      %c1_50 = arith.constant 1 : index
      %c0_51 = arith.constant 0 : index
      %56 = vector.load %arg1[%c0_49, %55, %c1_50, %c0_51] : memref<1x5x5x64xbf16, #tpu.memory_space<vmem>>, vector<1x1x2x64xbf16>
      %57 = vector.shape_cast %56 : vector<1x1x2x64xbf16> to vector<2x64xbf16>
      %c5 = arith.constant 5 : index
      %c0_52 = arith.constant 0 : index
      %c0_53 = arith.constant 0 : index
      %58 = vector.load %arg2[%c5, %c0_52, %c0_53] : memref<16x64x1xbf16, #tpu.memory_space<vmem>>, vector<1x64x1xbf16>
      %59 = vector.shape_cast %58 : vector<1x64x1xbf16> to vector<64x1xbf16>
      %cst_54 = arith.constant dense<0.000000e+00> : vector<2x1xf32>
      %60 = tpu.matmul %57, %59, %cst_54 {dimension_numbers = #tpu.dot_dimension_numbers<[1], [0], [0], [1], [0, 0, 1, 1], [], []>} : vector<2x64xbf16>, vector<64x1xbf16>, vector<2x1xf32> -> vector<2x1xf32>
      %61 = arith.addf %54, %60 : vector<2x1xf32>
      %c0_55 = arith.constant 0 : index
      %62 = arith.index_cast %47 : i32 to index
      %c2_56 = arith.constant 2 : index
      %c0_57 = arith.constant 0 : index
      %63 = vector.load %arg1[%c0_55, %62, %c2_56, %c0_57] : memref<1x5x5x64xbf16, #tpu.memory_space<vmem>>, vector<1x1x2x64xbf16>
      %64 = vector.shape_cast %63 : vector<1x1x2x64xbf16> to vector<2x64xbf16>
      %c6 = arith.constant 6 : index
      %c0_58 = arith.constant 0 : index
      %c0_59 = arith.constant 0 : index
      %65 = vector.load %arg2[%c6, %c0_58, %c0_59] : memref<16x64x1xbf16, #tpu.memory_space<vmem>>, vector<1x64x1xbf16>
      %66 = vector.shape_cast %65 : vector<1x64x1xbf16> to vector<64x1xbf16>
      %cst_60 = arith.constant dense<0.000000e+00> : vector<2x1xf32>
      %67 = tpu.matmul %64, %66, %cst_60 {dimension_numbers = #tpu.dot_dimension_numbers<[1], [0], [0], [1], [0, 0, 1, 1], [], []>} : vector<2x64xbf16>, vector<64x1xbf16>, vector<2x1xf32> -> vector<2x1xf32>
      %68 = arith.addf %61, %67 : vector<2x1xf32>
      %c0_61 = arith.constant 0 : index
      %69 = arith.index_cast %47 : i32 to index
      %c3_62 = arith.constant 3 : index
      %c0_63 = arith.constant 0 : index
      %70 = vector.load %arg1[%c0_61, %69, %c3_62, %c0_63] : memref<1x5x5x64xbf16, #tpu.memory_space<vmem>>, vector<1x1x2x64xbf16>
      %71 = vector.shape_cast %70 : vector<1x1x2x64xbf16> to vector<2x64xbf16>
      %c7 = arith.constant 7 : index
      %c0_64 = arith.constant 0 : index
      %c0_65 = arith.constant 0 : index
      %72 = vector.load %arg2[%c7, %c0_64, %c0_65] : memref<16x64x1xbf16, #tpu.memory_space<vmem>>, vector<1x64x1xbf16>
      %73 = vector.shape_cast %72 : vector<1x64x1xbf16> to vector<64x1xbf16>
      %cst_66 = arith.constant dense<0.000000e+00> : vector<2x1xf32>
      %74 = tpu.matmul %71, %73, %cst_66 {dimension_numbers = #tpu.dot_dimension_numbers<[1], [0], [0], [1], [0, 0, 1, 1], [], []>} : vector<2x64xbf16>, vector<64x1xbf16>, vector<2x1xf32> -> vector<2x1xf32>
      %75 = arith.addf %68, %74 : vector<2x1xf32>
      %c1_i32_67 = arith.constant 1 : i32
      %76 = arith.muli %arg8, %c1_i32_67 : i32
      %c2_i32_68 = arith.constant 2 : i32
      %77 = arith.addi %76, %c2_i32_68 : i32
      %c0_69 = arith.constant 0 : index
      %78 = arith.index_cast %77 : i32 to index
      %c0_70 = arith.constant 0 : index
      %c0_71 = arith.constant 0 : index
      %79 = vector.load %arg1[%c0_69, %78, %c0_70, %c0_71] : memref<1x5x5x64xbf16, #tpu.memory_space<vmem>>, vector<1x1x2x64xbf16>
      %80 = vector.shape_cast %79 : vector<1x1x2x64xbf16> to vector<2x64xbf16>
      %c8 = arith.constant 8 : index
      %c0_72 = arith.constant 0 : index
      %c0_73 = arith.constant 0 : index
      %81 = vector.load %arg2[%c8, %c0_72, %c0_73] : memref<16x64x1xbf16, #tpu.memory_space<vmem>>, vector<1x64x1xbf16>
      %82 = vector.shape_cast %81 : vector<1x64x1xbf16> to vector<64x1xbf16>
      %cst_74 = arith.constant dense<0.000000e+00> : vector<2x1xf32>
      %83 = tpu.matmul %80, %82, %cst_74 {dimension_numbers = #tpu.dot_dimension_numbers<[1], [0], [0], [1], [0, 0, 1, 1], [], []>} : vector<2x64xbf16>, vector<64x1xbf16>, vector<2x1xf32> -> vector<2x1xf32>
      %84 = arith.addf %75, %83 : vector<2x1xf32>
      %c0_75 = arith.constant 0 : index
      %85 = arith.index_cast %77 : i32 to index
      %c1_76 = arith.constant 1 : index
      %c0_77 = arith.constant 0 : index
      %86 = vector.load %arg1[%c0_75, %85, %c1_76, %c0_77] : memref<1x5x5x64xbf16, #tpu.memory_space<vmem>>, vector<1x1x2x64xbf16>
      %87 = vector.shape_cast %86 : vector<1x1x2x64xbf16> to vector<2x64xbf16>
      %c9 = arith.constant 9 : index
      %c0_78 = arith.constant 0 : index
      %c0_79 = arith.constant 0 : index
      %88 = vector.load %arg2[%c9, %c0_78, %c0_79] : memref<16x64x1xbf16, #tpu.memory_space<vmem>>, vector<1x64x1xbf16>
      %89 = vector.shape_cast %88 : vector<1x64x1xbf16> to vector<64x1xbf16>
      %cst_80 = arith.constant dense<0.000000e+00> : vector<2x1xf32>
      %90 = tpu.matmul %87, %89, %cst_80 {dimension_numbers = #tpu.dot_dimension_numbers<[1], [0], [0], [1], [0, 0, 1, 1], [], []>} : vector<2x64xbf16>, vector<64x1xbf16>, vector<2x1xf32> -> vector<2x1xf32>
      %91 = arith.addf %84, %90 : vector<2x1xf32>
      %c0_81 = arith.constant 0 : index
      %92 = arith.index_cast %77 : i32 to index
      %c2_82 = arith.constant 2 : index
      %c0_83 = arith.constant 0 : index
      %93 = vector.load %arg1[%c0_81, %92, %c2_82, %c0_83] : memref<1x5x5x64xbf16, #tpu.memory_space<vmem>>, vector<1x1x2x64xbf16>
      %94 = vector.shape_cast %93 : vector<1x1x2x64xbf16> to vector<2x64xbf16>
      %c10 = arith.constant 10 : index
      %c0_84 = arith.constant 0 : index
      %c0_85 = arith.constant 0 : index
      %95 = vector.load %arg2[%c10, %c0_84, %c0_85] : memref<16x64x1xbf16, #tpu.memory_space<vmem>>, vector<1x64x1xbf16>
      %96 = vector.shape_cast %95 : vector<1x64x1xbf16> to vector<64x1xbf16>
      %cst_86 = arith.constant dense<0.000000e+00> : vector<2x1xf32>
      %97 = tpu.matmul %94, %96, %cst_86 {dimension_numbers = #tpu.dot_dimension_numbers<[1], [0], [0], [1], [0, 0, 1, 1], [], []>} : vector<2x64xbf16>, vector<64x1xbf16>, vector<2x1xf32> -> vector<2x1xf32>
      %98 = arith.addf %91, %97 : vector<2x1xf32>
      %c0_87 = arith.constant 0 : index
      %99 = arith.index_cast %77 : i32 to index
      %c3_88 = arith.constant 3 : index
      %c0_89 = arith.constant 0 : index
      %100 = vector.load %arg1[%c0_87, %99, %c3_88, %c0_89] : memref<1x5x5x64xbf16, #tpu.memory_space<vmem>>, vector<1x1x2x64xbf16>
      %101 = vector.shape_cast %100 : vector<1x1x2x64xbf16> to vector<2x64xbf16>
      %c11 = arith.constant 11 : index
      %c0_90 = arith.constant 0 : index
      %c0_91 = arith.constant 0 : index
      %102 = vector.load %arg2[%c11, %c0_90, %c0_91] : memref<16x64x1xbf16, #tpu.memory_space<vmem>>, vector<1x64x1xbf16>
      %103 = vector.shape_cast %102 : vector<1x64x1xbf16> to vector<64x1xbf16>
      %cst_92 = arith.constant dense<0.000000e+00> : vector<2x1xf32>
      %104 = tpu.matmul %101, %103, %cst_92 {dimension_numbers = #tpu.dot_dimension_numbers<[1], [0], [0], [1], [0, 0, 1, 1], [], []>} : vector<2x64xbf16>, vector<64x1xbf16>, vector<2x1xf32> -> vector<2x1xf32>
      %105 = arith.addf %98, %104 : vector<2x1xf32>
      %c1_i32_93 = arith.constant 1 : i32
      %106 = arith.muli %arg8, %c1_i32_93 : i32
      %c3_i32 = arith.constant 3 : i32
      %107 = arith.addi %106, %c3_i32 : i32
      %c0_94 = arith.constant 0 : index
      %108 = arith.index_cast %107 : i32 to index
      %c0_95 = arith.constant 0 : index
      %c0_96 = arith.constant 0 : index
      %109 = vector.load %arg1[%c0_94, %108, %c0_95, %c0_96] : memref<1x5x5x64xbf16, #tpu.memory_space<vmem>>, vector<1x1x2x64xbf16>
      %110 = vector.shape_cast %109 : vector<1x1x2x64xbf16> to vector<2x64xbf16>
      %c12 = arith.constant 12 : index
      %c0_97 = arith.constant 0 : index
      %c0_98 = arith.constant 0 : index
      %111 = vector.load %arg2[%c12, %c0_97, %c0_98] : memref<16x64x1xbf16, #tpu.memory_space<vmem>>, vector<1x64x1xbf16>
      %112 = vector.shape_cast %111 : vector<1x64x1xbf16> to vector<64x1xbf16>
      %cst_99 = arith.constant dense<0.000000e+00> : vector<2x1xf32>
      %113 = tpu.matmul %110, %112, %cst_99 {dimension_numbers = #tpu.dot_dimension_numbers<[1], [0], [0], [1], [0, 0, 1, 1], [], []>} : vector<2x64xbf16>, vector<64x1xbf16>, vector<2x1xf32> -> vector<2x1xf32>
      %114 = arith.addf %105, %113 : vector<2x1xf32>
      %c0_100 = arith.constant 0 : index
      %115 = arith.index_cast %107 : i32 to index
      %c1_101 = arith.constant 1 : index
      %c0_102 = arith.constant 0 : index
      %116 = vector.load %arg1[%c0_100, %115, %c1_101, %c0_102] : memref<1x5x5x64xbf16, #tpu.memory_space<vmem>>, vector<1x1x2x64xbf16>
      %117 = vector.shape_cast %116 : vector<1x1x2x64xbf16> to vector<2x64xbf16>
      %c13 = arith.constant 13 : index
      %c0_103 = arith.constant 0 : index
      %c0_104 = arith.constant 0 : index
      %118 = vector.load %arg2[%c13, %c0_103, %c0_104] : memref<16x64x1xbf16, #tpu.memory_space<vmem>>, vector<1x64x1xbf16>
      %119 = vector.shape_cast %118 : vector<1x64x1xbf16> to vector<64x1xbf16>
      %cst_105 = arith.constant dense<0.000000e+00> : vector<2x1xf32>
      %120 = tpu.matmul %117, %119, %cst_105 {dimension_numbers = #tpu.dot_dimension_numbers<[1], [0], [0], [1], [0, 0, 1, 1], [], []>} : vector<2x64xbf16>, vector<64x1xbf16>, vector<2x1xf32> -> vector<2x1xf32>
      %121 = arith.addf %114, %120 : vector<2x1xf32>
      %c0_106 = arith.constant 0 : index
      %122 = arith.index_cast %107 : i32 to index
      %c2_107 = arith.constant 2 : index
      %c0_108 = arith.constant 0 : index
      %123 = vector.load %arg1[%c0_106, %122, %c2_107, %c0_108] : memref<1x5x5x64xbf16, #tpu.memory_space<vmem>>, vector<1x1x2x64xbf16>
      %124 = vector.shape_cast %123 : vector<1x1x2x64xbf16> to vector<2x64xbf16>
      %c14 = arith.constant 14 : index
      %c0_109 = arith.constant 0 : index
      %c0_110 = arith.constant 0 : index
      %125 = vector.load %arg2[%c14, %c0_109, %c0_110] : memref<16x64x1xbf16, #tpu.memory_space<vmem>>, vector<1x64x1xbf16>
      %126 = vector.shape_cast %125 : vector<1x64x1xbf16> to vector<64x1xbf16>
      %cst_111 = arith.constant dense<0.000000e+00> : vector<2x1xf32>
      %127 = tpu.matmul %124, %126, %cst_111 {dimension_numbers = #tpu.dot_dimension_numbers<[1], [0], [0], [1], [0, 0, 1, 1], [], []>} : vector<2x64xbf16>, vector<64x1xbf16>, vector<2x1xf32> -> vector<2x1xf32>
      %128 = arith.addf %121, %127 : vector<2x1xf32>
      %c0_112 = arith.constant 0 : index
      %129 = arith.index_cast %107 : i32 to index
      %c3_113 = arith.constant 3 : index
      %c0_114 = arith.constant 0 : index
      %130 = vector.load %arg1[%c0_112, %129, %c3_113, %c0_114] : memref<1x5x5x64xbf16, #tpu.memory_space<vmem>>, vector<1x1x2x64xbf16>
      %131 = vector.shape_cast %130 : vector<1x1x2x64xbf16> to vector<2x64xbf16>
      %c15 = arith.constant 15 : index
      %c0_115 = arith.constant 0 : index
      %c0_116 = arith.constant 0 : index
      %132 = vector.load %arg2[%c15, %c0_115, %c0_116] : memref<16x64x1xbf16, #tpu.memory_space<vmem>>, vector<1x64x1xbf16>
      %133 = vector.shape_cast %132 : vector<1x64x1xbf16> to vector<64x1xbf16>
      %cst_117 = arith.constant dense<0.000000e+00> : vector<2x1xf32>
      %134 = tpu.matmul %131, %133, %cst_117 {dimension_numbers = #tpu.dot_dimension_numbers<[1], [0], [0], [1], [0, 0, 1, 1], [], []>} : vector<2x64xbf16>, vector<64x1xbf16>, vector<2x1xf32> -> vector<2x1xf32>
      %135 = arith.addf %128, %134 : vector<2x1xf32>
      %c0_118 = arith.constant 0 : index
      %136 = arith.index_cast %arg8 : i32 to index
      %c0_119 = arith.constant 0 : index
      %c0_120 = arith.constant 0 : index
      %137 = vector.load %arg7[%c0_118, %136, %c0_119, %c0_120] : memref<1x2x2x1xf32, #tpu.memory_space<vmem>>, vector<1x1x2x1xf32>
      %138 = vector.shape_cast %137 : vector<1x1x2x1xf32> to vector<2x1xf32>
      %139 = vector.shape_cast %135 : vector<2x1xf32> to vector<1x1x2x1xf32>
      tpu.vector_store %arg7[%c0_118, %136, %c0_119, %c0_120], %139 {strides = array<i32>} : memref<1x2x2x1xf32, #tpu.memory_space<vmem>>, vector<1x1x2x1xf32>,
    }
    %c2_i32_0 = arith.constant 2 : i32
    %c0 = arith.constant 0 : index
    %c0_1 = arith.constant 0 : index
    %c0_2 = arith.constant 0 : index
    %c0_3 = arith.constant 0 : index
    %1 = vector.load %arg7[%c0, %c0_1, %c0_2, %c0_3] : memref<1x2x2x1xf32, #tpu.memory_space<vmem>>, vector<1x2x2x1xf32>
    %c0_4 = arith.constant 0 : index
    %c0_5 = arith.constant 0 : index
    %2 = vector.load %arg3[%c0_4, %c0_5] : memref<1x1xf32, #tpu.memory_space<vmem>>, vector<1x1xf32>
    %3 = vector.shape_cast %2 : vector<1x1xf32> to vector<1x1x1x1xf32>
    %4 = vector.broadcast %3 : vector<1x1x1x1xf32> to vector<1x2x2x1xf32>
    %5 = arith.addf %1, %4 : vector<1x2x2x1xf32>
    %c0_6 = arith.constant 0 : index
    %c0_7 = arith.constant 0 : index
    %6 = vector.load %arg4[%c0_6, %c0_7] : memref<1x1xf32, #tpu.memory_space<vmem>>, vector<1x1xf32>
    %7 = vector.shape_cast %6 : vector<1x1xf32> to vector<1x1x1x1xf32>
    %8 = vector.broadcast %7 : vector<1x1x1x1xf32> to vector<1x2x2x1xf32>
    %9 = arith.mulf %5, %8 : vector<1x2x2x1xf32>
    %c0_8 = arith.constant 0 : index
    %c0_9 = arith.constant 0 : index
    %10 = vector.load %arg5[%c0_8, %c0_9] : memref<1x1xf32, #tpu.memory_space<vmem>>, vector<1x1xf32>
    %11 = vector.shape_cast %10 : vector<1x1xf32> to vector<1x1x1x1xf32>
    %12 = vector.broadcast %11 : vector<1x1x1x1xf32> to vector<1x2x2x1xf32>
    %13 = arith.addf %9, %12 : vector<1x2x2x1xf32>
    %c0_10 = arith.constant 0 : index
    %c0_11 = arith.constant 0 : index
    %c0_12 = arith.constant 0 : index
    %c0_13 = arith.constant 0 : index
    %14 = vector.load %arg6[%c0_10, %c0_11, %c0_12, %c0_13] : memref<1x2x2x1xf32, #tpu.memory_space<vmem>>, vector<1x2x2x1xf32>
    tpu.vector_store %arg6[%c0_10, %c0_11, %c0_12, %c0_13], %13 {strides = array<i32>} : memref<1x2x2x1xf32, #tpu.memory_space<vmem>>, vector<1x2x2x1xf32>,
    return
  }
  func.func @transform_0(%arg0: i32) -> (i32, i32, i32, i32) {
    %c0_i32 = arith.constant 0 : i32
    %c0_i32_0 = arith.constant 0 : i32
    %c0_i32_1 = arith.constant 0 : i32
    %c0_i32_2 = arith.constant 0 : i32
    return %arg0, %c0_i32, %c0_i32_0, %c0_i32_1 : i32, i32, i32, i32
  }
  func.func @transform_1(%arg0: i32) -> (i32, i32, i32) {
    %c0_i32 = arith.constant 0 : i32
    %c0_i32_0 = arith.constant 0 : i32
    %c0_i32_1 = arith.constant 0 : i32
    %c0_i32_2 = arith.constant 0 : i32
    return %c0_i32, %c0_i32_0, %c0_i32_1 : i32, i32, i32
  }
  func.func @transform_2(%arg0: i32) -> (i32, i32) {
    %c0_i32 = arith.constant 0 : i32
    %c0_i32_0 = arith.constant 0 : i32
    %c0_i32_1 = arith.constant 0 : i32
    return %c0_i32, %c0_i32_0 : i32, i32
  }
  func.func @transform_3(%arg0: i32) -> (i32, i32) {
    %c0_i32 = arith.constant 0 : i32
    %c0_i32_0 = arith.constant 0 : i32
    %c0_i32_1 = arith.constant 0 : i32
    return %c0_i32, %c0_i32_0 : i32, i32
  }
  func.func @transform_4(%arg0: i32) -> (i32, i32) {
    %c0_i32 = arith.constant 0 : i32
    %c0_i32_0 = arith.constant 0 : i32
    %c0_i32_1 = arith.constant 0 : i32
    return %c0_i32, %c0_i32_0 : i32, i32
  }
  func.func @transform_5(%arg0: i32) -> (i32, i32, i32, i32) {
    %c0_i32 = arith.constant 0 : i32
    %c0_i32_0 = arith.constant 0 : i32
    %c0_i32_1 = arith.constant 0 : i32
    %c0_i32_2 = arith.constant 0 : i32
    return %arg0, %c0_i32, %c0_i32_0, %c0_i32_1 : i32, i32, i32, i32
  }
}

</mosaic_0001>

<bundles_post_ra>
// kernel: discriminator_forward.5
= control target key start
LH: loop header
LB: loop body
LE: loop exit
PB: predicated region body
PF: predicated region fallthrough
CT: control target
= control target key end

     0   :  { %s3639_s18 = smov 0   ;;  %s4574_s0 = inlined_call_operand.vmem [shape: f32[2,66,33,12], index: 0, kind: input, shape index: {}]   ;;  %s4575_s1 = inlined_call_operand.vmem [shape: bf16[16,6,8], index: 1, kind: input, shape index: {}]   ;;  %s4576_s2 = inlined_call_operand.vmem [shape: f32[1,8], index: 2, kind: input, shape index: {}]   ;;  %s4577_s3 = inlined_call_operand.vmem [shape: f32[1,8], index: 3, kind: input, shape index: {}]   ;;  %s4578_s4 = inlined_call_operand.vmem [shape: f32[1,8], index: 4, kind: input, shape index: {}]   ;;  %s4579_s5 = inlined_call_operand.vmem [shape: bf16[2,32,32,8], index: 5, kind: output, shape index: {}]  }
   0x1 LB: > { %s2998_s19 = sadd.s32 4294967295, %s3602_s18   ;;  %p3002_p0 = scmp.ge.s32.totalorder %s3602_s18, 1  ;;  %s3602_s18 = sphi %s3639_s18, %s15_s18  }
   0x2   : > { %p187_p1 = scmp.lt.s32.totalorder %s3602_s18, 3 }
   0x4   : > { %p188_p2 = pnand %p3002_p0, %p187_p1 }
   0x5   : > { %p215_p3 = scmp.lt.s32.totalorder (!%p188_p2), %s2998_s19, 1  ;;  %s3657_s28 = smov (!%p188_p2), 0  }
   0x6   : > { %191 = sbr.rel (%p188_p2) target bundleno = 686 (0x2ae), region = 40 }
   0xd   : > { %s4581_s19 = smov (!%p215_p3, %s2998_s19), 1 }
   0xe   : > { %s3568_s20 = smul.u32 2640, %s4581_s19  ;;  %s3219_s21 = sshll.u32 %s4581_s19, 9 }
   0xf   : > { %s3650_s24 = scalar_lea.vmem %s4579_s5, %s3219_s21 }
  0x10   : > { %s3655_s27 = scalar_lea.vmem %s4574_s0, %s3568_s20 }
  0x11 LB: >> { %vm257_vm0 = vcmask 1042432   ;;  %v3047_v0 = vld [vmem:[%s4575_s1 + $0x20] sm:$0x7]  ;;  %v3008_v2 = vld [vmem:[%s4575_s1 + $0x4] sm:$0x7]  ;;  %s3007_s10 = smul.u32 80, %s3606_s28  ;;  %s3606_s28 = sphi %s3657_s28, %s231_s28  }
  0x12   : >> { %3560 = vmatprep.subr.msk.bf16.mxu0 %vm257_vm0, %v3047_v0  ;;  %v809_v1 = vsel %vm257_vm0, %v3047_v0, 0  ;;  %v3050_v3 = vld [vmem:[%s4575_s1 + $0x24] sm:$0x7]  ;;  %3552 = vmatprep.subr.msk.bf16.mxu1 %vm257_vm0, %v3008_v2  ;;  %v259_v4 = vsel %vm257_vm0, %v3008_v2, 0  ;;  %v3679_v5 = vld [vmem:[%s4575_s1] sm:$0x7] }
  0x13   : >> { %3445 = vmatpush3.bf16.msra.mxu0 %v809_v1  ;;  %3397 = vmatpush3.bf16.msra.mxu1 %v259_v4  ;;  %s3683_s13 = scalar_lea.vmem %s3655_s27, %s3007_s10  ;;  %vm250_vm1 = vcmask 48128   ;;  %v879_v17 = vsel %vm257_vm0, %v3050_v3, 0  ;;  %s3608_s14 = smov 122   ;;  %v3057_v18 = vld [vmem:[%s4575_s1 + $0x28] sm:$0x7]  ;;  %v317_v60 = vsel %vm257_vm0, %v3679_v5, 0 }
  0x14   : >> { %3561 = vmatprep.subr.msk.bf16.mxu0 %vm257_vm0, %v3050_v3  ;;  %3553 = vmatprep.subr.msk.bf16.mxu1 %vm257_vm0, %v3679_v5  ;;  %v3043_v6 = vld [vmem:[%s3683_s13 + $0x50] sm:$0xff]  ;;  %v3044_v7 = vld [vmem:[%s3683_s13 + $0x58] sm:$0xff]  ;;  %v235_v8 = vld [vmem:[%s3683_s13] sm:$0xff]  ;;  %v949_v58 = vsel %vm257_vm0, %v3057_v18, 0  ;;  %s3085_s19 = sshll.u32 %s3606_s28, 5  ;;  %vm1359_vm2 = vcmask 64512  }
  0x15   : >> { %v798_v9 = vpack.c.bf16 %v3044_v7, %v3043_v6  ;;  %v236_v10 = vld [vmem:[%s3683_s13 + $0x8] sm:$0xff]  ;;  %v3045_v11 = vld [vmem:[%s3683_s13 + $0x60] sm:$0xff]  ;;  %v237_v15 = vld [vmem:[%s3683_s13 + $0x10] sm:$0xff]  ;;  %s1358_s20 = scalar_lea.vmem [#allocation2], %s3085_s19  ;;  %s231_s28 = sadd.s32 1, %s3606_s28  }
  0x16   : >> { %v3046_v12 = vld [vmem:[%s3683_s13 + $0x68] sm:$0xff]  ;;  %v3693_v13 = vpack.c.bf16 %v236_v10, %v235_v8  ;;  %v238_v16 = vld [vmem:[%s3683_s13 + $0x18] sm:$0xff]  ;;  %v3066_v33 = vld [vmem:[%s3683_s13 + $0x80] sm:$0xff]  ;;  %p228_p4 = scmp.ge.s32.totalorder %s231_s28, 32  }
  0x17   : >> { %v799_v14 = vpack.c.bf16 %v3046_v12, %v3045_v11  ;;  %868 = vrot.lane.b32.xlu1 %v798_v9, %s3608_s14  ;;  %3446 = vmatprep.mubr.msk.bf16.mxu0 %vm250_vm1, %v798_v9  ;;  %v3705_v19 = vpack.c.bf16 %v238_v16, %v237_v15  ;;  %v3053_v20 = vld [vmem:[%s3683_s13 + $0x51] sm:$0xff]  ;;  %v3054_v21 = vld [vmem:[%s3683_s13 + $0x59] sm:$0xff]  ;;  %v368_v22 = vld [vmem:[%s3683_s13 + $0x1] sm:$0xff]  ;;  %vm2793_vm3 = vcmask (%p228_p4), 60416  }
  0x18   : >> { %246 = vrot.lane.b32.xlu0 %v3693_v13, %s3608_s14  ;;  %v369_v23 = vld [vmem:[%s3683_s13 + $0x9] sm:$0xff]  ;;  %v938_v24 = vpack.c.bf16 %v3054_v21, %v3053_v20  ;;  %v3055_v25 = vld [vmem:[%s3683_s13 + $0x61] sm:$0xff]  ;;  %v370_v28 = vld [vmem:[%s3683_s13 + $0x11] sm:$0xff] }
  0x19   : >> { %3447 = vmatmul.mubr.msk.bf16.vlgmr.msra.gmra.mrb[0].mxu0 %vm250_vm1, %v799_v14  ;;  %v3056_v26 = vld [vmem:[%s3683_s13 + $0x69] sm:$0xff]  ;;  %v3718_v27 = vpack.c.bf16 %v369_v23, %v368_v22  ;;  %v371_v29 = vld [vmem:[%s3683_s13 + $0x19] sm:$0xff]  ;;  %v3076_v45 = vld [vmem:[%s3683_s13 + $0x81] sm:$0xff] }
  0x1a   : >> { %3451 = vmatpush3.bf16.msra.mxu0 %v879_v17  ;;  %v939_v30 = vpack.c.bf16 %v3056_v26, %v3055_v25  ;;  %v3725_v31 = vpack.c.bf16 %v371_v29, %v370_v28  ;;  %v3065_v32 = vld [vmem:[%s3683_s13 + $0x78] sm:$0xff]  ;;  %v3021_v34 = vld [vmem:[%s3683_s13 + $0x28] sm:$0xff]  ;;  %v3022_v35 = vld [vmem:[%s3683_s13 + $0x30] sm:$0xff] }
  0x1b   : >> { %3562 = vmatprep.subr.msk.bf16.mxu0 %vm257_vm0, %v3057_v18  ;;  %870 = vrot.lane.b32.xlu1 %v799_v14, %s3608_s14  ;;  %v3732_v36 = vpack.c.bf16 %v3066_v33, %v3065_v32  ;;  %v3067_v37 = vld [vmem:[%s3683_s13 + $0x88] sm:$0xff]  ;;  %v3068_v38 = vld [vmem:[%s3683_s13 + $0x90] sm:$0xff]  ;;  %v3738_v39 = vpack.c.bf16 %v3022_v35, %v3021_v34  ;;  %v3023_v40 = vld [vmem:[%s3683_s13 + $0x38] sm:$0xff] }
  0x1c   : >> { %248 = vrot.lane.b32.xlu0 %v3705_v19, %s3608_s14  ;;  %v3024_v41 = vld [vmem:[%s3683_s13 + $0x40] sm:$0xff]  ;;  %v3744_v42 = vpack.c.bf16 %v3068_v38, %v3067_v37  ;;  %v3031_v46 = vld [vmem:[%s3683_s13 + $0x29] sm:$0xff]  ;;  %v3032_v47 = vld [vmem:[%s3683_s13 + $0x31] sm:$0xff] }
  0x1d   : >> { %v3748_v43 = vpack.c.bf16 %v3024_v41, %v3023_v40  ;;  %v3075_v44 = vld [vmem:[%s3683_s13 + $0x79] sm:$0xff]  ;;  %v3077_v49 = vld [vmem:[%s3683_s13 + $0x89] sm:$0xff]  ;;  %v3078_v50 = vld [vmem:[%s3683_s13 + $0x91] sm:$0xff]  ;;  %v3762_v51 = vpack.c.bf16 %v3032_v47, %v3031_v46 }
  0x1e   : >> { %v3756_v48 = vpack.c.bf16 %v3076_v45, %v3075_v44  ;;  %v3033_v52 = vld [vmem:[%s3683_s13 + $0x39] sm:$0xff]  ;;  %v3034_v53 = vld [vmem:[%s3683_s13 + $0x41] sm:$0xff]  ;;  %v3768_v54 = vpack.c.bf16 %v3078_v50, %v3077_v49  ;;  %v3060_v63 = vld [vmem:[%s4575_s1 + $0x2c] sm:$0x7] }
  0x1f   : >> { %1008 = vrot.lane.b32.xlu1 %v938_v24, %s3608_s14  ;;  %v3772_v55 = vpack.c.bf16 %v3034_v53, %v3033_v52  ;;  %v3013_v62 = vld [vmem:[%s4575_s1 + $0x8] sm:$0x7]  ;;  %v1019_v0 = vsel %vm257_vm0, %v3060_v63, 0  ;;  %v3016_v2 = vld [vmem:[%s4575_s1 + $0xc] sm:$0x7] }
  0x20   : >> { %442 = vrot.lane.b32.xlu0 %v3718_v27, %s3608_s14  ;;  %v383_v1 = vsel %vm257_vm0, %v3013_v62, 0  ;;  %v3069_v3 = vld [vmem:[%s4575_s1 + $0x30] sm:$0x7]  ;;  %v453_v7 = vsel %vm257_vm0, %v3016_v2, 0  ;;  %v3072_v10 = vld [vmem:[%s4575_s1 + $0x34] sm:$0x7] }
  0x21   : >> { %v1092_v6 = vsel %vm257_vm0, %v3069_v3, 0  ;;  %v3025_v9 = vld [vmem:[%s4575_s1 + $0x10] sm:$0x7]  ;;  %v1162_v12 = vsel %vm257_vm0, %v3072_v10, 0  ;;  %v3028_v14 = vld [vmem:[%s4575_s1 + $0x14] sm:$0x7] }
  0x22   : >> { %v3079_v15 = vld [vmem:[%s4575_s1 + $0x38] sm:$0x7]  ;;  %v3082_v22 = vld [vmem:[%s4575_s1 + $0x3c] sm:$0x7]  ;;  %v3885_v45 = vld [vmem:[%s4576_s2] ss:$0 sm:$0xff] (%p228_p4) }
  0x23   : >> { %1010 = vrot.lane.b32.xlu1 %v939_v30, %s3608_s14  ;;  %v1232_v18 = vsel %vm257_vm0, %v3079_v15, 0  ;;  %v3035_v21 = vld [vmem:[%s4575_s1 + $0x18] sm:$0x7]  ;;  %v3038_v26 = vld [vmem:[%s4575_s1 + $0x1c] sm:$0x7] }
  0x24   : >> { %444 = vrot.lane.b32.xlu0 %v3725_v31, %s3608_s14  ;;  %v666_v25 = vsel %vm257_vm0, %v3035_v21, 0  ;;  %v736_v29 = vsel %vm257_vm0, %v3038_v26, 0  ;;  %v3890_v46 = vld [vmem:[%s4577_s3] ss:$0 sm:$0xff] (%p228_p4) }
  0x27   : >> { %1151 = vrot.lane.b32.xlu1 %v3732_v36, %s3608_s14 }
  0x28   : >> { %585 = vrot.lane.b32.xlu0 %v3738_v39, %s3608_s14 }
  0x2b   : >> { %1153 = vrot.lane.b32.xlu1 %v3744_v42, %s3608_s14 }
  0x2c   : >> { %587 = vrot.lane.b32.xlu0 %v3748_v43, %s3608_s14 }
  0x2f   : >> { %1291 = vrot.lane.b32.xlu1 %v3756_v48, %s3608_s14 }
  0x30   : >> { %725 = vrot.lane.b32.xlu0 %v3762_v51, %s3608_s14 }
  0x33   : >> { %1293 = vrot.lane.b32.xlu1 %v3768_v54, %s3608_s14 }
  0x34   : >> { %727 = vrot.lane.b32.xlu0 %v3772_v55, %s3608_s14 }
  0x89   : >> { %v869_v56 = vpop.permute.xlu1 %868 }
  0x8a   : >> { %v247_v57 = vpop.permute.xlu0 %246  ;;  %3452 = vmatprep.mubr.msk.bf16.mxu0 %vm250_vm1, %v869_v56 }
  0x8b   : >> { %3398 = vmatprep.mubr.msk.bf16.mxu1 %vm250_vm1, %v247_v57 }
  0x8d   : >> { %v871_v59 = vpop.permute.xlu1 %870 }
  0x8e   : >> { %v249_v61 = vpop.permute.xlu0 %248  ;;  %3453 = vmatmul.mubr.msk.bf16.vlgmr.msra.gmra.mrb[0].mxu0 %vm250_vm1, %v871_v59 }
  0x8f   : >> { %3399 = vmatmul.mubr.msk.bf16.vlgmr.msra.gmra.mrb[0].mxu1 %vm250_vm1, %v249_v61  ;;  %3457 = vmatpush3.bf16.msra.mxu0 %v949_v58 }
  0x90   : >> { %3403 = vmatpush3.bf16.msra.mxu1 %v317_v60  ;;  %3404 = vmatprep.mubr.msk.bf16.mxu1 %vm250_vm1, %v3693_v13  ;;  %v526_v13 = vsel %vm257_vm0, %v3025_v9, 0 }
  0x91   : >> { %3554 = vmatprep.subr.msk.bf16.mxu1 %vm257_vm0, %v3013_v62  ;;  %3458 = vmatprep.mubr.msk.bf16.mxu0 %vm250_vm1, %v938_v24  ;;  %v1009_v4 = vpop.permute.xlu1 %1008  ;;  %v1302_v24 = vsel %vm257_vm0, %v3082_v22, 0 }
  0x92   : >> { %3563 = vmatprep.subr.msk.bf16.mxu0 %vm257_vm0, %v3060_v63  ;;  %v443_v8 = vpop.permute.xlu0 %442 }
  0x95   : >> { %v1011_v5 = vpop.permute.xlu1 %1010 }
  0x96   : >> { %v445_v11 = vpop.permute.xlu0 %444 }
  0x99   : >> { %v1152_v16 = vpop.permute.xlu1 %1151 }
  0x9a   : >> { %3459 = vmatmul.mubr.msk.bf16.vlgmr.msra.gmra.mrb[0].mxu0 %vm250_vm1, %v939_v30  ;;  %v586_v20 = vpop.permute.xlu0 %585 }
  0x9b   : >> { %3405 = vmatmul.mubr.msk.bf16.vlgmr.msra.gmra.mrb[0].mxu1 %vm250_vm1, %v3705_v19  ;;  %3463 = vmatpush3.bf16.msra.mxu0 %v1019_v0  ;;  %v596_v19 = vsel %vm257_vm0, %v3028_v14, 0 }
  0x9c   : >> { %3409 = vmatpush3.bf16.msra.mxu1 %v383_v1  ;;  %3410 = vmatprep.mubr.msk.bf16.mxu1 %vm250_vm1, %v3718_v27 }
  0x9d   : >> { %3555 = vmatprep.subr.msk.bf16.mxu1 %vm257_vm0, %v3016_v2  ;;  %3464 = vmatprep.mubr.msk.bf16.mxu0 %vm250_vm1, %v1009_v4  ;;  %v1154_v17 = vpop.permute.xlu1 %1153 }
  0x9e   : >> { %3564 = vmatprep.subr.msk.bf16.mxu0 %vm257_vm0, %v3069_v3  ;;  %v588_v23 = vpop.permute.xlu0 %587 }
  0xa1   : >> { %v1292_v27 = vpop.permute.xlu1 %1291 }
  0xa2   : >> { %v726_v30 = vpop.permute.xlu0 %725 }
  0xa5   : >> { %v1294_v28 = vpop.permute.xlu1 %1293 }
  0xa6   : >> { %3465 = vmatmul.mubr.msk.bf16.vlgmr.msra.gmra.mrb[0].mxu0 %vm250_vm1, %v1011_v5 }
  0xa7   : >> { %3411 = vmatmul.mubr.msk.bf16.vlgmr.msra.gmra.mrb[0].mxu1 %vm250_vm1, %v3725_v31  ;;  %3469 = vmatpush3.bf16.msra.mxu0 %v1092_v6  ;;  %v728_v31 = vpop.permute.xlu0 %727 }
  0xa8   : >> { %3415 = vmatpush3.bf16.msra.mxu1 %v453_v7  ;;  %3416 = vmatprep.mubr.msk.bf16.mxu1 %vm250_vm1, %v443_v8 }
  0xa9   : >> { %3556 = vmatprep.subr.msk.bf16.mxu1 %vm257_vm0, %v3025_v9  ;;  %3470 = vmatprep.mubr.msk.bf16.mxu0 %vm250_vm1, %v3732_v36 }
  0xaa   : >> { %3565 = vmatprep.subr.msk.bf16.mxu0 %vm257_vm0, %v3072_v10 }
  0xb2   : >> { %3471 = vmatmul.mubr.msk.bf16.vlgmr.msra.gmra.mrb[0].mxu0 %vm250_vm1, %v3744_v42 }
  0xb3   : >> { %3417 = vmatmul.mubr.msk.bf16.vlgmr.msra.gmra.mrb[0].mxu1 %vm250_vm1, %v445_v11  ;;  %3475 = vmatpush3.bf16.msra.mxu0 %v1162_v12 }
  0xb4   : >> { %3421 = vmatpush3.bf16.msra.mxu1 %v526_v13  ;;  %3422 = vmatprep.mubr.msk.bf16.mxu1 %vm250_vm1, %v3738_v39 }
  0xb5   : >> { %3557 = vmatprep.subr.msk.bf16.mxu1 %vm257_vm0, %v3028_v14  ;;  %3476 = vmatprep.mubr.msk.bf16.mxu0 %vm250_vm1, %v1152_v16 }
  0xb6   : >> { %3566 = vmatprep.subr.msk.bf16.mxu0 %vm257_vm0, %v3079_v15 }
  0xbe   : >> { %3477 = vmatmul.mubr.msk.bf16.vlgmr.msra.gmra.mrb[0].mxu0 %vm250_vm1, %v1154_v17 }
  0xbf   : >> { %3423 = vmatmul.mubr.msk.bf16.vlgmr.msra.gmra.mrb[0].mxu1 %vm250_vm1, %v3748_v43  ;;  %3481 = vmatpush3.bf16.msra.mxu0 %v1232_v18 }
  0xc0   : >> { %3427 = vmatpush3.bf16.msra.mxu1 %v596_v19  ;;  %3428 = vmatprep.mubr.msk.bf16.mxu1 %vm250_vm1, %v586_v20 }
  0xc1   : >> { %3558 = vmatprep.subr.msk.bf16.mxu1 %vm257_vm0, %v3035_v21  ;;  %3482 = vmatprep.mubr.msk.bf16.mxu0 %vm250_vm1, %v3756_v48  ;;  %v3896_v48 = vld [vmem:[%s4578_s4] ss:$0 sm:$0xff] (%p228_p4) }
  0xc2   : >> { %3567 = vmatprep.subr.msk.bf16.mxu0 %vm257_vm0, %v3082_v22 }
  0xca   : >> { %3483 = vmatmul.mubr.msk.bf16.vlgmr.msra.gmra.mrb[0].mxu0 %vm250_vm1, %v3768_v54 }
  0xcb   : >> { %3429 = vmatmul.mubr.msk.bf16.vlgmr.msra.gmra.mrb[0].mxu1 %vm250_vm1, %v588_v23  ;;  %3487 = vmatpush3.bf16.msra.mxu0 %v1302_v24 }
  0xcc   : >> { %3433 = vmatpush3.bf16.msra.mxu1 %v666_v25  ;;  %3434 = vmatprep.mubr.msk.bf16.mxu1 %vm250_vm1, %v3762_v51 }
  0xcd   : >> { %3559 = vmatprep.subr.msk.bf16.mxu1 %vm257_vm0, %v3038_v26  ;;  %3488 = vmatprep.mubr.msk.bf16.mxu0 %vm250_vm1, %v1292_v27 }
  0xd6   : >> { %3489 = vmatmul.mubr.msk.bf16.vlgmr.msra.gmra.mrb[0].mxu0 %vm250_vm1, %v1294_v28 }
  0xd7   : >> { %3435 = vmatmul.mubr.msk.bf16.vlgmr.msra.gmra.mrb[0].mxu1 %vm250_vm1, %v3772_v55 }
  0xd8   : >> { %3439 = vmatpush3.bf16.msra.mxu1 %v736_v29  ;;  %3440 = vmatprep.mubr.msk.bf16.mxu1 %vm250_vm1, %v726_v30 }
  0xe3   : >> { %3441 = vmatmul.mubr.msk.bf16.vlgmr.msra.gmra.mrb[0].mxu1 %vm250_vm1, %v728_v31 }
 0x1a9   : >> { %v3490_v32 = vpop.f32.mrb[0].mxu0 }
 0x1aa   : >> { %v1338_v33 = vpop.f32.mrb[1].mxu0 }
 0x1ab   : >> { %v3491_v34 = vpop.f32.mrb[2].mxu0 }
 0x1ac   : >> { %v1341_v35 = vpop.f32.mrb[3].mxu0 }
 0x1b6   : >> { %v3442_v36 = vpop.f32.mrb[0].mxu1  ;;  %230 = sbr.rel (!%p228_p4) target bundleno = 17 (0x11), region = 97 }
 0x1b7   : >> { %v3492_v37 = vadd.f32 %v3490_v32, %v3442_v36  ;;  %v772_v38 = vpop.f32.mrb[1].mxu1 }
 0x1b8   : >> { %v3493_v39 = vadd.f32 %v1338_v33, %v772_v38  ;;  %v3443_v40 = vpop.f32.mrb[2].mxu1 }
 0x1b9   : >> { %1362 = vst.msk [vmem:[%s1358_s20 + $0x10] sm:$0xff] %vm1359_vm2, %v3492_v37  ;;  %v3494_v41 = vadd.f32 %v3491_v34, %v3443_v40  ;;  %v775_v42 = vpop.f32.mrb[3].mxu1 }
 0x1ba   : >> { %1360 = vst.msk [vmem:[%s1358_s20] sm:$0xff] %vm1359_vm2, %v3493_v39  ;;  %v3495_v43 = vadd.f32 %v1341_v35, %v775_v42 }
 0x1bb   : >> { %1363 = vst.msk [vmem:[%s1358_s20 + $0x18] sm:$0xff] %vm1359_vm2, %v3494_v41 }
 0x1bc   : >> { %1361 = vst.msk [vmem:[%s1358_s20 + $0x8] sm:$0xff] %vm1359_vm2, %v3495_v43 }
 0x1c3   : > { %v1364_v44 = vld [vmem:[#allocation2] sm:$0xff]  ;;  %v1365_v49 = vld [vmem:[#allocation2 + $0x8] sm:$0xff]  ;;  %v1366_v50 = vld [vmem:[#allocation2 + $0x10] sm:$0xff] }
 0x1c4   : > { %v1499_v47 = vadd.f32 %v3885_v45, %v1364_v44  ;;  %v1500_v51 = vadd.f32 %v3885_v45, %v1365_v49  ;;  %v1501_v52 = vadd.f32 %v3885_v45, %v1366_v50  ;;  %v1367_v53 = vld [vmem:[#allocation2 + $0x18] sm:$0xff]  ;;  %v1368_v54 = vld [vmem:[#allocation2 + $0x20] sm:$0xff]  ;;  %v1369_v55 = vld [vmem:[#allocation2 + $0x28] sm:$0xff] }
 0x1c5   : > { %v1502_v57 = vadd.f32 %v3885_v45, %v1367_v53  ;;  %v1503_v58 = vadd.f32 %v3885_v45, %v1368_v54  ;;  %v1504_v59 = vadd.f32 %v3885_v45, %v1369_v55  ;;  %v1370_v60 = vld [vmem:[#allocation2 + $0x30] sm:$0xff]  ;;  %v1371_v61 = vld [vmem:[#allocation2 + $0x38] sm:$0xff]  ;;  %v1372_v21 = vld [vmem:[#allocation2 + $0x40] sm:$0xff] }
 0x1c6   : > { %v1634_v56 = vmul.f32 %v3890_v46, %v1499_v47  ;;  %v1635_v62 = vmul.f32 %v3890_v46, %v1500_v51  ;;  %v1636_v63 = vmul.f32 %v3890_v46, %v1501_v52  ;;  %v1505_v0 = vadd.f32 %v3885_v45, %v1370_v60  ;;  %v1373_v30 = vld [vmem:[#allocation2 + $0x48] sm:$0xff]  ;;  %v1374_v31 = vld [vmem:[#allocation2 + $0x50] sm:$0xff]  ;;  %v1375_v35 = vld [vmem:[#allocation2 + $0x58] sm:$0xff] }
 0x1c7   : > { %v1506_v1 = vadd.f32 %v3885_v45, %v1371_v61  ;;  %v1637_v3 = vmul.f32 %v3890_v46, %v1502_v57  ;;  %v1638_v4 = vmul.f32 %v3890_v46, %v1503_v58  ;;  %v1639_v5 = vmul.f32 %v3890_v46, %v1504_v59  ;;  %v1376_v42 = vld [vmem:[#allocation2 + $0x60] sm:$0xff]  ;;  %v1377_v43 = vld [vmem:[#allocation2 + $0x68] sm:$0xff]  ;;  %v1378_v51 = vld [vmem:[#allocation2 + $0x70] sm:$0xff] }
 0x1c8   : > { %v1769_v2 = vadd.f32 %v3896_v48, %v1634_v56  ;;  %v1770_v6 = vadd.f32 %v3896_v48, %v1635_v62  ;;  %v1771_v7 = vadd.f32 %v3896_v48, %v1636_v63  ;;  %v1640_v8 = vmul.f32 %v3890_v46, %v1505_v0 }
 0x1c9   : > { %v1641_v9 = vmul.f32 %v3890_v46, %v1506_v1  ;;  %v1772_v11 = vadd.f32 %v3896_v48, %v1637_v3  ;;  %v1773_v12 = vadd.f32 %v3896_v48, %v1638_v4  ;;  %v1774_v25 = vadd.f32 %v3896_v48, %v1639_v5 }
 0x1ca   : > { %vm1897_vm4 = vcmp.ge.f32.partialorder %v1769_v2, 0.0  ;;  %v2025_v10 = vmul.f32 0.2, %v1769_v2  ;;  %vm1898_vm5 = vcmp.ge.f32.partialorder %v1770_v6, 0.0  ;;  %v2026_v13 = vmul.f32 0.2, %v1770_v6 }
 0x1cb   : > { %vm1899_vm6 = vcmp.ge.f32.partialorder %v1771_v7, 0.0  ;;  %v2027_v14 = vmul.f32 0.2, %v1771_v7  ;;  %vm1900_vm7 = vcmp.ge.f32.partialorder %v1772_v11, 0.0  ;;  %v2028_v16 = vmul.f32 0.2, %v1772_v11 }
 0x1cc   : > { %v2153_v15 = vsel %vm1897_vm4, %v1769_v2, %v2025_v10  ;;  %vm1901_vm8 = vcmp.ge.f32.partialorder %v1773_v12, 0.0  ;;  %v2154_v18 = vsel %vm1898_vm5, %v1770_v6, %v2026_v13  ;;  %v2029_v20 = vmul.f32 0.2, %v1773_v12  ;;  %v1379_v6 = vld [vmem:[#allocation2 + $0x78] sm:$0xff] }
 0x1cd   : > { %v3220_v17 = vpack.c.bf16 %v2153_v15, %v2153_v15  ;;  %v2155_v19 = vsel %vm1899_vm6, %v1771_v7, %v2027_v14  ;;  %v3221_v22 = vpack.c.bf16 %v2154_v18, %v2154_v18  ;;  %v2156_v24 = vsel %vm1900_vm7, %v1772_v11, %v2028_v16 }
 0x1ce   : > { %v3222_v23 = vpack.c.bf16 %v2155_v19, %v2155_v19  ;;  %v3223_v26 = vpack.c.bf16 %v2156_v24, %v2156_v24  ;;  %v2157_v27 = vsel %vm1901_vm8, %v1773_v12, %v2029_v20  ;;  %v1775_v28 = vadd.f32 %v3896_v48, %v1640_v8 }
 0x1cf   : > { %2794 = vst.msk [vmem:[%s3650_s24] sm:$0xf] %vm2793_vm3, %v3220_v17  ;;  %v1776_v29 = vadd.f32 %v3896_v48, %v1641_v9  ;;  %2795 = vst.msk [vmem:[%s3650_s24 + $0x4] sm:$0xf] %vm2793_vm3, %v3221_v22  ;;  %v3224_v32 = vpack.c.bf16 %v2157_v27, %v2157_v27  ;;  %vm1902_vm9 = vcmp.ge.f32.partialorder %v1774_v25, 0.0  ;;  %v1507_v34 = vadd.f32 %v3885_v45, %v1372_v21  ;;  %v1380_v17 = vld [vmem:[#allocation2 + $0x80] sm:$0xff] }
 0x1d0   : > { %2796 = vst.msk [vmem:[%s3650_s24 + $0x8] sm:$0xf] %vm2793_vm3, %v3222_v23  ;;  %v2030_v33 = vmul.f32 0.2, %v1774_v25  ;;  %2797 = vst.msk [vmem:[%s3650_s24 + $0xc] sm:$0xf] %vm2793_vm3, %v3223_v26  ;;  %v1508_v40 = vadd.f32 %v3885_v45, %v1373_v30  ;;  %v1509_v41 = vadd.f32 %v3885_v45, %v1374_v31  ;;  %v1510_v50 = vadd.f32 %v3885_v45, %v1375_v35 }
 0x1d1   : > { %vm1903_vm10 = vcmp.ge.f32.partialorder %v1775_v28, 0.0  ;;  %v2031_v36 = vmul.f32 0.2, %v1775_v28  ;;  %vm1904_vm11 = vcmp.ge.f32.partialorder %v1776_v29, 0.0  ;;  %v2032_v37 = vmul.f32 0.2, %v1776_v29 }
 0x1d2   : > { %2798 = vst.msk [vmem:[%s3650_s24 + $0x10] sm:$0xf] %vm2793_vm3, %v3224_v32  ;;  %v2158_v38 = vsel %vm1902_vm9, %v1774_v25, %v2030_v33  ;;  %v1642_v39 = vmul.f32 %v3890_v46, %v1507_v34  ;;  %v1643_v55 = vmul.f32 %v3890_v46, %v1508_v40  ;;  %v1644_v56 = vmul.f32 %v3890_v46, %v1509_v41  ;;  %v1381_v21 = vld [vmem:[#allocation2 + $0x88] sm:$0xff]  ;;  %v1382_v22 = vld [vmem:[#allocation2 + $0x90] sm:$0xff]  ;;  %v1384_v34 = vld [vmem:[#allocation2 + $0xa0] sm:$0xff] }
 0x1d3   : > { %v3225_v44 = vpack.c.bf16 %v2158_v38, %v2158_v38  ;;  %v2159_v47 = vsel %vm1903_vm10, %v1775_v28, %v2031_v36  ;;  %v2160_v49 = vsel %vm1904_vm11, %v1776_v29, %v2032_v37  ;;  %v1645_v57 = vmul.f32 %v3890_v46, %v1510_v50  ;;  %v1383_v29 = vld [vmem:[#allocation2 + $0x98] sm:$0xff] }
 0x1d4   : > { %v3226_v52 = vpack.c.bf16 %v2159_v47, %v2159_v47  ;;  %v3227_v53 = vpack.c.bf16 %v2160_v49, %v2160_v49  ;;  %v1777_v54 = vadd.f32 %v3896_v48, %v1642_v39  ;;  %v1511_v58 = vadd.f32 %v3885_v45, %v1376_v42  ;;  %v1385_v39 = vld [vmem:[#allocation2 + $0xa8] sm:$0xff] }
 0x1d5   : > { %2799 = vst.msk [vmem:[%s3650_s24 + $0x14] sm:$0xf] %vm2793_vm3, %v3225_v44  ;;  %v1512_v59 = vadd.f32 %v3885_v45, %v1377_v43  ;;  %v1778_v61 = vadd.f32 %v3896_v48, %v1643_v55  ;;  %v1513_v62 = vadd.f32 %v3885_v45, %v1378_v51  ;;  %v1779_v63 = vadd.f32 %v3896_v48, %v1644_v56 }
 0x1d6   : > { %2800 = vst.msk [vmem:[%s3650_s24 + $0x18] sm:$0xf] %vm2793_vm3, %v3226_v52  ;;  %2801 = vst.msk [vmem:[%s3650_s24 + $0x1c] sm:$0xf] %vm2793_vm3, %v3227_v53  ;;  %vm1905_vm12 = vcmp.ge.f32.partialorder %v1777_v54, 0.0  ;;  %v1780_v0 = vadd.f32 %v3896_v48, %v1645_v57  ;;  %v1646_v1 = vmul.f32 %v3890_v46, %v1511_v58  ;;  %v1514_v16 = vadd.f32 %v3885_v45, %v1379_v6  ;;  %v1386_v57 = vld [vmem:[#allocation2 + $0xb0] sm:$0xff] }
 0x1d7   : > { %v2033_v60 = vmul.f32 0.2, %v1777_v54  ;;  %v1647_v2 = vmul.f32 %v3890_v46, %v1512_v59  ;;  %vm1906_vm13 = vcmp.ge.f32.partialorder %v1778_v61, 0.0  ;;  %v2034_v4 = vmul.f32 0.2, %v1778_v61 }
 0x1d8   : > { %v1648_v5 = vmul.f32 %v3890_v46, %v1513_v62  ;;  %vm1907_vm14 = vcmp.ge.f32.partialorder %v1779_v63, 0.0  ;;  %v2035_v8 = vmul.f32 0.2, %v1779_v63  ;;  %vm1908_vm15 = vcmp.ge.f32.partialorder %v1780_v0, 0.0 }
 0x1d9   : > { %v2161_v3 = vsel %vm1905_vm12, %v1777_v54, %v2033_v60  ;;  %v2162_v9 = vsel %vm1906_vm13, %v1778_v61, %v2034_v4  ;;  %v2036_v10 = vmul.f32 0.2, %v1780_v0  ;;  %v1781_v11 = vadd.f32 %v3896_v48, %v1646_v1  ;;  %v1387_v4 = vld [vmem:[#allocation2 + $0xb8] sm:$0xff] }
 0x1da   : > { %v3228_v7 = vpack.c.bf16 %v2161_v3, %v2161_v3  ;;  %v1782_v12 = vadd.f32 %v3896_v48, %v1647_v2  ;;  %v3229_v13 = vpack.c.bf16 %v2162_v9, %v2162_v9  ;;  %v2163_v14 = vsel %vm1907_vm14, %v1779_v63, %v2035_v8 }
 0x1db   : > { %v1783_v15 = vadd.f32 %v3896_v48, %v1648_v5  ;;  %v3230_v18 = vpack.c.bf16 %v2163_v14, %v2163_v14  ;;  %v2164_v19 = vsel %vm1908_vm15, %v1780_v0, %v2036_v10  ;;  %vm1909_vm0 = vcmp.ge.f32.partialorder %v1781_v11, 0.0  ;;  %v1388_v5 = vld [vmem:[#allocation2 + $0xc0] sm:$0xff] }
 0x1dc   : > { %2802 = vst.msk [vmem:[%s3650_s24 + $0x20] sm:$0xf] %vm2793_vm3, %v3228_v7  ;;  %v2037_v20 = vmul.f32 0.2, %v1781_v11  ;;  %2803 = vst.msk [vmem:[%s3650_s24 + $0x24] sm:$0xf] %vm2793_vm3, %v3229_v13  ;;  %v3231_v23 = vpack.c.bf16 %v2164_v19, %v2164_v19  ;;  %v1649_v27 = vmul.f32 %v3890_v46, %v1514_v16  ;;  %v1515_v28 = vadd.f32 %v3885_v45, %v1380_v17 }
 0x1dd   : > { %vm1910_vm1 = vcmp.ge.f32.partialorder %v1782_v12, 0.0  ;;  %v2038_v24 = vmul.f32 0.2, %v1782_v12  ;;  %vm1911_vm2 = vcmp.ge.f32.partialorder %v1783_v15, 0.0  ;;  %2804 = vst.msk [vmem:[%s3650_s24 + $0x28] sm:$0xf] %vm2793_vm3, %v3230_v18  ;;  %v1516_v32 = vadd.f32 %v3885_v45, %v1381_v21 }
 0x1de   : > { %v2165_v25 = vsel %vm1909_vm0, %v1781_v11, %v2037_v20  ;;  %v2039_v26 = vmul.f32 0.2, %v1783_v15  ;;  %2805 = vst.msk [vmem:[%s3650_s24 + $0x2c] sm:$0xf] %vm2793_vm3, %v3231_v23  ;;  %v1517_v33 = vadd.f32 %v3885_v45, %v1382_v22  ;;  %v1784_v37 = vadd.f32 %v3896_v48, %v1649_v27  ;;  %v1389_v16 = vld [vmem:[#allocation2 + $0xc8] sm:$0xff]  ;;  %v1390_v17 = vld [vmem:[#allocation2 + $0xd0] sm:$0xff] }
 0x1df   : > { %v3232_v30 = vpack.c.bf16 %v2165_v25, %v2165_v25  ;;  %v2166_v31 = vsel %vm1910_vm1, %v1782_v12, %v2038_v24  ;;  %v1650_v38 = vmul.f32 %v3890_v46, %v1515_v28  ;;  %v1651_v41 = vmul.f32 %v3890_v46, %v1516_v32  ;;  %v1391_v18 = vld [vmem:[#allocation2 + $0xd8] sm:$0xff] }
 0x1e0   : > { %v3233_v35 = vpack.c.bf16 %v2166_v31, %v2166_v31  ;;  %v2167_v36 = vsel %vm1911_vm2, %v1783_v15, %v2039_v26  ;;  %v1652_v42 = vmul.f32 %v3890_v46, %v1517_v33  ;;  %v1518_v43 = vadd.f32 %v3885_v45, %v1383_v29 }
 0x1e1   : > { %2806 = vst.msk [vmem:[%s3650_s24 + $0x30] sm:$0xf] %vm2793_vm3, %v3232_v30  ;;  %v3234_v40 = vpack.c.bf16 %v2167_v36, %v2167_v36  ;;  %vm1912_vm4 = vcmp.ge.f32.partialorder %v1784_v37, 0.0  ;;  %v2040_v44 = vmul.f32 0.2, %v1784_v37  ;;  %v1785_v47 = vadd.f32 %v3896_v48, %v1650_v38  ;;  %v1392_v30 = vld [vmem:[#allocation2 + $0xe0] sm:$0xff] }
 0x1e2   : > { %2807 = vst.msk [vmem:[%s3650_s24 + $0x34] sm:$0xf] %vm2793_vm3, %v3233_v35  ;;  %v1519_v49 = vadd.f32 %v3885_v45, %v1384_v34  ;;  %v1786_v50 = vadd.f32 %v3896_v48, %v1651_v41  ;;  %v1787_v51 = vadd.f32 %v3896_v48, %v1652_v42  ;;  %v1653_v52 = vmul.f32 %v3890_v46, %v1518_v43 }
 0x1e3   : > { %2808 = vst.msk [vmem:[%s3650_s24 + $0x38] sm:$0xf] %vm2793_vm3, %v3234_v40  ;;  %v1520_v53 = vadd.f32 %v3885_v45, %v1385_v39  ;;  %v2168_v54 = vsel %vm1912_vm4, %v1784_v37, %v2040_v44  ;;  %vm1913_vm5 = vcmp.ge.f32.partialorder %v1785_v47, 0.0  ;;  %v2041_v55 = vmul.f32 0.2, %v1785_v47 }
 0x1e4   : > { %v1654_v56 = vmul.f32 %v3890_v46, %v1519_v49  ;;  %v3235_v58 = vpack.c.bf16 %v2168_v54, %v2168_v54  ;;  %vm1914_vm6 = vcmp.ge.f32.partialorder %v1786_v50, 0.0  ;;  %v2042_v59 = vmul.f32 0.2, %v1786_v50 }
 0x1e5   : > { %vm1915_vm7 = vcmp.ge.f32.partialorder %v1787_v51, 0.0  ;;  %v2169_v60 = vsel %vm1913_vm5, %v1785_v47, %v2041_v55  ;;  %v2043_v61 = vmul.f32 0.2, %v1787_v51  ;;  %v1788_v62 = vadd.f32 %v3896_v48, %v1653_v52  ;;  %v1394_v55 = vld [vmem:[#allocation2 + $0xf0] sm:$0xff] }
 0x1e6   : > { %v1789_v63 = vadd.f32 %v3896_v48, %v1654_v56  ;;  %2809 = vst.msk [vmem:[%s3650_s24 + $0x3c] sm:$0xf] %vm2793_vm3, %v3235_v58  ;;  %v3236_v0 = vpack.c.bf16 %v2169_v60, %v2169_v60  ;;  %v2170_v1 = vsel %vm1914_vm6, %v1786_v50, %v2042_v59  ;;  %v1655_v2 = vmul.f32 %v3890_v46, %v1520_v53  ;;  %v1395_v56 = vld [vmem:[#allocation2 + $0xf8] sm:$0xff] }
 0x1e7   : > { %v1521_v3 = vadd.f32 %v3885_v45, %v1386_v57  ;;  %v3237_v6 = vpack.c.bf16 %v2170_v1, %v2170_v1  ;;  %v2171_v7 = vsel %vm1915_vm7, %v1787_v51, %v2043_v61  ;;  %vm1916_vm8 = vcmp.ge.f32.partialorder %v1788_v62, 0.0  ;;  %v1393_v51 = vld [vmem:[#allocation2 + $0xe8] sm:$0xff] }
 0x1e8   : > { %v2044_v8 = vmul.f32 0.2, %v1788_v62  ;;  %2810 = vst.msk [vmem:[%s3650_s24 + $0x40] sm:$0xf] %vm2793_vm3, %v3236_v0  ;;  %v3238_v9 = vpack.c.bf16 %v2171_v7, %v2171_v7  ;;  %vm1917_vm9 = vcmp.ge.f32.partialorder %v1789_v63, 0.0  ;;  %v1790_v11 = vadd.f32 %v3896_v48, %v1655_v2 }
 0x1e9   : > { %v2045_v10 = vmul.f32 0.2, %v1789_v63  ;;  %2811 = vst.msk [vmem:[%s3650_s24 + $0x44] sm:$0xf] %vm2793_vm3, %v3237_v6  ;;  %v1656_v13 = vmul.f32 %v3890_v46, %v1521_v3  ;;  %v1522_v14 = vadd.f32 %v3885_v45, %v1387_v4  ;;  %v1523_v15 = vadd.f32 %v3885_v45, %v1388_v5  ;;  %v1396_v3 = vld [vmem:[#allocation2 + $0x100] sm:$0xff]  ;;  %v1397_v4 = vld [vmem:[#allocation2 + $0x108] sm:$0xff] }
 0x1ea   : > { %v2172_v12 = vsel %vm1916_vm8, %v1788_v62, %v2044_v8  ;;  %2812 = vst.msk [vmem:[%s3650_s24 + $0x48] sm:$0xf] %vm2793_vm3, %v3238_v9  ;;  %vm1918_vm10 = vcmp.ge.f32.partialorder %v1790_v11, 0.0  ;;  %v2046_v21 = vmul.f32 0.2, %v1790_v11  ;;  %v1524_v27 = vadd.f32 %v3885_v45, %v1389_v16  ;;  %v1398_v5 = vld [vmem:[#allocation2 + $0x110] sm:$0xff] }
 0x1eb   : > { %v3239_v19 = vpack.c.bf16 %v2172_v12, %v2172_v12  ;;  %v2173_v20 = vsel %vm1917_vm9, %v1789_v63, %v2045_v10  ;;  %v1791_v23 = vadd.f32 %v3896_v48, %v1656_v13  ;;  %v1657_v24 = vmul.f32 %v3890_v46, %v1522_v14  ;;  %v1399_v13 = vld [vmem:[#allocation2 + $0x118] sm:$0xff] }
 0x1ec   : > { %v3240_v22 = vpack.c.bf16 %v2173_v20, %v2173_v20  ;;  %v1658_v25 = vmul.f32 %v3890_v46, %v1523_v15  ;;  %v2174_v26 = vsel %vm1918_vm10, %v1790_v11, %v2046_v21  ;;  %v1525_v28 = vadd.f32 %v3885_v45, %v1390_v17 }
 0x1ed   : > { %2813 = vst.msk [vmem:[%s3650_s24 + $0x4c] sm:$0xf] %vm2793_vm3, %v3239_v19  ;;  %v1526_v29 = vadd.f32 %v3885_v45, %v1391_v18  ;;  %v3241_v31 = vpack.c.bf16 %v2174_v26, %v2174_v26  ;;  %vm1919_vm11 = vcmp.ge.f32.partialorder %v1791_v23, 0.0  ;;  %v2047_v32 = vmul.f32 0.2, %v1791_v23 }
 0x1ee   : > { %2814 = vst.msk [vmem:[%s3650_s24 + $0x50] sm:$0xf] %vm2793_vm3, %v3240_v22  ;;  %v1792_v33 = vadd.f32 %v3896_v48, %v1657_v24  ;;  %v1793_v34 = vadd.f32 %v3896_v48, %v1658_v25  ;;  %v1659_v35 = vmul.f32 %v3890_v46, %v1524_v27  ;;  %v1660_v36 = vmul.f32 %v3890_v46, %v1525_v28 }
 0x1ef   : > { %v1661_v37 = vmul.f32 %v3890_v46, %v1526_v29  ;;  %2815 = vst.msk [vmem:[%s3650_s24 + $0x54] sm:$0xf] %vm2793_vm3, %v3241_v31  ;;  %v2175_v38 = vsel %vm1919_vm11, %v1791_v23, %v2047_v32  ;;  %v1527_v40 = vadd.f32 %v3885_v45, %v1392_v30  ;;  %v1528_v62 = vadd.f32 %v3885_v45, %v1393_v51 }
 0x1f0   : > { %vm1920_vm12 = vcmp.ge.f32.partialorder %v1792_v33, 0.0  ;;  %v2048_v39 = vmul.f32 0.2, %v1792_v33  ;;  %v3242_v41 = vpack.c.bf16 %v2175_v38, %v2175_v38  ;;  %vm1921_vm13 = vcmp.ge.f32.partialorder %v1793_v34, 0.0 }
 0x1f1   : > { %v2049_v42 = vmul.f32 0.2, %v1793_v34  ;;  %v1794_v43 = vadd.f32 %v3896_v48, %v1659_v35  ;;  %v1795_v47 = vadd.f32 %v3896_v48, %v1660_v36  ;;  %v1796_v49 = vadd.f32 %v3896_v48, %v1661_v37  ;;  %v1400_v35 = vld [vmem:[#allocation2 + $0x120] sm:$0xff] }
 0x1f2   : > { %v2176_v44 = vsel %vm1920_vm12, %v1792_v33, %v2048_v39  ;;  %v1662_v50 = vmul.f32 %v3890_v46, %v1527_v40  ;;  %2816 = vst.msk [vmem:[%s3650_s24 + $0x58] sm:$0xf] %vm2793_vm3, %v3242_v41  ;;  %v1529_v1 = vadd.f32 %v3885_v45, %v1394_v55  ;;  %v1530_v2 = vadd.f32 %v3885_v45, %v1395_v56  ;;  %v1401_v39 = vld [vmem:[#allocation2 + $0x128] sm:$0xff]  ;;  %v1402_v40 = vld [vmem:[#allocation2 + $0x130] sm:$0xff]  ;;  %v1404_v55 = vld [vmem:[#allocation2 + $0x140] sm:$0xff] }
 0x1f3   : > { %v3243_v52 = vpack.c.bf16 %v2176_v44, %v2176_v44  ;;  %v2177_v53 = vsel %vm1921_vm13, %v1793_v34, %v2049_v42  ;;  %vm1922_vm14 = vcmp.ge.f32.partialorder %v1794_v43, 0.0  ;;  %v2050_v54 = vmul.f32 0.2, %v1794_v43  ;;  %v1405_v56 = vld [vmem:[#allocation2 + $0x148] sm:$0xff] }
 0x1f4   : > { %v3244_v57 = vpack.c.bf16 %v2177_v53, %v2177_v53  ;;  %vm1923_vm15 = vcmp.ge.f32.partialorder %v1795_v47, 0.0  ;;  %v2051_v58 = vmul.f32 0.2, %v1795_v47  ;;  %vm1924_vm0 = vcmp.ge.f32.partialorder %v1796_v49, 0.0 }
 0x1f5   : > { %2817 = vst.msk [vmem:[%s3650_s24 + $0x5c] sm:$0xf] %vm2793_vm3, %v3243_v52  ;;  %v2178_v59 = vsel %vm1922_vm14, %v1794_v43, %v2050_v54  ;;  %v2052_v60 = vmul.f32 0.2, %v1796_v49  ;;  %v1797_v61 = vadd.f32 %v3896_v48, %v1662_v50  ;;  %v1663_v10 = vmul.f32 %v3890_v46, %v1528_v62  ;;  %v1403_v54 = vld [vmem:[#allocation2 + $0x138] sm:$0xff] }
 0x1f6   : > { %2818 = vst.msk [vmem:[%s3650_s24 + $0x60] sm:$0xf] %vm2793_vm3, %v3244_v57  ;;  %v3245_v63 = vpack.c.bf16 %v2178_v59, %v2178_v59  ;;  %v2179_v0 = vsel %vm1923_vm15, %v1795_v47, %v2051_v58  ;;  %v1664_v11 = vmul.f32 %v3890_v46, %v1529_v1  ;;  %v1665_v12 = vmul.f32 %v3890_v46, %v1530_v2 }
 0x1f7   : > { %v3246_v6 = vpack.c.bf16 %v2179_v0, %v2179_v0  ;;  %v2180_v7 = vsel %vm1924_vm0, %v1796_v49, %v2052_v60  ;;  %vm1925_vm1 = vcmp.ge.f32.partialorder %v1797_v61, 0.0  ;;  %v2053_v8 = vmul.f32 0.2, %v1797_v61  ;;  %v1406_v60 = vld [vmem:[#allocation2 + $0x150] sm:$0xff] }
 0x1f8   : > { %2819 = vst.msk [vmem:[%s3650_s24 + $0x64] sm:$0xf] %vm2793_vm3, %v3245_v63  ;;  %v3247_v9 = vpack.c.bf16 %v2180_v7, %v2180_v7  ;;  %v1531_v15 = vadd.f32 %v3885_v45, %v1396_v3  ;;  %v1532_v16 = vadd.f32 %v3885_v45, %v1397_v4  ;;  %v1533_v17 = vadd.f32 %v3885_v45, %v1398_v5 }
 0x1f9   : > { %2820 = vst.msk [vmem:[%s3650_s24 + $0x68] sm:$0xf] %vm2793_vm3, %v3246_v6  ;;  %v2181_v14 = vsel %vm1925_vm1, %v1797_v61, %v2053_v8  ;;  %v1798_v19 = vadd.f32 %v3896_v48, %v1663_v10  ;;  %v1799_v20 = vadd.f32 %v3896_v48, %v1664_v11  ;;  %v1800_v21 = vadd.f32 %v3896_v48, %v1665_v12 }
 0x1fa   : > { %2821 = vst.msk [vmem:[%s3650_s24 + $0x6c] sm:$0xf] %vm2793_vm3, %v3247_v9  ;;  %v3248_v18 = vpack.c.bf16 %v2181_v14, %v2181_v14  ;;  %v1666_v22 = vmul.f32 %v3890_v46, %v1531_v15  ;;  %v1667_v23 = vmul.f32 %v3890_v46, %v1532_v16  ;;  %v1668_v24 = vmul.f32 %v3890_v46, %v1533_v17 }
 0x1fb   : > { %v1534_v25 = vadd.f32 %v3885_v45, %v1399_v13  ;;  %vm1926_vm2 = vcmp.ge.f32.partialorder %v1798_v19, 0.0  ;;  %v2054_v26 = vmul.f32 0.2, %v1798_v19  ;;  %vm1927_vm4 = vcmp.ge.f32.partialorder %v1799_v20, 0.0 }
 0x1fc   : > { %2822 = vst.msk [vmem:[%s3650_s24 + $0x70] sm:$0xf] %vm2793_vm3, %v3248_v18  ;;  %v2055_v27 = vmul.f32 0.2, %v1799_v20  ;;  %vm1928_vm5 = vcmp.ge.f32.partialorder %v1800_v21, 0.0  ;;  %v1801_v29 = vadd.f32 %v3896_v48, %v1666_v22  ;;  %v1802_v30 = vadd.f32 %v3896_v48, %v1667_v23  ;;  %v1407_v22 = vld [vmem:[#allocation2 + $0x158] sm:$0xff] }
 0x1fd   : > { %v2056_v28 = vmul.f32 0.2, %v1800_v21  ;;  %v2182_v31 = vsel %vm1926_vm2, %v1798_v19, %v2054_v26  ;;  %v1803_v33 = vadd.f32 %v3896_v48, %v1668_v24  ;;  %v1669_v34 = vmul.f32 %v3890_v46, %v1534_v25  ;;  %v1408_v23 = vld [vmem:[#allocation2 + $0x160] sm:$0xff] }
 0x1fe   : > { %v2183_v32 = vsel %vm1927_vm4, %v1799_v20, %v2055_v27  ;;  %v3249_v36 = vpack.c.bf16 %v2182_v31, %v2182_v31  ;;  %vm1929_vm6 = vcmp.ge.f32.partialorder %v1801_v29, 0.0  ;;  %v2057_v42 = vmul.f32 0.2, %v1801_v29  ;;  %v1409_v27 = vld [vmem:[#allocation2 + $0x168] sm:$0xff] }
 0x1ff   : > { %v3250_v37 = vpack.c.bf16 %v2183_v32, %v2183_v32  ;;  %v2184_v38 = vsel %vm1928_vm5, %v1800_v21, %v2056_v28  ;;  %vm1930_vm7 = vcmp.ge.f32.partialorder %v1802_v30, 0.0  ;;  %v2058_v43 = vmul.f32 0.2, %v1802_v30  ;;  %v1410_v28 = vld [vmem:[#allocation2 + $0x170] sm:$0xff] }
 0x200   : > { %v3251_v41 = vpack.c.bf16 %v2184_v38, %v2184_v38  ;;  %2823 = vst.msk [vmem:[%s3650_s24 + $0x74] sm:$0xf] %vm2793_vm3, %v3249_v36  ;;  %vm1931_vm8 = vcmp.ge.f32.partialorder %v1803_v33, 0.0  ;;  %v2059_v44 = vmul.f32 0.2, %v1803_v33  ;;  %v1804_v47 = vadd.f32 %v3896_v48, %v1669_v34 }
 0x201   : > { %2824 = vst.msk [vmem:[%s3650_s24 + $0x78] sm:$0xf] %vm2793_vm3, %v3250_v37  ;;  %v1535_v49 = vadd.f32 %v3885_v45, %v1400_v35  ;;  %v2185_v50 = vsel %vm1929_vm6, %v1801_v29, %v2057_v42  ;;  %v2186_v51 = vsel %vm1930_vm7, %v1802_v30, %v2058_v43  ;;  %v1536_v52 = vadd.f32 %v3885_v45, %v1401_v39 }
 0x202   : > { %2825 = vst.msk [vmem:[%s3650_s24 + $0x7c] sm:$0xf] %vm2793_vm3, %v3251_v41  ;;  %v1537_v53 = vadd.f32 %v3885_v45, %v1402_v40  ;;  %v3252_v57 = vpack.c.bf16 %v2185_v50, %v2185_v50  ;;  %v3253_v58 = vpack.c.bf16 %v2186_v51, %v2186_v51  ;;  %v2187_v59 = vsel %vm1931_vm8, %v1803_v33, %v2059_v44  ;;  %v1411_v40 = vld [vmem:[#allocation2 + $0x178] sm:$0xff] }
 0x203   : > { %vm1932_vm9 = vcmp.ge.f32.partialorder %v1804_v47, 0.0  ;;  %v3254_v61 = vpack.c.bf16 %v2187_v59, %v2187_v59  ;;  %v2060_v62 = vmul.f32 0.2, %v1804_v47  ;;  %v1670_v63 = vmul.f32 %v3890_v46, %v1535_v49 }
 0x204   : > { %v1671_v0 = vmul.f32 %v3890_v46, %v1536_v52  ;;  %2826 = vst.msk [vmem:[%s3650_s24 + $0x80] sm:$0xf] %vm2793_vm3, %v3252_v57  ;;  %2827 = vst.msk [vmem:[%s3650_s24 + $0x84] sm:$0xf] %vm2793_vm3, %v3253_v58  ;;  %v1672_v1 = vmul.f32 %v3890_v46, %v1537_v53  ;;  %v1538_v2 = vadd.f32 %v3885_v45, %v1403_v54 }
 0x205   : > { %v1539_v3 = vadd.f32 %v3885_v45, %v1404_v55  ;;  %v1540_v4 = vadd.f32 %v3885_v45, %v1405_v56  ;;  %2828 = vst.msk [vmem:[%s3650_s24 + $0x88] sm:$0xf] %vm2793_vm3, %v3254_v61  ;;  %v2188_v5 = vsel %vm1932_vm9, %v1804_v47, %v2060_v62  ;;  %v1805_v6 = vadd.f32 %v3896_v48, %v1670_v63  ;;  %v1412_v62 = vld [vmem:[#allocation2 + $0x180] sm:$0xff] }
 0x206   : > { %v1806_v7 = vadd.f32 %v3896_v48, %v1671_v0  ;;  %v1541_v8 = vadd.f32 %v3885_v45, %v1406_v60  ;;  %v3255_v9 = vpack.c.bf16 %v2188_v5, %v2188_v5  ;;  %v1807_v10 = vadd.f32 %v3896_v48, %v1672_v1 }
 0x207   : > { %v1673_v11 = vmul.f32 %v3890_v46, %v1538_v2  ;;  %v1674_v12 = vmul.f32 %v3890_v46, %v1539_v3  ;;  %vm1933_vm10 = vcmp.ge.f32.partialorder %v1805_v6, 0.0  ;;  %v2061_v13 = vmul.f32 0.2, %v1805_v6 }
 0x208   : > { %vm1934_vm11 = vcmp.ge.f32.partialorder %v1806_v7, 0.0  ;;  %v2062_v14 = vmul.f32 0.2, %v1806_v7  ;;  %2829 = vst.msk [vmem:[%s3650_s24 + $0x8c] sm:$0xf] %vm2793_vm3, %v3255_v9  ;;  %vm1935_vm12 = vcmp.ge.f32.partialorder %v1807_v10, 0.0  ;;  %v1675_v20 = vmul.f32 %v3890_v46, %v1540_v4 }
 0x209   : > { %v2063_v15 = vmul.f32 0.2, %v1807_v10  ;;  %v1808_v16 = vadd.f32 %v3896_v48, %v1673_v11  ;;  %v1809_v17 = vadd.f32 %v3896_v48, %v1674_v12  ;;  %v2189_v18 = vsel %vm1933_vm10, %v1805_v6, %v2061_v13  ;;  %v1415_v9 = vld [vmem:[#allocation2 + $0x198] sm:$0xff] }
 0x20a   : > { %v2190_v19 = vsel %vm1934_vm11, %v1806_v7, %v2062_v14  ;;  %v1676_v21 = vmul.f32 %v3890_v46, %v1541_v8  ;;  %v3256_v24 = vpack.c.bf16 %v2189_v18, %v2189_v18  ;;  %v1810_v32 = vadd.f32 %v3896_v48, %v1675_v20  ;;  %v1413_v7 = vld [vmem:[#allocation2 + $0x188] sm:$0xff]  ;;  %v1414_v8 = vld [vmem:[#allocation2 + $0x190] sm:$0xff]  ;;  %v1416_v14 = vld [vmem:[#allocation2 + $0x1a0] sm:$0xff] }
 0x20b   : > { %v3257_v25 = vpack.c.bf16 %v2190_v19, %v2190_v19  ;;  %v2191_v26 = vsel %vm1935_vm12, %v1807_v10, %v2063_v15  ;;  %vm1936_vm13 = vcmp.ge.f32.partialorder %v1808_v16, 0.0  ;;  %v2064_v30 = vmul.f32 0.2, %v1808_v16  ;;  %v1417_v15 = vld [vmem:[#allocation2 + $0x1a8] sm:$0xff] }
 0x20c   : > { %v3258_v29 = vpack.c.bf16 %v2191_v26, %v2191_v26  ;;  %vm1937_vm14 = vcmp.ge.f32.partialorder %v1809_v17, 0.0  ;;  %v2065_v31 = vmul.f32 0.2, %v1809_v17  ;;  %2830 = vst.msk [vmem:[%s3650_s24 + $0x90] sm:$0xf] %vm2793_vm3, %v3256_v24  ;;  %v1811_v33 = vadd.f32 %v3896_v48, %v1676_v21 }
 0x20d   : > { %2831 = vst.msk [vmem:[%s3650_s24 + $0x94] sm:$0xf] %vm2793_vm3, %v3257_v25  ;;  %v1542_v34 = vadd.f32 %v3885_v45, %v1407_v22  ;;  %v1543_v35 = vadd.f32 %v3885_v45, %v1408_v23  ;;  %v2192_v36 = vsel %vm1936_vm13, %v1808_v16, %v2064_v30  ;;  %v1544_v38 = vadd.f32 %v3885_v45, %v1409_v27  ;;  %v1418_v16 = vld [vmem:[#allocation2 + $0x1b0] sm:$0xff] }
 0x20e   : > { %2832 = vst.msk [vmem:[%s3650_s24 + $0x98] sm:$0xf] %vm2793_vm3, %v3258_v29  ;;  %v2193_v37 = vsel %vm1937_vm14, %v1809_v17, %v2065_v31  ;;  %v1545_v39 = vadd.f32 %v3885_v45, %v1410_v28  ;;  %v3259_v41 = vpack.c.bf16 %v2192_v36, %v2192_v36  ;;  %vm1938_vm15 = vcmp.ge.f32.partialorder %v1810_v32, 0.0 }
 0x20f   : > { %v3260_v42 = vpack.c.bf16 %v2193_v37, %v2193_v37  ;;  %v2066_v43 = vmul.f32 0.2, %v1810_v32  ;;  %vm1939_vm0 = vcmp.ge.f32.partialorder %v1811_v33, 0.0  ;;  %v2067_v44 = vmul.f32 0.2, %v1811_v33 }
 0x210   : > { %v1677_v47 = vmul.f32 %v3890_v46, %v1542_v34  ;;  %v1678_v49 = vmul.f32 %v3890_v46, %v1543_v35  ;;  %2833 = vst.msk [vmem:[%s3650_s24 + $0x9c] sm:$0xf] %vm2793_vm3, %v3259_v41  ;;  %v1679_v51 = vmul.f32 %v3890_v46, %v1544_v38  ;;  %v1680_v52 = vmul.f32 %v3890_v46, %v1545_v39 }
 0x211   : > { %2834 = vst.msk [vmem:[%s3650_s24 + $0xa0] sm:$0xf] %vm2793_vm3, %v3260_v42  ;;  %v2194_v50 = vsel %vm1938_vm15, %v1810_v32, %v2066_v43  ;;  %v1546_v53 = vadd.f32 %v3885_v45, %v1411_v40  ;;  %v2195_v55 = vsel %vm1939_vm0, %v1811_v33, %v2067_v44  ;;  %v1547_v6 = vadd.f32 %v3885_v45, %v1412_v62 }
 0x212   : > { %v3261_v54 = vpack.c.bf16 %v2194_v50, %v2194_v50  ;;  %v1812_v56 = vadd.f32 %v3896_v48, %v1677_v47  ;;  %v1813_v57 = vadd.f32 %v3896_v48, %v1678_v49  ;;  %v3262_v58 = vpack.c.bf16 %v2195_v55, %v2195_v55 }
 0x213   : > { %v1814_v59 = vadd.f32 %v3896_v48, %v1679_v51  ;;  %v1815_v60 = vadd.f32 %v3896_v48, %v1680_v52  ;;  %v1681_v61 = vmul.f32 %v3890_v46, %v1546_v53  ;;  %v1682_v20 = vmul.f32 %v3890_v46, %v1547_v6  ;;  %v1419_v53 = vld [vmem:[#allocation2 + $0x1b8] sm:$0xff] }
 0x214   : > { %2835 = vst.msk [vmem:[%s3650_s24 + $0xa4] sm:$0xf] %vm2793_vm3, %v3261_v54  ;;  %vm1940_vm1 = vcmp.ge.f32.partialorder %v1812_v56, 0.0  ;;  %v2068_v63 = vmul.f32 0.2, %v1812_v56  ;;  %vm1941_vm2 = vcmp.ge.f32.partialorder %v1813_v57, 0.0  ;;  %v1548_v21 = vadd.f32 %v3885_v45, %v1413_v7 }
 0x215   : > { %v2069_v0 = vmul.f32 0.2, %v1813_v57  ;;  %2836 = vst.msk [vmem:[%s3650_s24 + $0xa8] sm:$0xf] %vm2793_vm3, %v3262_v58  ;;  %vm1942_vm4 = vcmp.ge.f32.partialorder %v1814_v59, 0.0  ;;  %vm1943_vm5 = vcmp.ge.f32.partialorder %v1815_v60, 0.0  ;;  %v1816_v5 = vadd.f32 %v3896_v48, %v1681_v61 }
 0x216   : > { %v2070_v1 = vmul.f32 0.2, %v1814_v59  ;;  %v2071_v2 = vmul.f32 0.2, %v1815_v60  ;;  %v2196_v3 = vsel %vm1940_vm1, %v1812_v56, %v2068_v63  ;;  %v1549_v22 = vadd.f32 %v3885_v45, %v1414_v8  ;;  %v1421_v58 = vld [vmem:[#allocation2 + $0x1c8] sm:$0xff]  ;;  %v1423_v63 = vld [vmem:[#allocation2 + $0x1d8] sm:$0xff] }
 0x217   : > { %v2197_v4 = vsel %vm1941_vm2, %v1813_v57, %v2069_v0  ;;  %v3263_v10 = vpack.c.bf16 %v2196_v3, %v2196_v3  ;;  %vm1944_vm6 = vcmp.ge.f32.partialorder %v1816_v5, 0.0  ;;  %v2072_v19 = vmul.f32 0.2, %v1816_v5  ;;  %v1420_v57 = vld [vmem:[#allocation2 + $0x1c0] sm:$0xff] }
 0x218   : > { %v3264_v11 = vpack.c.bf16 %v2197_v4, %v2197_v4  ;;  %v2198_v12 = vsel %vm1942_vm4, %v1814_v59, %v2070_v1  ;;  %v2199_v13 = vsel %vm1943_vm5, %v1815_v60, %v2071_v2  ;;  %v1550_v23 = vadd.f32 %v3885_v45, %v1415_v9  ;;  %v1422_v59 = vld [vmem:[#allocation2 + $0x1d0] sm:$0xff]  ;;  %v1424_v0 = vld [vmem:[#allocation2 + $0x1e0] sm:$0xff]  ;;  %v1425_v9 = vld [vmem:[#allocation2 + $0x1e8] sm:$0xff] }
 0x219   : > { %v3265_v17 = vpack.c.bf16 %v2198_v12, %v2198_v12  ;;  %v3266_v18 = vpack.c.bf16 %v2199_v13, %v2199_v13  ;;  %2837 = vst.msk [vmem:[%s3650_s24 + $0xac] sm:$0xf] %vm2793_vm3, %v3263_v10  ;;  %v2200_v24 = vsel %vm1944_vm6, %v1816_v5, %v2072_v19  ;;  %v1551_v25 = vadd.f32 %v3885_v45, %v1416_v14  ;;  %v1426_v14 = vld [vmem:[#allocation2 + $0x1f0] sm:$0xff] }
 0x21a   : > { %2838 = vst.msk [vmem:[%s3650_s24 + $0xb0] sm:$0xf] %vm2793_vm3, %v3264_v11  ;;  %v1552_v26 = vadd.f32 %v3885_v45, %v1417_v15  ;;  %v1553_v27 = vadd.f32 %v3885_v45, %v1418_v16  ;;  %v3267_v28 = vpack.c.bf16 %v2200_v24, %v2200_v24  ;;  %v1817_v29 = vadd.f32 %v3896_v48, %v1682_v20  ;;  %v4190_v20 = vld [vmem:[%s4578_s4] ss:$0 sm:$0xff] }
 0x21b   : > { %2839 = vst.msk [vmem:[%s3650_s24 + $0xb4] sm:$0xf] %vm2793_vm3, %v3265_v17  ;;  %2840 = vst.msk [vmem:[%s3650_s24 + $0xb8] sm:$0xf] %vm2793_vm3, %v3266_v18  ;;  %v1683_v30 = vmul.f32 %v3890_v46, %v1548_v21  ;;  %v1684_v31 = vmul.f32 %v3890_v46, %v1549_v22  ;;  %v1685_v32 = vmul.f32 %v3890_v46, %v1550_v23  ;;  %v4183_v17 = vld [vmem:[%s4577_s3] ss:$0 sm:$0xff] }
 0x21c   : > { %v1686_v33 = vmul.f32 %v3890_v46, %v1551_v25  ;;  %v1687_v34 = vmul.f32 %v3890_v46, %v1552_v26  ;;  %v1688_v35 = vmul.f32 %v3890_v46, %v1553_v27  ;;  %2841 = vst.msk [vmem:[%s3650_s24 + $0xbc] sm:$0xf] %vm2793_vm3, %v3267_v28  ;;  %vm1945_vm7 = vcmp.ge.f32.partialorder %v1817_v29, 0.0  ;;  %v4198_v22 = vld [vmem:[%s4576_s2] ss:$0 sm:$0xff] }
 0x21d   : > { %v2073_v36 = vmul.f32 0.2, %v1817_v29  ;;  %v1818_v37 = vadd.f32 %v3896_v48, %v1683_v30  ;;  %v1819_v38 = vadd.f32 %v3896_v48, %v1684_v31  ;;  %v1820_v39 = vadd.f32 %v3896_v48, %v1685_v32 }
 0x21e   : > { %v1821_v40 = vadd.f32 %v3896_v48, %v1686_v33  ;;  %v1822_v41 = vadd.f32 %v3896_v48, %v1687_v34  ;;  %v1823_v42 = vadd.f32 %v3896_v48, %v1688_v35  ;;  %v1554_v4 = vadd.f32 %v3885_v45, %v1419_v53 }
 0x21f   : > { %v2201_v43 = vsel %vm1945_vm7, %v1817_v29, %v2073_v36  ;;  %vm1946_vm8 = vcmp.ge.f32.partialorder %v1818_v37, 0.0  ;;  %v2074_v44 = vmul.f32 0.2, %v1818_v37  ;;  %vm1947_vm9 = vcmp.ge.f32.partialorder %v1819_v38, 0.0 }
 0x220   : > { %v3268_v47 = vpack.c.bf16 %v2201_v43, %v2201_v43  ;;  %v2075_v49 = vmul.f32 0.2, %v1819_v38  ;;  %vm1948_vm10 = vcmp.ge.f32.partialorder %v1820_v39, 0.0  ;;  %v2076_v50 = vmul.f32 0.2, %v1820_v39 }
 0x221   : > { %v2202_v51 = vsel %vm1946_vm8, %v1818_v37, %v2074_v44  ;;  %vm1949_vm11 = vcmp.ge.f32.partialorder %v1821_v40, 0.0  ;;  %v2077_v52 = vmul.f32 0.2, %v1821_v40  ;;  %vm1950_vm12 = vcmp.ge.f32.partialorder %v1822_v41, 0.0  ;;  %v1429_v44 = vld [vmem:[#allocation2 + $0x208] sm:$0xff] }
 0x222   : > { %2842 = vst.msk [vmem:[%s3650_s24 + $0xc0] sm:$0xf] %vm2793_vm3, %v3268_v47  ;;  %v3269_v54 = vpack.c.bf16 %v2202_v51, %v2202_v51  ;;  %v2203_v55 = vsel %vm1947_vm9, %v1819_v38, %v2075_v49  ;;  %v2204_v56 = vsel %vm1948_vm10, %v1820_v39, %v2076_v50  ;;  %v2078_v48 = vmul.f32 0.2, %v1822_v41  ;;  %v1427_v39 = vld [vmem:[#allocation2 + $0x1f8] sm:$0xff]  ;;  %v1430_v47 = vld [vmem:[#allocation2 + $0x210] sm:$0xff] }
 0x223   : > { %v3270_v60 = vpack.c.bf16 %v2203_v55, %v2203_v55  ;;  %v3271_v61 = vpack.c.bf16 %v2204_v56, %v2204_v56  ;;  %v2205_v62 = vsel %vm1949_vm11, %v1821_v40, %v2077_v52  ;;  %vm1951_vm13 = vcmp.ge.f32.partialorder %v1823_v42, 0.0  ;;  %v1428_v40 = vld [vmem:[#allocation2 + $0x200] sm:$0xff] }
 0x224   : > { %2843 = vst.msk [vmem:[%s3650_s24 + $0xc4] sm:$0xf] %vm2793_vm3, %v3269_v54  ;;  %v3272_v1 = vpack.c.bf16 %v2205_v62, %v2205_v62  ;;  %v2206_v2 = vsel %vm1950_vm12, %v1822_v41, %v2078_v48  ;;  %v2079_v3 = vmul.f32 0.2, %v1823_v42  ;;  %v1555_v6 = vadd.f32 %v3885_v45, %v1420_v57 }
 0x225   : > { %2844 = vst.msk [vmem:[%s3650_s24 + $0xc8] sm:$0xf] %vm2793_vm3, %v3270_v60  ;;  %2845 = vst.msk [vmem:[%s3650_s24 + $0xcc] sm:$0xf] %vm2793_vm3, %v3271_v61  ;;  %v3273_v5 = vpack.c.bf16 %v2206_v2, %v2206_v2  ;;  %v1556_v7 = vadd.f32 %v3885_v45, %v1421_v58  ;;  %v1557_v8 = vadd.f32 %v3885_v45, %v1422_v59 }
 0x226   : > { %2846 = vst.msk [vmem:[%s3650_s24 + $0xd0] sm:$0xf] %vm2793_vm3, %v3272_v1  ;;  %v2207_v10 = vsel %vm1951_vm13, %v1823_v42, %v2079_v3  ;;  %v1689_v11 = vmul.f32 %v3890_v46, %v1554_v4  ;;  %v1558_v12 = vadd.f32 %v3885_v45, %v1423_v63  ;;  %v1559_v13 = vadd.f32 %v3885_v45, %v1424_v0  ;;  %v1431_v0 = vld [vmem:[#allocation2 + $0x218] sm:$0xff] }
 0x227   : > { %2847 = vst.msk [vmem:[%s3650_s24 + $0xd4] sm:$0xf] %vm2793_vm3, %v3273_v5  ;;  %v3274_v15 = vpack.c.bf16 %v2207_v10, %v2207_v10  ;;  %v1690_v16 = vmul.f32 %v3890_v46, %v1555_v6  ;;  %v1691_v18 = vmul.f32 %v4183_v17, %v1556_v7  ;;  %v1692_v19 = vmul.f32 %v4183_v17, %v1557_v8 }
 0x228   : > { %v1824_v45 = vadd.f32 %v4190_v20, %v1689_v11  ;;  %v1693_v21 = vmul.f32 %v4183_v17, %v1558_v12  ;;  %v1694_v46 = vmul.f32 %v4183_v17, %v1559_v13  ;;  %v1560_v23 = vadd.f32 %v4198_v22, %v1425_v9 }
 0x229   : > { %2848 = vst.msk [vmem:[%s3650_s24 + $0xd8] sm:$0xf] %vm2793_vm3, %v3274_v15  ;;  %v1825_v24 = vadd.f32 %v4190_v20, %v1690_v16  ;;  %v1826_v25 = vadd.f32 %v4190_v20, %v1691_v18  ;;  %v1827_v26 = vadd.f32 %v4190_v20, %v1692_v19  ;;  %v1561_v27 = vadd.f32 %v4198_v22, %v1426_v14  ;;  %v1432_v14 = vld [vmem:[#allocation2 + $0x220] sm:$0xff]  ;;  %v1433_v18 = vld [vmem:[#allocation2 + $0x228] sm:$0xff] }
 0x22a   : > { %vm1952_vm14 = vcmp.ge.f32.partialorder %v1824_v45, 0.0  ;;  %v2080_v28 = vmul.f32 0.2, %v1824_v45  ;;  %v1828_v29 = vadd.f32 %v4190_v20, %v1693_v21  ;;  %v1829_v30 = vadd.f32 %v4190_v20, %v1694_v46 }
 0x22b   : > { %vm1953_vm15 = vcmp.ge.f32.partialorder %v1825_v24, 0.0  ;;  %v2081_v31 = vmul.f32 0.2, %v1825_v24  ;;  %vm1954_vm0 = vcmp.ge.f32.partialorder %v1826_v25, 0.0  ;;  %v2082_v32 = vmul.f32 0.2, %v1826_v25 }
 0x22c   : > { %v2208_v33 = vsel %vm1952_vm14, %v1824_v45, %v2080_v28  ;;  %vm1955_vm1 = vcmp.ge.f32.partialorder %v1827_v26, 0.0  ;;  %v2083_v34 = vmul.f32 0.2, %v1827_v26  ;;  %vm1956_vm2 = vcmp.ge.f32.partialorder %v1828_v29, 0.0  ;;  %v1436_v28 = vld [vmem:[#allocation2 + $0x240] sm:$0xff] }
 0x22d   : > { %v3275_v35 = vpack.c.bf16 %v2208_v33, %v2208_v33  ;;  %v2209_v36 = vsel %vm1953_vm15, %v1825_v24, %v2081_v31  ;;  %v2210_v37 = vsel %vm1954_vm0, %v1826_v25, %v2082_v32  ;;  %v2084_v38 = vmul.f32 0.2, %v1828_v29  ;;  %v1437_v33 = vld [vmem:[#allocation2 + $0x248] sm:$0xff] }
 0x22e   : > { %v3276_v41 = vpack.c.bf16 %v2209_v36, %v2209_v36  ;;  %v3277_v42 = vpack.c.bf16 %v2210_v37, %v2210_v37  ;;  %v2211_v43 = vsel %vm1955_vm1, %v1827_v26, %v2083_v34  ;;  %vm1957_vm4 = vcmp.ge.f32.partialorder %v1829_v30, 0.0  ;;  %v1434_v26 = vld [vmem:[#allocation2 + $0x230] sm:$0xff] }
 0x22f   : > { %2849 = vst.msk [vmem:[%s3650_s24 + $0xdc] sm:$0xf] %vm2793_vm3, %v3275_v35  ;;  %v3278_v49 = vpack.c.bf16 %v2211_v43, %v2211_v43  ;;  %v2212_v50 = vsel %vm1956_vm2, %v1828_v29, %v2084_v38  ;;  %v2085_v51 = vmul.f32 0.2, %v1829_v30  ;;  %v1695_v52 = vmul.f32 %v4183_v17, %v1560_v23 }
 0x230   : > { %2850 = vst.msk [vmem:[%s3650_s24 + $0xe0] sm:$0xf] %vm2793_vm3, %v3276_v41  ;;  %2851 = vst.msk [vmem:[%s3650_s24 + $0xe4] sm:$0xf] %vm2793_vm3, %v3277_v42  ;;  %v3279_v53 = vpack.c.bf16 %v2212_v50, %v2212_v50  ;;  %v1696_v54 = vmul.f32 %v4183_v17, %v1561_v27  ;;  %v1562_v55 = vadd.f32 %v4198_v22, %v1427_v39  ;;  %v1435_v27 = vld [vmem:[#allocation2 + $0x238] sm:$0xff] }
 0x231   : > { %v1563_v56 = vadd.f32 %v4198_v22, %v1428_v40  ;;  %2852 = vst.msk [vmem:[%s3650_s24 + $0xe8] sm:$0xf] %vm2793_vm3, %v3278_v49  ;;  %v2213_v48 = vsel %vm1957_vm4, %v1829_v30, %v2085_v51  ;;  %v1830_v57 = vadd.f32 %v4190_v20, %v1695_v52  ;;  %v1564_v58 = vadd.f32 %v4198_v22, %v1429_v44 }
 0x232   : > { %v1565_v59 = vadd.f32 %v4198_v22, %v1430_v47  ;;  %2853 = vst.msk [vmem:[%s3650_s24 + $0xec] sm:$0xf] %vm2793_vm3, %v3279_v53  ;;  %v3280_v60 = vpack.c.bf16 %v2213_v48, %v2213_v48  ;;  %v1831_v61 = vadd.f32 %v4190_v20, %v1696_v54  ;;  %v1697_v62 = vmul.f32 %v4183_v17, %v1562_v55 }
 0x233   : > { %v1698_v63 = vmul.f32 %v4183_v17, %v1563_v56  ;;  %vm1958_vm5 = vcmp.ge.f32.partialorder %v1830_v57, 0.0  ;;  %v2086_v1 = vmul.f32 0.2, %v1830_v57  ;;  %v1699_v2 = vmul.f32 %v4183_v17, %v1564_v58 }
 0x234   : > { %v1700_v3 = vmul.f32 %v4183_v17, %v1565_v59  ;;  %2854 = vst.msk [vmem:[%s3650_s24 + $0xf0] sm:$0xf] %vm2793_vm3, %v3280_v60  ;;  %vm1959_vm6 = vcmp.ge.f32.partialorder %v1831_v61, 0.0  ;;  %v2087_v4 = vmul.f32 0.2, %v1831_v61  ;;  %v1832_v5 = vadd.f32 %v4190_v20, %v1697_v62 }
 0x235   : > { %v1833_v6 = vadd.f32 %v4190_v20, %v1698_v63  ;;  %v2214_v7 = vsel %vm1958_vm5, %v1830_v57, %v2086_v1  ;;  %v1834_v8 = vadd.f32 %v4190_v20, %v1699_v2  ;;  %v1566_v10 = vadd.f32 %v4198_v22, %v1431_v0  ;;  %v1438_v0 = vld [vmem:[#allocation2 + $0x250] sm:$0xff]  ;;  %v1439_v1 = vld [vmem:[#allocation2 + $0x258] sm:$0xff] }
 0x236   : > { %v1835_v9 = vadd.f32 %v4190_v20, %v1700_v3  ;;  %v3281_v11 = vpack.c.bf16 %v2214_v7, %v2214_v7  ;;  %v2215_v12 = vsel %vm1959_vm6, %v1831_v61, %v2087_v4  ;;  %vm1960_vm7 = vcmp.ge.f32.partialorder %v1832_v5, 0.0  ;;  %v1440_v4 = vld [vmem:[#allocation2 + $0x260] sm:$0xff] }
 0x237   : > { %v2088_v13 = vmul.f32 0.2, %v1832_v5  ;;  %v3282_v15 = vpack.c.bf16 %v2215_v12, %v2215_v12  ;;  %vm1961_vm8 = vcmp.ge.f32.partialorder %v1833_v6, 0.0  ;;  %v2089_v16 = vmul.f32 0.2, %v1833_v6  ;;  %v1441_v12 = vld [vmem:[#allocation2 + $0x268] sm:$0xff] }
 0x238   : > { %vm1962_vm9 = vcmp.ge.f32.partialorder %v1834_v8, 0.0  ;;  %2855 = vst.msk [vmem:[%s3650_s24 + $0xf4] sm:$0xf] %vm2793_vm3, %v3281_v11  ;;  %v2090_v45 = vmul.f32 0.2, %v1834_v8  ;;  %vm1963_vm10 = vcmp.ge.f32.partialorder %v1835_v9, 0.0  ;;  %v1701_v24 = vmul.f32 %v4183_v17, %v1566_v10 }
 0x239   : > { %v2216_v19 = vsel %vm1960_vm7, %v1832_v5, %v2088_v13  ;;  %v2091_v21 = vmul.f32 0.2, %v1835_v9  ;;  %2856 = vst.msk [vmem:[%s3650_s24 + $0xf8] sm:$0xf] %vm2793_vm3, %v3282_v15  ;;  %v2217_v23 = vsel %vm1961_vm8, %v1833_v6, %v2089_v16  ;;  %v1567_v25 = vadd.f32 %v4198_v22, %v1432_v14  ;;  %v1442_v13 = vld [vmem:[#allocation2 + $0x270] sm:$0xff]  ;;  %v1443_v14 = vld [vmem:[#allocation2 + $0x278] sm:$0xff] }
 0x23a   : > { %v3283_v46 = vpack.c.bf16 %v2216_v19, %v2216_v19  ;;  %v3284_v29 = vpack.c.bf16 %v2217_v23, %v2217_v23  ;;  %v2218_v30 = vsel %vm1962_vm9, %v1834_v8, %v2090_v45  ;;  %v1568_v32 = vadd.f32 %v4198_v22, %v1433_v18  ;;  %v1444_v45 = vld [vmem:[#allocation2 + $0x280] sm:$0xff] }
 0x23b   : > { %v2219_v31 = vsel %vm1963_vm10, %v1835_v9, %v2091_v21  ;;  %v3285_v34 = vpack.c.bf16 %v2218_v30, %v2218_v30  ;;  %v1836_v36 = vadd.f32 %v4190_v20, %v1701_v24  ;;  %v1702_v37 = vmul.f32 %v4183_v17, %v1567_v25  ;;  %v1445_v21 = vld [vmem:[#allocation2 + $0x288] sm:$0xff] }
 0x23c   : > { %2857 = vst.msk [vmem:[%s3650_s24 + $0xfc] sm:$0xf] %vm2793_vm3, %v3283_v46  ;;  %v3286_v35 = vpack.c.bf16 %v2219_v31, %v2219_v31  ;;  %2858 = vst.msk [vmem:[%s3650_s24 + $0x100] sm:$0xf] %vm2793_vm3, %v3284_v29  ;;  %v1703_v38 = vmul.f32 %v4183_v17, %v1568_v32  ;;  %v1569_v39 = vadd.f32 %v4198_v22, %v1434_v26 }
 0x23d   : > { %v1570_v40 = vadd.f32 %v4198_v22, %v1435_v27  ;;  %v1571_v41 = vadd.f32 %v4198_v22, %v1436_v28  ;;  %2859 = vst.msk [vmem:[%s3650_s24 + $0x104] sm:$0xf] %vm2793_vm3, %v3285_v34  ;;  %vm1964_vm11 = vcmp.ge.f32.partialorder %v1836_v36, 0.0  ;;  %v2092_v42 = vmul.f32 0.2, %v1836_v36 }
 0x23e   : > { %2860 = vst.msk [vmem:[%s3650_s24 + $0x108] sm:$0xf] %vm2793_vm3, %v3286_v35  ;;  %v1837_v43 = vadd.f32 %v4190_v20, %v1702_v37  ;;  %v1572_v44 = vadd.f32 %v4198_v22, %v1437_v33  ;;  %v1838_v47 = vadd.f32 %v4190_v20, %v1703_v38  ;;  %v1704_v49 = vmul.f32 %v4183_v17, %v1569_v39 }
 0x23f   : > { %v1705_v50 = vmul.f32 %v4183_v17, %v1570_v40  ;;  %v1706_v51 = vmul.f32 %v4183_v17, %v1571_v41  ;;  %v2220_v52 = vsel %vm1964_vm11, %v1836_v36, %v2092_v42  ;;  %v1573_v10 = vadd.f32 %v4198_v22, %v1438_v0  ;;  %v1448_v0 = vld [vmem:[#allocation2 + $0x2a0] sm:$0xff] }
 0x240   : > { %vm1965_vm12 = vcmp.ge.f32.partialorder %v1837_v43, 0.0  ;;  %v2093_v53 = vmul.f32 0.2, %v1837_v43  ;;  %v1707_v54 = vmul.f32 %v4183_v17, %v1572_v44  ;;  %v3287_v55 = vpack.c.bf16 %v2220_v52, %v2220_v52 }
 0x241   : > { %vm1966_vm13 = vcmp.ge.f32.partialorder %v1838_v47, 0.0  ;;  %v2094_v56 = vmul.f32 0.2, %v1838_v47  ;;  %v1839_v48 = vadd.f32 %v4190_v20, %v1704_v49  ;;  %v1840_v58 = vadd.f32 %v4190_v20, %v1705_v50 }
 0x242   : > { %v2221_v57 = vsel %vm1965_vm12, %v1837_v43, %v2093_v53  ;;  %v1841_v59 = vadd.f32 %v4190_v20, %v1706_v51  ;;  %v1842_v60 = vadd.f32 %v4190_v20, %v1707_v54  ;;  %2861 = vst.msk [vmem:[%s3650_s24 + $0x10c] sm:$0xf] %vm2793_vm3, %v3287_v55  ;;  %v1574_v11 = vadd.f32 %v4198_v22, %v1439_v1  ;;  %v1446_v53 = vld [vmem:[#allocation2 + $0x290] sm:$0xff]  ;;  %v1447_v54 = vld [vmem:[#allocation2 + $0x298] sm:$0xff]  ;;  %v1449_v1 = vld [vmem:[#allocation2 + $0x2a8] sm:$0xff] }
 0x243   : > { %v3288_v61 = vpack.c.bf16 %v2221_v57, %v2221_v57  ;;  %v2222_v62 = vsel %vm1966_vm13, %v1838_v47, %v2094_v56  ;;  %vm1967_vm14 = vcmp.ge.f32.partialorder %v1839_v48, 0.0  ;;  %v2095_v63 = vmul.f32 0.2, %v1839_v48 }
 0x244   : > { %v3289_v2 = vpack.c.bf16 %v2222_v62, %v2222_v62  ;;  %vm1968_vm15 = vcmp.ge.f32.partialorder %v1840_v58, 0.0  ;;  %v2096_v3 = vmul.f32 0.2, %v1840_v58  ;;  %vm1969_vm0 = vcmp.ge.f32.partialorder %v1841_v59, 0.0 }
 0x245   : > { %2862 = vst.msk [vmem:[%s3650_s24 + $0x110] sm:$0xf] %vm2793_vm3, %v3288_v61  ;;  %v2223_v5 = vsel %vm1967_vm14, %v1839_v48, %v2095_v63  ;;  %v2097_v6 = vmul.f32 0.2, %v1841_v59  ;;  %vm1970_vm1 = vcmp.ge.f32.partialorder %v1842_v60, 0.0  ;;  %v1575_v19 = vadd.f32 %v4198_v22, %v1440_v4 }
 0x246   : > { %v2098_v7 = vmul.f32 0.2, %v1842_v60  ;;  %2863 = vst.msk [vmem:[%s3650_s24 + $0x114] sm:$0xf] %vm2793_vm3, %v3289_v2  ;;  %v3290_v8 = vpack.c.bf16 %v2223_v5, %v2223_v5  ;;  %v2224_v9 = vsel %vm1968_vm15, %v1840_v58, %v2096_v3  ;;  %v1708_v24 = vmul.f32 %v4183_v17, %v1573_v10  ;;  %v1450_v2 = vld [vmem:[#allocation2 + $0x2b0] sm:$0xff] }
 0x247   : > { %v3291_v15 = vpack.c.bf16 %v2224_v9, %v2224_v9  ;;  %v2225_v16 = vsel %vm1969_vm0, %v1841_v59, %v2097_v6  ;;  %v1709_v25 = vmul.f32 %v4183_v17, %v1574_v11  ;;  %v1710_v26 = vmul.f32 %v4183_v17, %v1575_v19 }
 0x248   : > { %v2226_v18 = vsel %vm1970_vm1, %v1842_v60, %v2098_v7  ;;  %2864 = vst.msk [vmem:[%s3650_s24 + $0x118] sm:$0xf] %vm2793_vm3, %v3290_v8  ;;  %v3292_v46 = vpack.c.bf16 %v2225_v16, %v2225_v16  ;;  %v1576_v27 = vadd.f32 %v4198_v22, %v1441_v12  ;;  %v1577_v28 = vadd.f32 %v4198_v22, %v1442_v13 }
 0x249   : > { %v3293_v23 = vpack.c.bf16 %v2226_v18, %v2226_v18  ;;  %2865 = vst.msk [vmem:[%s3650_s24 + $0x11c] sm:$0xf] %vm2793_vm3, %v3291_v15  ;;  %v1578_v29 = vadd.f32 %v4198_v22, %v1443_v14  ;;  %v1843_v30 = vadd.f32 %v4190_v20, %v1708_v24  ;;  %v1844_v31 = vadd.f32 %v4190_v20, %v1709_v25 }
 0x24a   : > { %2866 = vst.msk [vmem:[%s3650_s24 + $0x120] sm:$0xf] %vm2793_vm3, %v3292_v46  ;;  %v1579_v32 = vadd.f32 %v4198_v22, %v1444_v45  ;;  %v1580_v33 = vadd.f32 %v4198_v22, %v1445_v21  ;;  %v1845_v34 = vadd.f32 %v4190_v20, %v1710_v26  ;;  %v1711_v35 = vmul.f32 %v4183_v17, %v1576_v27  ;;  %v1451_v46 = vld [vmem:[#allocation2 + $0x2b8] sm:$0xff] }
 0x24b   : > { %2867 = vst.msk [vmem:[%s3650_s24 + $0x124] sm:$0xf] %vm2793_vm3, %v3293_v23  ;;  %v1712_v36 = vmul.f32 %v4183_v17, %v1577_v28  ;;  %v1713_v37 = vmul.f32 %v4183_v17, %v1578_v29  ;;  %vm1971_vm2 = vcmp.ge.f32.partialorder %v1843_v30, 0.0  ;;  %v2099_v38 = vmul.f32 0.2, %v1843_v30 }
 0x24c   : > { %vm1972_vm4 = vcmp.ge.f32.partialorder %v1844_v31, 0.0  ;;  %v2100_v39 = vmul.f32 0.2, %v1844_v31  ;;  %vm1973_vm5 = vcmp.ge.f32.partialorder %v1845_v34, 0.0  ;;  %v2101_v40 = vmul.f32 0.2, %v1845_v34 }
 0x24d   : > { %v1846_v41 = vadd.f32 %v4190_v20, %v1711_v35  ;;  %v1847_v42 = vadd.f32 %v4190_v20, %v1712_v36  ;;  %v2227_v43 = vsel %vm1971_vm2, %v1843_v30, %v2099_v38  ;;  %v1848_v47 = vadd.f32 %v4190_v20, %v1713_v37  ;;  %v1453_v37 = vld [vmem:[#allocation2 + $0x2c8] sm:$0xff]  ;;  %v1454_v38 = vld [vmem:[#allocation2 + $0x2d0] sm:$0xff] }
 0x24e   : > { %v2228_v44 = vsel %vm1972_vm4, %v1844_v31, %v2100_v39  ;;  %v1714_v49 = vmul.f32 %v4183_v17, %v1579_v32  ;;  %v3294_v50 = vpack.c.bf16 %v2227_v43, %v2227_v43  ;;  %v2229_v52 = vsel %vm1973_vm5, %v1845_v34, %v2101_v40 }
 0x24f   : > { %v3295_v51 = vpack.c.bf16 %v2228_v44, %v2228_v44  ;;  %vm1974_vm6 = vcmp.ge.f32.partialorder %v1846_v41, 0.0  ;;  %v3296_v55 = vpack.c.bf16 %v2229_v52, %v2229_v52  ;;  %v2102_v56 = vmul.f32 0.2, %v1846_v41 }
 0x250   : > { %vm1975_vm7 = vcmp.ge.f32.partialorder %v1847_v42, 0.0  ;;  %v2103_v48 = vmul.f32 0.2, %v1847_v42  ;;  %2868 = vst.msk [vmem:[%s3650_s24 + $0x128] sm:$0xf] %vm2793_vm3, %v3294_v50  ;;  %vm1976_vm8 = vcmp.ge.f32.partialorder %v1848_v47, 0.0  ;;  %v1849_v58 = vadd.f32 %v4190_v20, %v1714_v49 }
 0x251   : > { %2869 = vst.msk [vmem:[%s3650_s24 + $0x12c] sm:$0xf] %vm2793_vm3, %v3295_v51  ;;  %v2104_v57 = vmul.f32 0.2, %v1848_v47  ;;  %v1715_v59 = vmul.f32 %v4183_v17, %v1580_v33  ;;  %2870 = vst.msk [vmem:[%s3650_s24 + $0x130] sm:$0xf] %vm2793_vm3, %v3296_v55  ;;  %v2230_v60 = vsel %vm1974_vm6, %v1846_v41, %v2102_v56  ;;  %v1581_v62 = vadd.f32 %v4198_v22, %v1446_v53 }
 0x252   : > { %v2231_v61 = vsel %vm1975_vm7, %v1847_v42, %v2103_v48  ;;  %v1582_v63 = vadd.f32 %v4198_v22, %v1447_v54  ;;  %v3297_v3 = vpack.c.bf16 %v2230_v60, %v2230_v60  ;;  %vm1977_vm9 = vcmp.ge.f32.partialorder %v1849_v58, 0.0  ;;  %v1452_v33 = vld [vmem:[#allocation2 + $0x2c0] sm:$0xff] }
 0x253   : > { %v3298_v4 = vpack.c.bf16 %v2231_v61, %v2231_v61  ;;  %v2232_v5 = vsel %vm1976_vm8, %v1848_v47, %v2104_v57  ;;  %v2105_v7 = vmul.f32 0.2, %v1849_v58  ;;  %v1850_v8 = vadd.f32 %v4190_v20, %v1715_v59  ;;  %v1455_v47 = vld [vmem:[#allocation2 + $0x2d8] sm:$0xff]  ;;  %v1456_v53 = vld [vmem:[#allocation2 + $0x2e0] sm:$0xff]  ;;  %v1457_v57 = vld [vmem:[#allocation2 + $0x2e8] sm:$0xff] }
 0x254   : > { %v3299_v6 = vpack.c.bf16 %v2232_v5, %v2232_v5  ;;  %v1716_v9 = vmul.f32 %v4183_v17, %v1581_v62  ;;  %2871 = vst.msk [vmem:[%s3650_s24 + $0x134] sm:$0xf] %vm2793_vm3, %v3297_v3  ;;  %v1717_v10 = vmul.f32 %v4183_v17, %v1582_v63  ;;  %v1583_v11 = vadd.f32 %v4198_v22, %v1448_v0 }
 0x255   : > { %2872 = vst.msk [vmem:[%s3650_s24 + $0x138] sm:$0xf] %vm2793_vm3, %v3298_v4  ;;  %v1584_v12 = vadd.f32 %v4198_v22, %v1449_v1  ;;  %v1585_v13 = vadd.f32 %v4198_v22, %v1450_v2  ;;  %v2233_v14 = vsel %vm1977_vm9, %v1849_v58, %v2105_v7  ;;  %vm1978_vm10 = vcmp.ge.f32.partialorder %v1850_v8, 0.0 }
 0x256   : > { %2873 = vst.msk [vmem:[%s3650_s24 + $0x13c] sm:$0xf] %vm2793_vm3, %v3299_v6  ;;  %v2106_v15 = vmul.f32 0.2, %v1850_v8  ;;  %v1851_v16 = vadd.f32 %v4190_v20, %v1716_v9  ;;  %v3300_v18 = vpack.c.bf16 %v2233_v14, %v2233_v14  ;;  %v1852_v19 = vadd.f32 %v4190_v20, %v1717_v10 }
 0x257   : > { %v1718_v45 = vmul.f32 %v4183_v17, %v1583_v11  ;;  %v1719_v21 = vmul.f32 %v4183_v17, %v1584_v12  ;;  %v1720_v25 = vmul.f32 %v4183_v17, %v1585_v13  ;;  %v1586_v32 = vadd.f32 %v4198_v22, %v1451_v46 }
 0x258   : > { %v2234_v23 = vsel %vm1978_vm10, %v1850_v8, %v2106_v15  ;;  %vm1979_vm11 = vcmp.ge.f32.partialorder %v1851_v16, 0.0  ;;  %v2107_v24 = vmul.f32 0.2, %v1851_v16  ;;  %2874 = vst.msk [vmem:[%s3650_s24 + $0x140] sm:$0xf] %vm2793_vm3, %v3300_v18  ;;  %vm1980_vm12 = vcmp.ge.f32.partialorder %v1852_v19, 0.0 }
 0x259   : > { %v3301_v26 = vpack.c.bf16 %v2234_v23, %v2234_v23  ;;  %v2108_v27 = vmul.f32 0.2, %v1852_v19  ;;  %v1853_v28 = vadd.f32 %v4190_v20, %v1718_v45  ;;  %v1854_v30 = vadd.f32 %v4190_v20, %v1719_v21  ;;  %v1458_v8 = vld [vmem:[#allocation2 + $0x2f0] sm:$0xff]  ;;  %v1459_v45 = vld [vmem:[#allocation2 + $0x2f8] sm:$0xff]  ;;  %v1460_v21 = vld [vmem:[#allocation2 + $0x300] sm:$0xff] }
 0x25a   : > { %v2235_v29 = vsel %vm1979_vm11, %v1851_v16, %v2107_v24  ;;  %v1855_v31 = vadd.f32 %v4190_v20, %v1720_v25  ;;  %v1721_v43 = vmul.f32 %v4183_v17, %v1586_v32  ;;  %v1587_v44 = vadd.f32 %v4198_v22, %v1452_v33  ;;  %v1461_v32 = vld [vmem:[#allocation2 + $0x308] sm:$0xff]  ;;  %v1462_v33 = vld [vmem:[#allocation2 + $0x310] sm:$0xff] }
 0x25b   : > { %2875 = vst.msk [vmem:[%s3650_s24 + $0x144] sm:$0xf] %vm2793_vm3, %v3301_v26  ;;  %v3302_v34 = vpack.c.bf16 %v2235_v29, %v2235_v29  ;;  %v2236_v35 = vsel %vm1980_vm12, %v1852_v19, %v2108_v27  ;;  %vm1981_vm13 = vcmp.ge.f32.partialorder %v1853_v28, 0.0  ;;  %v2109_v36 = vmul.f32 0.2, %v1853_v28 }
 0x25c   : > { %v3303_v39 = vpack.c.bf16 %v2236_v35, %v2236_v35  ;;  %vm1982_vm14 = vcmp.ge.f32.partialorder %v1854_v30, 0.0  ;;  %v2110_v40 = vmul.f32 0.2, %v1854_v30  ;;  %vm1983_vm15 = vcmp.ge.f32.partialorder %v1855_v31, 0.0 }
 0x25d   : > { %2876 = vst.msk [vmem:[%s3650_s24 + $0x148] sm:$0xf] %vm2793_vm3, %v3302_v34  ;;  %v2237_v41 = vsel %vm1981_vm13, %v1853_v28, %v2109_v36  ;;  %v2111_v42 = vmul.f32 0.2, %v1855_v31  ;;  %v1588_v51 = vadd.f32 %v4198_v22, %v1453_v37  ;;  %v1589_v52 = vadd.f32 %v4198_v22, %v1454_v38  ;;  %v1463_v34 = vld [vmem:[#allocation2 + $0x318] sm:$0xff] }
 0x25e   : > { %2877 = vst.msk [vmem:[%s3650_s24 + $0x14c] sm:$0xf] %vm2793_vm3, %v3303_v39  ;;  %v3304_v49 = vpack.c.bf16 %v2237_v41, %v2237_v41  ;;  %v2238_v50 = vsel %vm1982_vm14, %v1854_v30, %v2110_v40  ;;  %v1856_v56 = vadd.f32 %v4190_v20, %v1721_v43  ;;  %v1722_v48 = vmul.f32 %v4183_v17, %v1587_v44 }
 0x25f   : > { %v3305_v54 = vpack.c.bf16 %v2238_v50, %v2238_v50  ;;  %v2239_v55 = vsel %vm1983_vm15, %v1855_v31, %v2111_v42  ;;  %v1723_v59 = vmul.f32 %v4183_v17, %v1588_v51  ;;  %v1724_v60 = vmul.f32 %v4183_v17, %v1589_v52 }
 0x260   : > { %2878 = vst.msk [vmem:[%s3650_s24 + $0x150] sm:$0xf] %vm2793_vm3, %v3304_v49  ;;  %v3306_v58 = vpack.c.bf16 %v2239_v55, %v2239_v55  ;;  %v1590_v61 = vadd.f32 %v4198_v22, %v1455_v47  ;;  %vm1984_vm0 = vcmp.ge.f32.partialorder %v1856_v56, 0.0  ;;  %v2112_v62 = vmul.f32 0.2, %v1856_v56  ;;  %v1464_v49 = vld [vmem:[#allocation2 + $0x320] sm:$0xff] }
 0x261   : > { %2879 = vst.msk [vmem:[%s3650_s24 + $0x154] sm:$0xf] %vm2793_vm3, %v3305_v54  ;;  %v1857_v63 = vadd.f32 %v4190_v20, %v1722_v48  ;;  %v1591_v0 = vadd.f32 %v4198_v22, %v1456_v53  ;;  %v1858_v1 = vadd.f32 %v4190_v20, %v1723_v59  ;;  %v1859_v2 = vadd.f32 %v4190_v20, %v1724_v60 }
 0x262   : > { %2880 = vst.msk [vmem:[%s3650_s24 + $0x158] sm:$0xf] %vm2793_vm3, %v3306_v58  ;;  %v1725_v3 = vmul.f32 %v4183_v17, %v1590_v61  ;;  %v1592_v4 = vadd.f32 %v4198_v22, %v1457_v57  ;;  %v2240_v5 = vsel %vm1984_vm0, %v1856_v56, %v2112_v62  ;;  %v1593_v19 = vadd.f32 %v4198_v22, %v1458_v8 }
 0x263   : > { %vm1985_vm1 = vcmp.ge.f32.partialorder %v1857_v63, 0.0  ;;  %v2113_v6 = vmul.f32 0.2, %v1857_v63  ;;  %v1726_v7 = vmul.f32 %v4183_v17, %v1591_v0  ;;  %v3307_v9 = vpack.c.bf16 %v2240_v5, %v2240_v5 }
 0x264   : > { %vm1986_vm2 = vcmp.ge.f32.partialorder %v1858_v1, 0.0  ;;  %v2114_v10 = vmul.f32 0.2, %v1858_v1  ;;  %vm1987_vm4 = vcmp.ge.f32.partialorder %v1859_v2, 0.0  ;;  %v2115_v12 = vmul.f32 0.2, %v1859_v2 }
 0x265   : > { %v2241_v11 = vsel %vm1985_vm1, %v1857_v63, %v2113_v6  ;;  %v1860_v13 = vadd.f32 %v4190_v20, %v1725_v3  ;;  %v1861_v14 = vadd.f32 %v4190_v20, %v1726_v7  ;;  %2881 = vst.msk [vmem:[%s3650_s24 + $0x15c] sm:$0xf] %vm2793_vm3, %v3307_v9  ;;  %v1727_v18 = vmul.f32 %v4183_v17, %v1592_v4  ;;  %v1466_v6 = vld [vmem:[#allocation2 + $0x330] sm:$0xff]  ;;  %v1467_v7 = vld [vmem:[#allocation2 + $0x338] sm:$0xff] }
 0x266   : > { %v3308_v15 = vpack.c.bf16 %v2241_v11, %v2241_v11  ;;  %v2242_v16 = vsel %vm1986_vm2, %v1858_v1, %v2114_v10  ;;  %v2243_v23 = vsel %vm1987_vm4, %v1859_v2, %v2115_v12  ;;  %v1728_v29 = vmul.f32 %v4183_v17, %v1593_v19  ;;  %v1465_v2 = vld [vmem:[#allocation2 + $0x328] sm:$0xff]  ;;  %v1468_v19 = vld [vmem:[#allocation2 + $0x340] sm:$0xff] }
 0x267   : > { %v3309_v46 = vpack.c.bf16 %v2242_v16, %v2242_v16  ;;  %vm1988_vm5 = vcmp.ge.f32.partialorder %v1860_v13, 0.0  ;;  %v2116_v24 = vmul.f32 0.2, %v1860_v13  ;;  %v3310_v25 = vpack.c.bf16 %v2243_v23, %v2243_v23 }
 0x268   : > { %2882 = vst.msk [vmem:[%s3650_s24 + $0x160] sm:$0xf] %vm2793_vm3, %v3308_v15  ;;  %vm1989_vm6 = vcmp.ge.f32.partialorder %v1861_v14, 0.0  ;;  %v2117_v26 = vmul.f32 0.2, %v1861_v14  ;;  %v1862_v27 = vadd.f32 %v4190_v20, %v1727_v18  ;;  %v1594_v30 = vadd.f32 %v4198_v22, %v1459_v45  ;;  %v1469_v45 = vld [vmem:[#allocation2 + $0x348] sm:$0xff] }
 0x269   : > { %2883 = vst.msk [vmem:[%s3650_s24 + $0x164] sm:$0xf] %vm2793_vm3, %v3309_v46  ;;  %v2244_v28 = vsel %vm1988_vm5, %v1860_v13, %v2116_v24  ;;  %v1595_v31 = vadd.f32 %v4198_v22, %v1460_v21  ;;  %2884 = vst.msk [vmem:[%s3650_s24 + $0x168] sm:$0xf] %vm2793_vm3, %v3310_v25  ;;  %v1863_v39 = vadd.f32 %v4190_v20, %v1728_v29  ;;  %v1470_v21 = vld [vmem:[#allocation2 + $0x350] sm:$0xff]  ;;  %v1471_v29 = vld [vmem:[#allocation2 + $0x358] sm:$0xff] }
 0x26a   : > { %v3311_v35 = vpack.c.bf16 %v2244_v28, %v2244_v28  ;;  %v2245_v36 = vsel %vm1989_vm6, %v1861_v14, %v2117_v26  ;;  %vm1990_vm7 = vcmp.ge.f32.partialorder %v1862_v27, 0.0  ;;  %v2118_v37 = vmul.f32 0.2, %v1862_v27 }
 0x26b   : > { %v3312_v38 = vpack.c.bf16 %v2245_v36, %v2245_v36  ;;  %v1729_v40 = vmul.f32 %v4183_v17, %v1594_v30  ;;  %v1730_v41 = vmul.f32 %v4183_v17, %v1595_v31  ;;  %v1596_v43 = vadd.f32 %v4198_v22, %v1461_v32 }
 0x26c   : > { %2885 = vst.msk [vmem:[%s3650_s24 + $0x16c] sm:$0xf] %vm2793_vm3, %v3311_v35  ;;  %v2246_v42 = vsel %vm1990_vm7, %v1862_v27, %v2118_v37  ;;  %v1597_v44 = vadd.f32 %v4198_v22, %v1462_v33  ;;  %v1598_v47 = vadd.f32 %v4198_v22, %v1463_v34  ;;  %vm1991_vm8 = vcmp.ge.f32.partialorder %v1863_v39, 0.0 }
 0x26d   : > { %2886 = vst.msk [vmem:[%s3650_s24 + $0x170] sm:$0xf] %vm2793_vm3, %v3312_v38  ;;  %v3313_v50 = vpack.c.bf16 %v2246_v42, %v2246_v42  ;;  %v2119_v51 = vmul.f32 0.2, %v1863_v39  ;;  %v1864_v52 = vadd.f32 %v4190_v20, %v1729_v40  ;;  %v1865_v53 = vadd.f32 %v4190_v20, %v1730_v41 }
 0x26e   : > { %v1731_v54 = vmul.f32 %v4183_v17, %v1596_v43  ;;  %v1732_v55 = vmul.f32 %v4183_v17, %v1597_v44  ;;  %v1733_v56 = vmul.f32 %v4183_v17, %v1598_v47  ;;  %v1599_v58 = vadd.f32 %v4198_v22, %v1464_v49 }
 0x26f   : > { %2887 = vst.msk [vmem:[%s3650_s24 + $0x174] sm:$0xf] %vm2793_vm3, %v3313_v50  ;;  %v2247_v48 = vsel %vm1991_vm8, %v1863_v39, %v2119_v51  ;;  %vm1992_vm9 = vcmp.ge.f32.partialorder %v1864_v52, 0.0  ;;  %v2120_v57 = vmul.f32 0.2, %v1864_v52  ;;  %vm1993_vm10 = vcmp.ge.f32.partialorder %v1865_v53, 0.0 }
 0x270   : > { %v3314_v59 = vpack.c.bf16 %v2247_v48, %v2247_v48  ;;  %v2121_v60 = vmul.f32 0.2, %v1865_v53  ;;  %v1866_v61 = vadd.f32 %v4190_v20, %v1731_v54  ;;  %v1867_v63 = vadd.f32 %v4190_v20, %v1732_v55  ;;  %v1472_v54 = vld [vmem:[#allocation2 + $0x360] sm:$0xff] }
 0x271   : > { %v2248_v62 = vsel %vm1992_vm9, %v1864_v52, %v2120_v57  ;;  %v1868_v0 = vadd.f32 %v4190_v20, %v1733_v56  ;;  %v1734_v1 = vmul.f32 %v4183_v17, %v1599_v58  ;;  %v1600_v13 = vadd.f32 %v4198_v22, %v1465_v2  ;;  %v1473_v57 = vld [vmem:[#allocation2 + $0x368] sm:$0xff]  ;;  %v1474_v58 = vld [vmem:[#allocation2 + $0x370] sm:$0xff] }
 0x272   : > { %2888 = vst.msk [vmem:[%s3650_s24 + $0x178] sm:$0xf] %vm2793_vm3, %v3314_v59  ;;  %v3315_v3 = vpack.c.bf16 %v2248_v62, %v2248_v62  ;;  %v2249_v4 = vsel %vm1993_vm10, %v1865_v53, %v2121_v60  ;;  %vm1994_vm11 = vcmp.ge.f32.partialorder %v1866_v61, 0.0  ;;  %v2122_v5 = vmul.f32 0.2, %v1866_v61 }
 0x273   : > { %v3316_v8 = vpack.c.bf16 %v2249_v4, %v2249_v4  ;;  %vm1995_vm12 = vcmp.ge.f32.partialorder %v1867_v63, 0.0  ;;  %v2123_v9 = vmul.f32 0.2, %v1867_v63  ;;  %vm1996_vm13 = vcmp.ge.f32.partialorder %v1868_v0, 0.0 }
 0x274   : > { %2889 = vst.msk [vmem:[%s3650_s24 + $0x17c] sm:$0xf] %vm2793_vm3, %v3315_v3  ;;  %v2250_v10 = vsel %vm1994_vm11, %v1866_v61, %v2122_v5  ;;  %v2124_v11 = vmul.f32 0.2, %v1868_v0  ;;  %v1869_v12 = vadd.f32 %v4190_v20, %v1734_v1  ;;  %v1601_v16 = vadd.f32 %v4198_v22, %v1466_v6  ;;  %v1475_v5 = vld [vmem:[#allocation2 + $0x378] sm:$0xff]  ;;  %v1476_v6 = vld [vmem:[#allocation2 + $0x380] sm:$0xff] }
 0x275   : > { %2890 = vst.msk [vmem:[%s3650_s24 + $0x180] sm:$0xf] %vm2793_vm3, %v3316_v8  ;;  %v3317_v14 = vpack.c.bf16 %v2250_v10, %v2250_v10  ;;  %v2251_v15 = vsel %vm1995_vm12, %v1867_v63, %v2123_v9  ;;  %v1602_v18 = vadd.f32 %v4198_v22, %v1467_v7  ;;  %v1735_v26 = vmul.f32 %v4183_v17, %v1600_v13  ;;  %v1477_v7 = vld [vmem:[#allocation2 + $0x388] sm:$0xff] }
 0x276   : > { %v3318_v46 = vpack.c.bf16 %v2251_v15, %v2251_v15  ;;  %v2252_v23 = vsel %vm1996_vm13, %v1868_v0, %v2124_v11  ;;  %vm1997_vm14 = vcmp.ge.f32.partialorder %v1869_v12, 0.0  ;;  %v2125_v24 = vmul.f32 0.2, %v1869_v12  ;;  %v1478_v11 = vld [vmem:[#allocation2 + $0x390] sm:$0xff] }
 0x277   : > { %2891 = vst.msk [vmem:[%s3650_s24 + $0x184] sm:$0xf] %vm2793_vm3, %v3317_v14  ;;  %v3319_v25 = vpack.c.bf16 %v2252_v23, %v2252_v23  ;;  %v1736_v27 = vmul.f32 %v4183_v17, %v1601_v16  ;;  %v1737_v28 = vmul.f32 %v4183_v17, %v1602_v18  ;;  %v1603_v31 = vadd.f32 %v4198_v22, %v1468_v19 }
 0x278   : > { %2892 = vst.msk [vmem:[%s3650_s24 + $0x188] sm:$0xf] %vm2793_vm3, %v3318_v46  ;;  %v2253_v30 = vsel %vm1997_vm14, %v1869_v12, %v2125_v24  ;;  %v1604_v32 = vadd.f32 %v4198_v22, %v1469_v45  ;;  %v1605_v33 = vadd.f32 %v4198_v22, %v1470_v21  ;;  %v1870_v35 = vadd.f32 %v4190_v20, %v1735_v26 }
 0x279   : > { %2893 = vst.msk [vmem:[%s3650_s24 + $0x18c] sm:$0xf] %vm2793_vm3, %v3319_v25  ;;  %v3320_v34 = vpack.c.bf16 %v2253_v30, %v2253_v30  ;;  %v1871_v36 = vadd.f32 %v4190_v20, %v1736_v27  ;;  %v1872_v37 = vadd.f32 %v4190_v20, %v1737_v28  ;;  %v1738_v38 = vmul.f32 %v4183_v17, %v1603_v31 }
 0x27a   : > { %v1739_v39 = vmul.f32 %v4183_v17, %v1604_v32  ;;  %v1740_v40 = vmul.f32 %v4183_v17, %v1605_v33  ;;  %v1606_v41 = vadd.f32 %v4198_v22, %v1471_v29  ;;  %vm1998_vm15 = vcmp.ge.f32.partialorder %v1870_v35, 0.0 }
 0x27b   : > { %2894 = vst.msk [vmem:[%s3650_s24 + $0x190] sm:$0xf] %vm2793_vm3, %v3320_v34  ;;  %v2126_v42 = vmul.f32 0.2, %v1870_v35  ;;  %vm1999_vm0 = vcmp.ge.f32.partialorder %v1871_v36, 0.0  ;;  %vm2000_vm1 = vcmp.ge.f32.partialorder %v1872_v37, 0.0  ;;  %v1873_v47 = vadd.f32 %v4190_v20, %v1738_v38 }
 0x27c   : > { %v2127_v43 = vmul.f32 0.2, %v1871_v36  ;;  %v2128_v44 = vmul.f32 0.2, %v1872_v37  ;;  %v1874_v49 = vadd.f32 %v4190_v20, %v1739_v39  ;;  %v1875_v52 = vadd.f32 %v4190_v20, %v1740_v40  ;;  %v1479_v38 = vld [vmem:[#allocation2 + $0x398] sm:$0xff]  ;;  %v1480_v39 = vld [vmem:[#allocation2 + $0x3a0] sm:$0xff] }
 0x27d   : > { %v2254_v50 = vsel %vm1998_vm15, %v1870_v35, %v2126_v42  ;;  %v1741_v53 = vmul.f32 %v4183_v17, %v1606_v41  ;;  %vm2001_vm2 = vcmp.ge.f32.partialorder %v1873_v47, 0.0  ;;  %v2129_v60 = vmul.f32 0.2, %v1873_v47 }
 0x27e   : > { %v2255_v51 = vsel %vm1999_vm0, %v1871_v36, %v2127_v43  ;;  %v3321_v55 = vpack.c.bf16 %v2254_v50, %v2254_v50  ;;  %v2256_v48 = vsel %vm2000_vm1, %v1872_v37, %v2128_v44  ;;  %vm2002_vm4 = vcmp.ge.f32.partialorder %v1874_v49, 0.0  ;;  %v1481_v43 = vld [vmem:[#allocation2 + $0x3a8] sm:$0xff]  ;;  %v1482_v44 = vld [vmem:[#allocation2 + $0x3b0] sm:$0xff] }
 0x27f   : > { %v3322_v56 = vpack.c.bf16 %v2255_v51, %v2255_v51  ;;  %v3323_v59 = vpack.c.bf16 %v2256_v48, %v2256_v48  ;;  %v2130_v61 = vmul.f32 0.2, %v1874_v49  ;;  %vm2003_vm5 = vcmp.ge.f32.partialorder %v1875_v52, 0.0 }
 0x280   : > { %2895 = vst.msk [vmem:[%s3650_s24 + $0x194] sm:$0xf] %vm2793_vm3, %v3321_v55  ;;  %v2131_v62 = vmul.f32 0.2, %v1875_v52  ;;  %v1876_v63 = vadd.f32 %v4190_v20, %v1741_v53  ;;  %v1607_v0 = vadd.f32 %v4198_v22, %v1472_v54  ;;  %v2257_v1 = vsel %vm2001_vm2, %v1873_v47, %v2129_v60 }
 0x281   : > { %2896 = vst.msk [vmem:[%s3650_s24 + $0x198] sm:$0xf] %vm2793_vm3, %v3322_v56  ;;  %2897 = vst.msk [vmem:[%s3650_s24 + $0x19c] sm:$0xf] %vm2793_vm3, %v3323_v59  ;;  %v2258_v2 = vsel %vm2002_vm4, %v1874_v49, %v2130_v61  ;;  %v1608_v3 = vadd.f32 %v4198_v22, %v1473_v57  ;;  %v1609_v4 = vadd.f32 %v4198_v22, %v1474_v58  ;;  %v4488_v56 = vld [vmem:[%s4576_s2] ss:$0 sm:$0xff] }
 0x282   : > { %v3324_v8 = vpack.c.bf16 %v2257_v1, %v2257_v1  ;;  %v3325_v9 = vpack.c.bf16 %v2258_v2, %v2258_v2  ;;  %v2259_v10 = vsel %vm2003_vm5, %v1875_v52, %v2131_v62  ;;  %vm2004_vm6 = vcmp.ge.f32.partialorder %v1876_v63, 0.0  ;;  %v4495_v61 = vld [vmem:[%s4577_s3] ss:$0 sm:$0xff] }
 0x283   : > { %v3326_v12 = vpack.c.bf16 %v2259_v10, %v2259_v10  ;;  %v2132_v13 = vmul.f32 0.2, %v1876_v63  ;;  %v1742_v14 = vmul.f32 %v4183_v17, %v1607_v0  ;;  %v1743_v15 = vmul.f32 %v4183_v17, %v1608_v3 }
 0x284   : > { %2898 = vst.msk [vmem:[%s3650_s24 + $0x1a0] sm:$0xf] %vm2793_vm3, %v3324_v8  ;;  %2899 = vst.msk [vmem:[%s3650_s24 + $0x1a4] sm:$0xf] %vm2793_vm3, %v3325_v9  ;;  %v1744_v16 = vmul.f32 %v4183_v17, %v1609_v4  ;;  %v1610_v18 = vadd.f32 %v4198_v22, %v1475_v5  ;;  %v1611_v19 = vadd.f32 %v4198_v22, %v1476_v6  ;;  %v4509_v6 = vld [vmem:[%s4578_s4] ss:$0 sm:$0xff] }
 0x285   : > { %v1612_v45 = vadd.f32 %v4198_v22, %v1477_v7  ;;  %2900 = vst.msk [vmem:[%s3650_s24 + $0x1a8] sm:$0xf] %vm2793_vm3, %v3326_v12  ;;  %v2260_v21 = vsel %vm2004_vm6, %v1876_v63, %v2132_v13  ;;  %v1877_v46 = vadd.f32 %v4190_v20, %v1742_v14  ;;  %v1878_v23 = vadd.f32 %v4190_v20, %v1743_v15  ;;  %v1484_v13 = vld [vmem:[#allocation2 + $0x3c0] sm:$0xff] }
 0x286   : > { %v1613_v24 = vadd.f32 %v4198_v22, %v1478_v11  ;;  %v3327_v25 = vpack.c.bf16 %v2260_v21, %v2260_v21  ;;  %v1879_v26 = vadd.f32 %v4190_v20, %v1744_v16  ;;  %v1745_v27 = vmul.f32 %v4183_v17, %v1610_v18 }
 0x287   : > { %v1746_v28 = vmul.f32 %v4183_v17, %v1611_v19  ;;  %vm2005_vm7 = vcmp.ge.f32.partialorder %v1877_v46, 0.0  ;;  %v2133_v29 = vmul.f32 0.2, %v1877_v46  ;;  %vm2006_vm8 = vcmp.ge.f32.partialorder %v1878_v23, 0.0 }
 0x288   : > { %v2134_v30 = vmul.f32 0.2, %v1878_v23  ;;  %2901 = vst.msk [vmem:[%s3650_s24 + $0x1ac] sm:$0xf] %vm2793_vm3, %v3327_v25  ;;  %vm2007_vm9 = vcmp.ge.f32.partialorder %v1879_v26, 0.0  ;;  %v1880_v32 = vadd.f32 %v4190_v20, %v1745_v27  ;;  %v1747_v36 = vmul.f32 %v4183_v17, %v1612_v45  ;;  %v1487_v25 = vld [vmem:[#allocation2 + $0x3d8] sm:$0xff] }
 0x289   : > { %v2135_v31 = vmul.f32 0.2, %v1879_v26  ;;  %v1881_v33 = vadd.f32 %v4190_v20, %v1746_v28  ;;  %v2261_v34 = vsel %vm2005_vm7, %v1877_v46, %v2133_v29  ;;  %v1748_v37 = vmul.f32 %v4183_v17, %v1613_v24  ;;  %v1486_v24 = vld [vmem:[#allocation2 + $0x3d0] sm:$0xff] }
 0x28a   : > { %v2262_v35 = vsel %vm2006_vm8, %v1878_v23, %v2134_v30  ;;  %v3328_v40 = vpack.c.bf16 %v2261_v34, %v2261_v34  ;;  %vm2008_vm10 = vcmp.ge.f32.partialorder %v1880_v32, 0.0  ;;  %v2136_v49 = vmul.f32 0.2, %v1880_v32  ;;  %v1485_v23 = vld [vmem:[#allocation2 + $0x3c8] sm:$0xff]  ;;  %v1488_v30 = vld [vmem:[#allocation2 + $0x3e0] sm:$0xff] }
 0x28b   : > { %v3329_v41 = vpack.c.bf16 %v2262_v35, %v2262_v35  ;;  %v2263_v42 = vsel %vm2007_vm9, %v1879_v26, %v2135_v31  ;;  %vm2009_vm11 = vcmp.ge.f32.partialorder %v1881_v33, 0.0  ;;  %v2137_v50 = vmul.f32 0.2, %v1881_v33  ;;  %v1489_v31 = vld [vmem:[#allocation2 + $0x3e8] sm:$0xff] }
 0x28c   : > { %v3330_v47 = vpack.c.bf16 %v2263_v42, %v2263_v42  ;;  %2902 = vst.msk [vmem:[%s3650_s24 + $0x1b0] sm:$0xf] %vm2793_vm3, %v3328_v40  ;;  %v1882_v51 = vadd.f32 %v4190_v20, %v1747_v36  ;;  %v1883_v17 = vadd.f32 %v4190_v20, %v1748_v37  ;;  %v1614_v52 = vadd.f32 %v4198_v22, %v1479_v38  ;;  %v1483_v20 = vld [vmem:[#allocation2 + $0x3b8] sm:$0xff] }
 0x28d   : > { %2903 = vst.msk [vmem:[%s3650_s24 + $0x1b4] sm:$0xf] %vm2793_vm3, %v3329_v41  ;;  %v1615_v53 = vadd.f32 %v4198_v22, %v1480_v39  ;;  %v2264_v54 = vsel %vm2008_vm10, %v1880_v32, %v2136_v49  ;;  %v2265_v55 = vsel %vm2009_vm11, %v1881_v33, %v2137_v50  ;;  %v1616_v48 = vadd.f32 %v4488_v56, %v1481_v43  ;;  %v1490_v32 = vld [vmem:[#allocation2 + $0x3f0] sm:$0xff] }
 0x28e   : > { %2904 = vst.msk [vmem:[%s3650_s24 + $0x1b8] sm:$0xf] %vm2793_vm3, %v3330_v47  ;;  %v1617_v57 = vadd.f32 %v4488_v56, %v1482_v44  ;;  %v3331_v58 = vpack.c.bf16 %v2264_v54, %v2264_v54  ;;  %v3332_v59 = vpack.c.bf16 %v2265_v55, %v2265_v55  ;;  %vm2010_vm12 = vcmp.ge.f32.partialorder %v1882_v51, 0.0 }
 0x28f   : > { %v2138_v22 = vmul.f32 0.2, %v1882_v51  ;;  %vm2011_vm13 = vcmp.ge.f32.partialorder %v1883_v17, 0.0  ;;  %v2139_v60 = vmul.f32 0.2, %v1883_v17  ;;  %v1749_v62 = vmul.f32 %v4495_v61, %v1614_v52 }
 0x290   : > { %v1750_v63 = vmul.f32 %v4495_v61, %v1615_v53  ;;  %2905 = vst.msk [vmem:[%s3650_s24 + $0x1bc] sm:$0xf] %vm2793_vm3, %v3331_v58  ;;  %2906 = vst.msk [vmem:[%s3650_s24 + $0x1c0] sm:$0xf] %vm2793_vm3, %v3332_v59  ;;  %v1751_v1 = vmul.f32 %v4495_v61, %v1616_v48  ;;  %v1752_v2 = vmul.f32 %v4495_v61, %v1617_v57 }
 0x291   : > { %v2266_v0 = vsel %vm2010_vm12, %v1882_v51, %v2138_v22  ;;  %v1618_v3 = vadd.f32 %v4488_v56, %v1483_v20  ;;  %v2267_v5 = vsel %vm2011_vm13, %v1883_v17, %v2139_v60  ;;  %v1884_v7 = vadd.f32 %v4509_v6, %v1749_v62 }
 0x292   : > { %v3333_v4 = vpack.c.bf16 %v2266_v0, %v2266_v0  ;;  %v1885_v8 = vadd.f32 %v4509_v6, %v1750_v63  ;;  %v3334_v9 = vpack.c.bf16 %v2267_v5, %v2267_v5  ;;  %v1886_v10 = vadd.f32 %v4509_v6, %v1751_v1 }
 0x293   : > { %v1887_v11 = vadd.f32 %v4509_v6, %v1752_v2  ;;  %v1753_v12 = vmul.f32 %v4495_v61, %v1618_v3  ;;  %vm2012_vm14 = vcmp.ge.f32.partialorder %v1884_v7, 0.0  ;;  %v2140_v14 = vmul.f32 0.2, %v1884_v7  ;;  %v1491_v3 = vld [vmem:[#allocation2 + $0x3f8] sm:$0xff] }
 0x294   : > { %2907 = vst.msk [vmem:[%s3650_s24 + $0x1c4] sm:$0xf] %vm2793_vm3, %v3333_v4  ;;  %vm2013_vm15 = vcmp.ge.f32.partialorder %v1885_v8, 0.0  ;;  %v2141_v15 = vmul.f32 0.2, %v1885_v8  ;;  %vm2014_vm0 = vcmp.ge.f32.partialorder %v1886_v10, 0.0  ;;  %v1619_v46 = vadd.f32 %v4488_v56, %v1484_v13 }
 0x295   : > { %2908 = vst.msk [vmem:[%s3650_s24 + $0x1c8] sm:$0xf] %vm2793_vm3, %v3334_v9  ;;  %v2142_v16 = vmul.f32 0.2, %v1886_v10  ;;  %vm2015_vm1 = vcmp.ge.f32.partialorder %v1887_v11, 0.0  ;;  %v2268_v19 = vsel %vm2012_vm14, %v1884_v7, %v2140_v14  ;;  %v1888_v21 = vadd.f32 %v4509_v6, %v1753_v12 }
 0x296   : > { %v2143_v18 = vmul.f32 0.2, %v1887_v11  ;;  %v2269_v45 = vsel %vm2013_vm15, %v1885_v8, %v2141_v15  ;;  %v3335_v26 = vpack.c.bf16 %v2268_v19, %v2268_v19  ;;  %v1754_v36 = vmul.f32 %v4495_v61, %v1619_v46 }
 0x297   : > { %v3336_v27 = vpack.c.bf16 %v2269_v45, %v2269_v45  ;;  %v2270_v28 = vsel %vm2014_vm0, %v1886_v10, %v2142_v16  ;;  %vm2016_vm2 = vcmp.ge.f32.partialorder %v1888_v21, 0.0  ;;  %v2144_v35 = vmul.f32 0.2, %v1888_v21 }
 0x298   : > { %v2271_v29 = vsel %vm2015_vm1, %v1887_v11, %v2143_v18  ;;  %v3337_v33 = vpack.c.bf16 %v2270_v28, %v2270_v28  ;;  %2909 = vst.msk [vmem:[%s3650_s24 + $0x1cc] sm:$0xf] %vm2793_vm3, %v3335_v26  ;;  %v1620_v37 = vadd.f32 %v4488_v56, %v1485_v23  ;;  %v1621_v38 = vadd.f32 %v4488_v56, %v1486_v24 }
 0x299   : > { %v3338_v34 = vpack.c.bf16 %v2271_v29, %v2271_v29  ;;  %2910 = vst.msk [vmem:[%s3650_s24 + $0x1d0] sm:$0xf] %vm2793_vm3, %v3336_v27  ;;  %v1622_v39 = vadd.f32 %v4488_v56, %v1487_v25  ;;  %v2272_v40 = vsel %vm2016_vm2, %v1888_v21, %v2144_v35  ;;  %v1623_v41 = vadd.f32 %v4488_v56, %v1488_v30 }
 0x29a   : > { %2911 = vst.msk [vmem:[%s3650_s24 + $0x1d4] sm:$0xf] %vm2793_vm3, %v3337_v33  ;;  %v1624_v42 = vadd.f32 %v4488_v56, %v1489_v31  ;;  %v1625_v43 = vadd.f32 %v4488_v56, %v1490_v32  ;;  %v3339_v44 = vpack.c.bf16 %v2272_v40, %v2272_v40  ;;  %v1889_v47 = vadd.f32 %v4509_v6, %v1754_v36 }
 0x29b   : > { %2912 = vst.msk [vmem:[%s3650_s24 + $0x1d8] sm:$0xf] %vm2793_vm3, %v3338_v34  ;;  %v1755_v49 = vmul.f32 %v4495_v61, %v1620_v37  ;;  %v1756_v50 = vmul.f32 %v4495_v61, %v1621_v38  ;;  %v1757_v51 = vmul.f32 %v4495_v61, %v1622_v39  ;;  %v1758_v17 = vmul.f32 %v4495_v61, %v1623_v41 }
 0x29c   : > { %v1759_v52 = vmul.f32 %v4495_v61, %v1624_v42  ;;  %v1760_v53 = vmul.f32 %v4495_v61, %v1625_v43  ;;  %2913 = vst.msk [vmem:[%s3650_s24 + $0x1dc] sm:$0xf] %vm2793_vm3, %v3339_v44  ;;  %vm2017_vm4 = vcmp.ge.f32.partialorder %v1889_v47, 0.0  ;;  %v2145_v54 = vmul.f32 0.2, %v1889_v47 }
 0x29d   : > { %v1890_v55 = vadd.f32 %v4509_v6, %v1755_v49  ;;  %v1891_v48 = vadd.f32 %v4509_v6, %v1756_v50  ;;  %v1892_v57 = vadd.f32 %v4509_v6, %v1757_v51  ;;  %v1893_v20 = vadd.f32 %v4509_v6, %v1758_v17 }
 0x29e   : > { %v1894_v58 = vadd.f32 %v4509_v6, %v1759_v52  ;;  %v1895_v59 = vadd.f32 %v4509_v6, %v1760_v53  ;;  %v2273_v22 = vsel %vm2017_vm4, %v1889_v47, %v2145_v54  ;;  %v1626_v15 = vadd.f32 %v4488_v56, %v1491_v3 }
 0x29f   : > { %vm2018_vm5 = vcmp.ge.f32.partialorder %v1890_v55, 0.0  ;;  %v2146_v60 = vmul.f32 0.2, %v1890_v55  ;;  %vm2019_vm6 = vcmp.ge.f32.partialorder %v1891_v48, 0.0  ;;  %v3340_v62 = vpack.c.bf16 %v2273_v22, %v2273_v22 }
 0x2a0   : > { %v2147_v63 = vmul.f32 0.2, %v1891_v48  ;;  %vm2020_vm7 = vcmp.ge.f32.partialorder %v1892_v57, 0.0  ;;  %v2148_v0 = vmul.f32 0.2, %v1892_v57  ;;  %vm2021_vm8 = vcmp.ge.f32.partialorder %v1893_v20, 0.0 }
 0x2a1   : > { %v2274_v1 = vsel %vm2018_vm5, %v1890_v55, %v2146_v60  ;;  %v2149_v2 = vmul.f32 0.2, %v1893_v20  ;;  %vm2022_vm9 = vcmp.ge.f32.partialorder %v1894_v58, 0.0  ;;  %2914 = vst.msk [vmem:[%s3650_s24 + $0x1e0] sm:$0xf] %vm2793_vm3, %v3340_v62  ;;  %vm2023_vm10 = vcmp.ge.f32.partialorder %v1895_v59, 0.0 }
 0x2a2   : > { %v3341_v4 = vpack.c.bf16 %v2274_v1, %v2274_v1  ;;  %v2275_v5 = vsel %vm2019_vm6, %v1891_v48, %v2147_v63  ;;  %v2276_v7 = vsel %vm2020_vm7, %v1892_v57, %v2148_v0  ;;  %v2150_v8 = vmul.f32 0.2, %v1894_v58 }
 0x2a3   : > { %v3342_v9 = vpack.c.bf16 %v2275_v5, %v2275_v5  ;;  %v3343_v10 = vpack.c.bf16 %v2276_v7, %v2276_v7  ;;  %v2277_v11 = vsel %vm2021_vm8, %v1893_v20, %v2149_v2  ;;  %v2151_v14 = vmul.f32 0.2, %v1895_v59 }
 0x2a4   : > { %2915 = vst.msk [vmem:[%s3650_s24 + $0x1e4] sm:$0xf] %vm2793_vm3, %v3341_v4  ;;  %v3344_v12 = vpack.c.bf16 %v2277_v11, %v2277_v11  ;;  %v2278_v13 = vsel %vm2022_vm9, %v1894_v58, %v2150_v8  ;;  %v1761_v19 = vmul.f32 %v4495_v61, %v1626_v15 }
 0x2a5   : > { %2916 = vst.msk [vmem:[%s3650_s24 + $0x1e8] sm:$0xf] %vm2793_vm3, %v3342_v9  ;;  %2917 = vst.msk [vmem:[%s3650_s24 + $0x1ec] sm:$0xf] %vm2793_vm3, %v3343_v10  ;;  %v3345_v16 = vpack.c.bf16 %v2278_v13, %v2278_v13  ;;  %v2279_v18 = vsel %vm2023_vm10, %v1895_v59, %v2151_v14 }
 0x2a6   : > { %2918 = vst.msk [vmem:[%s3650_s24 + $0x1f0] sm:$0xf] %vm2793_vm3, %v3344_v12  ;;  %v3346_v45 = vpack.c.bf16 %v2279_v18, %v2279_v18  ;;  %v1896_v21 = vadd.f32 %v4509_v6, %v1761_v19 }
 0x2a7   : > { %2919 = vst.msk [vmem:[%s3650_s24 + $0x1f4] sm:$0xf] %vm2793_vm3, %v3345_v16 }
 0x2a8   : > { %2920 = vst.msk [vmem:[%s3650_s24 + $0x1f8] sm:$0xf] %vm2793_vm3, %v3346_v45  ;;  %vm2024_vm11 = vcmp.ge.f32.partialorder %v1896_v21, 0.0  ;;  %v2152_v46 = vmul.f32 0.2, %v1896_v21 }
 0x2aa   : > { %v2280_v56 = vsel %vm2024_vm11, %v1896_v21, %v2152_v46 }
 0x2ab   : > { %v3347_v23 = vpack.c.bf16 %v2280_v56, %v2280_v56 }
 0x2ad   : > { %2921 = vst.msk [vmem:[%s3650_s24 + $0x1fc] sm:$0xf] %vm2793_vm3, %v3347_v23 }
 0x2ae PF: > { %s15_s18 = sadd.s32 1, %s3602_s18  }
 0x2af   : > { %p12_p5 = scmp.ge.s32.totalorder %s15_s18, 4  }
 0x2b1   :  { %14 = sbr.rel (!%p12_p5) target bundleno = 1 (0x1), region = 108 }

// kernel: discriminator_forward.6
= control target key start
LH: loop header
LB: loop body
LE: loop exit
PB: predicated region body
PF: predicated region fallthrough
CT: control target
= control target key end

     0   :  { %s2441_s18 = smov 0   ;;  %s3222_s0 = inlined_call_operand.vmem [shape: bf16[2,32,16,16], index: 0, kind: input, shape index: {}]   ;;  %s3223_s1 = inlined_call_operand.vmem [shape: bf16[16,8,16], index: 1, kind: input, shape index: {}]   ;;  %s3224_s2 = inlined_call_operand.vmem [shape: f32[1,16], index: 2, kind: input, shape index: {}]   ;;  %s3225_s3 = inlined_call_operand.vmem [shape: f32[1,16], index: 3, kind: input, shape index: {}]   ;;  %s3226_s4 = inlined_call_operand.vmem [shape: f32[1,16], index: 4, kind: input, shape index: {}]   ;;  %s3227_s5 = inlined_call_operand.vmem [shape: bf16[2,15,15,16], index: 5, kind: output, shape index: {}]  }
   0x1 LB: > { %s2050_s19 = sadd.s32 4294967295, %s2402_s18   ;;  %p2054_p0 = scmp.ge.s32.totalorder %s2402_s18, 1  ;;  %s2402_s18 = sphi %s2441_s18, %s15_s18  }
   0x2   : > { %p187_p1 = scmp.lt.s32.totalorder %s2402_s18, 3 }
   0x4   : > { %p188_p2 = pnand %p2054_p0, %p187_p1 }
   0x6   : > { %191 = sbr.rel (%p188_p2) target bundleno = 661 (0x295), region = 40 }
   0xd   : > { %p215_p3 = scmp.lt.s32.totalorder %s2050_s19, 1  ;;  %s2459_s28 = smov 0  }
   0xf   : > { %s3276_s19 = smov (!%p215_p3, %s2050_s19), 1 }
  0x10   : > { %s2144_s20 = sshll.u32 %s3276_s19, 8  ;;  %s2366_s21 = smul.u32 120, %s3276_s19 }
  0x11   : > { %s2452_s24 = scalar_lea.vmem %s3222_s0, %s2144_s20 }
  0x12   : > { %s2457_s27 = scalar_lea.vmem %s3227_s5, %s2366_s21 }
  0x13 LB: >> { %vm252_vm0 = vcmask 1043456   ;;  %v2086_v0 = vld [vmem:[%s3223_s1 + $0x20] sm:$0xf]  ;;  %v2408_v1 = vmov 0.0   ;;  %vm2409_vm1 = vmmov 0   ;;  %s2146_s8 = sshll.u32 %s2406_s28, 4  ;;  %s2406_s28 = sphi %s2459_s28, %s231_s28  }
  0x14   : >> { %2260 = vmatprep.subr.bf16.mxu0 %v2408_v1  ;;  %v696_v2 = vsel %vm252_vm0, %v2086_v0, 0  ;;  %2262 = vmatprep.mubr.msk.bf16.mxu0 %vm2409_vm1, %v2408_v1  ;;  %v2061_v3 = vld [vmem:[%s3223_s1 + $0x4] sm:$0xf]  ;;  %s235_s11 = scalar_lea.vmem %s2452_s24, %s2146_s8  ;;  %vm248_vm2 = vcmask 64512   ;;  %s2410_s12 = smov 120   ;;  %vm1131_vm3 = vcmask 130048  }
  0x15   : >> { %2261 = vmatpush3.bf16.msra.mxu0 %v696_v2  ;;  %2212 = vmatprep.subr.bf16.mxu1 %v2408_v1  ;;  %v254_v4 = vsel %vm252_vm0, %v2061_v3, 0  ;;  %v2089_v5 = vld [vmem:[%s3223_s1 + $0x24] sm:$0xf]  ;;  %v2387_v7 = vld [vmem:[%s235_s11 + $0x10] sm:$0xff]   ;;  %v2489_v14 = vld [vmem:[%s235_s11 + $0x8] sm:$0xff]   ;;  %vm1133_vm4 = vcmask 129024  }
  0x16   : >> { %2213 = vmatpush3.bf16.msra.mxu1 %v254_v4  ;;  %2214 = vmatprep.mubr.msk.bf16.mxu1 %vm2409_vm1, %v2408_v1  ;;  %v2386_v6 = vld [vmem:[%s235_s11] sm:$0xff]   ;;  %v749_v8 = vsel %vm252_vm0, %v2089_v5, 0  ;;  %v798_v11 = vshll.u32 %v2387_v7, 16  ;;  %v796_v13 = vshrl.u32 %v2387_v7, 16  ;;  %v2494_v17 = vld [vmem:[%s235_s11 + $0x18] sm:$0xff]   ;;  %v571_v18 = vshrl.u32 %v2489_v14, 16 }
  0x17   : >> { %2218 = vmatprep.subr.bf16.mxu1 %v2408_v1  ;;  %2266 = vmatprep.subr.bf16.mxu0 %v2408_v1  ;;  %v346_v9 = vshrl.u32 %v2386_v6, 16  ;;  %v348_v10 = vshll.u32 %v2386_v6, 16  ;;  %v573_v19 = vshll.u32 %v2489_v14, 16  ;;  %v1023_v21 = vshll.u32 %v2494_v17, 16  ;;  %v238_v27 = vld [vmem:[%s3223_s1] sm:$0xf] }
  0x18   : >> { %246 = vrot.lane.b32.xlu0 %v2386_v6, %s2410_s12  ;;  %2263 = vmatmul.mubr.msk.bf16.vlgmr.msra.gmra.mrb[0].mxu0 %vm248_vm2, %v2387_v7  ;;  %v800_v15 = vrot.slane %v798_v11, 1  ;;  %v1021_v24 = vshrl.u32 %v2494_v17, 16  ;;  %v301_v28 = vsel %vm252_vm0, %v238_v27, 0  ;;  %v2091_v30 = vld [vmem:[%s3223_s1 + $0x28] sm:$0xf]  ;;  %s1130_s20 = scalar_lea.vmem [#allocation2], %s2146_s8 }
  0x19   : >> { %v350_v12 = vrot.slane %v348_v10, 1  ;;  %2267 = vmatpush3.bf16.msra.mxu0 %v749_v8  ;;  %2268 = vmatprep.mubr.msk.bf16.mxu0 %vm2409_vm1, %v2408_v1  ;;  %v575_v22 = vrot.slane %v573_v19, 1  ;;  %v1025_v25 = vrot.slane %v1023_v21, 1  ;;  %v806_v31 = vsel %vm252_vm0, %v2091_v30, 0  ;;  %v2065_v33 = vld [vmem:[%s3223_s1 + $0x8] sm:$0xf] }
  0x1a   : >> { %2272 = vmatprep.subr.bf16.mxu0 %v2408_v1  ;;  %v801_v20 = vor.u32 %v800_v15, %v796_v13  ;;  %v356_v34 = vsel %vm252_vm0, %v2065_v33, 0  ;;  %v2093_v35 = vld [vmem:[%s3223_s1 + $0x2c] sm:$0xf]  ;;  %v2099_v40 = vld [vmem:[%s3223_s1 + $0x30] sm:$0xf]  ;;  %s231_s28 = sadd.s32 1, %s2406_s28  }
  0x1b   : >> { %v351_v16 = vor.u32 %v350_v12, %v346_v9  ;;  %v2500_v23 = vor.u32 %v575_v22, %v571_v18  ;;  %v2505_v26 = vor.u32 %v1025_v25, %v1021_v24  ;;  %v859_v36 = vsel %vm252_vm0, %v2093_v35, 0  ;;  %v2067_v38 = vld [vmem:[%s3223_s1 + $0xc] sm:$0xf]  ;;  %v2073_v43 = vld [vmem:[%s3223_s1 + $0x10] sm:$0xf]  ;;  %p228_p4 = scmp.ge.s32.totalorder %s231_s28, 15  }
  0x1c   : >> { %743 = vrot.lane.b32.xlu0 %v2387_v7, %s2410_s12  ;;  %v409_v39 = vsel %vm252_vm0, %v2067_v38, 0  ;;  %v921_v42 = vsel %vm252_vm0, %v2099_v40, 0  ;;  %v471_v44 = vsel %vm252_vm0, %v2073_v43, 0  ;;  %v2102_v45 = vld [vmem:[%s3223_s1 + $0x34] sm:$0xf]  ;;  %vm1910_vm5 = vcmask (%p228_p4), 125952  }
  0x1d   : >> { %403 = vrot.lane.b32.xlu1 %v351_v16, %s2410_s12  ;;  %v974_v46 = vsel %vm252_vm0, %v2102_v45, 0  ;;  %v2076_v47 = vld [vmem:[%s3223_s1 + $0x14] sm:$0xf]  ;;  %v2104_v49 = vld [vmem:[%s3223_s1 + $0x38] sm:$0xf] }
  0x1e   : >> { %v524_v48 = vsel %vm252_vm0, %v2076_v47, 0  ;;  %v1031_v51 = vsel %vm252_vm0, %v2104_v49, 0  ;;  %v2078_v52 = vld [vmem:[%s3223_s1 + $0x18] sm:$0xf]  ;;  %v2106_v55 = vld [vmem:[%s3223_s1 + $0x3c] sm:$0xf] }
  0x1f   : >> { %v581_v54 = vsel %vm252_vm0, %v2078_v52, 0  ;;  %v1084_v56 = vsel %vm252_vm0, %v2106_v55, 0  ;;  %v2080_v57 = vld [vmem:[%s3223_s1 + $0x1c] sm:$0xf]  ;;  %v2626_v12 = vld [vmem:[%s3224_s2] ss:$0 sm:$0xff] (%p228_p4) }
  0x20   : >> { %518 = vrot.lane.b32.xlu0 %v2489_v14, %s2410_s12  ;;  %v634_v58 = vsel %vm252_vm0, %v2080_v57, 0  ;;  %vm1913_vm6 = vsmask.f32 (%p228_p4), 3328 }
  0x21   : >> { %853 = vrot.lane.b32.xlu1 %v801_v20, %s2410_s12  ;;  %vm3037_vm11 = vmand (%p228_p4), %vm1910_vm5, %vm1913_vm6 }
  0x24   : >> { %628 = vrot.lane.b32.xlu0 %v2500_v23, %s2410_s12 }
  0x25   : >> { %968 = vrot.lane.b32.xlu1 %v2494_v17, %s2410_s12 }
  0x29   : >> { %1078 = vrot.lane.b32.xlu1 %v2505_v26, %s2410_s12 }
  0x8a   : >> { %v247_v29 = vpop.permute.xlu0 %246 }
  0x8b   : >> { %2215 = vmatmul.mubr.msk.bf16.vlgmr.msra.gmra.mrb[0].mxu1 %vm248_vm2, %v247_v29 }
  0x8c   : >> { %2219 = vmatpush3.bf16.msra.mxu1 %v301_v28  ;;  %2220 = vmatprep.mubr.msk.bf16.mxu1 %vm2409_vm1, %v2408_v1 }
  0x8d   : >> { %2224 = vmatprep.subr.bf16.mxu1 %v2408_v1 }
  0x8e   : >> { %v744_v32 = vpop.permute.xlu0 %743 }
  0x8f   : >> { %2269 = vmatmul.mubr.msk.bf16.vlgmr.msra.gmra.mrb[0].mxu0 %vm248_vm2, %v744_v32  ;;  %v404_v37 = vpop.permute.xlu1 %403 }
  0x90   : >> { %2273 = vmatpush3.bf16.msra.mxu0 %v806_v31  ;;  %2274 = vmatprep.mubr.msk.bf16.mxu0 %vm2409_vm1, %v2408_v1 }
  0x91   : >> { %2278 = vmatprep.subr.bf16.mxu0 %v2408_v1 }
  0x92   : >> { %v519_v53 = vpop.permute.xlu0 %518 }
  0x93   : >> { %v854_v41 = vpop.permute.xlu1 %853 }
  0x96   : >> { %v629_v60 = vpop.permute.xlu0 %628 }
  0x97   : >> { %2221 = vmatmul.mubr.msk.bf16.vlgmr.msra.gmra.mrb[0].mxu1 %vm248_vm2, %v2386_v6  ;;  %v969_v50 = vpop.permute.xlu1 %968 }
  0x98   : >> { %2225 = vmatpush3.bf16.msra.mxu1 %v356_v34  ;;  %2226 = vmatprep.mubr.msk.bf16.mxu1 %vm2409_vm1, %v2408_v1 }
  0x99   : >> { %2230 = vmatprep.subr.bf16.mxu1 %v2408_v1 }
  0x9b   : >> { %2275 = vmatmul.mubr.msk.bf16.vlgmr.msra.gmra.mrb[0].mxu0 %vm248_vm2, %v801_v20  ;;  %v1079_v59 = vpop.permute.xlu1 %1078 }
  0x9c   : >> { %2279 = vmatpush3.bf16.msra.mxu0 %v859_v36  ;;  %2280 = vmatprep.mubr.msk.bf16.mxu0 %vm2409_vm1, %v2408_v1 }
  0x9d   : >> { %2284 = vmatprep.subr.bf16.mxu0 %v2408_v1 }
  0xa3   : >> { %2227 = vmatmul.mubr.msk.bf16.vlgmr.msra.gmra.mrb[0].mxu1 %vm248_vm2, %v351_v16 }
  0xa4   : >> { %2231 = vmatpush3.bf16.msra.mxu1 %v409_v39  ;;  %2232 = vmatprep.mubr.msk.bf16.mxu1 %vm2409_vm1, %v2408_v1 }
  0xa5   : >> { %2236 = vmatprep.subr.bf16.mxu1 %v2408_v1 }
  0xa7   : >> { %2281 = vmatmul.mubr.msk.bf16.vlgmr.msra.gmra.mrb[0].mxu0 %vm248_vm2, %v854_v41 }
  0xa8   : >> { %2285 = vmatpush3.bf16.msra.mxu0 %v921_v42  ;;  %2286 = vmatprep.mubr.msk.bf16.mxu0 %vm2409_vm1, %v2408_v1 }
  0xa9   : >> { %2290 = vmatprep.subr.bf16.mxu0 %v2408_v1 }
  0xaf   : >> { %2233 = vmatmul.mubr.msk.bf16.vlgmr.msra.gmra.mrb[0].mxu1 %vm248_vm2, %v404_v37 }
  0xb0   : >> { %2237 = vmatpush3.bf16.msra.mxu1 %v471_v44  ;;  %2238 = vmatprep.mubr.msk.bf16.mxu1 %vm2409_vm1, %v2408_v1 }
  0xb1   : >> { %2242 = vmatprep.subr.bf16.mxu1 %v2408_v1 }
  0xb3   : >> { %2287 = vmatmul.mubr.msk.bf16.vlgmr.msra.gmra.mrb[0].mxu0 %vm248_vm2, %v2494_v17 }
  0xb4   : >> { %2291 = vmatpush3.bf16.msra.mxu0 %v974_v46  ;;  %2292 = vmatprep.mubr.msk.bf16.mxu0 %vm2409_vm1, %v2408_v1 }
  0xb5   : >> { %2296 = vmatprep.subr.bf16.mxu0 %v2408_v1 }
  0xbb   : >> { %2239 = vmatmul.mubr.msk.bf16.vlgmr.msra.gmra.mrb[0].mxu1 %vm248_vm2, %v2489_v14 }
  0xbc   : >> { %2243 = vmatpush3.bf16.msra.mxu1 %v524_v48  ;;  %2244 = vmatprep.mubr.msk.bf16.mxu1 %vm2409_vm1, %v2408_v1 }
  0xbd   : >> { %2248 = vmatprep.subr.bf16.mxu1 %v2408_v1 }
  0xbf   : >> { %2293 = vmatmul.mubr.msk.bf16.vlgmr.msra.gmra.mrb[0].mxu0 %vm248_vm2, %v969_v50 }
  0xc0   : >> { %2297 = vmatpush3.bf16.msra.mxu0 %v1031_v51  ;;  %2298 = vmatprep.mubr.msk.bf16.mxu0 %vm2409_vm1, %v2408_v1 }
  0xc1   : >> { %2302 = vmatprep.subr.bf16.mxu0 %v2408_v1 }
  0xc7   : >> { %2245 = vmatmul.mubr.msk.bf16.vlgmr.msra.gmra.mrb[0].mxu1 %vm248_vm2, %v519_v53 }
  0xc8   : >> { %2249 = vmatpush3.bf16.msra.mxu1 %v581_v54  ;;  %2250 = vmatprep.mubr.msk.bf16.mxu1 %vm2409_vm1, %v2408_v1 }
  0xc9   : >> { %2254 = vmatprep.subr.bf16.mxu1 %v2408_v1 }
  0xcb   : >> { %2299 = vmatmul.mubr.msk.bf16.vlgmr.msra.gmra.mrb[0].mxu0 %vm248_vm2, %v2505_v26 }
  0xcc   : >> { %2303 = vmatpush3.bf16.msra.mxu0 %v1084_v56  ;;  %2304 = vmatprep.mubr.msk.bf16.mxu0 %vm2409_vm1, %v2408_v1 }
  0xd3   : >> { %2251 = vmatmul.mubr.msk.bf16.vlgmr.msra.gmra.mrb[0].mxu1 %vm248_vm2, %v2500_v23 }
  0xd4   : >> { %2255 = vmatpush3.bf16.msra.mxu1 %v634_v58  ;;  %2256 = vmatprep.mubr.msk.bf16.mxu1 %vm2409_vm1, %v2408_v1 }
  0xd7   : >> { %2305 = vmatmul.mubr.msk.bf16.vlgmr.msra.gmra.mrb[0].mxu0 %vm248_vm2, %v1079_v59 }
  0xdf   : >> { %2257 = vmatmul.mubr.msk.bf16.vlgmr.msra.gmra.mrb[0].mxu1 %vm248_vm2, %v629_v60 }
 0x1aa   : >> { %v1120_v61 = vpop.f32.mrb[0].mxu0 }
 0x1ab   : >> { %v2306_v62 = vpop.f32.mrb[1].mxu0 }
 0x1ac   : >> { %v1123_v63 = vpop.f32.mrb[2].mxu0 }
 0x1ad   : >> { %v2307_v0 = vpop.f32.mrb[3].mxu0 }
 0x1b1   : > { %230 = sbr.rel (!%p228_p4) target bundleno = 19 (0x13), region = 97 }
 0x1b2   : >> { %v670_v2 = vpop.f32.mrb[0].mxu1 }
 0x1b3   : >> { %v2308_v3 = vadd.f32 %v1120_v61, %v670_v2  ;;  %v2258_v4 = vpop.f32.mrb[1].mxu1 }
 0x1b4   : >> { %v673_v5 = vpop.f32.mrb[2].mxu1 }
 0x1b5   : >> { %1132 = vst.msk [vmem:[%s1130_s20] sm:$0xff] %vm1131_vm3, %v2308_v3  ;;  %v2309_v1 = vadd.f32 %v1123_v63, %v673_v5  ;;  %v2259_v6 = vpop.f32.mrb[3].mxu1 }
 0x1b7   : >> { %1134 = vst.msk [vmem:[%s1130_s20 + $0x8] sm:$0x7f] %vm1133_vm4, %v2309_v1 }
 0x1be   : > { %v1135_v7 = vld [vmem:[#allocation2] sm:$0xff]  ;;  %v1136_v8 = vld [vmem:[#allocation2 + $0x8] sm:$0x7f]  ;;  %v1137_v9 = vld [vmem:[#allocation2 + $0x10] sm:$0xff] }
 0x1bf   : > { %v1138_v10 = vld [vmem:[#allocation2 + $0x18] sm:$0x7f]  ;;  %v1139_v11 = vld [vmem:[#allocation2 + $0x20] sm:$0xff]  ;;  %v1140_v13 = vld [vmem:[#allocation2 + $0x28] sm:$0x7f]  ;;  %v2629_v22 = vadd.f32 %v2626_v12, %v1135_v7  ;;  %v2632_v23 = vadd.f32 %v2626_v12, %v1136_v8  ;;  %v2635_v26 = vadd.f32 %v2626_v12, %v1137_v9 }
 0x1c0   : > { %v1141_v14 = vld [vmem:[#allocation2 + $0x30] sm:$0xff]  ;;  %v1142_v15 = vld [vmem:[#allocation2 + $0x38] sm:$0x7f]  ;;  %v1143_v16 = vld [vmem:[#allocation2 + $0x40] sm:$0xff]  ;;  %v2638_v27 = vadd.f32 %v2626_v12, %v1138_v10  ;;  %v2641_v28 = vadd.f32 %v2626_v12, %v1139_v11  ;;  %v2644_v29 = vadd.f32 %v2626_v12, %v1140_v13 }
 0x1c1   : > { %v1144_v17 = vld [vmem:[#allocation2 + $0x48] sm:$0x7f]  ;;  %v1145_v18 = vld [vmem:[#allocation2 + $0x50] sm:$0xff]  ;;  %v1146_v19 = vld [vmem:[#allocation2 + $0x58] sm:$0x7f]  ;;  %v2647_v30 = vadd.f32 %v2626_v12, %v1141_v14  ;;  %v2650_v31 = vadd.f32 %v2626_v12, %v1142_v15  ;;  %v2653_v32 = vadd.f32 %v2626_v12, %v1143_v16  ;;  %v1203_v40 = vsel %vm1131_vm3, %v2629_v22, 0.0 }
 0x1c2   : > { %v1147_v20 = vld [vmem:[#allocation2 + $0x60] sm:$0xff]  ;;  %v1148_v21 = vld [vmem:[#allocation2 + $0x68] sm:$0x7f]  ;;  %v1149_v24 = vld [vmem:[#allocation2 + $0x70] sm:$0xff]  ;;  %v2656_v33 = vadd.f32 %v2626_v12, %v1144_v17  ;;  %v2659_v34 = vadd.f32 %v2626_v12, %v1145_v18  ;;  %v2662_v35 = vadd.f32 %v2626_v12, %v1146_v19  ;;  %v1205_v41 = vsel %vm1133_vm4, %v2632_v23, 0.0 }
 0x1c3   : > { %v1150_v25 = vld [vmem:[#allocation2 + $0x78] sm:$0x7f]  ;;  %v2665_v36 = vadd.f32 %v2626_v12, %v1147_v20  ;;  %v2668_v37 = vadd.f32 %v2626_v12, %v1148_v21  ;;  %v2671_v38 = vadd.f32 %v2626_v12, %v1149_v24  ;;  %v1206_v42 = vadd.f32 %v1205_v41, %v1203_v40  ;;  %v1151_v54 = vld [vmem:[#allocation2 + $0x80] sm:$0xff]  ;;  %v1152_v59 = vld [vmem:[#allocation2 + $0x88] sm:$0x7f] }
 0x1c4   : > { %v2674_v39 = vadd.f32 %v2626_v12, %v1150_v25  ;;  %v1213_v43 = vsel %vm1131_vm3, %v2635_v26, 0.0  ;;  %v1214_v44 = vsel %vm1133_vm4, %v2638_v27, 0.0  ;;  %v1222_v45 = vsel %vm1131_vm3, %v2641_v28, 0.0  ;;  %v1153_v0 = vld [vmem:[#allocation2 + $0x90] sm:$0xff]  ;;  %v1154_v2 = vld [vmem:[#allocation2 + $0x98] sm:$0x7f] }
 0x1c5   : > { %v1215_v46 = vadd.f32 %v1214_v44, %v1213_v43  ;;  %v1223_v47 = vsel %vm1133_vm4, %v2644_v29, 0.0  ;;  %v1231_v48 = vsel %vm1131_vm3, %v2647_v30, 0.0  ;;  %v1232_v49 = vsel %vm1133_vm4, %v2650_v31, 0.0  ;;  %v1155_v6 = vld [vmem:[#allocation2 + $0xa0] sm:$0xff]  ;;  %v1156_v7 = vld [vmem:[#allocation2 + $0xa8] sm:$0x7f] }
 0x1c6   : > { %v1207_v50 = vrot.slane %v1206_v42, 4  ;;  %v1224_v51 = vadd.f32 %v1223_v47, %v1222_v45  ;;  %v1233_v52 = vadd.f32 %v1232_v49, %v1231_v48  ;;  %v1240_v53 = vsel %vm1131_vm3, %v2653_v32, 0.0  ;;  %v1157_v13 = vld [vmem:[#allocation2 + $0xb0] sm:$0xff]  ;;  %v1158_v14 = vld [vmem:[#allocation2 + $0xb8] sm:$0x7f]  ;;  %v1159_v25 = vld [vmem:[#allocation2 + $0xc0] sm:$0xff] }
 0x1c7   : > { %v1216_v55 = vrot.slane %v1215_v46, 4  ;;  %v1241_v56 = vsel %vm1133_vm4, %v2656_v33, 0.0  ;;  %v1249_v57 = vsel %vm1131_vm3, %v2659_v34, 0.0  ;;  %v1250_v58 = vsel %vm1133_vm4, %v2662_v35, 0.0  ;;  %v1160_v40 = vld [vmem:[#allocation2 + $0xc8] sm:$0x7f] }
 0x1c8   : > { %v1208_v60 = vadd.f32 %v1207_v50, %v1206_v42  ;;  %v1225_v61 = vrot.slane %v1224_v51, 4  ;;  %v1234_v62 = vrot.slane %v1233_v52, 4  ;;  %v1242_v63 = vadd.f32 %v1241_v56, %v1240_v53  ;;  %v1161_v41 = vld [vmem:[#allocation2 + $0xd0] sm:$0xff] }
 0x1c9   : > { %v1217_v3 = vadd.f32 %v1216_v55, %v1215_v46  ;;  %v1251_v4 = vadd.f32 %v1250_v58, %v1249_v57  ;;  %v1258_v5 = vsel %vm1131_vm3, %v2665_v36, 0.0  ;;  %v1259_v1 = vsel %vm1133_vm4, %v2668_v37, 0.0  ;;  %v1162_v46 = vld [vmem:[#allocation2 + $0xd8] sm:$0x7f] }
 0x1ca   : > { %v2705_v8 = vadd.f32 %v2626_v12, %v1151_v54  ;;  %v1209_v9 = vrot.slane %v1208_v60, 2  ;;  %v1226_v10 = vadd.f32 %v1225_v61, %v1224_v51  ;;  %v1235_v11 = vadd.f32 %v1234_v62, %v1233_v52  ;;  %v1163_v51 = vld [vmem:[#allocation2 + $0xe0] sm:$0xff]  ;;  %v1164_v52 = vld [vmem:[#allocation2 + $0xe8] sm:$0x7f] }
 0x1cb   : > { %v2708_v15 = vadd.f32 %v2626_v12, %v1152_v59  ;;  %v1218_v16 = vrot.slane %v1217_v3, 2  ;;  %v1243_v17 = vrot.slane %v1242_v63, 4  ;;  %v1260_v18 = vadd.f32 %v1259_v1, %v1258_v5 }
 0x1cc   : > { %v2711_v19 = vadd.f32 %v2626_v12, %v1153_v0  ;;  %v2714_v20 = vadd.f32 %v2626_v12, %v1154_v2  ;;  %v1252_v21 = vrot.slane %v1251_v4, 4  ;;  %v1267_v24 = vsel %vm1131_vm3, %v2671_v38, 0.0 }
 0x1cd   : > { %v2719_v42 = vadd.f32 %v2626_v12, %v1155_v6  ;;  %v1210_v43 = vadd.f32 %v1209_v9, %v1208_v60  ;;  %v1227_v44 = vrot.slane %v1226_v10, 2  ;;  %v1268_v45 = vsel %vm1133_vm4, %v2674_v39, 0.0 }
 0x1ce   : > { %v2724_v47 = vadd.f32 %v2626_v12, %v1156_v7  ;;  %v2727_v48 = vadd.f32 %v2626_v12, %v1157_v13  ;;  %v2730_v49 = vadd.f32 %v2626_v12, %v1158_v14  ;;  %v1236_v50 = vrot.slane %v1235_v11, 2 }
 0x1cf   : > { %v1219_v53 = vadd.f32 %v1218_v16, %v1217_v3  ;;  %v1244_v54 = vadd.f32 %v1243_v17, %v1242_v63  ;;  %v1261_v55 = vrot.slane %v1260_v18, 4  ;;  %v1269_v56 = vadd.f32 %v1268_v45, %v1267_v24 }
 0x1d0   : > { %3243 = vst [vmem:[#allocation3_spill] sm:$0xff] %v2730_v49  ;;  %v2733_v57 = vadd.f32 %v2626_v12, %v1159_v25  ;;  %v2736_v58 = vadd.f32 %v2626_v12, %v1160_v40  ;;  %v2739_v59 = vadd.f32 %v2626_v12, %v1161_v41  ;;  %v1253_v60 = vadd.f32 %v1252_v21, %v1251_v4 }
 0x1d1   : > { %v2742_v61 = vadd.f32 %v2626_v12, %v1162_v46  ;;  %v1211_v62 = vrot.slane %v1210_v43, 1  ;;  %v1228_v0 = vadd.f32 %v1227_v44, %v1226_v10  ;;  %v1270_v2 = vrot.slane %v1269_v56, 4 }
 0x1d2   : > { %3244 = vst [vmem:[#allocation4_spill] sm:$0xff] %v2733_v57  ;;  %3245 = vst [vmem:[#allocation5_spill] sm:$0xff] %v2736_v58  ;;  %v2745_v63 = vadd.f32 %v2626_v12, %v1163_v51  ;;  %v2748_v3 = vadd.f32 %v2626_v12, %v1164_v52  ;;  %v1237_v5 = vadd.f32 %v1236_v50, %v1235_v11  ;;  %v1276_v1 = vsel %vm1131_vm3, %v2705_v8, 0.0 }
 0x1d3   : > { %3246 = vst [vmem:[#allocation6_spill] sm:$0xff] %v2739_v59  ;;  %3247 = vst [vmem:[#allocation7_spill] sm:$0xff] %v2742_v61  ;;  %v1220_v6 = vrot.slane %v1219_v53, 1  ;;  %v1245_v7 = vrot.slane %v1244_v54, 2  ;;  %v1262_v9 = vadd.f32 %v1261_v55, %v1260_v18  ;;  %v1277_v4 = vsel %vm1133_vm4, %v2708_v15, 0.0 }
 0x1d4   : > { %3248 = vst [vmem:[#allocation8_spill] sm:$0xff] %v2745_v63  ;;  %3249 = vst [vmem:[#allocation9_spill] sm:$0xff] %v2748_v3  ;;  %v1254_v13 = vrot.slane %v1253_v60, 2  ;;  %v1278_v14 = vadd.f32 %v1277_v4, %v1276_v1  ;;  %v1285_v10 = vsel %vm1131_vm3, %v2711_v19, 0.0  ;;  %v1286_v16 = vsel %vm1133_vm4, %v2714_v20, 0.0 }
 0x1d5   : > { %v1212_v12 = vadd.f32 %v1211_v62, %v1210_v43  ;;  %v1229_v17 = vrot.slane %v1228_v0, 1  ;;  %v1271_v11 = vadd.f32 %v1270_v2, %v1269_v56  ;;  %v1287_v21 = vadd.f32 %v1286_v16, %v1285_v10 }
 0x1d6   : > { %v1279_v24 = vrot.slane %v1278_v14, 4  ;;  %v1294_v25 = vsel %vm1131_vm3, %v2719_v42, 0.0  ;;  %v1295_v18 = vsel %vm1133_vm4, %v2724_v47, 0.0  ;;  %v1303_v40 = vsel %vm1131_vm3, %v2727_v48, 0.0 }
 0x1d7   : > { %v1246_v41 = vadd.f32 %v1245_v7, %v1244_v54  ;;  %v1263_v44 = vrot.slane %v1262_v9, 2  ;;  %v1288_v45 = vrot.slane %v1287_v21, 4  ;;  %v1296_v46 = vadd.f32 %v1295_v18, %v1294_v25 }
 0x1d8   : > { %v1280_v50 = vadd.f32 %v1279_v24, %v1278_v14  ;;  %v1304_v43 = vsel %vm1133_vm4, %v2730_v49, 0.0  ;;  %v1312_v51 = vsel %vm1131_vm3, %v2733_v57, 0.0  ;;  %v1313_v52 = vsel %vm1133_vm4, %v2736_v58, 0.0 }
 0x1d9   : > { %v1255_v55 = vadd.f32 %v1254_v13, %v1253_v60  ;;  %v1272_v56 = vrot.slane %v1271_v11, 2  ;;  %v1297_v62 = vrot.slane %v1296_v46, 4  ;;  %v1305_v2 = vadd.f32 %v1304_v43, %v1303_v40 }
 0x1da   : > { %v1289_v1 = vadd.f32 %v1288_v45, %v1287_v21  ;;  %v1314_v4 = vadd.f32 %v1313_v52, %v1312_v51  ;;  %v1321_v54 = vsel %vm1131_vm3, %v2739_v59, 0.0  ;;  %v1322_v7 = vsel %vm1133_vm4, %v2742_v61, 0.0 }
 0x1db   : > { %v1221_v14 = vadd.f32 %v1220_v6, %v1219_v53  ;;  %v1238_v10 = vrot.slane %v1237_v5, 1  ;;  %v1247_v16 = vrot.slane %v1246_v41, 1  ;;  %v1306_v24 = vrot.slane %v1305_v2, 4 }
 0x1dc   : > { %v1264_v25 = vadd.f32 %v1263_v44, %v1262_v9  ;;  %v1281_v18 = vrot.slane %v1280_v50, 2  ;;  %v1323_v57 = vadd.f32 %v1322_v7, %v1321_v54  ;;  %v1330_v60 = vsel %vm1131_vm3, %v2745_v63, 0.0 }
 0x1dd   : > { %v1230_v13 = vadd.f32 %v1229_v17, %v1228_v0  ;;  %v1298_v40 = vadd.f32 %v1297_v62, %v1296_v46  ;;  %v1315_v21 = vrot.slane %v1314_v4, 4  ;;  %v1331_v45 = vsel %vm1133_vm4, %v2748_v3, 0.0 }
 0x1de   : > { %v1256_v43 = vrot.slane %v1255_v55, 1  ;;  %v1273_v51 = vadd.f32 %v1272_v56, %v1271_v11  ;;  %v1290_v52 = vrot.slane %v1289_v1, 2  ;;  %v1332_v61 = vadd.f32 %v1331_v45, %v1330_v60 }
 0x1df   : > { %v1239_v53 = vadd.f32 %v1238_v10, %v1237_v5  ;;  %v1307_v6 = vadd.f32 %v1306_v24, %v1305_v2  ;;  %v1324_v59 = vrot.slane %v1323_v57, 4  ;;  %v1339_v9 = vsel %vm1131_vm3, %v1212_v12, 0.0 }
 0x1e0   : > { %v1248_v44 = vadd.f32 %v1247_v16, %v1246_v41  ;;  %v1265_v54 = vrot.slane %v1264_v25, 1  ;;  %v1282_v7 = vadd.f32 %v1281_v18, %v1280_v50  ;;  %v1299_v58 = vrot.slane %v1298_v40, 2 }
 0x1e1   : > { %v1316_v63 = vadd.f32 %v1315_v21, %v1314_v4  ;;  %v1333_v0 = vrot.slane %v1332_v61, 4  ;;  %v1340_v17 = vsel %vm1131_vm3, %v1221_v14, 0.0  ;;  %v1257_v46 = vadd.f32 %v1256_v43, %v1255_v55 }
 0x1e2   : > { %v1274_v62 = vrot.slane %v1273_v51, 1  ;;  %v1291_v3 = vadd.f32 %v1290_v52, %v1289_v1  ;;  %v1341_v49 = vadd.f32 %v1340_v17, %v1339_v9  ;;  %v1308_v11 = vrot.slane %v1307_v6, 2 }
 0x1e3   : > { %v1325_v56 = vadd.f32 %v1324_v59, %v1323_v57  ;;  %v1342_v5 = vsel %vm1131_vm3, %v1230_v13, 0.0  ;;  %v1344_v2 = vsel %vm1131_vm3, %v1239_v53, 0.0  ;;  %v1266_v10 = vadd.f32 %v1265_v54, %v1264_v25 }
 0x1e4   : > { %v1283_v12 = vrot.slane %v1282_v7, 1  ;;  %v1343_v41 = vadd.f32 %v1342_v5, %v1341_v49  ;;  %v1300_v16 = vadd.f32 %v1299_v58, %v1298_v40  ;;  %v1317_v50 = vrot.slane %v1316_v63, 2 }
 0x1e5   : > { %v1334_v24 = vadd.f32 %v1333_v0, %v1332_v61  ;;  %v1346_v4 = vsel %vm1131_vm3, %v1248_v44, 0.0  ;;  %v1275_v18 = vadd.f32 %v1274_v62, %v1273_v51  ;;  %v1292_v55 = vrot.slane %v1291_v3, 1 }
 0x1e6   : > { %v1345_v14 = vadd.f32 %v1344_v2, %v1343_v41  ;;  %v1309_v60 = vadd.f32 %v1308_v11, %v1307_v6  ;;  %v1326_v1 = vrot.slane %v1325_v56, 2  ;;  %v1348_v21 = vsel %vm1131_vm3, %v1257_v46, 0.0 }
 0x1e7   : > { %v1284_v57 = vadd.f32 %v1283_v12, %v1282_v7  ;;  %v1301_v13 = vrot.slane %v1300_v16, 1  ;;  %v1318_v45 = vadd.f32 %v1317_v50, %v1316_v63  ;;  %v1335_v43 = vrot.slane %v1334_v24, 2 }
 0x1e8   : > { %v1347_v59 = vadd.f32 %v1346_v4, %v1345_v14  ;;  %v1350_v25 = vsel %vm1131_vm3, %v1266_v10, 0.0  ;;  %v1293_v58 = vadd.f32 %v1292_v55, %v1291_v3  ;;  %v1310_v40 = vrot.slane %v1309_v60, 1 }
 0x1e9   : > { %v1327_v61 = vadd.f32 %v1326_v1, %v1325_v56  ;;  %v1352_v52 = vsel %vm1131_vm3, %v1275_v18, 0.0  ;;  %v1302_v53 = vadd.f32 %v1301_v13, %v1300_v16  ;;  %v1319_v9 = vrot.slane %v1318_v45, 1 }
 0x1ea   : > { %v1349_v49 = vadd.f32 %v1348_v21, %v1347_v59  ;;  %v1336_v6 = vadd.f32 %v1335_v43, %v1334_v24  ;;  %v1354_v44 = vsel %vm1131_vm3, %v1284_v57, 0.0  ;;  %v1311_v7 = vadd.f32 %v1310_v40, %v1309_v60 }
 0x1eb   : > { %v1328_v0 = vrot.slane %v1327_v61, 1  ;;  %v1356_v63 = vsel %vm1131_vm3, %v1293_v58, 0.0  ;;  %v1320_v46 = vadd.f32 %v1319_v9, %v1318_v45  ;;  %v1358_v3 = vsel %vm1131_vm3, %v1302_v53, 0.0 }
 0x1ec   : > { %v1351_v51 = vadd.f32 %v1350_v25, %v1349_v49  ;;  %v1337_v62 = vrot.slane %v1336_v6, 1  ;;  %v1360_v5 = vsel %vm1131_vm3, %v1311_v7, 0.0 }
 0x1ed   : > { %v1329_v56 = vadd.f32 %v1328_v0, %v1327_v61  ;;  %v1362_v12 = vsel %vm1131_vm3, %v1320_v46, 0.0 }
 0x1ee   : > { %v1353_v54 = vadd.f32 %v1352_v52, %v1351_v51  ;;  %v1338_v10 = vadd.f32 %v1337_v62, %v1336_v6 }
 0x1ef   : > { %v1364_v16 = vsel %vm1131_vm3, %v1329_v56, 0.0 }
 0x1f0   : > { %v1355_v17 = vadd.f32 %v1354_v44, %v1353_v54  ;;  %v1366_v24 = vsel %vm1131_vm3, %v1338_v10, 0.0 }
 0x1f2   : > { %v1357_v11 = vadd.f32 %v1356_v63, %v1355_v17 }
 0x1f4   : > { %v1359_v2 = vadd.f32 %v1358_v3, %v1357_v11 }
 0x1f6   : > { %v1361_v41 = vadd.f32 %v1360_v5, %v1359_v2 }
 0x1f8   : > { %v1363_v50 = vadd.f32 %v1362_v12, %v1361_v41 }
 0x1fa   : > { %v1365_v4 = vadd.f32 %v1364_v16, %v1363_v50 }
 0x1fc   : > { %v1367_v18 = vadd.f32 %v1366_v24, %v1365_v4 }
 0x1fe   : > { %v1368_v14 = vmul.f32 0.0044444446, %v1367_v18 }
 0x200   : > { %v2794_v55 = vsub.f32 %v2629_v22, %v1368_v14  ;;  %v2797_v60 = vsub.f32 %v2632_v23, %v1368_v14  ;;  %v2800_v1 = vsub.f32 %v2635_v26, %v1368_v14  ;;  %v2803_v21 = vsub.f32 %v2638_v27, %v1368_v14 }
 0x201   : > { %v2806_v57 = vsub.f32 %v2641_v28, %v1368_v14  ;;  %v2809_v59 = vsub.f32 %v2644_v29, %v1368_v14  ;;  %v2812_v13 = vsub.f32 %v2647_v30, %v1368_v14  ;;  %v2815_v22 = vsub.f32 %v2650_v31, %v1368_v14 }
 0x202   : > { %v2818_v23 = vsub.f32 %v2653_v32, %v1368_v14  ;;  %v2821_v26 = vsub.f32 %v2656_v33, %v1368_v14  ;;  %v2824_v27 = vsub.f32 %v2659_v34, %v1368_v14  ;;  %v2827_v28 = vsub.f32 %v2662_v35, %v1368_v14 }
 0x203   : > { %v2830_v29 = vsub.f32 %v2665_v36, %v1368_v14  ;;  %v2833_v30 = vsub.f32 %v2668_v37, %v1368_v14  ;;  %v2836_v31 = vsub.f32 %v2671_v38, %v1368_v14  ;;  %v2839_v32 = vsub.f32 %v2674_v39, %v1368_v14 }
 0x204   : > { %v2842_v33 = vsub.f32 %v2705_v8, %v1368_v14  ;;  %v2845_v34 = vsub.f32 %v2708_v15, %v1368_v14  ;;  %v2848_v35 = vsub.f32 %v2711_v19, %v1368_v14  ;;  %v2851_v36 = vsub.f32 %v2714_v20, %v1368_v14  ;;  %v3251_v8 = vld [vmem:[#allocation3_spill] sm:$0xff]  ;;  %v3253_v15 = vld [vmem:[#allocation4_spill] sm:$0xff]  ;;  %v3255_v19 = vld [vmem:[#allocation5_spill] sm:$0xff] }
 0x205   : > { %v2854_v37 = vsub.f32 %v2719_v42, %v1368_v14  ;;  %v2857_v38 = vsub.f32 %v2724_v47, %v1368_v14  ;;  %v2860_v39 = vsub.f32 %v2727_v48, %v1368_v14  ;;  %v2863_v45 = vsub.f32 %v3251_v8, %v1368_v14  ;;  %v3257_v20 = vld [vmem:[#allocation6_spill] sm:$0xff]  ;;  %v3259_v42 = vld [vmem:[#allocation7_spill] sm:$0xff]  ;;  %v3261_v47 = vld [vmem:[#allocation8_spill] sm:$0xff] }
 0x206   : > { %v2866_v43 = vsub.f32 %v3253_v15, %v1368_v14  ;;  %v2869_v25 = vsub.f32 %v3255_v19, %v1368_v14  ;;  %v2872_v49 = vsub.f32 %v3257_v20, %v1368_v14  ;;  %v2875_v58 = vsub.f32 %v3259_v42, %v1368_v14  ;;  %v3263_v48 = vld [vmem:[#allocation9_spill] sm:$0xff] }
 0x207   : > { %3250 = vst [vmem:[#allocation10_spill] sm:$0xff] %v2860_v39  ;;  %3252 = vst [vmem:[#allocation3_spill] sm:$0xff] %v2863_v45  ;;  %v2878_v40 = vsub.f32 %v3261_v47, %v1368_v14  ;;  %v2881_v61 = vsub.f32 %v3263_v48, %v1368_v14  ;;  %v1399_v52 = vmul.f32 %v2794_v55, %v2794_v55 }
 0x208   : > { %3254 = vst [vmem:[#allocation4_spill] sm:$0xff] %v2866_v43  ;;  %3256 = vst [vmem:[#allocation5_spill] sm:$0xff] %v2869_v25  ;;  %v1400_v51 = vmul.f32 %v2797_v60, %v2797_v60  ;;  %v1401_v53 = vmul.f32 %v2800_v1, %v2800_v1  ;;  %v1402_v9 = vmul.f32 %v2803_v21, %v2803_v21 }
 0x209   : > { %3258 = vst [vmem:[#allocation6_spill] sm:$0xff] %v2872_v49  ;;  %3260 = vst [vmem:[#allocation7_spill] sm:$0xff] %v2875_v58  ;;  %v1403_v6 = vmul.f32 %v2806_v57, %v2806_v57  ;;  %v1404_v44 = vmul.f32 %v2809_v59, %v2809_v59  ;;  %v1405_v54 = vmul.f32 %v2812_v13, %v2812_v13  ;;  %v1429_v2 = vsel %vm1131_vm3, %v1399_v52, 0.0 }
 0x20a   : > { %3262 = vst [vmem:[#allocation8_spill] sm:$0xff] %v2878_v40  ;;  %3264 = vst [vmem:[#allocation9_spill] sm:$0xff] %v2881_v61  ;;  %v1406_v7 = vmul.f32 %v2815_v22, %v2815_v22  ;;  %v1407_v0 = vmul.f32 %v2818_v23, %v2818_v23  ;;  %v1408_v63 = vmul.f32 %v2821_v26, %v2821_v26  ;;  %v1430_v10 = vsel %vm1133_vm4, %v1400_v51, 0.0 }
 0x20b   : > { %v1409_v17 = vmul.f32 %v2824_v27, %v2824_v27  ;;  %v1410_v46 = vmul.f32 %v2827_v28, %v2827_v28  ;;  %v1411_v62 = vmul.f32 %v2830_v29, %v2830_v29  ;;  %v1412_v3 = vmul.f32 %v2833_v30, %v2833_v30 }
 0x20c   : > { %v1413_v11 = vmul.f32 %v2836_v31, %v2836_v31  ;;  %v1414_v56 = vmul.f32 %v2839_v32, %v2839_v32  ;;  %v2917_v5 = vmul.f32 %v2842_v33, %v2842_v33  ;;  %v1438_v12 = vsel %vm1131_vm3, %v1401_v53, 0.0 }
 0x20d   : > { %v1439_v41 = vsel %vm1133_vm4, %v1402_v9, 0.0  ;;  %v1431_v16 = vadd.f32 %v1430_v10, %v1429_v2  ;;  %v1447_v24 = vsel %vm1131_vm3, %v1403_v6, 0.0  ;;  %v1448_v4 = vsel %vm1133_vm4, %v1404_v44, 0.0 }
 0x20e   : > { %v1440_v50 = vadd.f32 %v1439_v41, %v1438_v12  ;;  %v1449_v18 = vadd.f32 %v1448_v4, %v1447_v24  ;;  %v1456_v14 = vsel %vm1131_vm3, %v1405_v54, 0.0  ;;  %v1457_v8 = vsel %vm1133_vm4, %v1406_v7, 0.0 }
 0x20f   : > { %v1465_v15 = vsel %vm1131_vm3, %v1407_v0, 0.0  ;;  %v1432_v19 = vrot.slane %v1431_v16, 4  ;;  %v1458_v42 = vadd.f32 %v1457_v8, %v1456_v14  ;;  %v1466_v47 = vsel %vm1133_vm4, %v1408_v63, 0.0 }
 0x210   : > { %v1441_v20 = vrot.slane %v1440_v50, 4  ;;  %v1450_v48 = vrot.slane %v1449_v18, 4  ;;  %v1467_v52 = vadd.f32 %v1466_v47, %v1465_v15  ;;  %v1474_v51 = vsel %vm1131_vm3, %v1409_v17, 0.0 }
 0x211   : > { %v1475_v53 = vsel %vm1133_vm4, %v1410_v46, 0.0  ;;  %v1433_v9 = vadd.f32 %v1432_v19, %v1431_v16  ;;  %v1459_v44 = vrot.slane %v1458_v42, 4  ;;  %v1483_v7 = vsel %vm1131_vm3, %v1411_v62, 0.0 }
 0x212   : > { %v1442_v6 = vadd.f32 %v1441_v20, %v1440_v50  ;;  %v1476_v2 = vadd.f32 %v1475_v53, %v1474_v51  ;;  %v1451_v54 = vadd.f32 %v1450_v48, %v1449_v18  ;;  %v1468_v10 = vrot.slane %v1467_v52, 4 }
 0x213   : > { %v1484_v0 = vsel %vm1133_vm4, %v1412_v3, 0.0  ;;  %v1416_v12 = vmul.f32 %v2845_v34, %v2845_v34  ;;  %v1434_v63 = vrot.slane %v1433_v9, 2  ;;  %v1460_v24 = vadd.f32 %v1459_v44, %v1458_v42 }
 0x214   : > { %v1443_v41 = vrot.slane %v1442_v6, 2  ;;  %v1417_v17 = vmul.f32 %v2848_v35, %v2848_v35  ;;  %v1452_v46 = vrot.slane %v1451_v54, 2  ;;  %v1477_v16 = vrot.slane %v1476_v2, 4 }
 0x215   : > { %v1485_v50 = vadd.f32 %v1484_v0, %v1483_v7  ;;  %v1418_v4 = vmul.f32 %v2851_v36, %v2851_v36  ;;  %v1435_v18 = vadd.f32 %v1434_v63, %v1433_v9  ;;  %v1469_v14 = vadd.f32 %v1468_v10, %v1467_v52 }
 0x216   : > { %v1492_v62 = vsel %vm1131_vm3, %v1413_v11, 0.0  ;;  %v1419_v3 = vmul.f32 %v2854_v37, %v2854_v37  ;;  %v1420_v8 = vmul.f32 %v2857_v38, %v2857_v38  ;;  %v1421_v15 = vmul.f32 %v2860_v39, %v2860_v39 }
 0x217   : > { %v1493_v19 = vsel %vm1133_vm4, %v1414_v56, 0.0  ;;  %v1422_v20 = vmul.f32 %v2863_v45, %v2863_v45  ;;  %v1423_v42 = vmul.f32 %v2866_v43, %v2866_v43  ;;  %v1444_v47 = vadd.f32 %v1443_v41, %v1442_v6 }
 0x218   : > { %v1461_v48 = vrot.slane %v1460_v24, 2  ;;  %v1453_v11 = vadd.f32 %v1452_v46, %v1451_v54  ;;  %v1478_v52 = vadd.f32 %v1477_v16, %v1476_v2  ;;  %v1486_v51 = vrot.slane %v1485_v50, 4 }
 0x219   : > { %v1494_v53 = vadd.f32 %v1493_v19, %v1492_v62  ;;  %v1424_v9 = vmul.f32 %v2869_v25, %v2869_v25  ;;  %v1425_v44 = vmul.f32 %v2872_v49, %v2872_v49  ;;  %v1436_v10 = vrot.slane %v1435_v18, 1 }
 0x21a   : > { %v1470_v56 = vrot.slane %v1469_v14, 2  ;;  %v1426_v7 = vmul.f32 %v2875_v58, %v2875_v58  ;;  %v1427_v0 = vmul.f32 %v2878_v40, %v2878_v40  ;;  %v1428_v6 = vmul.f32 %v2881_v61, %v2881_v61 }
 0x21b   : > { %v1495_v2 = vrot.slane %v1494_v53, 4  ;;  %v1445_v54 = vrot.slane %v1444_v47, 1  ;;  %v1462_v63 = vadd.f32 %v1461_v48, %v1460_v24  ;;  %v1501_v41 = vsel %vm1131_vm3, %v2917_v5, 0.0 }
 0x21c   : > { %v1502_v46 = vsel %vm1133_vm4, %v1416_v12, 0.0  ;;  %v1454_v16 = vrot.slane %v1453_v11, 1  ;;  %v1479_v62 = vrot.slane %v1478_v52, 2  ;;  %v1487_v19 = vadd.f32 %v1486_v51, %v1485_v50 }
 0x21d   : > { %v1503_v49 = vadd.f32 %v1502_v46, %v1501_v41  ;;  %v1437_v25 = vadd.f32 %v1436_v10, %v1435_v18  ;;  %v1471_v58 = vadd.f32 %v1470_v56, %v1469_v14  ;;  %v1510_v43 = vsel %vm1131_vm3, %v1417_v17, 0.0 }
 0x21e   : > { %v1511_v40 = vsel %vm1133_vm4, %v1418_v4, 0.0  ;;  %v1496_v45 = vadd.f32 %v1495_v2, %v1494_v53  ;;  %v1519_v24 = vsel %vm1131_vm3, %v1419_v3, 0.0  ;;  %v1520_v48 = vsel %vm1133_vm4, %v1420_v8, 0.0 }
 0x21f   : > { %v1504_v61 = vrot.slane %v1503_v49, 4  ;;  %v1512_v39 = vadd.f32 %v1511_v40, %v1510_v43  ;;  %v1528_v5 = vsel %vm1131_vm3, %v1421_v15, 0.0  ;;  %v1529_v12 = vsel %vm1133_vm4, %v1422_v20, 0.0 }
 0x220   : > { %v1537_v50 = vsel %vm1131_vm3, %v1423_v42, 0.0  ;;  %v1446_v51 = vadd.f32 %v1445_v54, %v1444_v47  ;;  %v1488_v18 = vrot.slane %v1487_v19, 2  ;;  %v1480_v17 = vadd.f32 %v1479_v62, %v1478_v52 }
 0x221   : > { %v1505_v14 = vadd.f32 %v1504_v61, %v1503_v49  ;;  %v1513_v10 = vrot.slane %v1512_v39, 4  ;;  %v1521_v56 = vadd.f32 %v1520_v48, %v1519_v24  ;;  %v1530_v4 = vadd.f32 %v1529_v12, %v1528_v5 }
 0x222   : > { %v1538_v53 = vsel %vm1133_vm4, %v1424_v9, 0.0  ;;  %v1497_v43 = vrot.slane %v1496_v45, 2  ;;  %v1546_v8 = vsel %vm1131_vm3, %v1425_v44, 0.0  ;;  %v1547_v20 = vsel %vm1133_vm4, %v1426_v7, 0.0 }
 0x223   : > { %v1514_v40 = vadd.f32 %v1513_v10, %v1512_v39  ;;  %v1539_v3 = vadd.f32 %v1538_v53, %v1537_v50  ;;  %v1522_v2 = vrot.slane %v1521_v56, 4  ;;  %v1531_v15 = vrot.slane %v1530_v4, 4 }
 0x224   : > { %v1555_v42 = vsel %vm1131_vm3, %v1427_v0, 0.0  ;;  %v1463_v47 = vrot.slane %v1462_v63, 1  ;;  %v1472_v54 = vrot.slane %v1471_v58, 1  ;;  %v1489_v49 = vadd.f32 %v1488_v18, %v1487_v19 }
 0x225   : > { %v1506_v61 = vrot.slane %v1505_v14, 2  ;;  %v1523_v52 = vadd.f32 %v1522_v2, %v1521_v56  ;;  %v1540_v41 = vrot.slane %v1539_v3, 4  ;;  %v1548_v46 = vadd.f32 %v1547_v20, %v1546_v8 }
 0x226   : > { %v1556_v9 = vsel %vm1133_vm4, %v1428_v6, 0.0  ;;  %v1455_v62 = vadd.f32 %v1454_v16, %v1453_v11  ;;  %v1481_v39 = vrot.slane %v1480_v17, 1  ;;  %v1498_v24 = vadd.f32 %v1497_v43, %v1496_v45 }
 0x227   : > { %v1557_v48 = vadd.f32 %v1556_v9, %v1555_v42  ;;  %v1515_v44 = vrot.slane %v1514_v40, 2  ;;  %v1532_v5 = vadd.f32 %v1531_v15, %v1530_v4  ;;  %v1549_v12 = vrot.slane %v1548_v46, 4 }
 0x228   : > { %v1564_v7 = vsel %vm1131_vm3, %v1437_v25, 0.0  ;;  %v1464_v50 = vadd.f32 %v1463_v47, %v1462_v63  ;;  %v1473_v0 = vadd.f32 %v1472_v54, %v1471_v58  ;;  %v1490_v10 = vrot.slane %v1489_v49, 1 }
 0x229   : > { %v1507_v53 = vadd.f32 %v1506_v61, %v1505_v14  ;;  %v1524_v19 = vrot.slane %v1523_v52, 2  ;;  %v1541_v18 = vadd.f32 %v1540_v41, %v1539_v3  ;;  %v1558_v56 = vrot.slane %v1557_v48, 4 }
 0x22a   : > { %v1565_v8 = vsel %vm1131_vm3, %v1446_v51, 0.0  ;;  %v1482_v2 = vadd.f32 %v1481_v39, %v1480_v17  ;;  %v1499_v6 = vrot.slane %v1498_v24, 1  ;;  %v1516_v16 = vadd.f32 %v1515_v44, %v1514_v40 }
 0x22b   : > { %v1566_v11 = vadd.f32 %v1565_v8, %v1564_v7  ;;  %v1533_v45 = vrot.slane %v1532_v5, 2  ;;  %v1550_v43 = vadd.f32 %v1549_v12, %v1548_v46  ;;  %v1567_v4 = vsel %vm1131_vm3, %v1455_v62, 0.0 }
 0x22c   : > { %v1491_v15 = vadd.f32 %v1490_v10, %v1489_v49  ;;  %v1508_v20 = vrot.slane %v1507_v53, 1  ;;  %v1569_v58 = vsel %vm1131_vm3, %v1464_v50, 0.0  ;;  %v1525_v63 = vadd.f32 %v1524_v19, %v1523_v52 }
 0x22d   : > { %v1568_v25 = vadd.f32 %v1567_v4, %v1566_v11  ;;  %v1542_v14 = vrot.slane %v1541_v18, 2  ;;  %v1559_v42 = vadd.f32 %v1558_v56, %v1557_v48  ;;  %v1571_v3 = vsel %vm1131_vm3, %v1473_v0, 0.0 }
 0x22e   : > { %v1500_v47 = vadd.f32 %v1499_v6, %v1498_v24  ;;  %v1517_v17 = vrot.slane %v1516_v16, 1  ;;  %v1534_v54 = vadd.f32 %v1533_v45, %v1532_v5  ;;  %v1551_v61 = vrot.slane %v1550_v43, 2 }
 0x22f   : > { %v1570_v51 = vadd.f32 %v1569_v58, %v1568_v25  ;;  %v1573_v40 = vsel %vm1131_vm3, %v1482_v2, 0.0  ;;  %v1509_v41 = vadd.f32 %v1508_v20, %v1507_v53  ;;  %v1526_v9 = vrot.slane %v1525_v63, 1 }
 0x230   : > { %v1543_v49 = vadd.f32 %v1542_v14, %v1541_v18  ;;  %v1560_v62 = vrot.slane %v1559_v42, 2  ;;  %v1575_v39 = vsel %vm1131_vm3, %v1491_v15, 0.0  ;;  %v1518_v52 = vadd.f32 %v1517_v17, %v1516_v16 }
 0x231   : > { %v1572_v46 = vadd.f32 %v1571_v3, %v1570_v51  ;;  %v1535_v12 = vrot.slane %v1534_v54, 1  ;;  %v1552_v48 = vadd.f32 %v1551_v61, %v1550_v43  ;;  %v1577_v7 = vsel %vm1131_vm3, %v1500_v47, 0.0 }
 0x232   : > { %v1527_v50 = vadd.f32 %v1526_v9, %v1525_v63  ;;  %v1544_v0 = vrot.slane %v1543_v49, 1  ;;  %v1561_v5 = vadd.f32 %v1560_v62, %v1559_v42  ;;  %v1579_v10 = vsel %vm1131_vm3, %v1509_v41, 0.0  ;;  %v3009_v9 = vld [vmem:[%s3226_s4] ss:$0 sm:$0xff] }
 0x233   : > { %v1574_v44 = vadd.f32 %v1573_v40, %v1572_v46  ;;  %v1536_v53 = vadd.f32 %v1535_v12, %v1534_v54  ;;  %v1553_v56 = vrot.slane %v1552_v48, 1  ;;  %v1581_v18 = vsel %vm1131_vm3, %v1518_v52, 0.0  ;;  %v2996_v54 = vld [vmem:[%s3225_s3] ss:$0 sm:$0xff] }
 0x234   : > { %v1545_v2 = vadd.f32 %v1544_v0, %v1543_v49  ;;  %v1562_v6 = vrot.slane %v1561_v5, 1  ;;  %v1583_v11 = vsel %vm1131_vm3, %v1527_v50, 0.0 }
 0x235   : > { %v1576_v24 = vadd.f32 %v1575_v39, %v1574_v44  ;;  %v1554_v45 = vadd.f32 %v1553_v56, %v1552_v48  ;;  %v1585_v43 = vsel %vm1131_vm3, %v1536_v53, 0.0 }
 0x236   : > { %v1563_v15 = vadd.f32 %v1562_v6, %v1561_v5  ;;  %v1587_v20 = vsel %vm1131_vm3, %v1545_v2, 0.0  ;;  %v1915_v6 = vld [vmem:[%s2457_s27 + $0x4] sm:$0xf] }
 0x237   : > { %v1578_v19 = vadd.f32 %v1577_v7, %v1576_v24  ;;  %v1589_v58 = vsel %vm1131_vm3, %v1554_v45, 0.0 }
 0x238   : > { %v1591_v14 = vsel %vm1131_vm3, %v1563_v15, 0.0  ;;  %v1919_v15 = vld [vmem:[%s2457_s27 + $0xc] sm:$0xf] }
 0x239   : > { %v1580_v8 = vadd.f32 %v1579_v10, %v1578_v19 }
 0x23b   : > { %v1582_v16 = vadd.f32 %v1581_v18, %v1580_v8 }
 0x23d   : > { %v1584_v4 = vadd.f32 %v1583_v11, %v1582_v16 }
 0x23f   : > { %v1586_v25 = vadd.f32 %v1585_v43, %v1584_v4 }
 0x241   : > { %v1588_v63 = vadd.f32 %v1587_v20, %v1586_v25 }
 0x243   : > { %v1590_v42 = vadd.f32 %v1589_v58, %v1588_v63 }
 0x245   : > { %v1592_v3 = vadd.f32 %v1591_v14, %v1590_v42 }
 0x247   : > { %v1593_v47 = vmul.f32 0.0044444446, %v1592_v3 }
 0x249   : > { %v1594_v51 = vadd.f32 1e-05, %v1593_v47 }
 0x24b   : > { %2390 = vrsqrt.f32 %v1594_v51 }
 0x255   : > { %v2991_v17 = vpop.eup %2390 }
 0x256   : > { %v1596_v61 = vmul.f32 %v2991_v17, %v2794_v55  ;;  %v1597_v40 = vmul.f32 %v2991_v17, %v2797_v60  ;;  %v1598_v41 = vmul.f32 %v2991_v17, %v2800_v1  ;;  %v1599_v46 = vmul.f32 %v2991_v17, %v2803_v21 }
 0x257   : > { %v1600_v49 = vmul.f32 %v2991_v17, %v2806_v57  ;;  %v1601_v55 = vmul.f32 %v2991_v17, %v2809_v59  ;;  %v1602_v60 = vmul.f32 %v2991_v17, %v2812_v13  ;;  %v1603_v1 = vmul.f32 %v2991_v17, %v2815_v22 }
 0x258   : > { %v1633_v62 = vmul.f32 %v2996_v54, %v1596_v61  ;;  %v1634_v21 = vmul.f32 %v2996_v54, %v1597_v40  ;;  %v1635_v39 = vmul.f32 %v2996_v54, %v1598_v41  ;;  %v1636_v44 = vmul.f32 %v2996_v54, %v1599_v46  ;;  %v1923_v40 = vld [vmem:[%s2457_s27 + $0x14] sm:$0xf] }
 0x259   : > { %v1637_v52 = vmul.f32 %v2996_v54, %v1600_v49  ;;  %v1638_v57 = vmul.f32 %v2996_v54, %v1601_v55  ;;  %v1639_v59 = vmul.f32 %v2996_v54, %v1602_v60  ;;  %v1640_v12 = vmul.f32 %v2996_v54, %v1603_v1 }
 0x25a   : > { %v1670_v13 = vadd.f32 %v3009_v9, %v1633_v62  ;;  %v1671_v22 = vadd.f32 %v3009_v9, %v1634_v21  ;;  %v1672_v48 = vadd.f32 %v3009_v9, %v1635_v39  ;;  %v1673_v7 = vadd.f32 %v3009_v9, %v1636_v44  ;;  %v1927_v62 = vld [vmem:[%s2457_s27 + $0x1c] sm:$0xf] }
 0x25b   : > { %v1674_v24 = vadd.f32 %v3009_v9, %v1637_v52  ;;  %v1675_v50 = vadd.f32 %v3009_v9, %v1638_v57  ;;  %v1676_v0 = vadd.f32 %v3009_v9, %v1639_v59  ;;  %v1677_v5 = vadd.f32 %v3009_v9, %v1640_v12 }
 0x25c   : > { %vm1700_vm7 = vcmp.ge.f32.partialorder %v1670_v13, 0.0  ;;  %v1730_v10 = vmul.f32 0.2, %v1670_v13  ;;  %vm1701_vm8 = vcmp.ge.f32.partialorder %v1671_v22, 0.0  ;;  %v1731_v19 = vmul.f32 0.2, %v1671_v22 }
 0x25d   : > { %vm1702_vm9 = vcmp.ge.f32.partialorder %v1672_v48, 0.0  ;;  %v1732_v53 = vmul.f32 0.2, %v1672_v48  ;;  %vm1703_vm10 = vcmp.ge.f32.partialorder %v1673_v7, 0.0  ;;  %v1733_v56 = vmul.f32 0.2, %v1673_v7 }
 0x25e   : > { %v1760_v18 = vsel %vm1700_vm7, %v1670_v13, %v1730_v10  ;;  %v1761_v8 = vsel %vm1701_vm8, %v1671_v22, %v1731_v19  ;;  %vm1704_vm12 = vcmp.ge.f32.partialorder %v1674_v24, 0.0  ;;  %v1734_v11 = vmul.f32 0.2, %v1674_v24 }
 0x25f   : > { %v2150_v16 = vpack.c.bf16 %v1760_v18, %v1760_v18  ;;  %v2151_v45 = vpack.c.bf16 %v1761_v8, %v1761_v8  ;;  %v1762_v43 = vsel %vm1702_vm9, %v1672_v48, %v1732_v53  ;;  %v1763_v4 = vsel %vm1703_vm10, %v1673_v7, %v1733_v56  ;;  %v1931_v53 = vld [vmem:[%s2457_s27 + $0x24] sm:$0xf] }
 0x260   : > { %v2152_v20 = vpack.c.bf16 %v1762_v43, %v1762_v43  ;;  %v2153_v25 = vpack.c.bf16 %v1763_v4, %v1763_v4  ;;  %v1764_v58 = vsel %vm1704_vm12, %v1674_v24, %v1734_v11  ;;  %vm1705_vm13 = vcmp.ge.f32.partialorder %v1675_v50, 0.0 }
 0x261   : > { %1911 = vst.msk [vmem:[%s2457_s27] sm:$0xf] %vm1910_vm5, %v2150_v16  ;;  %v1916_v63 = vsel %vm3037_vm11, %v2151_v45, %v1915_v6  ;;  %v2154_v14 = vpack.c.bf16 %v1764_v58, %v1764_v58  ;;  %v1735_v42 = vmul.f32 0.2, %v1675_v50  ;;  %vm1706_vm14 = vcmp.ge.f32.partialorder %v1676_v0, 0.0 }
 0x262   : > { %1917 = vst [vmem:[%s2457_s27 + $0x4] sm:$0xf] %v1916_v63  ;;  %1918 = vst.msk [vmem:[%s2457_s27 + $0x8] sm:$0xf] %vm1910_vm5, %v2152_v20  ;;  %v1920_v3 = vsel %vm3037_vm11, %v2153_v25, %v1919_v15  ;;  %v1736_v47 = vmul.f32 0.2, %v1676_v0  ;;  %v1604_v41 = vmul.f32 %v2991_v17, %v2818_v23  ;;  %v1605_v46 = vmul.f32 %v2991_v17, %v2821_v26 }
 0x263   : > { %vm1707_vm15 = vcmp.ge.f32.partialorder %v1677_v5, 0.0  ;;  %v1737_v51 = vmul.f32 0.2, %v1677_v5  ;;  %1921 = vst [vmem:[%s2457_s27 + $0xc] sm:$0xf] %v1920_v3  ;;  %v1765_v61 = vsel %vm1705_vm13, %v1675_v50, %v1735_v42  ;;  %v1606_v49 = vmul.f32 %v2991_v17, %v2824_v27 }
 0x264   : > { %1922 = vst.msk [vmem:[%s2457_s27 + $0x10] sm:$0xf] %vm1910_vm5, %v2154_v14  ;;  %v2155_v55 = vpack.c.bf16 %v1765_v61, %v1765_v61  ;;  %v1766_v60 = vsel %vm1706_vm14, %v1676_v0, %v1736_v47  ;;  %v1607_v21 = vmul.f32 %v2991_v17, %v2827_v28  ;;  %v1641_v23 = vmul.f32 %v2996_v54, %v1604_v41  ;;  %v1935_v16 = vld [vmem:[%s2457_s27 + $0x2c] sm:$0xf] }
 0x265   : > { %v1767_v1 = vsel %vm1707_vm15, %v1677_v5, %v1737_v51  ;;  %v2156_v39 = vpack.c.bf16 %v1766_v60, %v1766_v60  ;;  %v1642_v52 = vmul.f32 %v2996_v54, %v1605_v46  ;;  %v1643_v57 = vmul.f32 %v2996_v54, %v1606_v49  ;;  %v1939_v49 = vld [vmem:[%s2457_s27 + $0x34] sm:$0xf] }
 0x266   : > { %v2157_v44 = vpack.c.bf16 %v1767_v1, %v1767_v1  ;;  %v1924_v26 = vsel %vm3037_vm11, %v2155_v55, %v1923_v40  ;;  %v1644_v27 = vmul.f32 %v2996_v54, %v1607_v21  ;;  %v1608_v59 = vmul.f32 %v2991_v17, %v2830_v29 }
 0x267   : > { %1925 = vst [vmem:[%s2457_s27 + $0x14] sm:$0xf] %v1924_v26  ;;  %1926 = vst.msk [vmem:[%s2457_s27 + $0x18] sm:$0xf] %vm1910_vm5, %v2156_v39  ;;  %v1678_v12 = vadd.f32 %v3009_v9, %v1641_v23  ;;  %v1679_v13 = vadd.f32 %v3009_v9, %v1642_v52  ;;  %v1609_v22 = vmul.f32 %v2991_v17, %v2833_v30 }
 0x268   : > { %v1928_v28 = vsel %vm3037_vm11, %v2157_v44, %v1927_v62  ;;  %v1680_v48 = vadd.f32 %v3009_v9, %v1643_v57  ;;  %v1681_v7 = vadd.f32 %v3009_v9, %v1644_v27  ;;  %v1645_v29 = vmul.f32 %v2996_v54, %v1608_v59 }
 0x269   : > { %1929 = vst [vmem:[%s2457_s27 + $0x1c] sm:$0xf] %v1928_v28  ;;  %v1610_v24 = vmul.f32 %v2991_v17, %v2836_v31  ;;  %vm1708_vm0 = vcmp.ge.f32.partialorder %v1678_v12, 0.0  ;;  %v1738_v50 = vmul.f32 0.2, %v1678_v12  ;;  %vm1709_vm1 = vcmp.ge.f32.partialorder %v1679_v13, 0.0 }
 0x26a   : > { %v1739_v0 = vmul.f32 0.2, %v1679_v13  ;;  %vm1710_vm2 = vcmp.ge.f32.partialorder %v1680_v48, 0.0  ;;  %v1740_v5 = vmul.f32 0.2, %v1680_v48  ;;  %vm1711_vm3 = vcmp.ge.f32.partialorder %v1681_v7, 0.0 }
 0x26b   : > { %v1741_v30 = vmul.f32 0.2, %v1681_v7  ;;  %v1768_v10 = vsel %vm1708_vm0, %v1678_v12, %v1738_v50  ;;  %v1682_v56 = vadd.f32 %v3009_v9, %v1645_v29  ;;  %v1646_v18 = vmul.f32 %v2996_v54, %v1609_v22  ;;  %v1943_v28 = vld [vmem:[%s2457_s27 + $0x3c] sm:$0xf]  ;;  %v1947_v29 = vld [vmem:[%s2457_s27 + $0x44] sm:$0xf] }
 0x26c   : > { %v1769_v19 = vsel %vm1709_vm1, %v1679_v13, %v1739_v0  ;;  %v2158_v31 = vpack.c.bf16 %v1768_v10, %v1768_v10  ;;  %v1770_v6 = vsel %vm1710_vm2, %v1680_v48, %v1740_v5  ;;  %v1647_v25 = vmul.f32 %v2996_v54, %v1610_v24 }
 0x26d   : > { %v2159_v8 = vpack.c.bf16 %v1769_v19, %v1769_v19  ;;  %v1771_v11 = vsel %vm1711_vm3, %v1681_v7, %v1741_v30  ;;  %v2160_v45 = vpack.c.bf16 %v1770_v6, %v1770_v6  ;;  %vm1712_vm4 = vcmp.ge.f32.partialorder %v1682_v56, 0.0 }
 0x26e   : > { %v2161_v43 = vpack.c.bf16 %v1771_v11, %v1771_v11  ;;  %v1742_v4 = vmul.f32 0.2, %v1682_v56  ;;  %1930 = vst.msk [vmem:[%s2457_s27 + $0x20] sm:$0xf] %vm1910_vm5, %v2158_v31  ;;  %v1683_v20 = vadd.f32 %v3009_v9, %v1646_v18  ;;  %v1611_v58 = vmul.f32 %v2991_v17, %v2839_v32  ;;  %v3267_v18 = vld [vmem:[#allocation10_spill] sm:$0xff] }
 0x26f   : > { %v1932_v15 = vsel %vm3037_vm11, %v2159_v8, %v1931_v53  ;;  %1934 = vst.msk [vmem:[%s2457_s27 + $0x28] sm:$0xf] %vm1910_vm5, %v2160_v45  ;;  %v1612_v42 = vmul.f32 %v2991_v17, %v2842_v33  ;;  %v1613_v3 = vmul.f32 %v2991_v17, %v2845_v34  ;;  %v1684_v32 = vadd.f32 %v3009_v9, %v1647_v25  ;;  %v1951_v11 = vld [vmem:[%s2457_s27 + $0x4c] sm:$0xf] }
 0x270   : > { %1933 = vst [vmem:[%s2457_s27 + $0x24] sm:$0xf] %v1932_v15  ;;  %v1936_v63 = vsel %vm3037_vm11, %v2161_v43, %v1935_v16  ;;  %v1772_v14 = vsel %vm1712_vm4, %v1682_v56, %v1742_v4  ;;  %vm1713_vm6 = vcmp.ge.f32.partialorder %v1683_v20, 0.0  ;;  %v1743_v51 = vmul.f32 0.2, %v1683_v20  ;;  %v3268_v15 = vld [vmem:[#allocation3_spill] sm:$0xff] }
 0x271   : > { %1937 = vst [vmem:[%s2457_s27 + $0x2c] sm:$0xf] %v1936_v63  ;;  %v2162_v47 = vpack.c.bf16 %v1772_v14, %v1772_v14  ;;  %v1648_v61 = vmul.f32 %v2996_v54, %v1611_v58  ;;  %v1649_v40 = vmul.f32 %v2996_v54, %v1612_v42  ;;  %v1650_v41 = vmul.f32 %v2996_v54, %v1613_v3  ;;  %v3269_v58 = vld [vmem:[#allocation4_spill] sm:$0xff]  ;;  %v3270_v14 = vld [vmem:[#allocation5_spill] sm:$0xff]  ;;  %v3271_v3 = vld [vmem:[#allocation6_spill] sm:$0xff] }
 0x272   : > { %v1614_v46 = vmul.f32 %v2991_v17, %v2848_v35  ;;  %v1773_v33 = vsel %vm1713_vm6, %v1683_v20, %v1743_v51  ;;  %vm1714_vm7 = vcmp.ge.f32.partialorder %v1684_v32, 0.0  ;;  %v1744_v34 = vmul.f32 0.2, %v1684_v32 }
 0x273   : > { %1938 = vst.msk [vmem:[%s2457_s27 + $0x30] sm:$0xf] %vm1910_vm5, %v2162_v47  ;;  %v1615_v55 = vmul.f32 %v2991_v17, %v2851_v36  ;;  %v2163_v60 = vpack.c.bf16 %v1773_v33, %v1773_v33  ;;  %v1685_v1 = vadd.f32 %v3009_v9, %v1648_v61  ;;  %v1686_v62 = vadd.f32 %v3009_v9, %v1649_v40 }
 0x274   : > { %v1687_v21 = vadd.f32 %v3009_v9, %v1650_v41  ;;  %v1774_v35 = vsel %vm1714_vm7, %v1684_v32, %v1744_v34  ;;  %v1651_v39 = vmul.f32 %v2996_v54, %v1614_v46  ;;  %v1616_v23 = vmul.f32 %v2991_v17, %v2854_v37  ;;  %v1955_v34 = vld [vmem:[%s2457_s27 + $0x54] sm:$0xf] }
 0x275   : > { %v1652_v44 = vmul.f32 %v2996_v54, %v1615_v55  ;;  %v1940_v36 = vsel %vm3037_vm11, %v2163_v60, %v1939_v49  ;;  %v2164_v52 = vpack.c.bf16 %v1774_v35, %v1774_v35  ;;  %vm1715_vm8 = vcmp.ge.f32.partialorder %v1685_v1, 0.0  ;;  %v3272_v60 = vld [vmem:[#allocation7_spill] sm:$0xff] }
 0x276   : > { %v1745_v26 = vmul.f32 0.2, %v1685_v1  ;;  %1941 = vst [vmem:[%s2457_s27 + $0x34] sm:$0xf] %v1940_v36  ;;  %vm1716_vm9 = vcmp.ge.f32.partialorder %v1686_v62, 0.0  ;;  %vm1717_vm10 = vcmp.ge.f32.partialorder %v1687_v21, 0.0  ;;  %v1688_v12 = vadd.f32 %v3009_v9, %v1651_v39 }
 0x277   : > { %v1746_v57 = vmul.f32 0.2, %v1686_v62  ;;  %v1747_v27 = vmul.f32 0.2, %v1687_v21  ;;  %1942 = vst.msk [vmem:[%s2457_s27 + $0x38] sm:$0xf] %vm1910_vm5, %v2164_v52  ;;  %v1689_v37 = vadd.f32 %v3009_v9, %v1652_v44  ;;  %v1653_v13 = vmul.f32 %v2996_v54, %v1616_v23 }
 0x278   : > { %v1775_v59 = vsel %vm1715_vm8, %v1685_v1, %v1745_v26  ;;  %v1617_v24 = vmul.f32 %v2991_v17, %v2857_v38  ;;  %vm1718_vm12 = vcmp.ge.f32.partialorder %v1688_v12, 0.0  ;;  %v1748_v5 = vmul.f32 0.2, %v1688_v12 }
 0x279   : > { %v2165_v22 = vpack.c.bf16 %v1775_v59, %v1775_v59  ;;  %v1776_v48 = vsel %vm1716_vm9, %v1686_v62, %v1746_v57  ;;  %v1777_v7 = vsel %vm1717_vm10, %v1687_v21, %v1747_v27  ;;  %vm1719_vm13 = vcmp.ge.f32.partialorder %v1689_v37, 0.0  ;;  %v3273_v62 = vld [vmem:[#allocation8_spill] sm:$0xff] }
 0x27a   : > { %v2166_v50 = vpack.c.bf16 %v1776_v48, %v1776_v48  ;;  %v2167_v0 = vpack.c.bf16 %v1777_v7, %v1777_v7  ;;  %v1749_v10 = vmul.f32 0.2, %v1689_v37  ;;  %v1690_v19 = vadd.f32 %v3009_v9, %v1653_v13 }
 0x27b   : > { %v1944_v30 = vsel %vm3037_vm11, %v2165_v22, %v1943_v28  ;;  %v1778_v38 = vsel %vm1718_vm12, %v1688_v12, %v1748_v5  ;;  %v1654_v56 = vmul.f32 %v2996_v54, %v1617_v24  ;;  %v1618_v31 = vmul.f32 %v2991_v17, %v3267_v18  ;;  %v1959_v12 = vld [vmem:[%s2457_s27 + $0x5c] sm:$0xf] }
 0x27c   : > { %1945 = vst [vmem:[%s2457_s27 + $0x3c] sm:$0xf] %v1944_v30  ;;  %1946 = vst.msk [vmem:[%s2457_s27 + $0x40] sm:$0xf] %vm1910_vm5, %v2166_v50  ;;  %v1948_v53 = vsel %vm3037_vm11, %v2167_v0, %v1947_v29  ;;  %v2168_v8 = vpack.c.bf16 %v1778_v38, %v1778_v38  ;;  %v1779_v6 = vsel %vm1719_vm13, %v1689_v37, %v1749_v10  ;;  %vm1720_vm14 = vcmp.ge.f32.partialorder %v1690_v19, 0.0 }
 0x27d   : > { %1949 = vst [vmem:[%s2457_s27 + $0x44] sm:$0xf] %v1948_v53  ;;  %v1750_v16 = vmul.f32 0.2, %v1690_v19  ;;  %v2169_v45 = vpack.c.bf16 %v1779_v6, %v1779_v6  ;;  %v1691_v43 = vadd.f32 %v3009_v9, %v1654_v56  ;;  %v1655_v4 = vmul.f32 %v2996_v54, %v1618_v31  ;;  %v1963_v30 = vld [vmem:[%s2457_s27 + $0x64] sm:$0xf] }
 0x27e   : > { %v1619_v20 = vmul.f32 %v2991_v17, %v3268_v15  ;;  %1950 = vst.msk [vmem:[%s2457_s27 + $0x48] sm:$0xf] %vm1910_vm5, %v2168_v8  ;;  %v1620_v63 = vmul.f32 %v2991_v17, %v3269_v58  ;;  %v1621_v42 = vmul.f32 %v2991_v17, %v3270_v14  ;;  %v1622_v47 = vmul.f32 %v2991_v17, %v3271_v3 }
 0x27f   : > { %v1780_v25 = vsel %vm1720_vm14, %v1690_v19, %v1750_v16  ;;  %v1952_v51 = vsel %vm3037_vm11, %v2169_v45, %v1951_v11  ;;  %vm1721_vm15 = vcmp.ge.f32.partialorder %v1691_v43, 0.0  ;;  %v1751_v61 = vmul.f32 0.2, %v1691_v43  ;;  %v3274_v19 = vld [vmem:[#allocation9_spill] sm:$0xff]  ;;  %v1967_v16 = vld [vmem:[%s2457_s27 + $0x6c] sm:$0xf] }
 0x280   : > { %v2170_v32 = vpack.c.bf16 %v1780_v25, %v1780_v25  ;;  %1953 = vst [vmem:[%s2457_s27 + $0x4c] sm:$0xf] %v1952_v51  ;;  %v1692_v40 = vadd.f32 %v3009_v9, %v1655_v4  ;;  %v1656_v41 = vmul.f32 %v2996_v54, %v1619_v20  ;;  %v1657_v46 = vmul.f32 %v2996_v54, %v1620_v63  ;;  %v1971_v63 = vld [vmem:[%s2457_s27 + $0x74] sm:$0xf] }
 0x281   : > { %v1658_v33 = vmul.f32 %v2996_v54, %v1621_v42  ;;  %v1781_v49 = vsel %vm1721_vm15, %v1691_v43, %v1751_v61  ;;  %v1659_v55 = vmul.f32 %v2996_v54, %v1622_v47  ;;  %v1623_v1 = vmul.f32 %v2991_v17, %v3272_v60 }
 0x282   : > { %1954 = vst.msk [vmem:[%s2457_s27 + $0x50] sm:$0xf] %vm1910_vm5, %v2170_v32  ;;  %v1624_v21 = vmul.f32 %v2991_v17, %v3273_v62  ;;  %v2171_v35 = vpack.c.bf16 %v1781_v49, %v1781_v49  ;;  %vm1722_vm0 = vcmp.ge.f32.partialorder %v1692_v40, 0.0  ;;  %v1752_v39 = vmul.f32 0.2, %v1692_v40 }
 0x283   : > { %v1693_v44 = vadd.f32 %v3009_v9, %v1656_v41  ;;  %v1694_v23 = vadd.f32 %v3009_v9, %v1657_v46  ;;  %v1695_v36 = vadd.f32 %v3009_v9, %v1658_v33  ;;  %v1696_v52 = vadd.f32 %v3009_v9, %v1659_v55 }
 0x284   : > { %v1660_v26 = vmul.f32 %v2996_v54, %v1623_v1  ;;  %v1956_v57 = vsel %vm3037_vm11, %v2171_v35, %v1955_v34  ;;  %v1782_v27 = vsel %vm1722_vm0, %v1692_v40, %v1752_v39  ;;  %v1661_v50 = vmul.f32 %v2996_v54, %v1624_v21 }
 0x285   : > { %vm1723_vm1 = vcmp.ge.f32.partialorder %v1693_v44, 0.0  ;;  %v1753_v59 = vmul.f32 0.2, %v1693_v44  ;;  %1957 = vst [vmem:[%s2457_s27 + $0x54] sm:$0xf] %v1956_v57  ;;  %v2172_v28 = vpack.c.bf16 %v1782_v27, %v1782_v27  ;;  %vm1724_vm2 = vcmp.ge.f32.partialorder %v1694_v23, 0.0 }
 0x286   : > { %v1754_v37 = vmul.f32 0.2, %v1694_v23  ;;  %vm1725_vm3 = vcmp.ge.f32.partialorder %v1695_v36, 0.0  ;;  %v1755_v22 = vmul.f32 0.2, %v1695_v36  ;;  %vm1726_vm4 = vcmp.ge.f32.partialorder %v1696_v52, 0.0 }
 0x287   : > { %v1783_v13 = vsel %vm1723_vm1, %v1693_v44, %v1753_v59  ;;  %v1756_v48 = vmul.f32 0.2, %v1696_v52  ;;  %1958 = vst.msk [vmem:[%s2457_s27 + $0x58] sm:$0xf] %vm1910_vm5, %v2172_v28  ;;  %v1697_v24 = vadd.f32 %v3009_v9, %v1660_v26  ;;  %v1625_v53 = vmul.f32 %v2991_v17, %v3274_v19 }
 0x288   : > { %v2173_v7 = vpack.c.bf16 %v1783_v13, %v1783_v13  ;;  %v1784_v29 = vsel %vm1724_vm2, %v1694_v23, %v1754_v37  ;;  %v1785_v5 = vsel %vm1725_vm3, %v1695_v36, %v1755_v22  ;;  %v1698_v8 = vadd.f32 %v3009_v9, %v1661_v50 }
 0x289   : > { %v2174_v0 = vpack.c.bf16 %v1784_v29, %v1784_v29  ;;  %v1786_v10 = vsel %vm1726_vm4, %v1696_v52, %v1756_v48  ;;  %v2175_v56 = vpack.c.bf16 %v1785_v5, %v1785_v5  ;;  %vm1727_vm6 = vcmp.ge.f32.partialorder %v1697_v24, 0.0 }
 0x28a   : > { %v1960_v38 = vsel %vm3037_vm11, %v2173_v7, %v1959_v12  ;;  %v2176_v18 = vpack.c.bf16 %v1786_v10, %v1786_v10  ;;  %v1757_v31 = vmul.f32 0.2, %v1697_v24  ;;  %v1662_v6 = vmul.f32 %v2996_v54, %v1625_v53 }
 0x28b   : > { %1961 = vst [vmem:[%s2457_s27 + $0x5c] sm:$0xf] %v1960_v38  ;;  %1962 = vst.msk [vmem:[%s2457_s27 + $0x60] sm:$0xf] %vm1910_vm5, %v2174_v0  ;;  %v1964_v11 = vsel %vm3037_vm11, %v2175_v56, %v1963_v30  ;;  %vm1728_vm7 = vcmp.ge.f32.partialorder %v1698_v8, 0.0 }
 0x28c   : > { %1966 = vst.msk [vmem:[%s2457_s27 + $0x68] sm:$0xf] %vm1910_vm5, %v2176_v18  ;;  %1965 = vst [vmem:[%s2457_s27 + $0x64] sm:$0xf] %v1964_v11  ;;  %v1787_v17 = vsel %vm1727_vm6, %v1697_v24, %v1757_v31  ;;  %v1758_v45 = vmul.f32 0.2, %v1698_v8  ;;  %v1699_v43 = vadd.f32 %v3009_v9, %v1662_v6 }
 0x28d   : > { %v2177_v4 = vpack.c.bf16 %v1787_v17, %v1787_v17 }
 0x28e   : > { %v1788_v15 = vsel %vm1728_vm7, %v1698_v8, %v1758_v45  ;;  %vm1729_vm8 = vcmp.ge.f32.partialorder %v1699_v43, 0.0  ;;  %v1759_v20 = vmul.f32 0.2, %v1699_v43 }
 0x28f   : > { %v1968_v54 = vsel %vm3037_vm11, %v2177_v4, %v1967_v16  ;;  %v2178_v25 = vpack.c.bf16 %v1788_v15, %v1788_v15 }
 0x290   : > { %1969 = vst [vmem:[%s2457_s27 + $0x6c] sm:$0xf] %v1968_v54  ;;  %v1789_v58 = vsel %vm1729_vm8, %v1699_v43, %v1759_v20 }
 0x291   : > { %1970 = vst.msk [vmem:[%s2457_s27 + $0x70] sm:$0xf] %vm1910_vm5, %v2178_v25  ;;  %v2179_v14 = vpack.c.bf16 %v1789_v58, %v1789_v58 }
 0x293   : > { %v1972_v42 = vsel %vm3037_vm11, %v2179_v14, %v1971_v63 }
 0x294   : > { %1973 = vst [vmem:[%s2457_s27 + $0x74] sm:$0xf] %v1972_v42 }
 0x295 PF: > { %s15_s18 = sadd.s32 1, %s2402_s18  }
 0x296   : > { %p12_p5 = scmp.ge.s32.totalorder %s15_s18, 4  }
 0x298   :  { %14 = sbr.rel (!%p12_p5) target bundleno = 1 (0x1), region = 108 }

// kernel: discriminator_forward.7
= control target key start
LH: loop header
LB: loop body
LE: loop exit
PB: predicated region body
PF: predicated region fallthrough
CT: control target
= control target key end

     0   :  { %s1834_s18 = smov 0   ;;  %s2088_s0 = inlined_call_operand.vmem [shape: bf16[2,15,8,32], index: 0, kind: input, shape index: {}]   ;;  %s2089_s1 = inlined_call_operand.vmem [shape: bf16[16,16,32], index: 1, kind: input, shape index: {}]   ;;  %s2090_s2 = inlined_call_operand.vmem [shape: f32[1,32], index: 2, kind: input, shape index: {}]   ;;  %s2091_s3 = inlined_call_operand.vmem [shape: f32[1,32], index: 3, kind: input, shape index: {}]   ;;  %s2092_s4 = inlined_call_operand.vmem [shape: f32[1,32], index: 4, kind: input, shape index: {}]   ;;  %s2093_s5 = inlined_call_operand.vmem [shape: bf16[2,6,6,32], index: 5, kind: output, shape index: {}]  }
   0x1 LB: > { %s1452_s19 = sadd.s32 4294967295, %s1795_s18   ;;  %p1456_p0 = scmp.ge.s32.totalorder %s1795_s18, 1  ;;  %s1795_s18 = sphi %s1834_s18, %s15_s18  }
   0x2   : > { %p187_p1 = scmp.lt.s32.totalorder %s1795_s18, 3 }
   0x4   : > { %p188_p2 = pnand %p1456_p0, %p187_p1 }
   0x5   : > { %p215_p3 = scmp.lt.s32.totalorder (!%p188_p2), %s1452_s19, 1  ;;  %s1852_s28 = smov (!%p188_p2), 0  }
   0x6   : > { %191 = sbr.rel (%p188_p2) target bundleno = 532 (0x214), region = 40 }
   0xd   : > { %s2095_s19 = smov (!%p215_p3, %s1452_s19), 1 }
   0xe   : > { %s1738_s20 = smul.u32 60, %s2095_s19 }
   0xf   : > { %s1739_s21 = smul.u32 24, %s2095_s19 }
  0x10   : > { %s1845_s24 = scalar_lea.vmem %s2088_s0, %s1738_s20 }
  0x11   : > { %s1850_s27 = scalar_lea.vmem %s2093_s5, %s1739_s21 }
  0x12 LB: >> { %v1801_v0 = vmov 0.0   ;;  %v1767_v1 = vld [vmem:[%s2089_s1 + $0x40] sm:$0xff]   ;;  %v1768_v2 = vld [vmem:[%s2089_s1 + $0x8] sm:$0xff]   ;;  %s1549_s8 = sshll.u32 %s1799_s28, 3  ;;  %vm1802_vm0 = vmmov 0   ;;  %vm252_vm1 = vcmask 130048   ;;  %s1799_s28 = sphi %s1852_s28, %s231_s28  }
  0x13   : >> { %1633 = vmatprep.subr.bf16.mxu0 %v1801_v0  ;;  %1585 = vmatprep.subr.bf16.mxu1 %v1801_v0  ;;  %s1873_s9 = scalar_lea.vmem %s1845_s24, %s1549_s8  ;;  %s1803_s10 = smov 112   ;;  %v1770_v15 = vld [vmem:[%s2089_s1 + $0x48] sm:$0xff]   ;;  %v1769_v32 = vld [vmem:[%s2089_s1] sm:$0xff]   ;;  %v1772_v34 = vld [vmem:[%s2089_s1 + $0x50] sm:$0xff]   ;;  %vm1168_vm2 = vcmask 259072  }
  0x14   : >> { %1635 = vmatprep.mubr.msk.bf16.mxu0 %vm1802_vm0, %v1801_v0  ;;  %1587 = vmatprep.mubr.msk.bf16.mxu1 %vm1802_vm0, %v1801_v0  ;;  %v235_v3 = vld [vmem:[%s1873_s9] sm:$0x7]  ;;  %v1501_v4 = vld [vmem:[%s1873_s9 + $0x8] sm:$0x7]  ;;  %v1882_v8 = vld [vmem:[%s1873_s9 + $0x4] sm:$0x7] }
  0x15   : >> { %1634 = vmatpush3.bf16.msra.mxu0 %v1767_v1  ;;  %1586 = vmatpush3.bf16.msra.mxu1 %v1768_v2  ;;  %v1463_v5 = vcombine.low %v235_v3, %v235_v3  ;;  %v1761_v6 = vld [vmem:[%s1873_s9] ss:$0 sps:$4 sm:$0xff]   ;;  %v1762_v7 = vld [vmem:[%s1873_s9 + $0x8] ss:$0 sps:$4 sm:$0xff]   ;;  %v1508_v9 = vcombine.low %v1501_v4, %v1501_v4  ;;  %v1765_v13 = vld [vmem:[%s1873_s9 + $0xc] ss:$0 sps:$4 sm:$0xff]   ;;  %v1486_v21 = vcombine.low %v1882_v8, %v1882_v8 }
  0x16   : >> { %1591 = vmatprep.subr.bf16.mxu1 %v1801_v0  ;;  %1639 = vmatprep.subr.bf16.mxu0 %v1801_v0  ;;  %v353_v10 = vshrl.u32 %v1761_v6, 16  ;;  %v355_v11 = vshll.u32 %v1761_v6, 16  ;;  %v823_v12 = vshll.u32 %v1762_v7, 16  ;;  %v1766_v14 = vld [vmem:[%s1873_s9 + $0x4] ss:$0 sps:$4 sm:$0xff]   ;;  %v821_v17 = vshrl.u32 %v1762_v7, 16 }
  0x17   : >> { %244 = vrot.lane.b32.xlu0 %v1463_v5, %s1803_s10  ;;  %v589_v19 = vshll.u32 %v1766_v14, 16  ;;  %v587_v22 = vshrl.u32 %v1766_v14, 16  ;;  %v1523_v23 = vld [vmem:[%s1873_s9 + $0xc] sm:$0x7]  ;;  %v1057_v24 = vshll.u32 %v1765_v13, 16  ;;  %v1055_v29 = vshrl.u32 %v1765_v13, 16 }
  0x18   : >> { %1636 = vmatmul.mubr.msk.bf16.vlgmr.msra.gmra.mrb[0].mxu0 %vm252_vm1, %v1501_v4  ;;  %v357_v16 = vrot.slane %v355_v11, 1  ;;  %v825_v18 = vrot.slane %v823_v12, 1  ;;  %v1530_v28 = vcombine.low %v1523_v23, %v1523_v23  ;;  %v1771_v36 = vld [vmem:[%s2089_s1 + $0x10] sm:$0xff]   ;;  %v1774_v37 = vld [vmem:[%s2089_s1 + $0x58] sm:$0xff]   ;;  %v1776_v41 = vld [vmem:[%s2089_s1 + $0x60] sm:$0xff]   ;;  %s1167_s20 = scalar_lea.vmem [#allocation2], %s1549_s8 }
  0x19   : >> { %1641 = vmatprep.mubr.msk.bf16.mxu0 %vm1802_vm0, %v1801_v0  ;;  %1640 = vmatpush3.bf16.msra.mxu0 %v1770_v15  ;;  %v591_v25 = vrot.slane %v589_v19, 1  ;;  %v1059_v30 = vrot.slane %v1057_v24, 1  ;;  %v1773_v39 = vld [vmem:[%s2089_s1 + $0x18] sm:$0xff]   ;;  %v1775_v42 = vld [vmem:[%s2089_s1 + $0x20] sm:$0xff]   ;;  %v1778_v43 = vld [vmem:[%s2089_s1 + $0x68] sm:$0xff]   ;;  %s231_s28 = sadd.s32 1, %s1799_s28  }
  0x1a   : >> { %v358_v20 = vor.u32 %v357_v16, %v353_v10  ;;  %1645 = vmatprep.subr.bf16.mxu0 %v1801_v0  ;;  %v826_v26 = vor.u32 %v825_v18, %v821_v17  ;;  %v1777_v44 = vld [vmem:[%s2089_s1 + $0x28] sm:$0xff]   ;;  %v1780_v46 = vld [vmem:[%s2089_s1 + $0x70] sm:$0xff]   ;;  %v1782_v49 = vld [vmem:[%s2089_s1 + $0x78] sm:$0xff]   ;;  %p228_p4 = scmp.ge.s32.totalorder %s231_s28, 6  }
  0x1b   : >> { %761 = vrot.lane.b32.xlu0 %v1508_v9, %s1803_s10  ;;  %v1900_v27 = vor.u32 %v591_v25, %v587_v22  ;;  %v1906_v31 = vor.u32 %v1059_v30, %v1055_v29  ;;  %v1779_v48 = vld [vmem:[%s2089_s1 + $0x30] sm:$0xff]   ;;  %v1781_v50 = vld [vmem:[%s2089_s1 + $0x38] sm:$0xff]   ;;  %v1544_v4 = vld [vmem:[%s2090_s2] ss:$0 sm:$0xff] (%p228_p4)  ;;  %vm1232_vm3 = vcmask (%p228_p4), 261120   ;;  %vm1369_vm4 = vcmask (%p228_p4), 256000  }
  0x1c   : >> { %412 = vrot.lane.b32.xlu1 %v358_v20, %s1803_s10 }
  0x1f   : >> { %527 = vrot.lane.b32.xlu0 %v1486_v21, %s1803_s10 }
  0x20   : >> { %880 = vrot.lane.b32.xlu1 %v826_v26, %s1803_s10 }
  0x23   : >> { %646 = vrot.lane.b32.xlu0 %v1900_v27, %s1803_s10 }
  0x24   : >> { %995 = vrot.lane.b32.xlu1 %v1530_v28, %s1803_s10 }
  0x28   : >> { %1114 = vrot.lane.b32.xlu1 %v1906_v31, %s1803_s10 }
  0x89   : >> { %v245_v33 = vpop.permute.xlu0 %244 }
  0x8a   : >> { %1588 = vmatmul.mubr.msk.bf16.vlgmr.msra.gmra.mrb[0].mxu1 %vm252_vm1, %v245_v33 }
  0x8b   : >> { %1592 = vmatpush3.bf16.msra.mxu1 %v1769_v32  ;;  %1593 = vmatprep.mubr.msk.bf16.mxu1 %vm1802_vm0, %v1801_v0 }
  0x8c   : >> { %1597 = vmatprep.subr.bf16.mxu1 %v1801_v0 }
  0x8d   : >> { %v762_v35 = vpop.permute.xlu0 %761 }
  0x8e   : >> { %1642 = vmatmul.mubr.msk.bf16.vlgmr.msra.gmra.mrb[0].mxu0 %vm252_vm1, %v762_v35  ;;  %v413_v38 = vpop.permute.xlu1 %412 }
  0x8f   : >> { %1646 = vmatpush3.bf16.msra.mxu0 %v1772_v34  ;;  %1647 = vmatprep.mubr.msk.bf16.mxu0 %vm1802_vm0, %v1801_v0 }
  0x90   : >> { %1651 = vmatprep.subr.bf16.mxu0 %v1801_v0 }
  0x91   : >> { %v528_v47 = vpop.permute.xlu0 %527 }
  0x92   : >> { %v881_v40 = vpop.permute.xlu1 %880 }
  0x95   : >> { %v647_v52 = vpop.permute.xlu0 %646 }
  0x96   : >> { %1594 = vmatmul.mubr.msk.bf16.vlgmr.msra.gmra.mrb[0].mxu1 %vm252_vm1, %v235_v3  ;;  %v996_v45 = vpop.permute.xlu1 %995 }
  0x97   : >> { %1598 = vmatpush3.bf16.msra.mxu1 %v1771_v36  ;;  %1599 = vmatprep.mubr.msk.bf16.mxu1 %vm1802_vm0, %v1801_v0 }
  0x98   : >> { %1603 = vmatprep.subr.bf16.mxu1 %v1801_v0 }
  0x9a   : >> { %1648 = vmatmul.mubr.msk.bf16.vlgmr.msra.gmra.mrb[0].mxu0 %vm252_vm1, %v826_v26  ;;  %v1115_v51 = vpop.permute.xlu1 %1114 }
  0x9b   : >> { %1652 = vmatpush3.bf16.msra.mxu0 %v1774_v37  ;;  %1653 = vmatprep.mubr.msk.bf16.mxu0 %vm1802_vm0, %v1801_v0 }
  0x9c   : >> { %1657 = vmatprep.subr.bf16.mxu0 %v1801_v0 }
  0xa2   : >> { %1600 = vmatmul.mubr.msk.bf16.vlgmr.msra.gmra.mrb[0].mxu1 %vm252_vm1, %v358_v20 }
  0xa3   : >> { %1604 = vmatpush3.bf16.msra.mxu1 %v1773_v39  ;;  %1605 = vmatprep.mubr.msk.bf16.mxu1 %vm1802_vm0, %v1801_v0 }
  0xa4   : >> { %1609 = vmatprep.subr.bf16.mxu1 %v1801_v0 }
  0xa6   : >> { %1654 = vmatmul.mubr.msk.bf16.vlgmr.msra.gmra.mrb[0].mxu0 %vm252_vm1, %v881_v40 }
  0xa7   : >> { %1658 = vmatpush3.bf16.msra.mxu0 %v1776_v41  ;;  %1659 = vmatprep.mubr.msk.bf16.mxu0 %vm1802_vm0, %v1801_v0 }
  0xa8   : >> { %1663 = vmatprep.subr.bf16.mxu0 %v1801_v0 }
  0xae   : >> { %1606 = vmatmul.mubr.msk.bf16.vlgmr.msra.gmra.mrb[0].mxu1 %vm252_vm1, %v413_v38 }
  0xaf   : >> { %1610 = vmatpush3.bf16.msra.mxu1 %v1775_v42  ;;  %1611 = vmatprep.mubr.msk.bf16.mxu1 %vm1802_vm0, %v1801_v0 }
  0xb0   : >> { %1615 = vmatprep.subr.bf16.mxu1 %v1801_v0 }
  0xb2   : >> { %1660 = vmatmul.mubr.msk.bf16.vlgmr.msra.gmra.mrb[0].mxu0 %vm252_vm1, %v1523_v23 }
  0xb3   : >> { %1664 = vmatpush3.bf16.msra.mxu0 %v1778_v43  ;;  %1665 = vmatprep.mubr.msk.bf16.mxu0 %vm1802_vm0, %v1801_v0 }
  0xb4   : >> { %1669 = vmatprep.subr.bf16.mxu0 %v1801_v0 }
  0xba   : >> { %1612 = vmatmul.mubr.msk.bf16.vlgmr.msra.gmra.mrb[0].mxu1 %vm252_vm1, %v1882_v8 }
  0xbb   : >> { %1616 = vmatpush3.bf16.msra.mxu1 %v1777_v44  ;;  %1617 = vmatprep.mubr.msk.bf16.mxu1 %vm1802_vm0, %v1801_v0 }
  0xbc   : >> { %1621 = vmatprep.subr.bf16.mxu1 %v1801_v0 }
  0xbe   : >> { %1666 = vmatmul.mubr.msk.bf16.vlgmr.msra.gmra.mrb[0].mxu0 %vm252_vm1, %v996_v45 }
  0xbf   : >> { %1670 = vmatpush3.bf16.msra.mxu0 %v1780_v46  ;;  %1671 = vmatprep.mubr.msk.bf16.mxu0 %vm1802_vm0, %v1801_v0 }
  0xc0   : >> { %1675 = vmatprep.subr.bf16.mxu0 %v1801_v0 }
  0xc6   : >> { %1618 = vmatmul.mubr.msk.bf16.vlgmr.msra.gmra.mrb[0].mxu1 %vm252_vm1, %v528_v47 }
  0xc7   : >> { %1622 = vmatpush3.bf16.msra.mxu1 %v1779_v48  ;;  %1623 = vmatprep.mubr.msk.bf16.mxu1 %vm1802_vm0, %v1801_v0 }
  0xc8   : >> { %1627 = vmatprep.subr.bf16.mxu1 %v1801_v0 }
  0xca   : >> { %1672 = vmatmul.mubr.msk.bf16.vlgmr.msra.gmra.mrb[0].mxu0 %vm252_vm1, %v1906_v31 }
  0xcb   : >> { %1676 = vmatpush3.bf16.msra.mxu0 %v1782_v49  ;;  %1677 = vmatprep.mubr.msk.bf16.mxu0 %vm1802_vm0, %v1801_v0 }
  0xd2   : >> { %1624 = vmatmul.mubr.msk.bf16.vlgmr.msra.gmra.mrb[0].mxu1 %vm252_vm1, %v1900_v27 }
  0xd3   : >> { %1628 = vmatpush3.bf16.msra.mxu1 %v1781_v50  ;;  %1629 = vmatprep.mubr.msk.bf16.mxu1 %vm1802_vm0, %v1801_v0 }
  0xd6   : >> { %1678 = vmatmul.mubr.msk.bf16.vlgmr.msra.gmra.mrb[0].mxu0 %vm252_vm1, %v1115_v51 }
  0xde   : >> { %1630 = vmatmul.mubr.msk.bf16.vlgmr.msra.gmra.mrb[0].mxu1 %vm252_vm1, %v647_v52 }
 0x1a9   : >> { %v1159_v53 = vpop.f32.mrb[0].mxu0 }
 0x1aa   : >> { %v1679_v54 = vpop.f32.mrb[1].mxu0 }
 0x1ab   : >> { %v1162_v55 = vpop.f32.mrb[2].mxu0 }
 0x1ac   : >> { %v1680_v56 = vpop.f32.mrb[3].mxu0 }
 0x1ae   : > { %230 = sbr.rel (!%p228_p4) target bundleno = 18 (0x12), region = 97 }
 0x1b1   : >> { %v691_v57 = vpop.f32.mrb[0].mxu1 }
 0x1b2   : >> { %v1681_v58 = vadd.f32 %v1159_v53, %v691_v57  ;;  %v1631_v59 = vpop.f32.mrb[1].mxu1 }
 0x1b3   : >> { %v694_v60 = vpop.f32.mrb[2].mxu1 }
 0x1b4   : >> { %1169 = vst.msk [vmem:[%s1167_s20] sm:$0x3f] %vm1168_vm2, %v1681_v58  ;;  %v1632_v61 = vpop.f32.mrb[3].mxu1 }
 0x1bb   : > { %v1170_v62 = vld [vmem:[#allocation2] sm:$0x3f]  ;;  %v1171_v63 = vld [vmem:[#allocation2 + $0x8] sm:$0x3f]  ;;  %v1172_v0 = vld [vmem:[#allocation2 + $0x10] sm:$0x3f] }
 0x1bc   : > { %v1173_v1 = vld [vmem:[#allocation2 + $0x18] sm:$0x3f]  ;;  %v1174_v2 = vld [vmem:[#allocation2 + $0x20] sm:$0x3f]  ;;  %v1175_v3 = vld [vmem:[#allocation2 + $0x28] sm:$0x3f]  ;;  %v1183_v5 = vadd.f32 %v1544_v4, %v1170_v62  ;;  %v1184_v6 = vadd.f32 %v1544_v4, %v1171_v63  ;;  %v1185_v7 = vadd.f32 %v1544_v4, %v1172_v0 }
 0x1bd   : > { %v1186_v8 = vadd.f32 %v1544_v4, %v1173_v1  ;;  %v1187_v9 = vadd.f32 %v1544_v4, %v1174_v2  ;;  %v1188_v10 = vadd.f32 %v1544_v4, %v1175_v3 }
 0x1be   : > { %v1190_v11 = vsel %vm1168_vm2, %v1183_v5, 0.0  ;;  %v1197_v12 = vsel %vm1168_vm2, %v1184_v6, 0.0  ;;  %v1204_v13 = vsel %vm1168_vm2, %v1185_v7, 0.0 }
 0x1bf   : > { %v1211_v14 = vsel %vm1168_vm2, %v1186_v8, 0.0  ;;  %v1191_v15 = vrot.slane %v1190_v11, 4  ;;  %v1198_v16 = vrot.slane %v1197_v12, 4  ;;  %v1205_v17 = vrot.slane %v1204_v13, 4 }
 0x1c0   : > { %v1212_v18 = vrot.slane %v1211_v14, 4  ;;  %v1218_v19 = vsel %vm1168_vm2, %v1187_v9, 0.0  ;;  %v1225_v20 = vsel %vm1168_vm2, %v1188_v10, 0.0 }
 0x1c1   : > { %v1192_v21 = vadd.f32 %v1191_v15, %v1190_v11  ;;  %v1199_v22 = vadd.f32 %v1198_v16, %v1197_v12  ;;  %v1206_v23 = vadd.f32 %v1205_v17, %v1204_v13  ;;  %v1219_v25 = vrot.slane %v1218_v19, 4 }
 0x1c2   : > { %v1213_v24 = vadd.f32 %v1212_v18, %v1211_v14  ;;  %v1226_v26 = vrot.slane %v1225_v20, 4 }
 0x1c3   : > { %v1193_v27 = vrot.slane %v1192_v21, 2  ;;  %v1200_v28 = vrot.slane %v1199_v22, 2  ;;  %v1207_v29 = vrot.slane %v1206_v23, 2  ;;  %v1220_v31 = vadd.f32 %v1219_v25, %v1218_v19 }
 0x1c4   : > { %v1214_v30 = vrot.slane %v1213_v24, 2  ;;  %v1227_v32 = vadd.f32 %v1226_v26, %v1225_v20 }
 0x1c5   : > { %v1194_v33 = vadd.f32 %v1193_v27, %v1192_v21  ;;  %v1201_v34 = vadd.f32 %v1200_v28, %v1199_v22  ;;  %v1208_v35 = vadd.f32 %v1207_v29, %v1206_v23  ;;  %v1221_v37 = vrot.slane %v1220_v31, 2 }
 0x1c6   : > { %v1215_v36 = vadd.f32 %v1214_v30, %v1213_v24  ;;  %v1228_v38 = vrot.slane %v1227_v32, 2 }
 0x1c7   : > { %v1195_v39 = vrot.slane %v1194_v33, 1  ;;  %v1202_v40 = vrot.slane %v1201_v34, 1  ;;  %v1209_v41 = vrot.slane %v1208_v35, 1  ;;  %v1222_v43 = vadd.f32 %v1221_v37, %v1220_v31 }
 0x1c8   : > { %v1216_v42 = vrot.slane %v1215_v36, 1  ;;  %v1229_v44 = vadd.f32 %v1228_v38, %v1227_v32 }
 0x1c9   : > { %v1196_v45 = vadd.f32 %v1195_v39, %v1194_v33  ;;  %v1203_v46 = vadd.f32 %v1202_v40, %v1201_v34  ;;  %v1210_v47 = vadd.f32 %v1209_v41, %v1208_v35  ;;  %v1223_v49 = vrot.slane %v1222_v43, 1 }
 0x1ca   : > { %v1217_v48 = vadd.f32 %v1216_v42, %v1215_v36  ;;  %v1230_v50 = vrot.slane %v1229_v44, 1 }
 0x1cb   : > { %v1233_v51 = vsel %vm1232_vm3, %v1196_v45, 0.0  ;;  %v1234_v52 = vsel %vm1232_vm3, %v1203_v46, 0.0  ;;  %v1236_v53 = vsel %vm1232_vm3, %v1210_v47, 0.0  ;;  %v1224_v54 = vadd.f32 %v1223_v49, %v1222_v43 }
 0x1cc   : > { %v1235_v55 = vadd.f32 %v1234_v52, %v1233_v51  ;;  %v1231_v56 = vadd.f32 %v1230_v50, %v1229_v44  ;;  %v1238_v57 = vsel %vm1232_vm3, %v1217_v48, 0.0 }
 0x1cd   : > { %v1240_v59 = vsel %vm1232_vm3, %v1224_v54, 0.0 }
 0x1ce   : > { %v1237_v58 = vadd.f32 %v1236_v53, %v1235_v55  ;;  %v1242_v61 = vsel %vm1232_vm3, %v1231_v56, 0.0 }
 0x1d0   : > { %v1239_v60 = vadd.f32 %v1238_v57, %v1237_v58 }
 0x1d2   : > { %v1241_v62 = vadd.f32 %v1240_v59, %v1239_v60 }
 0x1d4   : > { %v1243_v63 = vadd.f32 %v1242_v61, %v1241_v62 }
 0x1d6   : > { %v1244_v0 = vmul.f32 0.027777778, %v1243_v63 }
 0x1d8   : > { %v2025_v1 = vsub.f32 %v1183_v5, %v1244_v0  ;;  %v2027_v2 = vsub.f32 %v1184_v6, %v1244_v0  ;;  %v2029_v3 = vsub.f32 %v1185_v7, %v1244_v0  ;;  %v2031_v4 = vsub.f32 %v1186_v8, %v1244_v0 }
 0x1d9   : > { %v2033_v11 = vsub.f32 %v1187_v9, %v1244_v0  ;;  %v2035_v12 = vsub.f32 %v1188_v10, %v1244_v0 }
 0x1da   : > { %v1251_v13 = vmul.f32 %v2025_v1, %v2025_v1  ;;  %v1252_v14 = vmul.f32 %v2027_v2, %v2027_v2  ;;  %v1253_v5 = vmul.f32 %v2029_v3, %v2029_v3  ;;  %v1254_v6 = vmul.f32 %v2031_v4, %v2031_v4 }
 0x1db   : > { %v1255_v7 = vmul.f32 %v2033_v11, %v2033_v11  ;;  %v1256_v8 = vmul.f32 %v2035_v12, %v2035_v12 }
 0x1dc   : > { %v1257_v9 = vsel %vm1168_vm2, %v1251_v13, 0.0  ;;  %v1264_v10 = vsel %vm1168_vm2, %v1252_v14, 0.0  ;;  %v1271_v15 = vsel %vm1168_vm2, %v1253_v5, 0.0  ;;  %v1278_v16 = vsel %vm1168_vm2, %v1254_v6, 0.0 }
 0x1dd   : > { %v1258_v17 = vrot.slane %v1257_v9, 4  ;;  %v1265_v18 = vrot.slane %v1264_v10, 4  ;;  %v1272_v19 = vrot.slane %v1271_v15, 4  ;;  %v1279_v20 = vrot.slane %v1278_v16, 4 }
 0x1de   : > { %v1285_v21 = vsel %vm1168_vm2, %v1255_v7, 0.0  ;;  %v1292_v22 = vsel %vm1168_vm2, %v1256_v8, 0.0  ;;  %v1545_v7 = vld [vmem:[%s2091_s3] ss:$0 sm:$0xff] }
 0x1df   : > { %v1259_v23 = vadd.f32 %v1258_v17, %v1257_v9  ;;  %v1266_v24 = vadd.f32 %v1265_v18, %v1264_v10  ;;  %v1273_v25 = vadd.f32 %v1272_v19, %v1271_v15  ;;  %v1280_v26 = vadd.f32 %v1279_v20, %v1278_v16  ;;  %v1546_v16 = vld [vmem:[%s2092_s4] ss:$0 sm:$0xff] }
 0x1e0   : > { %v1286_v27 = vrot.slane %v1285_v21, 4  ;;  %v1293_v28 = vrot.slane %v1292_v22, 4 }
 0x1e1   : > { %v1260_v29 = vrot.slane %v1259_v23, 2  ;;  %v1267_v30 = vrot.slane %v1266_v24, 2  ;;  %v1274_v31 = vrot.slane %v1273_v25, 2  ;;  %v1281_v32 = vrot.slane %v1280_v26, 2 }
 0x1e2   : > { %v1287_v33 = vadd.f32 %v1286_v27, %v1285_v21  ;;  %v1294_v34 = vadd.f32 %v1293_v28, %v1292_v22 }
 0x1e3   : > { %v1261_v35 = vadd.f32 %v1260_v29, %v1259_v23  ;;  %v1268_v36 = vadd.f32 %v1267_v30, %v1266_v24  ;;  %v1275_v37 = vadd.f32 %v1274_v31, %v1273_v25  ;;  %v1282_v38 = vadd.f32 %v1281_v32, %v1280_v26 }
 0x1e4   : > { %v1288_v39 = vrot.slane %v1287_v33, 2  ;;  %v1295_v40 = vrot.slane %v1294_v34, 2 }
 0x1e5   : > { %v1262_v41 = vrot.slane %v1261_v35, 1  ;;  %v1269_v42 = vrot.slane %v1268_v36, 1  ;;  %v1276_v43 = vrot.slane %v1275_v37, 1  ;;  %v1283_v44 = vrot.slane %v1282_v38, 1 }
 0x1e6   : > { %v1289_v45 = vadd.f32 %v1288_v39, %v1287_v33  ;;  %v1296_v46 = vadd.f32 %v1295_v40, %v1294_v34 }
 0x1e7   : > { %v1263_v47 = vadd.f32 %v1262_v41, %v1261_v35  ;;  %v1270_v48 = vadd.f32 %v1269_v42, %v1268_v36  ;;  %v1277_v49 = vadd.f32 %v1276_v43, %v1275_v37  ;;  %v1284_v50 = vadd.f32 %v1283_v44, %v1282_v38 }
 0x1e8   : > { %v1290_v51 = vrot.slane %v1289_v45, 1  ;;  %v1297_v52 = vrot.slane %v1296_v46, 1 }
 0x1e9   : > { %v1299_v53 = vsel %vm1232_vm3, %v1263_v47, 0.0  ;;  %v1300_v54 = vsel %vm1232_vm3, %v1270_v48, 0.0  ;;  %v1302_v55 = vsel %vm1232_vm3, %v1277_v49, 0.0  ;;  %v1304_v59 = vsel %vm1232_vm3, %v1284_v50, 0.0 }
 0x1ea   : > { %v1291_v56 = vadd.f32 %v1290_v51, %v1289_v45  ;;  %v1301_v57 = vadd.f32 %v1300_v54, %v1299_v53  ;;  %v1298_v58 = vadd.f32 %v1297_v52, %v1296_v46 }
 0x1ec   : > { %v1303_v60 = vadd.f32 %v1302_v55, %v1301_v57  ;;  %v1306_v61 = vsel %vm1232_vm3, %v1291_v56, 0.0  ;;  %v1308_v63 = vsel %vm1232_vm3, %v1298_v58, 0.0 }
 0x1ee   : > { %v1305_v62 = vadd.f32 %v1304_v59, %v1303_v60 }
 0x1f0   : > { %v1307_v0 = vadd.f32 %v1306_v61, %v1305_v62 }
 0x1f2   : > { %v1309_v13 = vadd.f32 %v1308_v63, %v1307_v0 }
 0x1f4   : > { %v1310_v14 = vmul.f32 0.027777778, %v1309_v13 }
 0x1f6   : > { %v1311_v5 = vadd.f32 1e-05, %v1310_v14 }
 0x1f8   : > { %1783 = vrsqrt.f32 %v1311_v5 }
 0x202   : > { %v1784_v6 = vpop.eup %1783 }
 0x203   : > { %v1313_v8 = vmul.f32 %v1784_v6, %v2025_v1  ;;  %v1314_v9 = vmul.f32 %v1784_v6, %v2027_v2  ;;  %v1315_v10 = vmul.f32 %v1784_v6, %v2029_v3  ;;  %v1316_v15 = vmul.f32 %v1784_v6, %v2031_v4 }
 0x204   : > { %v1317_v17 = vmul.f32 %v1784_v6, %v2033_v11  ;;  %v1318_v18 = vmul.f32 %v1784_v6, %v2035_v12 }
 0x205   : > { %v1326_v19 = vmul.f32 %v1545_v7, %v1313_v8  ;;  %v1327_v20 = vmul.f32 %v1545_v7, %v1314_v9  ;;  %v1328_v21 = vmul.f32 %v1545_v7, %v1315_v10  ;;  %v1329_v22 = vmul.f32 %v1545_v7, %v1316_v15 }
 0x206   : > { %v1330_v23 = vmul.f32 %v1545_v7, %v1317_v17  ;;  %v1331_v1 = vmul.f32 %v1545_v7, %v1318_v18 }
 0x207   : > { %v1339_v24 = vadd.f32 %v1546_v16, %v1326_v19  ;;  %v1340_v2 = vadd.f32 %v1546_v16, %v1327_v20  ;;  %v1341_v25 = vadd.f32 %v1546_v16, %v1328_v21  ;;  %v1342_v3 = vadd.f32 %v1546_v16, %v1329_v22 }
 0x208   : > { %v1343_v4 = vadd.f32 %v1546_v16, %v1330_v23  ;;  %v1344_v26 = vadd.f32 %v1546_v16, %v1331_v1 }
 0x209   : > { %vm1345_vm5 = vcmp.ge.f32.partialorder %v1339_v24, 0.0  ;;  %v1351_v27 = vmul.f32 0.2, %v1339_v24  ;;  %vm1346_vm6 = vcmp.ge.f32.partialorder %v1340_v2, 0.0  ;;  %v1352_v28 = vmul.f32 0.2, %v1340_v2 }
 0x20a   : > { %vm1347_vm7 = vcmp.ge.f32.partialorder %v1341_v25, 0.0  ;;  %v1353_v11 = vmul.f32 0.2, %v1341_v25  ;;  %vm1348_vm8 = vcmp.ge.f32.partialorder %v1342_v3, 0.0  ;;  %v1354_v12 = vmul.f32 0.2, %v1342_v3 }
 0x20b   : > { %v1357_v29 = vsel %vm1345_vm5, %v1339_v24, %v1351_v27  ;;  %v1358_v30 = vsel %vm1346_vm6, %v1340_v2, %v1352_v28  ;;  %vm1349_vm9 = vcmp.ge.f32.partialorder %v1343_v4, 0.0  ;;  %v1355_v31 = vmul.f32 0.2, %v1343_v4 }
 0x20c   : > { %v1363_v32 = vpack.c.bf16 %v1357_v29, %v1357_v29  ;;  %v1364_v33 = vpack.c.bf16 %v1358_v30, %v1358_v30  ;;  %v1359_v34 = vsel %vm1347_vm7, %v1341_v25, %v1353_v11  ;;  %v1360_v35 = vsel %vm1348_vm8, %v1342_v3, %v1354_v12 }
 0x20d   : > { %v1365_v36 = vpack.c.bf16 %v1359_v34, %v1359_v34  ;;  %v1366_v37 = vpack.c.bf16 %v1360_v35, %v1360_v35  ;;  %v1361_v38 = vsel %vm1349_vm9, %v1343_v4, %v1355_v31  ;;  %vm1350_vm10 = vcmp.ge.f32.partialorder %v1344_v26, 0.0 }
 0x20e   : > { %1370 = vst.msk [vmem:[%s1850_s27] sm:$0x7] %vm1369_vm4, %v1363_v32  ;;  %1371 = vst.msk [vmem:[%s1850_s27 + $0x4] sm:$0x7] %vm1369_vm4, %v1364_v33  ;;  %v1367_v39 = vpack.c.bf16 %v1361_v38, %v1361_v38  ;;  %v1356_v40 = vmul.f32 0.2, %v1344_v26 }
 0x20f   : > { %1372 = vst.msk [vmem:[%s1850_s27 + $0x8] sm:$0x7] %vm1369_vm4, %v1365_v36  ;;  %1373 = vst.msk [vmem:[%s1850_s27 + $0xc] sm:$0x7] %vm1369_vm4, %v1366_v37 }
 0x210   : > { %1374 = vst.msk [vmem:[%s1850_s27 + $0x10] sm:$0x7] %vm1369_vm4, %v1367_v39  ;;  %v1362_v41 = vsel %vm1350_vm10, %v1344_v26, %v1356_v40 }
 0x211   : > { %v1368_v42 = vpack.c.bf16 %v1362_v41, %v1362_v41 }
 0x213   : > { %1375 = vst.msk [vmem:[%s1850_s27 + $0x14] sm:$0x7] %vm1369_vm4, %v1368_v42 }
 0x214 PF: > { %s15_s18 = sadd.s32 1, %s1795_s18  }
 0x215   : > { %p12_p5 = scmp.ge.s32.totalorder %s15_s18, 4  }
 0x217   :  { %14 = sbr.rel (!%p12_p5) target bundleno = 1 (0x1), region = 108 }

// kernel: discriminator_forward.8
= control target key start
LH: loop header
LB: loop body
LE: loop exit
PB: predicated region body
PF: predicated region fallthrough
CT: control target
= control target key end

     0   :  { %s1996_s18 = smov 0   ;;  %s2245_s0 = inlined_call_operand.vmem [shape: bf16[2,6,6,32], index: 0, kind: input, shape index: {}]   ;;  %s2246_s1 = inlined_call_operand.vmem [shape: bf16[16,32,64], index: 1, kind: input, shape index: {}]   ;;  %s2247_s2 = inlined_call_operand.vmem [shape: f32[1,64], index: 2, kind: input, shape index: {}]   ;;  %s2248_s3 = inlined_call_operand.vmem [shape: f32[1,64], index: 3, kind: input, shape index: {}]   ;;  %s2249_s4 = inlined_call_operand.vmem [shape: f32[1,64], index: 4, kind: input, shape index: {}]   ;;  %s2250_s5 = inlined_call_operand.vmem [shape: bf16[2,3,3,64], index: 5, kind: output, shape index: {}]  }
   0x1 LB: > { %s1514_s19 = sadd.s32 4294967295, %s1958_s18   ;;  %p1518_p0 = scmp.ge.s32.totalorder %s1958_s18, 1  ;;  %s1958_s18 = sphi %s1996_s18, %s15_s18  }
   0x2   : > { %p187_p1 = scmp.lt.s32.totalorder %s1958_s18, 3 }
   0x4   : > { %p188_p2 = pnand %p1518_p0, %p187_p1 }
   0x5   : > { %p215_p3 = scmp.lt.s32.totalorder (!%p188_p2), %s1514_s19, 1  ;;  %s2014_s28 = smov (!%p188_p2), 0  }
   0x6   : > { %191 = sbr.rel (%p188_p2) target bundleno = 408 (0x198), region = 40 }
   0xd   : > { %s2252_s19 = smov (!%p215_p3, %s1514_s19), 1 }
   0xe   : > { %s1886_s20 = smul.u32 24, %s2252_s19 }
   0xf   : > { %s1887_s21 = smul.u32 6, %s2252_s19 }
  0x10   : > { %s2007_s24 = scalar_lea.vmem %s2245_s0, %s1886_s20 }
  0x11   : > { %s2012_s27 = scalar_lea.vmem %s2250_s5, %s1887_s21 }
  0x12 LB: >> { %v1906_v0 = vld [vmem:[%s2246_s1 + $0x80] sm:$0xff]   ;;  %v1964_v1 = vmov 0.0   ;;  %v1907_v2 = vld [vmem:[%s2246_s1 + $0x10] sm:$0xff]   ;;  %v1908_v3 = vld [vmem:[%s2246_s1 + $0x88] sm:$0xff]   ;;  %vm1965_vm0 = vmmov 0   ;;  %s1521_s10 = sshll.u32 %s1962_s28, 2  ;;  %s1962_s28 = sphi %s2014_s28, %s231_s28  }
  0x13   : >> { %1765 = vmatprep.subr.bf16.mxu0 %v1964_v1  ;;  %1701 = vmatprep.subr.bf16.mxu1 %v1964_v1  ;;  %v1909_v4 = vld [vmem:[%s2246_s1 + $0x18] sm:$0xff]   ;;  %s2040_s13 = scalar_lea.vmem %s2007_s24, %s1521_s10  ;;  %vm266_vm1 = vcmask 261120   ;;  %v1913_v9 = vld [vmem:[%s2246_s1 + $0x90] sm:$0xff]   ;;  %v1912_v14 = vld [vmem:[%s2246_s1] sm:$0xff]   ;;  %vm1315_vm2 = vcmask 518144   ;;  %s1314_s11 = scalar_lea.vmem [#allocation2], %s1521_s10 }
  0x14   : >> { %1766 = vmatpush3.bf16.msra.mxu0 %v1906_v0  ;;  %1769 = vmatprep.mubr.msk.bf16.mxu0 %vm1965_vm0, %v1964_v1  ;;  %v1582_v5 = vld [vmem:[%s2040_s13 + $0x8] sm:$0x3]  ;;  %v234_v6 = vld [vmem:[%s2040_s13] sm:$0x3]  ;;  %v1915_v15 = vld [vmem:[%s2246_s1 + $0x98] sm:$0xff]   ;;  %s231_s28 = sadd.s32 1, %s1962_s28  }
  0x15   : >> { %1702 = vmatpush3.bf16.msra.mxu1 %v1907_v2  ;;  %1767 = vmatprep.subr.bf16.mxu0 %v1964_v1  ;;  %v1594_v7 = vcombine.low %v1582_v5, %v1582_v5  ;;  %v1526_v8 = vcombine.low %v234_v6, %v234_v6  ;;  %v1914_v19 = vld [vmem:[%s2246_s1 + $0x8] sm:$0xff]   ;;  %v1917_v21 = vld [vmem:[%s2246_s1 + $0xa0] sm:$0xff]   ;;  %v1923_v28 = vld [vmem:[%s2246_s1 + $0xb0] sm:$0xff]   ;;  %p228_p4 = scmp.ge.s32.totalorder %s231_s28, 3  }
  0x16   : >> { %1703 = vmatprep.subr.bf16.mxu1 %v1964_v1  ;;  %1705 = vmatprep.mubr.msk.bf16.mxu1 %vm1965_vm0, %v1964_v1  ;;  %v1916_v22 = vld [vmem:[%s2246_s1 + $0x20] sm:$0xff]   ;;  %v1919_v23 = vld [vmem:[%s2246_s1 + $0xa8] sm:$0xff]   ;;  %v1922_v32 = vld [vmem:[%s2246_s1 + $0x30] sm:$0xff]   ;;  %vm1352_vm3 = vcmask (%p228_p4), 523264   ;;  %vm1429_vm4 = vcmask (%p228_p4), 517120  }
  0x17   : >> { %v248_v10 = vshrl.u32 %v1526_v8, 16  ;;  %v250_v11 = vshll.u32 %v1526_v8, 16  ;;  %v847_v12 = vshll.u32 %v1594_v7, 16  ;;  %v845_v17 = vshrl.u32 %v1594_v7, 16  ;;  %v1918_v25 = vld [vmem:[%s2246_s1 + $0x28] sm:$0xff]   ;;  %v1925_v33 = vld [vmem:[%s2246_s1 + $0xb8] sm:$0xff]  }
  0x18   : >> { %1768 = vmatpush3.bf16.msra.mxu0 %v1908_v3  ;;  %v1920_v24 = vld [vmem:[%s2040_s13 + $0x8] ss:$0 sps:$4 sm:$0x66]   ;;  %v1921_v27 = vld [vmem:[%s2040_s13] ss:$0 sps:$4 sm:$0x66]  }
  0x19   : >> { %1704 = vmatpush3.bf16.msra.mxu1 %v1909_v4  ;;  %1773 = vmatprep.subr.bf16.mxu0 %v1964_v1  ;;  %v252_v13 = vrot.slane %v250_v11, 1  ;;  %v849_v18 = vrot.slane %v847_v12, 1  ;;  %v916_v26 = vrot.slane %v1920_v24, 1  ;;  %v979_v29 = vshrl.u32 %v1920_v24, 16  ;;  %v1924_v38 = vld [vmem:[%s2246_s1 + $0x38] sm:$0xff]   ;;  %v1927_v42 = vld [vmem:[%s2246_s1 + $0xc0] sm:$0xff]  }
  0x1a   : >> { %1709 = vmatprep.subr.bf16.mxu1 %v1964_v1  ;;  %v982_v30 = vshll.u32 %v1920_v24, 16  ;;  %v374_v31 = vrot.slane %v1921_v27, 1  ;;  %v437_v34 = vshrl.u32 %v1921_v27, 16  ;;  %v440_v35 = vshll.u32 %v1921_v27, 16  ;;  %v1926_v44 = vld [vmem:[%s2246_s1 + $0x40] sm:$0xff]   ;;  %v1929_v45 = vld [vmem:[%s2246_s1 + $0xc8] sm:$0xff]  }
  0x1b   : >> { %1770 = vmatmul.mubr.msk.bf16.vlgmr.msra.gmra.mrb[0].mxu0 %vm266_vm1, %v1582_v5  ;;  %v253_v16 = vor.u32 %v252_v13, %v248_v10  ;;  %v850_v20 = vor.u32 %v849_v18, %v845_v17  ;;  %v981_v36 = vrot.slane %v979_v29, 1  ;;  %v1928_v46 = vld [vmem:[%s2246_s1 + $0x48] sm:$0xff]   ;;  %v1933_v49 = vld [vmem:[%s2246_s1 + $0xd0] sm:$0xff]   ;;  %v1549_v50 = vld [vmem:[%s2040_s13 + $0x4] sm:$0x3] }
  0x1c   : >> { %1774 = vmatpush3.bf16.msra.mxu0 %v1913_v9  ;;  %1777 = vmatprep.mubr.msk.bf16.mxu0 %vm1965_vm0, %v1964_v1  ;;  %v984_v37 = vrot.slane %v982_v30, 2  ;;  %v439_v40 = vrot.slane %v437_v34, 1  ;;  %v442_v41 = vrot.slane %v440_v35, 2  ;;  %v1615_v47 = vld [vmem:[%s2040_s13 + $0xc] sm:$0x3]  ;;  %v1561_v52 = vcombine.low %v1549_v50, %v1549_v50  ;;  %v1932_v53 = vld [vmem:[%s2246_s1 + $0x50] sm:$0xff]  }
  0x1d   : >> { %1775 = vmatprep.subr.bf16.mxu0 %v1964_v1  ;;  %1706 = vmatmul.mubr.msk.bf16.vlgmr.msra.gmra.mrb[0].mxu1 %vm266_vm1, %v253_v16  ;;  %v1627_v48 = vcombine.low %v1615_v47, %v1615_v47  ;;  %v1935_v54 = vld [vmem:[%s2246_s1 + $0xd8] sm:$0xff]   ;;  %v1937_v62 = vld [vmem:[%s2246_s1 + $0xe0] sm:$0xff]   ;;  %v1939_v2 = vld [vmem:[%s2246_s1 + $0xe8] sm:$0xff]   ;;  %vm1430_vm5 = vsmask.f32 (%p228_p4), 1280 }
  0x1e   : >> { %1710 = vmatpush3.bf16.msra.mxu1 %v1912_v14  ;;  %1713 = vmatprep.mubr.msk.bf16.mxu1 %vm1965_vm0, %v1964_v1  ;;  %v985_v39 = vor.u32 %v984_v37, %v981_v36  ;;  %v443_v43 = vor.u32 %v442_v41, %v439_v40  ;;  %v576_v57 = vshll.u32 %v1561_v52, 16  ;;  %v1934_v58 = vld [vmem:[%s2246_s1 + $0x58] sm:$0xff]   ;;  %v574_v60 = vshrl.u32 %v1561_v52, 16  ;;  %v1936_v0 = vld [vmem:[%s2246_s1 + $0x60] sm:$0xff]   ;;  %v1938_v4 = vld [vmem:[%s2246_s1 + $0x68] sm:$0xff]  }
  0x1f   : >> { %1711 = vmatprep.subr.bf16.mxu1 %v1964_v1  ;;  %v1118_v51 = vshll.u32 %v1627_v48, 16  ;;  %v1116_v55 = vshrl.u32 %v1627_v48, 16  ;;  %v1940_v3 = vld [vmem:[%s2040_s13 + $0xc] ss:$0 sps:$4 sm:$0x66]   ;;  %v1943_v7 = vld [vmem:[%s2246_s1 + $0xf0] sm:$0xff]   ;;  %vm1431_vm9 = vmand (%p228_p4), %vm1429_vm4, %vm1430_vm5 }
  0x20   : >> { %1776 = vmatpush3.bf16.msra.mxu0 %v1915_v15  ;;  %v578_v61 = vrot.slane %v576_v57, 1  ;;  %v1187_v5 = vrot.slane %v1940_v3, 1  ;;  %v1250_v9 = vshrl.u32 %v1940_v3, 16  ;;  %v1253_v10 = vshll.u32 %v1940_v3, 16  ;;  %v1942_v11 = vld [vmem:[%s2246_s1 + $0x70] sm:$0xff]   ;;  %v1945_v12 = vld [vmem:[%s2246_s1 + $0xf8] sm:$0xff]  }
  0x21   : >> { %1781 = vmatprep.subr.bf16.mxu0 %v1964_v1  ;;  %v1120_v56 = vrot.slane %v1118_v51, 1  ;;  %v1944_v17 = vld [vmem:[%s2246_s1 + $0x78] sm:$0xff]  }
  0x22   : >> { %1712 = vmatpush3.bf16.msra.mxu1 %v1914_v19  ;;  %v579_v63 = vor.u32 %v578_v61, %v574_v60  ;;  %v1252_v13 = vrot.slane %v1250_v9, 1  ;;  %v1255_v14 = vrot.slane %v1253_v10, 2 }
  0x23   : >> { %1717 = vmatprep.subr.bf16.mxu1 %v1964_v1  ;;  %v1121_v59 = vor.u32 %v1120_v56, %v1116_v55 }
  0x24   : >> { %v1256_v18 = vor.u32 %v1255_v14, %v1252_v13 }
  0x27   : >> { %1778 = vmatmul.mubr.msk.bf16.vlgmr.msra.gmra.mrb[0].mxu0 %vm266_vm1, %v850_v20 }
  0x28   : >> { %1782 = vmatpush3.bf16.msra.mxu0 %v1917_v21  ;;  %1785 = vmatprep.mubr.msk.bf16.mxu0 %vm1965_vm0, %v1964_v1 }
  0x29   : >> { %1783 = vmatprep.subr.bf16.mxu0 %v1964_v1  ;;  %1714 = vmatmul.mubr.msk.bf16.vlgmr.msra.gmra.mrb[0].mxu1 %vm266_vm1, %v234_v6  ;;  %v1941_v6 = vld [vmem:[%s2040_s13 + $0x4] ss:$0 sps:$4 sm:$0x66]  }
  0x2a   : >> { %1718 = vmatpush3.bf16.msra.mxu1 %v1916_v22  ;;  %1721 = vmatprep.mubr.msk.bf16.mxu1 %vm1965_vm0, %v1964_v1  ;;  %v645_v8 = vrot.slane %v1941_v6, 1  ;;  %v708_v15 = vshrl.u32 %v1941_v6, 16  ;;  %v711_v16 = vshll.u32 %v1941_v6, 16 }
  0x2b   : >> { %1719 = vmatprep.subr.bf16.mxu1 %v1964_v1 }
  0x2c   : >> { %1784 = vmatpush3.bf16.msra.mxu0 %v1919_v23  ;;  %v710_v19 = vrot.slane %v708_v15, 1  ;;  %v713_v20 = vrot.slane %v711_v16, 2 }
  0x2d   : >> { %1789 = vmatprep.subr.bf16.mxu0 %v1964_v1 }
  0x2e   : >> { %1720 = vmatpush3.bf16.msra.mxu1 %v1918_v25  ;;  %v714_v21 = vor.u32 %v713_v20, %v710_v19 }
  0x2f   : >> { %1725 = vmatprep.subr.bf16.mxu1 %v1964_v1 }
  0x33   : >> { %1786 = vmatmul.mubr.msk.bf16.vlgmr.msra.gmra.mrb[0].mxu0 %vm266_vm1, %v916_v26 }
  0x34   : >> { %1790 = vmatpush3.bf16.msra.mxu0 %v1923_v28  ;;  %1793 = vmatprep.mubr.msk.bf16.mxu0 %vm1965_vm0, %v1964_v1 }
  0x35   : >> { %1791 = vmatprep.subr.bf16.mxu0 %v1964_v1  ;;  %1722 = vmatmul.mubr.msk.bf16.vlgmr.msra.gmra.mrb[0].mxu1 %vm266_vm1, %v374_v31 }
  0x36   : >> { %1726 = vmatpush3.bf16.msra.mxu1 %v1922_v32  ;;  %1729 = vmatprep.mubr.msk.bf16.mxu1 %vm1965_vm0, %v1964_v1 }
  0x37   : >> { %1727 = vmatprep.subr.bf16.mxu1 %v1964_v1 }
  0x38   : >> { %1792 = vmatpush3.bf16.msra.mxu0 %v1925_v33  ;;  %v1648_v33 = vld [vmem:[%s2247_s2] ss:$0 sm:$0xff] (%p228_p4) }
  0x39   : >> { %1797 = vmatprep.subr.bf16.mxu0 %v1964_v1 }
  0x3a   : >> { %1728 = vmatpush3.bf16.msra.mxu1 %v1924_v38 }
  0x3b   : >> { %1733 = vmatprep.subr.bf16.mxu1 %v1964_v1 }
  0x3f   : >> { %1794 = vmatmul.mubr.msk.bf16.vlgmr.msra.gmra.mrb[0].mxu0 %vm266_vm1, %v985_v39 }
  0x40   : >> { %1798 = vmatpush3.bf16.msra.mxu0 %v1927_v42  ;;  %1801 = vmatprep.mubr.msk.bf16.mxu0 %vm1965_vm0, %v1964_v1 }
  0x41   : >> { %1799 = vmatprep.subr.bf16.mxu0 %v1964_v1  ;;  %1730 = vmatmul.mubr.msk.bf16.vlgmr.msra.gmra.mrb[0].mxu1 %vm266_vm1, %v443_v43 }
  0x42   : >> { %1734 = vmatpush3.bf16.msra.mxu1 %v1926_v44  ;;  %1737 = vmatprep.mubr.msk.bf16.mxu1 %vm1965_vm0, %v1964_v1 }
  0x43   : >> { %1735 = vmatprep.subr.bf16.mxu1 %v1964_v1 }
  0x44   : >> { %1800 = vmatpush3.bf16.msra.mxu0 %v1929_v45 }
  0x45   : >> { %1805 = vmatprep.subr.bf16.mxu0 %v1964_v1 }
  0x46   : >> { %1736 = vmatpush3.bf16.msra.mxu1 %v1928_v46 }
  0x47   : >> { %1741 = vmatprep.subr.bf16.mxu1 %v1964_v1 }
  0x4b   : >> { %1802 = vmatmul.mubr.msk.bf16.vlgmr.msra.gmra.mrb[0].mxu0 %vm266_vm1, %v1615_v47 }
  0x4c   : >> { %1806 = vmatpush3.bf16.msra.mxu0 %v1933_v49  ;;  %1809 = vmatprep.mubr.msk.bf16.mxu0 %vm1965_vm0, %v1964_v1 }
  0x4d   : >> { %1807 = vmatprep.subr.bf16.mxu0 %v1964_v1  ;;  %1738 = vmatmul.mubr.msk.bf16.vlgmr.msra.gmra.mrb[0].mxu1 %vm266_vm1, %v1549_v50 }
  0x4e   : >> { %1742 = vmatpush3.bf16.msra.mxu1 %v1932_v53  ;;  %1745 = vmatprep.mubr.msk.bf16.mxu1 %vm1965_vm0, %v1964_v1 }
  0x4f   : >> { %1743 = vmatprep.subr.bf16.mxu1 %v1964_v1 }
  0x50   : >> { %1808 = vmatpush3.bf16.msra.mxu0 %v1935_v54 }
  0x51   : >> { %1813 = vmatprep.subr.bf16.mxu0 %v1964_v1 }
  0x52   : >> { %1744 = vmatpush3.bf16.msra.mxu1 %v1934_v58 }
  0x53   : >> { %1749 = vmatprep.subr.bf16.mxu1 %v1964_v1 }
  0x57   : >> { %1810 = vmatmul.mubr.msk.bf16.vlgmr.msra.gmra.mrb[0].mxu0 %vm266_vm1, %v1121_v59 }
  0x58   : >> { %1814 = vmatpush3.bf16.msra.mxu0 %v1937_v62  ;;  %1817 = vmatprep.mubr.msk.bf16.mxu0 %vm1965_vm0, %v1964_v1 }
  0x59   : >> { %1815 = vmatprep.subr.bf16.mxu0 %v1964_v1  ;;  %1746 = vmatmul.mubr.msk.bf16.vlgmr.msra.gmra.mrb[0].mxu1 %vm266_vm1, %v579_v63 }
  0x5a   : >> { %1750 = vmatpush3.bf16.msra.mxu1 %v1936_v0  ;;  %1753 = vmatprep.mubr.msk.bf16.mxu1 %vm1965_vm0, %v1964_v1 }
  0x5b   : >> { %1751 = vmatprep.subr.bf16.mxu1 %v1964_v1 }
  0x5c   : >> { %1816 = vmatpush3.bf16.msra.mxu0 %v1939_v2 }
  0x5d   : >> { %1821 = vmatprep.subr.bf16.mxu0 %v1964_v1 }
  0x5e   : >> { %1752 = vmatpush3.bf16.msra.mxu1 %v1938_v4 }
  0x5f   : >> { %1757 = vmatprep.subr.bf16.mxu1 %v1964_v1 }
  0x63   : >> { %1818 = vmatmul.mubr.msk.bf16.vlgmr.msra.gmra.mrb[0].mxu0 %vm266_vm1, %v1187_v5 }
  0x64   : >> { %1822 = vmatpush3.bf16.msra.mxu0 %v1943_v7  ;;  %1825 = vmatprep.mubr.msk.bf16.mxu0 %vm1965_vm0, %v1964_v1 }
  0x65   : >> { %1823 = vmatprep.subr.bf16.mxu0 %v1964_v1  ;;  %1754 = vmatmul.mubr.msk.bf16.vlgmr.msra.gmra.mrb[0].mxu1 %vm266_vm1, %v645_v8 }
  0x66   : >> { %1758 = vmatpush3.bf16.msra.mxu1 %v1942_v11  ;;  %1761 = vmatprep.mubr.msk.bf16.mxu1 %vm1965_vm0, %v1964_v1 }
  0x67   : >> { %1759 = vmatprep.subr.bf16.mxu1 %v1964_v1 }
  0x68   : >> { %1824 = vmatpush3.bf16.msra.mxu0 %v1945_v12 }
  0x6a   : >> { %1760 = vmatpush3.bf16.msra.mxu1 %v1944_v17 }
  0x6f   : >> { %1826 = vmatmul.mubr.msk.bf16.vlgmr.msra.gmra.mrb[0].mxu0 %vm266_vm1, %v1256_v18 }
  0x71   : >> { %1762 = vmatmul.mubr.msk.bf16.vlgmr.msra.gmra.mrb[0].mxu1 %vm266_vm1, %v714_v21 }
 0x141   : > { %230 = sbr.rel (!%p228_p4) target bundleno = 18 (0x12), region = 97 }
 0x142   : >> { %v1306_v22 = vpop.f32.mrb[0].mxu0 }
 0x143   : >> { %v1827_v23 = vpop.f32.mrb[1].mxu0 }
 0x144   : >> { %v1309_v24 = vpop.f32.mrb[2].mxu0  ;;  %v764_v26 = vpop.f32.mrb[0].mxu1 }
 0x145   : >> { %v1828_v25 = vpop.f32.mrb[3].mxu0  ;;  %v1829_v27 = vadd.f32 %v1306_v22, %v764_v26  ;;  %v1763_v28 = vpop.f32.mrb[1].mxu1 }
 0x146   : >> { %v767_v29 = vpop.f32.mrb[2].mxu1 }
 0x147   : >> { %1316 = vst.msk [vmem:[%s1314_s11] sm:$0x7] %vm1315_vm2, %v1829_v27  ;;  %v1764_v1 = vpop.f32.mrb[3].mxu1 }
 0x14e   : > { %v1317_v30 = vld [vmem:[#allocation2] sm:$0x7]  ;;  %v1318_v31 = vld [vmem:[#allocation2 + $0x4] sm:$0x7]  ;;  %v1319_v32 = vld [vmem:[#allocation2 + $0x8] sm:$0x7] }
 0x14f   : > { %v1327_v34 = vadd.f32 %v1648_v33, %v1317_v30  ;;  %v1328_v35 = vadd.f32 %v1648_v33, %v1318_v31  ;;  %v1329_v36 = vadd.f32 %v1648_v33, %v1319_v32 }
 0x151   : > { %v1331_v37 = vsel %vm1315_vm2, %v1327_v34, 0.0  ;;  %v1338_v38 = vsel %vm1315_vm2, %v1328_v35, 0.0  ;;  %v1345_v39 = vsel %vm1315_vm2, %v1329_v36, 0.0 }
 0x152   : > { %v1332_v40 = vrot.slane %v1331_v37, 4  ;;  %v1339_v41 = vrot.slane %v1338_v38, 4  ;;  %v1346_v42 = vrot.slane %v1345_v39, 4 }
 0x154   : > { %v1333_v43 = vadd.f32 %v1332_v40, %v1331_v37  ;;  %v1340_v44 = vadd.f32 %v1339_v41, %v1338_v38  ;;  %v1347_v45 = vadd.f32 %v1346_v42, %v1345_v39  ;;  %v1650_v39 = vld [vmem:[%s2249_s4] ss:$0 sm:$0xff] }
 0x156   : > { %v1334_v46 = vrot.slane %v1333_v43, 2  ;;  %v1341_v47 = vrot.slane %v1340_v44, 2  ;;  %v1348_v48 = vrot.slane %v1347_v45, 2 }
 0x158   : > { %v1335_v49 = vadd.f32 %v1334_v46, %v1333_v43  ;;  %v1342_v50 = vadd.f32 %v1341_v47, %v1340_v44  ;;  %v1349_v51 = vadd.f32 %v1348_v48, %v1347_v45 }
 0x15a   : > { %v1336_v52 = vrot.slane %v1335_v49, 1  ;;  %v1343_v53 = vrot.slane %v1342_v50, 1  ;;  %v1350_v54 = vrot.slane %v1349_v51, 1 }
 0x15c   : > { %v1337_v55 = vadd.f32 %v1336_v52, %v1335_v49  ;;  %v1344_v56 = vadd.f32 %v1343_v53, %v1342_v50  ;;  %v1351_v57 = vadd.f32 %v1350_v54, %v1349_v51  ;;  %v1432_v50 = vld [vmem:[%s2012_s27] sm:$0x3]  ;;  %v1435_v52 = vld [vmem:[%s2012_s27 + $0x2] sm:$0x3] }
 0x15e   : > { %v1353_v58 = vsel %vm1352_vm3, %v1337_v55, 0.0  ;;  %v1354_v59 = vsel %vm1352_vm3, %v1344_v56, 0.0  ;;  %v1356_v60 = vsel %vm1352_vm3, %v1351_v57, 0.0  ;;  %v1438_v56 = vld [vmem:[%s2012_s27 + $0x4] sm:$0x3] }
 0x15f   : > { %v1355_v61 = vadd.f32 %v1354_v59, %v1353_v58 }
 0x161   : > { %v1357_v62 = vadd.f32 %v1356_v60, %v1355_v61 }
 0x163   : > { %v1358_v63 = vmul.f32 0.11111111, %v1357_v62 }
 0x165   : > { %v1359_v0 = vsub.f32 %v1327_v34, %v1358_v63  ;;  %v1360_v2 = vsub.f32 %v1328_v35, %v1358_v63  ;;  %v1361_v3 = vsub.f32 %v1329_v36, %v1358_v63  ;;  %v1649_v35 = vld [vmem:[%s2248_s3] ss:$0 sm:$0xff] }
 0x167   : > { %v1362_v4 = vmul.f32 %v1359_v0, %v1359_v0  ;;  %v1363_v5 = vmul.f32 %v1360_v2, %v1360_v2  ;;  %v1364_v6 = vmul.f32 %v1361_v3, %v1361_v3 }
 0x169   : > { %v1365_v7 = vsel %vm1315_vm2, %v1362_v4, 0.0  ;;  %v1372_v8 = vsel %vm1315_vm2, %v1363_v5, 0.0  ;;  %v1379_v9 = vsel %vm1315_vm2, %v1364_v6, 0.0 }
 0x16a   : > { %v1366_v10 = vrot.slane %v1365_v7, 4  ;;  %v1373_v11 = vrot.slane %v1372_v8, 4  ;;  %v1380_v12 = vrot.slane %v1379_v9, 4 }
 0x16c   : > { %v1367_v13 = vadd.f32 %v1366_v10, %v1365_v7  ;;  %v1374_v14 = vadd.f32 %v1373_v11, %v1372_v8  ;;  %v1381_v15 = vadd.f32 %v1380_v12, %v1379_v9 }
 0x16e   : > { %v1368_v16 = vrot.slane %v1367_v13, 2  ;;  %v1375_v17 = vrot.slane %v1374_v14, 2  ;;  %v1382_v18 = vrot.slane %v1381_v15, 2 }
 0x170   : > { %v1369_v19 = vadd.f32 %v1368_v16, %v1367_v13  ;;  %v1376_v20 = vadd.f32 %v1375_v17, %v1374_v14  ;;  %v1383_v21 = vadd.f32 %v1382_v18, %v1381_v15 }
 0x172   : > { %v1370_v22 = vrot.slane %v1369_v19, 1  ;;  %v1377_v23 = vrot.slane %v1376_v20, 1  ;;  %v1384_v24 = vrot.slane %v1383_v21, 1 }
 0x174   : > { %v1371_v25 = vadd.f32 %v1370_v22, %v1369_v19  ;;  %v1378_v26 = vadd.f32 %v1377_v23, %v1376_v20  ;;  %v1385_v27 = vadd.f32 %v1384_v24, %v1383_v21 }
 0x176   : > { %v1386_v28 = vsel %vm1352_vm3, %v1371_v25, 0.0  ;;  %v1387_v29 = vsel %vm1352_vm3, %v1378_v26, 0.0  ;;  %v1389_v1 = vsel %vm1352_vm3, %v1385_v27, 0.0 }
 0x177   : > { %v1388_v30 = vadd.f32 %v1387_v29, %v1386_v28 }
 0x179   : > { %v1390_v31 = vadd.f32 %v1389_v1, %v1388_v30 }
 0x17b   : > { %v1391_v32 = vmul.f32 0.11111111, %v1390_v31 }
 0x17d   : > { %v1392_v33 = vadd.f32 1e-05, %v1391_v32 }
 0x17f   : > { %1946 = vrsqrt.f32 %v1392_v33 }
 0x189   : > { %v1947_v34 = vpop.eup %1946 }
 0x18a   : > { %v1394_v36 = vmul.f32 %v1947_v34, %v1359_v0  ;;  %v1395_v37 = vmul.f32 %v1947_v34, %v1360_v2  ;;  %v1396_v38 = vmul.f32 %v1947_v34, %v1361_v3 }
 0x18c   : > { %v1404_v40 = vmul.f32 %v1649_v35, %v1394_v36  ;;  %v1405_v41 = vmul.f32 %v1649_v35, %v1395_v37  ;;  %v1406_v42 = vmul.f32 %v1649_v35, %v1396_v38 }
 0x18e   : > { %v1414_v43 = vadd.f32 %v1650_v39, %v1404_v40  ;;  %v1415_v44 = vadd.f32 %v1650_v39, %v1405_v41  ;;  %v1416_v45 = vadd.f32 %v1650_v39, %v1406_v42 }
 0x190   : > { %vm1417_vm6 = vcmp.ge.f32.partialorder %v1414_v43, 0.0  ;;  %v1420_v46 = vmul.f32 0.2, %v1414_v43  ;;  %vm1418_vm7 = vcmp.ge.f32.partialorder %v1415_v44, 0.0  ;;  %v1421_v47 = vmul.f32 0.2, %v1415_v44 }
 0x191   : > { %vm1419_vm8 = vcmp.ge.f32.partialorder %v1416_v45, 0.0  ;;  %v1422_v48 = vmul.f32 0.2, %v1416_v45 }
 0x192   : > { %v1423_v49 = vsel %vm1417_vm6, %v1414_v43, %v1420_v46  ;;  %v1424_v51 = vsel %vm1418_vm7, %v1415_v44, %v1421_v47 }
 0x193   : > { %v1426_v53 = vpack.c.bf16 %v1423_v49, %v1423_v49  ;;  %v1427_v54 = vpack.c.bf16 %v1424_v51, %v1424_v51  ;;  %v1425_v55 = vsel %vm1419_vm8, %v1416_v45, %v1422_v48 }
 0x194   : > { %v1428_v57 = vpack.c.bf16 %v1425_v55, %v1425_v55 }
 0x195   : > { %v1433_v58 = vsel %vm1431_vm9, %v1426_v53, %v1432_v50  ;;  %v1436_v59 = vsel %vm1431_vm9, %v1427_v54, %v1435_v52 }
 0x196   : > { %1434 = vst [vmem:[%s2012_s27] sm:$0x3] %v1433_v58  ;;  %1437 = vst [vmem:[%s2012_s27 + $0x2] sm:$0x3] %v1436_v59  ;;  %v1439_v60 = vsel %vm1431_vm9, %v1428_v57, %v1438_v56 }
 0x197   : > { %1440 = vst [vmem:[%s2012_s27 + $0x4] sm:$0x3] %v1439_v60 }
 0x198 PF: > { %s15_s18 = sadd.s32 1, %s1958_s18  }
 0x199   : > { %p12_p5 = scmp.ge.s32.totalorder %s15_s18, 4  }
 0x19b   :  { %14 = sbr.rel (!%p12_p5) target bundleno = 1 (0x1), region = 108 }

// kernel: discriminator_forward.9
= control target key start
LH: loop header
LB: loop body
LE: loop exit
PB: predicated region body
PF: predicated region fallthrough
CT: control target
= control target key end

     0   :  { %s2428_s24 = smov 0   ;;  %s2787_s0 = inlined_call_operand.vmem [shape: bf16[2,5,5,64], index: 0, kind: input, shape index: {}]   ;;  %s2788_s1 = inlined_call_operand.vmem [shape: bf16[16,64,1], index: 1, kind: input, shape index: {}]   ;;  %s2789_s2 = inlined_call_operand.<no memory space> [shape: f32[1,1], index: 2, kind: input, shape index: {}]   ;;  %s2790_s5 = inlined_call_operand.vmem [shape: f32[2,2,2,1], index: 5, kind: output, shape index: {}]   ;;  %s2791_s3 = inlined_call_operand.<no memory space> [shape: f32[1,1], index: 3, kind: input, shape index: {}]   ;;  %s2792_s4 = inlined_call_operand.<no memory space> [shape: f32[1,1], index: 4, kind: input, shape index: {}]  }
   0x1   :  { %v10_v0 = vstv %s2789_s2  ;;  %v12_v1 = vstv %s2791_s3  ;;  %v14_v2 = vstv %s2792_s4 }
   0x2   :  { %11 = vst [vmem:[#allocation3] sm:$0x1] %v10_v0  ;;  %13 = vst [vmem:[#allocation4] sm:$0x1] %v12_v1 }
   0x3   :  { %15 = vst [vmem:[#allocation5] sm:$0x1] %v14_v2 }
   0x4 LB: > { %s1704_s2 = sadd.s32 4294967295, %s2381_s24   ;;  %p1708_p0 = scmp.ge.s32.totalorder %s2381_s24, 1  ;;  %s2381_s24 = sphi %s2428_s24, %s21_s24  }
   0x5   : > { %p193_p1 = scmp.lt.s32.totalorder %s2381_s24, 3 }
   0x7   : > { %p194_p2 = pnand %p1708_p0, %p193_p1 }
   0x8   : > { %p221_p3 = scmp.lt.s32.totalorder (!%p194_p2), %s1704_s2, 1  ;;  %s2446_s6 = smov (!%p194_p2), 0  }
   0x9   : > { %197 = sbr.rel (%p194_p2) target bundleno = 379 (0x17b), region = 40 }
  0x10   : > { %s2794_s2 = smov (!%p221_p3, %s1704_s2), 1 }
  0x11   : > { %s2276_s3 = smul.u32 20, %s2794_s2  ;;  %s1946_s4 = sshll.u32 %s2794_s2, 2 }
  0x12   : > { %s2439_s27 = scalar_lea.vmem %s2790_s5, %s1946_s4 }
  0x13   : > { %s2444_s30 = scalar_lea.vmem %s2787_s0, %s2276_s3 }
  0x14 LB: >> { %v2295_v3 = vld [vmem:[%s2788_s1 + $0x20] sm:$0xff]   ;;  %v2387_v4 = vmov 0.0   ;;  %v2297_v6 = vld [vmem:[%s2788_s1 + $0x28] sm:$0xff]   ;;  %vm2388_vm0 = vmmov 0   ;;  %s1712_s13 = sshll.u32 %s2385_s6, 2  ;;  %v2299_v8 = vld [vmem:[%s2788_s1 + $0x30] sm:$0xff]   ;;  %s2385_s6 = sphi %s2446_s6, %s237_s6  }
  0x15   : >> { %2027 = vmatprep.subr.bf16.mxu1 %v2387_v4  ;;  %2123 = vmatprep.subr.bf16.mxu0 %v2387_v4  ;;  %v2296_v5 = vld [vmem:[%s2788_s1 + $0x100] sm:$0xff]   ;;  %v2298_v7 = vld [vmem:[%s2788_s1 + $0x108] sm:$0xff]   ;;  %s2473_s16 = scalar_lea.vmem %s2444_s30, %s1712_s13  ;;  %v2300_v9 = vld [vmem:[%s2788_s1 + $0x110] sm:$0xff]   ;;  %vm293_vm1 = vcmask 523264   ;;  %s1940_s21 = sshll.u32 %s2385_s6, 1  ;;  %vm1597_vm2 = vcmask 1024  }
  0x16   : >> { %2028 = vmatpush3.bf16.msra.mxu1 %v2295_v3  ;;  %2035 = vmatprep.mubr.msk.bf16.mxu1 %vm2388_vm0, %v2387_v4  ;;  %v2303_v10 = vld [vmem:[%s2473_s16] ss:$0 sps:$4 sm:$0x33]   ;;  %v2301_v11 = vld [vmem:[%s2788_s1 + $0x38] sm:$0xff]   ;;  %v1821_v18 = vld [vmem:[%s2473_s16 + $0x8] sm:$0x1] }
  0x17   : >> { %2124 = vmatpush3.bf16.msra.mxu0 %v2296_v5  ;;  %2029 = vmatprep.subr.bf16.mxu1 %v2387_v4  ;;  %v263_v12 = vshrl.u32 %v2303_v10, 16  ;;  %v265_v13 = vshll.u32 %v2303_v10, 16  ;;  %v2302_v14 = vld [vmem:[%s2788_s1 + $0x118] sm:$0xff]   ;;  %v2304_v16 = vld [vmem:[%s2788_s1] sm:$0xff]   ;;  %v2306_v20 = vld [vmem:[%s2788_s1 + $0x8] sm:$0xff]   ;;  %s1596_s22 = scalar_lea.vmem [#allocation2], %s1940_s21 }
  0x18   : >> { %2125 = vmatprep.subr.bf16.mxu0 %v2387_v4  ;;  %2131 = vmatprep.mubr.msk.bf16.mxu0 %vm2388_vm0, %v2387_v4  ;;  %v2305_v19 = vld [vmem:[%s2788_s1 + $0x120] sm:$0xff]   ;;  %v2307_v21 = vld [vmem:[%s2788_s1 + $0x128] sm:$0xff]   ;;  %v2308_v23 = vld [vmem:[%s2788_s1 + $0x10] sm:$0xff]   ;;  %s237_s6 = sadd.s32 1, %s2385_s6  }
  0x19   : >> { %v267_v15 = vrot.slane %v265_v13, 1  ;;  %v2313_v22 = vld [vmem:[%s2473_s16 + $0x8] ss:$0 sps:$4 sm:$0x33]   ;;  %v2309_v25 = vld [vmem:[%s2788_s1 + $0x130] sm:$0xff]   ;;  %v2310_v26 = vld [vmem:[%s2788_s1 + $0x18] sm:$0xff]  }
  0x1a   : >> { %2030 = vmatpush3.bf16.msra.mxu1 %v2297_v6  ;;  %v1012_v24 = vshll.u32 %v2313_v22, 16  ;;  %v1010_v27 = vshrl.u32 %v2313_v22, 16  ;;  %v2311_v29 = vld [vmem:[%s2788_s1 + $0x138] sm:$0xff]   ;;  %v240_v30 = vld [vmem:[%s2473_s16] sm:$0x1]  ;;  %v2315_v34 = vld [vmem:[%s2788_s1 + $0x48] sm:$0xff]  }
  0x1b   : >> { %2126 = vmatpush3.bf16.msra.mxu0 %v2298_v7  ;;  %2031 = vmatprep.subr.bf16.mxu1 %v2387_v4  ;;  %v268_v17 = vor.u32 %v267_v15, %v263_v12  ;;  %v2312_v31 = vld [vmem:[%s2788_s1 + $0x40] sm:$0xff]   ;;  %v2316_v35 = vld [vmem:[%s2788_s1 + $0x148] sm:$0xff]   ;;  %v2317_v36 = vld [vmem:[%s2788_s1 + $0x50] sm:$0xff]   ;;  %p234_p4 = scmp.ge.s32.totalorder %s237_s6, 2  }
  0x1c   : >> { %2127 = vmatprep.subr.bf16.mxu0 %v2387_v4  ;;  %v1014_v28 = vrot.slane %v1012_v24, 1  ;;  %v2314_v33 = vld [vmem:[%s2788_s1 + $0x140] sm:$0xff]   ;;  %v2318_v37 = vld [vmem:[%s2788_s1 + $0x150] sm:$0xff]   ;;  %v2319_v39 = vld [vmem:[%s2788_s1 + $0x58] sm:$0xff]  }
  0x1d   : >> { %v2321_v38 = vld [vmem:[%s2473_s16] ss:$0 sps:$4 sm:$0x22]   ;;  %v2320_v40 = vld [vmem:[%s2788_s1 + $0x158] sm:$0xff]   ;;  %v2325_v48 = vld [vmem:[%s2788_s1 + $0x68] sm:$0xff]  }
  0x1e   : >> { %2032 = vmatpush3.bf16.msra.mxu1 %v2299_v8  ;;  %v1015_v32 = vor.u32 %v1014_v28, %v1010_v27  ;;  %v2323_v41 = vld [vmem:[%s2473_s16 + $0x8] ss:$0 sps:$4 sm:$0x22]   ;;  %v417_v42 = vrot.slane %v2321_v38, 1  ;;  %v2322_v43 = vld [vmem:[%s2788_s1 + $0x60] sm:$0xff]   ;;  %v2327_v54 = vld [vmem:[%s2788_s1 + $0x70] sm:$0xff]  }
  0x1f   : >> { %2128 = vmatpush3.bf16.msra.mxu0 %v2300_v9  ;;  %2033 = vmatprep.subr.bf16.mxu1 %v2387_v4  ;;  %v1097_v44 = vrot.slane %v2323_v41, 1  ;;  %v2331_v45 = vld [vmem:[%s2473_s16] ss:$0 sps:$4 sm:$0x66]   ;;  %v2326_v49 = vld [vmem:[%s2788_s1 + $0x168] sm:$0xff]   ;;  %v2328_v55 = vld [vmem:[%s2788_s1 + $0x170] sm:$0xff]  }
  0x20   : >> { %2129 = vmatprep.subr.bf16.mxu0 %v2387_v4  ;;  %v2324_v46 = vld [vmem:[%s2788_s1 + $0x160] sm:$0xff]   ;;  %v2333_v47 = vld [vmem:[%s2473_s16 + $0x8] ss:$0 sps:$4 sm:$0x66]   ;;  %v500_v50 = vshrl.u32 %v2331_v45, 16  ;;  %v503_v51 = vshll.u32 %v2331_v45, 16 }
  0x21   : >> { %v1180_v52 = vshrl.u32 %v2333_v47, 16  ;;  %v1183_v53 = vshll.u32 %v2333_v47, 16  ;;  %v2329_v56 = vld [vmem:[%s2788_s1 + $0x78] sm:$0xff]   ;;  %v2332_v63 = vld [vmem:[%s2788_s1 + $0x80] sm:$0xff]   ;;  %v2335_v2 = vld [vmem:[%s2788_s1 + $0x88] sm:$0xff]  }
  0x22   : >> { %2034 = vmatpush3.bf16.msra.mxu1 %v2301_v11  ;;  %v502_v57 = vrot.slane %v500_v50, 1  ;;  %v505_v58 = vrot.slane %v503_v51, 2  ;;  %v2330_v61 = vld [vmem:[%s2788_s1 + $0x178] sm:$0xff]   ;;  %v2334_v1 = vld [vmem:[%s2788_s1 + $0x180] sm:$0xff]   ;;  %v2336_v3 = vld [vmem:[%s2788_s1 + $0x188] sm:$0xff]  }
  0x23   : >> { %2130 = vmatpush3.bf16.msra.mxu0 %v2302_v14  ;;  %2039 = vmatprep.subr.bf16.mxu1 %v2387_v4  ;;  %v1182_v59 = vrot.slane %v1180_v52, 1  ;;  %v1185_v60 = vrot.slane %v1183_v53, 2  ;;  %v2337_v5 = vld [vmem:[%s2788_s1 + $0x90] sm:$0xff]   ;;  %v2339_v7 = vld [vmem:[%s2788_s1 + $0x98] sm:$0xff]   ;;  %v1761_v9 = vld [vmem:[%s2473_s16 + $0x4] sm:$0x1] }
  0x24   : >> { %2135 = vmatprep.subr.bf16.mxu0 %v2387_v4  ;;  %v506_v62 = vor.u32 %v505_v58, %v502_v57  ;;  %v2338_v6 = vld [vmem:[%s2788_s1 + $0x190] sm:$0xff]   ;;  %v2340_v8 = vld [vmem:[%s2788_s1 + $0x198] sm:$0xff]   ;;  %v2341_v10 = vld [vmem:[%s2788_s1 + $0xa0] sm:$0xff]  }
  0x25   : >> { %2036 = vmatmul.mubr.msk.bf16.vlgmr.msra.gmra.mrb[0].mxu1 %vm293_vm1, %v268_v17  ;;  %v1186_v0 = vor.u32 %v1185_v60, %v1182_v59  ;;  %v1881_v11 = vld [vmem:[%s2473_s16 + $0xc] sm:$0x1]  ;;  %v2342_v12 = vld [vmem:[%s2788_s1 + $0x1a0] sm:$0xff]   ;;  %v2358_v38 = vld [vmem:[%s2788_s1 + $0x1d8] sm:$0xff]  }
  0x26   : >> { %2040 = vmatpush3.bf16.msra.mxu1 %v2304_v16  ;;  %2132 = vmatmul.mubr.msk.bf16.vlgmr.msra.gmra.mrb[0].mxu0 %vm293_vm1, %v1821_v18  ;;  %v2349_v13 = vld [vmem:[%s2473_s16 + $0x4] ss:$0 sps:$4 sm:$0x33]   ;;  %v2343_v14 = vld [vmem:[%s2788_s1 + $0xa8] sm:$0xff]   ;;  %v2345_v18 = vld [vmem:[%s2788_s1 + $0xb0] sm:$0xff]  }
  0x27   : >> { %2136 = vmatpush3.bf16.msra.mxu0 %v2305_v19  ;;  %2041 = vmatprep.subr.bf16.mxu1 %v2387_v4  ;;  %v2351_v15 = vld [vmem:[%s2473_s16 + $0xc] ss:$0 sps:$4 sm:$0x33]   ;;  %v672_v17 = vshll.u32 %v2349_v13, 16  ;;  %v2350_v28 = vld [vmem:[%s2788_s1 + $0xc0] sm:$0xff]   ;;  %v2366_v52 = vld [vmem:[%s2788_s1 + $0x1f0] sm:$0xff]  }
  0x28   : >> { %2137 = vmatprep.subr.bf16.mxu0 %v2387_v4  ;;  %2047 = vmatprep.mubr.msk.bf16.mxu1 %vm2388_vm0, %v2387_v4  ;;  %v2344_v16 = vld [vmem:[%s2788_s1 + $0x1a8] sm:$0xff]   ;;  %v1352_v19 = vshll.u32 %v2351_v15, 16  ;;  %v1350_v24 = vshrl.u32 %v2351_v15, 16  ;;  %v2368_v58 = vld [vmem:[%s2788_s1 + $0x1f8] sm:$0xff]  }
  0x29   : >> { %2143 = vmatprep.mubr.msk.bf16.mxu0 %vm2388_vm0, %v2387_v4  ;;  %v674_v22 = vrot.slane %v672_v17, 1  ;;  %v2370_v45 = vld [vmem:[%s2473_s16 + $0xc] ss:$0 sps:$4 sm:$0x66]  }
  0x2a   : >> { %2042 = vmatpush3.bf16.msra.mxu1 %v2306_v20  ;;  %v2346_v20 = vld [vmem:[%s2788_s1 + $0x1b0] sm:$0xff]   ;;  %v1520_v50 = vshrl.u32 %v2370_v45, 16  ;;  %v1523_v51 = vshll.u32 %v2370_v45, 16 }
  0x2b   : >> { %2138 = vmatpush3.bf16.msra.mxu0 %v2307_v21  ;;  %2043 = vmatprep.subr.bf16.mxu1 %v2387_v4  ;;  %v670_v21 = vshrl.u32 %v2349_v13, 16 }
  0x2c   : >> { %2139 = vmatprep.subr.bf16.mxu0 %v2387_v4  ;;  %v1525_v57 = vrot.slane %v1523_v51, 2 }
  0x2d   : >> { %v675_v27 = vor.u32 %v674_v22, %v670_v21 }
  0x2e   : >> { %2044 = vmatpush3.bf16.msra.mxu1 %v2308_v23  ;;  %v2347_v23 = vld [vmem:[%s2788_s1 + $0xb8] sm:$0xff]  }
  0x2f   : >> { %2140 = vmatpush3.bf16.msra.mxu0 %v2309_v25  ;;  %2045 = vmatprep.subr.bf16.mxu1 %v2387_v4  ;;  %v1354_v25 = vrot.slane %v1352_v19, 1 }
  0x30   : >> { %2141 = vmatprep.subr.bf16.mxu0 %v2387_v4 }
  0x32   : >> { %2046 = vmatpush3.bf16.msra.mxu1 %v2310_v26  ;;  %v2348_v26 = vld [vmem:[%s2788_s1 + $0x1b8] sm:$0xff]  }
  0x33   : >> { %2142 = vmatpush3.bf16.msra.mxu0 %v2311_v29  ;;  %2051 = vmatprep.subr.bf16.mxu1 %v2387_v4  ;;  %v1355_v29 = vor.u32 %v1354_v25, %v1350_v24 }
  0x34   : >> { %2147 = vmatprep.subr.bf16.mxu0 %v2387_v4 }
  0x35   : >> { %2048 = vmatmul.mubr.msk.bf16.vlgmr.msra.gmra.mrb[0].mxu1 %vm293_vm1, %v240_v30  ;;  %v2352_v30 = vld [vmem:[%s2788_s1 + $0x1c0] sm:$0xff]  }
  0x36   : >> { %2052 = vmatpush3.bf16.msra.mxu1 %v2312_v31  ;;  %2144 = vmatmul.mubr.msk.bf16.vlgmr.msra.gmra.mrb[0].mxu0 %vm293_vm1, %v1015_v32  ;;  %v2353_v31 = vld [vmem:[%s2788_s1 + $0xc8] sm:$0xff]  }
  0x37   : >> { %2148 = vmatpush3.bf16.msra.mxu0 %v2314_v33  ;;  %2053 = vmatprep.subr.bf16.mxu1 %v2387_v4  ;;  %v2354_v32 = vld [vmem:[%s2788_s1 + $0x1c8] sm:$0xff]   ;;  %v2355_v33 = vld [vmem:[%s2788_s1 + $0xd0] sm:$0xff]  }
  0x38   : >> { %2149 = vmatprep.subr.bf16.mxu0 %v2387_v4  ;;  %2059 = vmatprep.mubr.msk.bf16.mxu1 %vm2388_vm0, %v2387_v4 }
  0x39   : >> { %2155 = vmatprep.mubr.msk.bf16.mxu0 %vm2388_vm0, %v2387_v4 }
  0x3a   : >> { %2054 = vmatpush3.bf16.msra.mxu1 %v2315_v34  ;;  %v2356_v34 = vld [vmem:[%s2788_s1 + $0x1d0] sm:$0xff]  }
  0x3b   : >> { %2150 = vmatpush3.bf16.msra.mxu0 %v2316_v35  ;;  %2055 = vmatprep.subr.bf16.mxu1 %v2387_v4  ;;  %v2359_v35 = vld [vmem:[%s2473_s16 + $0x4] ss:$0 sps:$4 sm:$0x22]  }
  0x3c   : >> { %2151 = vmatprep.subr.bf16.mxu0 %v2387_v4 }
  0x3e   : >> { %2056 = vmatpush3.bf16.msra.mxu1 %v2317_v36  ;;  %v2357_v36 = vld [vmem:[%s2788_s1 + $0xd8] sm:$0xff]  }
  0x3f   : >> { %2152 = vmatpush3.bf16.msra.mxu0 %v2318_v37  ;;  %2057 = vmatprep.subr.bf16.mxu1 %v2387_v4  ;;  %v2361_v37 = vld [vmem:[%s2473_s16 + $0xc] ss:$0 sps:$4 sm:$0x22]  }
  0x40   : >> { %2153 = vmatprep.subr.bf16.mxu0 %v2387_v4  ;;  %v1437_v41 = vrot.slane %v2361_v37, 1 }
  0x42   : >> { %2058 = vmatpush3.bf16.msra.mxu1 %v2319_v39  ;;  %v757_v39 = vrot.slane %v2359_v35, 1 }
  0x43   : >> { %2154 = vmatpush3.bf16.msra.mxu0 %v2320_v40  ;;  %2063 = vmatprep.subr.bf16.mxu1 %v2387_v4  ;;  %v2360_v40 = vld [vmem:[%s2788_s1 + $0xe0] sm:$0xff]  }
  0x44   : >> { %2159 = vmatprep.subr.bf16.mxu0 %v2387_v4 }
  0x45   : >> { %2060 = vmatmul.mubr.msk.bf16.vlgmr.msra.gmra.mrb[0].mxu1 %vm293_vm1, %v417_v42  ;;  %v2362_v42 = vld [vmem:[%s2788_s1 + $0x1e0] sm:$0xff]  }
  0x46   : >> { %2064 = vmatpush3.bf16.msra.mxu1 %v2322_v43  ;;  %2156 = vmatmul.mubr.msk.bf16.vlgmr.msra.gmra.mrb[0].mxu0 %vm293_vm1, %v1097_v44  ;;  %v2369_v43 = vld [vmem:[%s2473_s16 + $0x4] ss:$0 sps:$4 sm:$0x66]   ;;  %v2363_v44 = vld [vmem:[%s2788_s1 + $0xe8] sm:$0xff]  }
  0x47   : >> { %2160 = vmatpush3.bf16.msra.mxu0 %v2324_v46  ;;  %2065 = vmatprep.subr.bf16.mxu1 %v2387_v4  ;;  %v2364_v46 = vld [vmem:[%s2788_s1 + $0x1e8] sm:$0xff]   ;;  %v840_v47 = vshrl.u32 %v2369_v43, 16 }
  0x48   : >> { %2161 = vmatprep.subr.bf16.mxu0 %v2387_v4  ;;  %2071 = vmatprep.mubr.msk.bf16.mxu1 %vm2388_vm0, %v2387_v4 }
  0x49   : >> { %2167 = vmatprep.mubr.msk.bf16.mxu0 %vm2388_vm0, %v2387_v4  ;;  %v842_v53 = vrot.slane %v840_v47, 1 }
  0x4a   : >> { %2066 = vmatpush3.bf16.msra.mxu1 %v2325_v48  ;;  %v843_v48 = vshll.u32 %v2369_v43, 16 }
  0x4b   : >> { %2162 = vmatpush3.bf16.msra.mxu0 %v2326_v49  ;;  %2067 = vmatprep.subr.bf16.mxu1 %v2387_v4  ;;  %v2365_v49 = vld [vmem:[%s2788_s1 + $0xf0] sm:$0xff]  }
  0x4c   : >> { %2163 = vmatprep.subr.bf16.mxu0 %v2387_v4 }
  0x4e   : >> { %2068 = vmatpush3.bf16.msra.mxu1 %v2327_v54  ;;  %v845_v54 = vrot.slane %v843_v48, 2 }
  0x4f   : >> { %2164 = vmatpush3.bf16.msra.mxu0 %v2328_v55  ;;  %2069 = vmatprep.subr.bf16.mxu1 %v2387_v4  ;;  %v2367_v55 = vld [vmem:[%s2788_s1 + $0xf8] sm:$0xff]  }
  0x50   : >> { %2165 = vmatprep.subr.bf16.mxu0 %v2387_v4  ;;  %v846_v59 = vor.u32 %v845_v54, %v842_v53 }
  0x52   : >> { %2070 = vmatpush3.bf16.msra.mxu1 %v2329_v56  ;;  %v1522_v56 = vrot.slane %v1520_v50, 1 }
  0x53   : >> { %2166 = vmatpush3.bf16.msra.mxu0 %v2330_v61  ;;  %2075 = vmatprep.subr.bf16.mxu1 %v2387_v4 }
  0x54   : >> { %2171 = vmatprep.subr.bf16.mxu0 %v2387_v4  ;;  %v1526_v60 = vor.u32 %v1525_v57, %v1522_v56 }
  0x55   : >> { %2072 = vmatmul.mubr.msk.bf16.vlgmr.msra.gmra.mrb[0].mxu1 %vm293_vm1, %v506_v62 }
  0x56   : >> { %2076 = vmatpush3.bf16.msra.mxu1 %v2332_v63  ;;  %2168 = vmatmul.mubr.msk.bf16.vlgmr.msra.gmra.mrb[0].mxu0 %vm293_vm1, %v1186_v0 }
  0x57   : >> { %2172 = vmatpush3.bf16.msra.mxu0 %v2334_v1  ;;  %2077 = vmatprep.subr.bf16.mxu1 %v2387_v4 }
  0x58   : >> { %2173 = vmatprep.subr.bf16.mxu0 %v2387_v4  ;;  %2083 = vmatprep.mubr.msk.bf16.mxu1 %vm2388_vm0, %v2387_v4 }
  0x59   : >> { %2179 = vmatprep.mubr.msk.bf16.mxu0 %vm2388_vm0, %v2387_v4 }
  0x5a   : >> { %2078 = vmatpush3.bf16.msra.mxu1 %v2335_v2 }
  0x5b   : >> { %2174 = vmatpush3.bf16.msra.mxu0 %v2336_v3  ;;  %2079 = vmatprep.subr.bf16.mxu1 %v2387_v4 }
  0x5c   : >> { %2175 = vmatprep.subr.bf16.mxu0 %v2387_v4 }
  0x5e   : >> { %2080 = vmatpush3.bf16.msra.mxu1 %v2337_v5 }
  0x5f   : >> { %2176 = vmatpush3.bf16.msra.mxu0 %v2338_v6  ;;  %2081 = vmatprep.subr.bf16.mxu1 %v2387_v4 }
  0x60   : >> { %2177 = vmatprep.subr.bf16.mxu0 %v2387_v4 }
  0x62   : >> { %2082 = vmatpush3.bf16.msra.mxu1 %v2339_v7  ;;  %v1941_v7 = vld [vmem:[#allocation3] ss:$0 sm:$0xff] (%p234_p4) }
  0x63   : >> { %2178 = vmatpush3.bf16.msra.mxu0 %v2340_v8  ;;  %2087 = vmatprep.subr.bf16.mxu1 %v2387_v4  ;;  %v1942_v8 = vld [vmem:[#allocation4] ss:$0 sm:$0xff] (%p234_p4) }
  0x64   : >> { %2183 = vmatprep.subr.bf16.mxu0 %v2387_v4 }
  0x65   : >> { %2084 = vmatmul.mubr.msk.bf16.vlgmr.msra.gmra.mrb[0].mxu1 %vm293_vm1, %v1761_v9 }
  0x66   : >> { %2088 = vmatpush3.bf16.msra.mxu1 %v2341_v10  ;;  %2180 = vmatmul.mubr.msk.bf16.vlgmr.msra.gmra.mrb[0].mxu0 %vm293_vm1, %v1881_v11  ;;  %v1943_v11 = vld [vmem:[#allocation5] ss:$0 sm:$0xff] (%p234_p4) }
  0x67   : >> { %2184 = vmatpush3.bf16.msra.mxu0 %v2342_v12  ;;  %2089 = vmatprep.subr.bf16.mxu1 %v2387_v4 }
  0x68   : >> { %2185 = vmatprep.subr.bf16.mxu0 %v2387_v4  ;;  %2095 = vmatprep.mubr.msk.bf16.mxu1 %vm2388_vm0, %v2387_v4 }
  0x69   : >> { %2191 = vmatprep.mubr.msk.bf16.mxu0 %vm2388_vm0, %v2387_v4 }
  0x6a   : >> { %2090 = vmatpush3.bf16.msra.mxu1 %v2343_v14 }
  0x6b   : >> { %2186 = vmatpush3.bf16.msra.mxu0 %v2344_v16  ;;  %2091 = vmatprep.subr.bf16.mxu1 %v2387_v4 }
  0x6c   : >> { %2187 = vmatprep.subr.bf16.mxu0 %v2387_v4 }
  0x6e   : >> { %2092 = vmatpush3.bf16.msra.mxu1 %v2345_v18 }
  0x6f   : >> { %2188 = vmatpush3.bf16.msra.mxu0 %v2346_v20  ;;  %2093 = vmatprep.subr.bf16.mxu1 %v2387_v4 }
  0x70   : >> { %2189 = vmatprep.subr.bf16.mxu0 %v2387_v4 }
  0x72   : >> { %2094 = vmatpush3.bf16.msra.mxu1 %v2347_v23 }
  0x73   : >> { %2190 = vmatpush3.bf16.msra.mxu0 %v2348_v26  ;;  %2099 = vmatprep.subr.bf16.mxu1 %v2387_v4 }
  0x74   : >> { %2195 = vmatprep.subr.bf16.mxu0 %v2387_v4 }
  0x75   : >> { %2096 = vmatmul.mubr.msk.bf16.vlgmr.msra.gmra.mrb[0].mxu1 %vm293_vm1, %v675_v27 }
  0x76   : >> { %2100 = vmatpush3.bf16.msra.mxu1 %v2350_v28  ;;  %2192 = vmatmul.mubr.msk.bf16.vlgmr.msra.gmra.mrb[0].mxu0 %vm293_vm1, %v1355_v29 }
  0x77   : >> { %2196 = vmatpush3.bf16.msra.mxu0 %v2352_v30  ;;  %2101 = vmatprep.subr.bf16.mxu1 %v2387_v4 }
  0x78   : >> { %2197 = vmatprep.subr.bf16.mxu0 %v2387_v4  ;;  %2107 = vmatprep.mubr.msk.bf16.mxu1 %vm2388_vm0, %v2387_v4 }
  0x79   : >> { %2203 = vmatprep.mubr.msk.bf16.mxu0 %vm2388_vm0, %v2387_v4 }
  0x7a   : >> { %2102 = vmatpush3.bf16.msra.mxu1 %v2353_v31 }
  0x7b   : >> { %2198 = vmatpush3.bf16.msra.mxu0 %v2354_v32  ;;  %2103 = vmatprep.subr.bf16.mxu1 %v2387_v4 }
  0x7c   : >> { %2199 = vmatprep.subr.bf16.mxu0 %v2387_v4 }
  0x7e   : >> { %2104 = vmatpush3.bf16.msra.mxu1 %v2355_v33 }
  0x7f   : >> { %2200 = vmatpush3.bf16.msra.mxu0 %v2356_v34  ;;  %2105 = vmatprep.subr.bf16.mxu1 %v2387_v4 }
  0x80   : >> { %2201 = vmatprep.subr.bf16.mxu0 %v2387_v4 }
  0x82   : >> { %2106 = vmatpush3.bf16.msra.mxu1 %v2357_v36 }
  0x83   : >> { %2202 = vmatpush3.bf16.msra.mxu0 %v2358_v38  ;;  %2111 = vmatprep.subr.bf16.mxu1 %v2387_v4 }
  0x84   : >> { %2207 = vmatprep.subr.bf16.mxu0 %v2387_v4 }
  0x85   : >> { %2108 = vmatmul.mubr.msk.bf16.vlgmr.msra.gmra.mrb[0].mxu1 %vm293_vm1, %v757_v39 }
  0x86   : >> { %2112 = vmatpush3.bf16.msra.mxu1 %v2360_v40  ;;  %2204 = vmatmul.mubr.msk.bf16.vlgmr.msra.gmra.mrb[0].mxu0 %vm293_vm1, %v1437_v41 }
  0x87   : >> { %2208 = vmatpush3.bf16.msra.mxu0 %v2362_v42  ;;  %2113 = vmatprep.subr.bf16.mxu1 %v2387_v4 }
  0x88   : >> { %2209 = vmatprep.subr.bf16.mxu0 %v2387_v4  ;;  %2119 = vmatprep.mubr.msk.bf16.mxu1 %vm2388_vm0, %v2387_v4 }
  0x89   : >> { %2215 = vmatprep.mubr.msk.bf16.mxu0 %vm2388_vm0, %v2387_v4 }
  0x8a   : >> { %2114 = vmatpush3.bf16.msra.mxu1 %v2363_v44 }
  0x8b   : >> { %2210 = vmatpush3.bf16.msra.mxu0 %v2364_v46  ;;  %2115 = vmatprep.subr.bf16.mxu1 %v2387_v4 }
  0x8c   : >> { %2211 = vmatprep.subr.bf16.mxu0 %v2387_v4 }
  0x8e   : >> { %2116 = vmatpush3.bf16.msra.mxu1 %v2365_v49 }
  0x8f   : >> { %2212 = vmatpush3.bf16.msra.mxu0 %v2366_v52  ;;  %2117 = vmatprep.subr.bf16.mxu1 %v2387_v4 }
  0x90   : >> { %2213 = vmatprep.subr.bf16.mxu0 %v2387_v4 }
  0x92   : >> { %2118 = vmatpush3.bf16.msra.mxu1 %v2367_v55 }
  0x93   : >> { %2214 = vmatpush3.bf16.msra.mxu0 %v2368_v58 }
  0x95   : >> { %2120 = vmatmul.mubr.msk.bf16.vlgmr.msra.gmra.mrb[0].mxu1 %vm293_vm1, %v846_v59 }
  0x96   : >> { %2216 = vmatmul.mubr.msk.bf16.vlgmr.msra.gmra.mrb[0].mxu0 %vm293_vm1, %v1526_v60 }
 0x166   : > { %236 = sbr.rel (!%p234_p4) target bundleno = 20 (0x14), region = 97 }
 0x168   : >> { %v908_v61 = vpop.f32.mrb[0].mxu1 }
 0x169   : >> { %v1588_v62 = vpop.f32.mrb[0].mxu0  ;;  %v2121_v63 = vpop.f32.mrb[1].mxu1 }
 0x16a   : >> { %v2219_v0 = vadd.f32 %v1588_v62, %v908_v61  ;;  %v2217_v1 = vpop.f32.mrb[1].mxu0  ;;  %v911_v2 = vpop.f32.mrb[2].mxu1 }
 0x16b   : >> { %v1591_v3 = vpop.f32.mrb[2].mxu0  ;;  %v2122_v5 = vpop.f32.mrb[3].mxu1 }
 0x16c   : >> { %1598 = vst.msk [vmem:[%s1596_s22] sm:$0x3] %vm1597_vm2, %v2219_v0  ;;  %v2218_v4 = vpop.f32.mrb[3].mxu0 }
 0x173   : > { %v1599_v6 = vld [vmem:[#allocation2] sm:$0x3]  ;;  %v1600_v10 = vld [vmem:[#allocation2 + $0x2] sm:$0x3] }
 0x174   : > { %v1608_v9 = vadd.f32 %v1941_v7, %v1599_v6  ;;  %v1609_v12 = vadd.f32 %v1941_v7, %v1600_v10 }
 0x176   : > { %v1617_v13 = vmul.f32 %v1942_v8, %v1608_v9  ;;  %v1618_v14 = vmul.f32 %v1942_v8, %v1609_v12 }
 0x178   : > { %v1626_v15 = vadd.f32 %v1943_v11, %v1617_v13  ;;  %v1627_v16 = vadd.f32 %v1943_v11, %v1618_v14 }
 0x17a   : > { %1629 = vst.msk [vmem:[%s2439_s27] sm:$0x3] %vm1597_vm2, %v1626_v15  ;;  %1630 = vst.msk [vmem:[%s2439_s27 + $0x2] sm:$0x3] %vm1597_vm2, %v1627_v16 }
 0x17b PF: > { %s21_s24 = sadd.s32 1, %s2381_s24  }
 0x17c   : > { %p18_p5 = scmp.ge.s32.totalorder %s21_s24, 4  }
 0x17e   :  { %20 = sbr.rel (!%p18_p5) target bundleno = 4 (0x4), region = 108 }

</bundles_post_ra>
